<compile_context>
chip_gen: v6e
topology: v6e:2x2x1
jax: 0.10.0
libtpu: 0.0.40
codegen_flags: <defaults>
</compile_context>

<pallas_src>
import functools

import jax
import jax.numpy as jnp
from jax.experimental import pallas as pl
from jax.experimental.pallas import tpu as pltpu


# ------------------------------------------------------------------ in-kernel helpers

def _bias_relu_maxpool2x2(acc, bias, nb, h, w, cout):
    """acc: (nb*h*w, cout) f32 register value -> (nb, h//2, w//2, cout) f32."""
    ho, wo = h // 2, w // 2
    y = jnp.maximum(acc + bias, 0.0)
    y = y.reshape(nb, ho, 2, w, cout)
    y = jnp.maximum(y[:, :, 0], y[:, :, 1])            # pool rows: 2-way VPU max
    y = y.reshape(nb, ho, wo, 2, cout)
    y = jnp.maximum(y[:, :, :, 0], y[:, :, :, 1])      # pool cols: 2-way VPU max
    return y


def _store_with_halo(o_ref, y, ho, wo):
    """Write the pooled activation into a zero-halo padded output block (next layer's input)."""
    o_ref[...] = jnp.zeros_like(o_ref)
    o_ref[:, 1:ho + 1, 1:wo + 1, :] = y.astype(o_ref.dtype)


# ------------------------------------------------------------------ Pallas kernels

def _first_conv_kernel(p_ref, w_ref, b_ref, o_ref, *, H, W):
    """Layer 1 (Cin=3): single K=27 matmul over pre-packed patches, then bias+ReLU+2x2 pool.

    p_ref: (Nb, H*W, 27) bf16 ; w_ref: (27, Cout) bf16 ; b_ref: (1, Cout) f32
    o_ref: (Nb, H//2+2, W//2+2, Cout) bf16 (zero halo built in)
    """
    nb = p_ref.shape[0]
    cout = w_ref.shape[-1]
    a = p_ref[...].reshape(nb * H * W, p_ref.shape[-1])
    acc = jnp.dot(a, w_ref[...], preferred_element_type=jnp.float32)   # register accumulator
    y = _bias_relu_maxpool2x2(acc, b_ref[...], nb, H, W, cout)
    _store_with_halo(o_ref, y, H // 2, W // 2)


def _conv_kernel(x_ref, w_ref, b_ref, o_ref, *, H, W):
    """3x3 'same' conv + bias + ReLU + 2x2/2 max-pool; dw taps folded into K (3 matmuls).

    x_ref: (Nb, H+2, W+2, Cin) bf16 halo-padded ; w_ref: (3, 3*Cin, Cout) bf16
    b_ref: (1, Cout) f32 ; o_ref: (Nb, H//2+2, W//2+2, Cout) bf16 (zero halo built in)
    """
    nb, _, _, cin = x_ref.shape
    cout = w_ref.shape[-1]
    acc = None
    for dh in range(3):
        # Lane-aligned concat of the 3 dw windows -> operand (nb*H*W, 3*cin); K = 3*cin.
        a = jnp.concatenate([x_ref[:, dh:dh + H, dw:dw + W, :] for dw in range(3)], axis=-1)
        a = a.reshape(nb * H * W, 3 * cin)
        part = jnp.dot(a, w_ref[dh], preferred_element_type=jnp.float32)
        acc = part if acc is None else acc + part      # register accumulator, no VMEM scratch
    y = _bias_relu_maxpool2x2(acc, b_ref[...], nb, H, W, cout)
    _store_with_halo(o_ref, y, H // 2, W // 2)


def _final_conv_fc_kernel(x_ref, w_ref, b_ref, fcw_ref, fcb_ref, o_ref, *, H, W):
    """Last conv stage + AdaptiveAvgPool2d((1,1)) + flatten + Linear, fully fused.

    x_ref: (Nb, H+2, W+2, Cin) bf16 ; w_ref: (3, 3*Cin, Cout) bf16 ; b_ref: (1, Cout) f32
    fcw_ref: (Cout, NclsPad) bf16 ; fcb_ref: (1, NclsPad) f32 ; o_ref: (Nb, NclsPad) f32
    """
    nb, _, _, cin = x_ref.shape
    cout = w_ref.shape[-1]
    acc = None
    for dh in range(3):
        a = jnp.concatenate([x_ref[:, dh:dh + H, dw:dw + W, :] for dw in range(3)], axis=-1)
        a = a.reshape(nb * H * W, 3 * cin)
        part = jnp.dot(a, w_ref[dh], preferred_element_type=jnp.float32)
        acc = part if acc is None else acc + part
    y = _bias_relu_maxpool2x2(acc, b_ref[...], nb, H, W, cout)     # (nb, Ho, Wo, cout) f32
    ho, wo = H // 2, W // 2
    feat = y.reshape(nb, ho * wo, cout).sum(axis=1) * (1.0 / (ho * wo))   # avgpool + flatten
    logits = jnp.dot(feat.astype(jnp.bfloat16), fcw_ref[...],
                     preferred_element_type=jnp.float32) + fcb_ref[...]
    o_ref[...] = logits


# ------------------------------------------------------------------ layer wrappers

def _pick_batch_block(n, hw, m_target=128):
    """Largest power-of-two divisor of n such that nb*hw reaches ~m_target (MXU M-dim)."""
    nb = 1
    while nb < n and nb * hw < m_target and n % (nb * 2) == 0:
        nb *= 2
    return nb


def first_conv_relu_maxpool(x_nhwc, w, b):
    """conv3x3('same', Cin=3) + bias + ReLU + MaxPool2d(2,2); returns zero-halo padded bf16."""
    n, h, wd, cin = x_nhwc.shape
    cout = w.shape[-1]
    # TODO(synk): PyTorch MaxPool2d(2,2) silently floors odd spatial dims; even dims assumed.
    assert h % 2 == 0 and wd % 2 == 0
    ho, wo = h // 2, wd // 2
    xp = jnp.pad(x_nhwc, ((0, 0), (1, 1), (1, 1), (0, 0)))
    # Pack all 9 taps of the 3-channel input into K=27 (tiny tensor; one MXU matmul per block).
    patches = jnp.concatenate(
        [xp[:, dh:dh + h, dw:dw + wd, :] for dh in range(3) for dw in range(3)], axis=-1)
    patches = patches.reshape(n, h * wd, 9 * cin)
    wk = w.reshape(9 * cin, cout).astype(jnp.bfloat16)
    b2 = b.reshape(1, cout).astype(jnp.float32)
    nb = _pick_batch_block(n, h * wd)
    kernel = functools.partial(_first_conv_kernel, H=h, W=wd)
    return pl.pallas_call(
        kernel,
        out_shape=jax.ShapeDtypeStruct((n, ho + 2, wo + 2, cout), jnp.bfloat16),
        grid=(n // nb,),
        in_specs=[
            pl.BlockSpec((nb, h * wd, 9 * cin), lambda i: (i, 0, 0)),
            pl.BlockSpec((9 * cin, cout), lambda i: (0, 0)),       # weights resident
            pl.BlockSpec((1, cout), lambda i: (0, 0)),             # bias resident
        ],
        out_specs=pl.BlockSpec((nb, ho + 2, wo + 2, cout), lambda i: (i, 0, 0, 0)),
        compiler_params=pltpu.CompilerParams(dimension_semantics=("parallel",)),
    )(patches, wk, b2)


def conv_relu_maxpool(xpad, w, b):
    """conv3x3('same') + bias + ReLU + MaxPool2d(2,2) on a zero-halo padded bf16 input."""
    n, hp, wp, cin = xpad.shape
    h, wd = hp - 2, wp - 2
    cout = w.shape[-1]
    assert h % 2 == 0 and wd % 2 == 0
    ho, wo = h // 2, wd // 2
    wk = w.reshape(3, 3 * cin, cout).astype(jnp.bfloat16)          # dw taps folded into K
    b2 = b.reshape(1, cout).astype(jnp.float32)
    nb = _pick_batch_block(n, h * wd)
    kernel = functools.partial(_conv_kernel, H=h, W=wd)
    # TODO(synk): for >=224^2 images on v7x (64 MiB VMEM) add a spatial row-block (+2-row halo)
    # grid axis and single-buffer the resident weights; unnecessary at these test sizes.
    return pl.pallas_call(
        kernel,
        out_shape=jax.ShapeDtypeStruct((n, ho + 2, wo + 2, cout), jnp.bfloat16),
        grid=(n // nb,),
        in_specs=[
            pl.BlockSpec((nb, hp, wp, cin), lambda i: (i, 0, 0, 0)),
            pl.BlockSpec((3, 3 * cin, cout), lambda i: (0, 0, 0)),  # weights resident
            pl.BlockSpec((1, cout), lambda i: (0, 0)),              # bias resident
        ],
        out_specs=pl.BlockSpec((nb, ho + 2, wo + 2, cout), lambda i: (i, 0, 0, 0)),
        compiler_params=pltpu.CompilerParams(dimension_semantics=("parallel",)),
    )(xpad, wk, b2)


def final_conv_avgpool_fc(xpad, w, b, fc_w, fc_b):
    """Last conv stage + AdaptiveAvgPool2d((1,1)) + flatten + Linear(512, num_classes), fused."""
    n, hp, wp, cin = xpad.shape
    h, wd = hp - 2, wp - 2
    cout = w.shape[-1]
    ncls = fc_w.shape[-1]
    ncls_pad = ((ncls + 127) // 128) * 128                         # lane-dense logits store
    wk = w.reshape(3, 3 * cin, cout).astype(jnp.bfloat16)
    b2 = b.reshape(1, cout).astype(jnp.float32)
    fcw = jnp.zeros((cout, ncls_pad), jnp.bfloat16).at[:, :ncls].set(fc_w.astype(jnp.bfloat16))
    fcb = jnp.zeros((1, ncls_pad), jnp.float32).at[:, :ncls].set(fc_b.reshape(1, ncls))
    nb = _pick_batch_block(n, h * wd)
    kernel = functools.partial(_final_conv_fc_kernel, H=h, W=wd)
    logits = pl.pallas_call(
        kernel,
        out_shape=jax.ShapeDtypeStruct((n, ncls_pad), jnp.float32),
        grid=(n // nb,),
        in_specs=[
            pl.BlockSpec((nb, hp, wp, cin), lambda i: (i, 0, 0, 0)),
            pl.BlockSpec((3, 3 * cin, cout), lambda i: (0, 0, 0)),
            pl.BlockSpec((1, cout), lambda i: (0, 0)),
            pl.BlockSpec((cout, ncls_pad), lambda i: (0, 0)),       # FC weight resident
            pl.BlockSpec((1, ncls_pad), lambda i: (0, 0)),
        ],
        out_specs=pl.BlockSpec((nb, ncls_pad), lambda i: (i, 0)),
        compiler_params=pltpu.CompilerParams(dimension_semantics=("parallel",)),
    )(xpad, wk, b2, fcw, fcb)
    return logits[:, :ncls]


# ------------------------------------------------------------------ model

def init_params(key, num_classes=1000):
    """Deterministic synthetic init matching the PyTorch init scheme.

    `features` is an external nn.Module argument of AMMVGG; we instantiate a representative
    VGG-style (conv3x3 + ReLU + MaxPool2d(2,2)) x 3 stack with lane-dense channel widths ending
    at 512 channels, as required by the classifier Linear(512, num_classes).
    """
    conv_cfg = [(3, 128), (128, 256), (256, 512)]
    keys = jax.random.split(key, len(conv_cfg) + 1)
    convs = []
    for k, (cin, cout) in zip(keys[:-1], conv_cfg):
        fan_out = cout * 3 * 3
        std = (2.0 / fan_out) ** 0.5                 # kaiming_normal_(mode='fan_out', relu)
        w = jax.random.normal(k, (3, 3, cin, cout), jnp.float32) * std
        b = jnp.zeros((cout,), jnp.float32)          # constant_(bias, 0)
        convs.append((w, b))
    fc_w = jax.random.normal(keys[-1], (512, num_classes), jnp.float32) * 0.01  # normal(0, 0.01)
    fc_b = jnp.zeros((num_classes,), jnp.float32)
    return convs, (fc_w, fc_b)


@jax.jit
def amm_vgg_forward(x_nchw, convs, fc):
    x = jnp.transpose(x_nchw, (0, 2, 3, 1)).astype(jnp.bfloat16)    # NCHW -> NHWC, bf16
    (w0, b0), *mid, (wl, bl) = convs
    x = first_conv_relu_maxpool(x, w0, b0)          # zero-halo padded bf16 activation
    for w, b in mid:
        x = conv_relu_maxpool(x, w, b)              # consumes / produces halo-padded activations
    fc_w, fc_b = fc
    return final_conv_avgpool_fc(x, wl, bl, fc_w, fc_b)             # (N, num_classes) f32


def reference_forward(x_nchw, convs, fc):
    """Pure-JAX reference with the same bf16-operand / f32-accumulate numerics as the kernels."""
    x = jnp.transpose(x_nchw, (0, 2, 3, 1)).astype(jnp.bfloat16)
    last = len(convs) - 1
    for li, (w, b) in enumerate(convs):
        y = jax.lax.conv_general_dilated(
            x, w.astype(jnp.bfloat16), (1, 1), "SAME",
            dimension_numbers=("NHWC", "HWIO", "NHWC"),
            preferred_element_type=jnp.float32)
        y = jnp.maximum(y + b.reshape(1, 1, 1, -1), 0.0)
        n, h, wd, c = y.shape
        y = y.reshape(n, h // 2, 2, wd // 2, 2, c).max(axis=(2, 4))
        x = y if li == last else y.astype(jnp.bfloat16)   # last layer stays f32 (fused epilogue)
    fc_w, fc_b = fc
    feat = x.mean(axis=(1, 2)).astype(jnp.bfloat16)
    return jnp.dot(feat, fc_w.astype(jnp.bfloat16),
                   preferred_element_type=jnp.float32) + fc_b


# ------------------------------------------------------------------ main

if __name__ == "__main__":
    key = jax.random.PRNGKey(0)
    pkey, xkey = jax.random.split(key)

    num_classes = 1000
    convs, fc = init_params(pkey, num_classes=num_classes)

    # Small ImageNet-like NCHW input, as the PyTorch module expects.
    x = jax.random.normal(xkey, (2, 3, 16, 16), jnp.float32)

    out = jax.block_until_ready(amm_vgg_forward(x, convs, fc))
    ref = jax.block_until_ready(reference_forward(x, convs, fc))

    assert out.shape == (2, num_classes), out.shape
    max_err = float(jnp.max(jnp.abs(out - ref)))
    assert bool(jnp.allclose(out, ref, rtol=2e-2, atol=2e-3)), max_err

    print("KERNEL_OK")
</pallas_src>

<mosaic_0001>
module attributes {stable_mosaic.version = 11 : i64} {
  func.func @_first_conv_kernel(%arg0: i32, %arg1: memref<1x256x27xbf16, #tpu.memory_space<vmem>>, %arg2: memref<27x128xbf16, #tpu.memory_space<vmem>>, %arg3: memref<1x128xf32, #tpu.memory_space<vmem>>, %arg4: memref<1x10x10x128xbf16, #tpu.memory_space<vmem>>) attributes {dimension_semantics = [#tpu.dimension_semantics<parallel>], iteration_bounds = array<i64: 2>, scalar_prefetch = 0 : i64, scratch_operands = 0 : i64, tpu.core_type = #tpu.core_type<tc>, window_params = [{transform_indices = @transform_0, window_bounds = array<i64: 1, 256, 27>}, {pipeline_mode = #tpu.pipeline_mode<synchronous>, transform_indices = @transform_1, window_bounds = array<i64: 27, 128>}, {pipeline_mode = #tpu.pipeline_mode<synchronous>, transform_indices = @transform_2, window_bounds = array<i64: 1, 128>}, {transform_indices = @transform_3, window_bounds = array<i64: 1, 10, 10, 128>}]} {
    %c0 = arith.constant 0 : index
    %c0_0 = arith.constant 0 : index
    %c0_1 = arith.constant 0 : index
    %0 = vector.load %arg1[%c0, %c0_0, %c0_1] : memref<1x256x27xbf16, #tpu.memory_space<vmem>>, vector<1x256x27xbf16>
    %1 = vector.shape_cast %0 : vector<1x256x27xbf16> to vector<256x27xbf16>
    %c0_2 = arith.constant 0 : index
    %c0_3 = arith.constant 0 : index
    %2 = vector.load %arg2[%c0_2, %c0_3] : memref<27x128xbf16, #tpu.memory_space<vmem>>, vector<27x128xbf16>
    %cst = arith.constant dense<0.000000e+00> : vector<256x128xf32>
    %3 = tpu.matmul %1, %2, %cst {dimension_numbers = #tpu.dot_dimension_numbers<[1], [0], [0], [1], [0, 0, 1, 1], [], []>} : vector<256x27xbf16>, vector<27x128xbf16>, vector<256x128xf32> -> vector<256x128xf32>
    %c0_4 = arith.constant 0 : index
    %c0_5 = arith.constant 0 : index
    %4 = vector.load %arg3[%c0_4, %c0_5] : memref<1x128xf32, #tpu.memory_space<vmem>>, vector<1x128xf32>
    %5 = vector.broadcast %4 : vector<1x128xf32> to vector<256x128xf32>
    %6 = arith.addf %3, %5 : vector<256x128xf32>
    %cst_6 = arith.constant 0.000000e+00 : f32
    %7 = vector.broadcast %cst_6 : f32 to vector<256x128xf32>
    %8 = arith.maximumf %6, %7 : vector<256x128xf32>
    %9 = vector.shape_cast %8 : vector<256x128xf32> to vector<1x8x2x16x128xf32>
    %10 = vector.extract_strided_slice %9 {offsets = [0, 0, 0, 0, 0], sizes = [1, 8, 1, 16, 128], strides = [1, 1, 1, 1, 1]} : vector<1x8x2x16x128xf32> to vector<1x8x1x16x128xf32>
    %11 = vector.shape_cast %10 : vector<1x8x1x16x128xf32> to vector<1x8x16x128xf32>
    %12 = vector.extract_strided_slice %9 {offsets = [0, 0, 1, 0, 0], sizes = [1, 8, 1, 16, 128], strides = [1, 1, 1, 1, 1]} : vector<1x8x2x16x128xf32> to vector<1x8x1x16x128xf32>
    %13 = vector.shape_cast %12 : vector<1x8x1x16x128xf32> to vector<1x8x16x128xf32>
    %14 = arith.maximumf %11, %13 : vector<1x8x16x128xf32>
    %15 = vector.shape_cast %14 : vector<1x8x16x128xf32> to vector<1x8x8x2x128xf32>
    %16 = vector.extract_strided_slice %15 {offsets = [0, 0, 0, 0, 0], sizes = [1, 8, 8, 1, 128], strides = [1, 1, 1, 1, 1]} : vector<1x8x8x2x128xf32> to vector<1x8x8x1x128xf32>
    %17 = vector.shape_cast %16 : vector<1x8x8x1x128xf32> to vector<1x8x8x128xf32>
    %18 = vector.extract_strided_slice %15 {offsets = [0, 0, 0, 1, 0], sizes = [1, 8, 8, 1, 128], strides = [1, 1, 1, 1, 1]} : vector<1x8x8x2x128xf32> to vector<1x8x8x1x128xf32>
    %19 = vector.shape_cast %18 : vector<1x8x8x1x128xf32> to vector<1x8x8x128xf32>
    %20 = arith.maximumf %17, %19 : vector<1x8x8x128xf32>
    %cst_7 = arith.constant 0.000000e+00 : bf16
    %21 = vector.broadcast %cst_7 : bf16 to vector<1x10x10x128xbf16>
    %c0_8 = arith.constant 0 : index
    %c0_9 = arith.constant 0 : index
    %c0_10 = arith.constant 0 : index
    %c0_11 = arith.constant 0 : index
    %22 = vector.load %arg4[%c0_8, %c0_9, %c0_10, %c0_11] : memref<1x10x10x128xbf16, #tpu.memory_space<vmem>>, vector<1x10x10x128xbf16>
    tpu.vector_store %arg4[%c0_8, %c0_9, %c0_10, %c0_11], %21 {strides = array<i32>} : memref<1x10x10x128xbf16, #tpu.memory_space<vmem>>, vector<1x10x10x128xbf16>,
    %23 = arith.truncf %20 : vector<1x8x8x128xf32> to vector<1x8x8x128xbf16>
    %c0_12 = arith.constant 0 : index
    %c1 = arith.constant 1 : index
    %c1_13 = arith.constant 1 : index
    %c0_14 = arith.constant 0 : index
    %24 = vector.load %arg4[%c0_12, %c1, %c1_13, %c0_14] : memref<1x10x10x128xbf16, #tpu.memory_space<vmem>>, vector<1x8x8x128xbf16>
    tpu.vector_store %arg4[%c0_12, %c1, %c1_13, %c0_14], %23 {strides = array<i32>} : memref<1x10x10x128xbf16, #tpu.memory_space<vmem>>, vector<1x8x8x128xbf16>,
    return
  }
  func.func @transform_0(%arg0: i32) -> (i32, i32, i32) {
    %c0_i32 = arith.constant 0 : i32
    %c0_i32_0 = arith.constant 0 : i32
    %c0_i32_1 = arith.constant 0 : i32
    return %arg0, %c0_i32, %c0_i32_0 : i32, i32, i32
  }
  func.func @transform_1(%arg0: i32) -> (i32, i32) {
    %c0_i32 = arith.constant 0 : i32
    %c0_i32_0 = arith.constant 0 : i32
    %c0_i32_1 = arith.constant 0 : i32
    return %c0_i32, %c0_i32_0 : i32, i32
  }
  func.func @transform_2(%arg0: i32) -> (i32, i32) {
    %c0_i32 = arith.constant 0 : i32
    %c0_i32_0 = arith.constant 0 : i32
    %c0_i32_1 = arith.constant 0 : i32
    return %c0_i32, %c0_i32_0 : i32, i32
  }
  func.func @transform_3(%arg0: i32) -> (i32, i32, i32, i32) {
    %c0_i32 = arith.constant 0 : i32
    %c0_i32_0 = arith.constant 0 : i32
    %c0_i32_1 = arith.constant 0 : i32
    %c0_i32_2 = arith.constant 0 : i32
    return %arg0, %c0_i32, %c0_i32_0, %c0_i32_1 : i32, i32, i32, i32
  }
}

module attributes {stable_mosaic.version = 11 : i64} {
  func.func @_conv_kernel(%arg0: i32, %arg1: memref<2x10x10x128xbf16, #tpu.memory_space<vmem>>, %arg2: memref<3x384x256xbf16, #tpu.memory_space<vmem>>, %arg3: memref<1x256xf32, #tpu.memory_space<vmem>>, %arg4: memref<2x6x6x256xbf16, #tpu.memory_space<vmem>>) attributes {dimension_semantics = [#tpu.dimension_semantics<parallel>], iteration_bounds = array<i64: 1>, scalar_prefetch = 0 : i64, scratch_operands = 0 : i64, tpu.core_type = #tpu.core_type<tc>, window_params = [{transform_indices = @transform_0, window_bounds = array<i64: 2, 10, 10, 128>}, {pipeline_mode = #tpu.pipeline_mode<synchronous>, transform_indices = @transform_1, window_bounds = array<i64: 3, 384, 256>}, {pipeline_mode = #tpu.pipeline_mode<synchronous>, transform_indices = @transform_2, window_bounds = array<i64: 1, 256>}, {transform_indices = @transform_3, window_bounds = array<i64: 2, 6, 6, 256>}]} {
    %c0 = arith.constant 0 : index
    %c0_0 = arith.constant 0 : index
    %c0_1 = arith.constant 0 : index
    %c0_2 = arith.constant 0 : index
    %0 = vector.load %arg1[%c0, %c0_0, %c0_1, %c0_2] : memref<2x10x10x128xbf16, #tpu.memory_space<vmem>>, vector<2x8x8x128xbf16>
    %c0_3 = arith.constant 0 : index
    %c0_4 = arith.constant 0 : index
    %c1 = arith.constant 1 : index
    %c0_5 = arith.constant 0 : index
    %1 = vector.load %arg1[%c0_3, %c0_4, %c1, %c0_5] : memref<2x10x10x128xbf16, #tpu.memory_space<vmem>>, vector<2x8x8x128xbf16>
    %c0_6 = arith.constant 0 : index
    %c0_7 = arith.constant 0 : index
    %c2 = arith.constant 2 : index
    %c0_8 = arith.constant 0 : index
    %2 = vector.load %arg1[%c0_6, %c0_7, %c2, %c0_8] : memref<2x10x10x128xbf16, #tpu.memory_space<vmem>>, vector<2x8x8x128xbf16>
    %3 = tpu.concatenate %0, %1, %2 in 3 : vector<2x8x8x128xbf16>, vector<2x8x8x128xbf16>, vector<2x8x8x128xbf16> -> vector<2x8x8x384xbf16>
    %4 = vector.shape_cast %3 : vector<2x8x8x384xbf16> to vector<128x384xbf16>
    %c0_9 = arith.constant 0 : index
    %c0_10 = arith.constant 0 : index
    %c0_11 = arith.constant 0 : index
    %5 = vector.load %arg2[%c0_9, %c0_10, %c0_11] : memref<3x384x256xbf16, #tpu.memory_space<vmem>>, vector<1x384x256xbf16>
    %6 = vector.shape_cast %5 : vector<1x384x256xbf16> to vector<384x256xbf16>
    %cst = arith.constant dense<0.000000e+00> : vector<128x256xf32>
    %7 = tpu.matmul %4, %6, %cst {dimension_numbers = #tpu.dot_dimension_numbers<[1], [0], [0], [1], [0, 0, 1, 1], [], []>} : vector<128x384xbf16>, vector<384x256xbf16>, vector<128x256xf32> -> vector<128x256xf32>
    %c0_12 = arith.constant 0 : index
    %c1_13 = arith.constant 1 : index
    %c0_14 = arith.constant 0 : index
    %c0_15 = arith.constant 0 : index
    %8 = vector.load %arg1[%c0_12, %c1_13, %c0_14, %c0_15] : memref<2x10x10x128xbf16, #tpu.memory_space<vmem>>, vector<2x8x8x128xbf16>
    %c0_16 = arith.constant 0 : index
    %c1_17 = arith.constant 1 : index
    %c1_18 = arith.constant 1 : index
    %c0_19 = arith.constant 0 : index
    %9 = vector.load %arg1[%c0_16, %c1_17, %c1_18, %c0_19] : memref<2x10x10x128xbf16, #tpu.memory_space<vmem>>, vector<2x8x8x128xbf16>
    %c0_20 = arith.constant 0 : index
    %c1_21 = arith.constant 1 : index
    %c2_22 = arith.constant 2 : index
    %c0_23 = arith.constant 0 : index
    %10 = vector.load %arg1[%c0_20, %c1_21, %c2_22, %c0_23] : memref<2x10x10x128xbf16, #tpu.memory_space<vmem>>, vector<2x8x8x128xbf16>
    %11 = tpu.concatenate %8, %9, %10 in 3 : vector<2x8x8x128xbf16>, vector<2x8x8x128xbf16>, vector<2x8x8x128xbf16> -> vector<2x8x8x384xbf16>
    %12 = vector.shape_cast %11 : vector<2x8x8x384xbf16> to vector<128x384xbf16>
    %c1_24 = arith.constant 1 : index
    %c0_25 = arith.constant 0 : index
    %c0_26 = arith.constant 0 : index
    %13 = vector.load %arg2[%c1_24, %c0_25, %c0_26] : memref<3x384x256xbf16, #tpu.memory_space<vmem>>, vector<1x384x256xbf16>
    %14 = vector.shape_cast %13 : vector<1x384x256xbf16> to vector<384x256xbf16>
    %cst_27 = arith.constant dense<0.000000e+00> : vector<128x256xf32>
    %15 = tpu.matmul %12, %14, %cst_27 {dimension_numbers = #tpu.dot_dimension_numbers<[1], [0], [0], [1], [0, 0, 1, 1], [], []>} : vector<128x384xbf16>, vector<384x256xbf16>, vector<128x256xf32> -> vector<128x256xf32>
    %16 = arith.addf %7, %15 : vector<128x256xf32>
    %c0_28 = arith.constant 0 : index
    %c2_29 = arith.constant 2 : index
    %c0_30 = arith.constant 0 : index
    %c0_31 = arith.constant 0 : index
    %17 = vector.load %arg1[%c0_28, %c2_29, %c0_30, %c0_31] : memref<2x10x10x128xbf16, #tpu.memory_space<vmem>>, vector<2x8x8x128xbf16>
    %c0_32 = arith.constant 0 : index
    %c2_33 = arith.constant 2 : index
    %c1_34 = arith.constant 1 : index
    %c0_35 = arith.constant 0 : index
    %18 = vector.load %arg1[%c0_32, %c2_33, %c1_34, %c0_35] : memref<2x10x10x128xbf16, #tpu.memory_space<vmem>>, vector<2x8x8x128xbf16>
    %c0_36 = arith.constant 0 : index
    %c2_37 = arith.constant 2 : index
    %c2_38 = arith.constant 2 : index
    %c0_39 = arith.constant 0 : index
    %19 = vector.load %arg1[%c0_36, %c2_37, %c2_38, %c0_39] : memref<2x10x10x128xbf16, #tpu.memory_space<vmem>>, vector<2x8x8x128xbf16>
    %20 = tpu.concatenate %17, %18, %19 in 3 : vector<2x8x8x128xbf16>, vector<2x8x8x128xbf16>, vector<2x8x8x128xbf16> -> vector<2x8x8x384xbf16>
    %21 = vector.shape_cast %20 : vector<2x8x8x384xbf16> to vector<128x384xbf16>
    %c2_40 = arith.constant 2 : index
    %c0_41 = arith.constant 0 : index
    %c0_42 = arith.constant 0 : index
    %22 = vector.load %arg2[%c2_40, %c0_41, %c0_42] : memref<3x384x256xbf16, #tpu.memory_space<vmem>>, vector<1x384x256xbf16>
    %23 = vector.shape_cast %22 : vector<1x384x256xbf16> to vector<384x256xbf16>
    %cst_43 = arith.constant dense<0.000000e+00> : vector<128x256xf32>
    %24 = tpu.matmul %21, %23, %cst_43 {dimension_numbers = #tpu.dot_dimension_numbers<[1], [0], [0], [1], [0, 0, 1, 1], [], []>} : vector<128x384xbf16>, vector<384x256xbf16>, vector<128x256xf32> -> vector<128x256xf32>
    %25 = arith.addf %16, %24 : vector<128x256xf32>
    %c0_44 = arith.constant 0 : index
    %c0_45 = arith.constant 0 : index
    %26 = vector.load %arg3[%c0_44, %c0_45] : memref<1x256xf32, #tpu.memory_space<vmem>>, vector<1x256xf32>
    %27 = vector.broadcast %26 : vector<1x256xf32> to vector<128x256xf32>
    %28 = arith.addf %25, %27 : vector<128x256xf32>
    %cst_46 = arith.constant 0.000000e+00 : f32
    %29 = vector.broadcast %cst_46 : f32 to vector<128x256xf32>
    %30 = arith.maximumf %28, %29 : vector<128x256xf32>
    %31 = vector.shape_cast %30 : vector<128x256xf32> to vector<2x4x2x8x256xf32>
    %32 = vector.extract_strided_slice %31 {offsets = [0, 0, 0, 0, 0], sizes = [2, 4, 1, 8, 256], strides = [1, 1, 1, 1, 1]} : vector<2x4x2x8x256xf32> to vector<2x4x1x8x256xf32>
    %33 = vector.shape_cast %32 : vector<2x4x1x8x256xf32> to vector<2x4x8x256xf32>
    %34 = vector.extract_strided_slice %31 {offsets = [0, 0, 1, 0, 0], sizes = [2, 4, 1, 8, 256], strides = [1, 1, 1, 1, 1]} : vector<2x4x2x8x256xf32> to vector<2x4x1x8x256xf32>
    %35 = vector.shape_cast %34 : vector<2x4x1x8x256xf32> to vector<2x4x8x256xf32>
    %36 = arith.maximumf %33, %35 : vector<2x4x8x256xf32>
    %37 = vector.shape_cast %36 : vector<2x4x8x256xf32> to vector<2x4x4x2x256xf32>
    %38 = vector.extract_strided_slice %37 {offsets = [0, 0, 0, 0, 0], sizes = [2, 4, 4, 1, 256], strides = [1, 1, 1, 1, 1]} : vector<2x4x4x2x256xf32> to vector<2x4x4x1x256xf32>
    %39 = vector.shape_cast %38 : vector<2x4x4x1x256xf32> to vector<2x4x4x256xf32>
    %40 = vector.extract_strided_slice %37 {offsets = [0, 0, 0, 1, 0], sizes = [2, 4, 4, 1, 256], strides = [1, 1, 1, 1, 1]} : vector<2x4x4x2x256xf32> to vector<2x4x4x1x256xf32>
    %41 = vector.shape_cast %40 : vector<2x4x4x1x256xf32> to vector<2x4x4x256xf32>
    %42 = arith.maximumf %39, %41 : vector<2x4x4x256xf32>
    %cst_47 = arith.constant 0.000000e+00 : bf16
    %43 = vector.broadcast %cst_47 : bf16 to vector<2x6x6x256xbf16>
    %c0_48 = arith.constant 0 : index
    %c0_49 = arith.constant 0 : index
    %c0_50 = arith.constant 0 : index
    %c0_51 = arith.constant 0 : index
    %44 = vector.load %arg4[%c0_48, %c0_49, %c0_50, %c0_51] : memref<2x6x6x256xbf16, #tpu.memory_space<vmem>>, vector<2x6x6x256xbf16>
    tpu.vector_store %arg4[%c0_48, %c0_49, %c0_50, %c0_51], %43 {strides = array<i32>} : memref<2x6x6x256xbf16, #tpu.memory_space<vmem>>, vector<2x6x6x256xbf16>,
    %45 = arith.truncf %42 : vector<2x4x4x256xf32> to vector<2x4x4x256xbf16>
    %c0_52 = arith.constant 0 : index
    %c1_53 = arith.constant 1 : index
    %c1_54 = arith.constant 1 : index
    %c0_55 = arith.constant 0 : index
    %46 = vector.load %arg4[%c0_52, %c1_53, %c1_54, %c0_55] : memref<2x6x6x256xbf16, #tpu.memory_space<vmem>>, vector<2x4x4x256xbf16>
    tpu.vector_store %arg4[%c0_52, %c1_53, %c1_54, %c0_55], %45 {strides = array<i32>} : memref<2x6x6x256xbf16, #tpu.memory_space<vmem>>, vector<2x4x4x256xbf16>,
    return
  }
  func.func @transform_0(%arg0: i32) -> (i32, i32, i32, i32) {
    %c0_i32 = arith.constant 0 : i32
    %c0_i32_0 = arith.constant 0 : i32
    %c0_i32_1 = arith.constant 0 : i32
    %c0_i32_2 = arith.constant 0 : i32
    return %arg0, %c0_i32, %c0_i32_0, %c0_i32_1 : i32, i32, i32, i32
  }
  func.func @transform_1(%arg0: i32) -> (i32, i32, i32) {
    %c0_i32 = arith.constant 0 : i32
    %c0_i32_0 = arith.constant 0 : i32
    %c0_i32_1 = arith.constant 0 : i32
    %c0_i32_2 = arith.constant 0 : i32
    return %c0_i32, %c0_i32_0, %c0_i32_1 : i32, i32, i32
  }
  func.func @transform_2(%arg0: i32) -> (i32, i32) {
    %c0_i32 = arith.constant 0 : i32
    %c0_i32_0 = arith.constant 0 : i32
    %c0_i32_1 = arith.constant 0 : i32
    return %c0_i32, %c0_i32_0 : i32, i32
  }
  func.func @transform_3(%arg0: i32) -> (i32, i32, i32, i32) {
    %c0_i32 = arith.constant 0 : i32
    %c0_i32_0 = arith.constant 0 : i32
    %c0_i32_1 = arith.constant 0 : i32
    %c0_i32_2 = arith.constant 0 : i32
    return %arg0, %c0_i32, %c0_i32_0, %c0_i32_1 : i32, i32, i32, i32
  }
}

module attributes {stable_mosaic.version = 11 : i64} {
  func.func @_final_conv_fc_kernel(%arg0: i32, %arg1: memref<2x6x6x256xbf16, #tpu.memory_space<vmem>>, %arg2: memref<3x768x512xbf16, #tpu.memory_space<vmem>>, %arg3: memref<1x512xf32, #tpu.memory_space<vmem>>, %arg4: memref<512x1024xbf16, #tpu.memory_space<vmem>>, %arg5: memref<1x1024xf32, #tpu.memory_space<vmem>>, %arg6: memref<2x1024xf32, #tpu.memory_space<vmem>>) attributes {dimension_semantics = [#tpu.dimension_semantics<parallel>], iteration_bounds = array<i64: 1>, scalar_prefetch = 0 : i64, scratch_operands = 0 : i64, tpu.core_type = #tpu.core_type<tc>, window_params = [{transform_indices = @transform_0, window_bounds = array<i64: 2, 6, 6, 256>}, {pipeline_mode = #tpu.pipeline_mode<synchronous>, transform_indices = @transform_1, window_bounds = array<i64: 3, 768, 512>}, {pipeline_mode = #tpu.pipeline_mode<synchronous>, transform_indices = @transform_2, window_bounds = array<i64: 1, 512>}, {pipeline_mode = #tpu.pipeline_mode<synchronous>, transform_indices = @transform_3, window_bounds = array<i64: 512, 1024>}, {pipeline_mode = #tpu.pipeline_mode<synchronous>, transform_indices = @transform_4, window_bounds = array<i64: 1, 1024>}, {transform_indices = @transform_5, window_bounds = array<i64: 2, 1024>}]} {
    %c0 = arith.constant 0 : index
    %c0_0 = arith.constant 0 : index
    %c0_1 = arith.constant 0 : index
    %c0_2 = arith.constant 0 : index
    %0 = vector.load %arg1[%c0, %c0_0, %c0_1, %c0_2] : memref<2x6x6x256xbf16, #tpu.memory_space<vmem>>, vector<2x4x4x256xbf16>
    %c0_3 = arith.constant 0 : index
    %c0_4 = arith.constant 0 : index
    %c1 = arith.constant 1 : index
    %c0_5 = arith.constant 0 : index
    %1 = vector.load %arg1[%c0_3, %c0_4, %c1, %c0_5] : memref<2x6x6x256xbf16, #tpu.memory_space<vmem>>, vector<2x4x4x256xbf16>
    %c0_6 = arith.constant 0 : index
    %c0_7 = arith.constant 0 : index
    %c2 = arith.constant 2 : index
    %c0_8 = arith.constant 0 : index
    %2 = vector.load %arg1[%c0_6, %c0_7, %c2, %c0_8] : memref<2x6x6x256xbf16, #tpu.memory_space<vmem>>, vector<2x4x4x256xbf16>
    %3 = tpu.concatenate %0, %1, %2 in 3 : vector<2x4x4x256xbf16>, vector<2x4x4x256xbf16>, vector<2x4x4x256xbf16> -> vector<2x4x4x768xbf16>
    %4 = vector.shape_cast %3 : vector<2x4x4x768xbf16> to vector<32x768xbf16>
    %c0_9 = arith.constant 0 : index
    %c0_10 = arith.constant 0 : index
    %c0_11 = arith.constant 0 : index
    %5 = vector.load %arg2[%c0_9, %c0_10, %c0_11] : memref<3x768x512xbf16, #tpu.memory_space<vmem>>, vector<1x768x512xbf16>
    %6 = vector.shape_cast %5 : vector<1x768x512xbf16> to vector<768x512xbf16>
    %cst = arith.constant dense<0.000000e+00> : vector<32x512xf32>
    %7 = tpu.matmul %4, %6, %cst {dimension_numbers = #tpu.dot_dimension_numbers<[1], [0], [0], [1], [0, 0, 1, 1], [], []>} : vector<32x768xbf16>, vector<768x512xbf16>, vector<32x512xf32> -> vector<32x512xf32>
    %c0_12 = arith.constant 0 : index
    %c1_13 = arith.constant 1 : index
    %c0_14 = arith.constant 0 : index
    %c0_15 = arith.constant 0 : index
    %8 = vector.load %arg1[%c0_12, %c1_13, %c0_14, %c0_15] : memref<2x6x6x256xbf16, #tpu.memory_space<vmem>>, vector<2x4x4x256xbf16>
    %c0_16 = arith.constant 0 : index
    %c1_17 = arith.constant 1 : index
    %c1_18 = arith.constant 1 : index
    %c0_19 = arith.constant 0 : index
    %9 = vector.load %arg1[%c0_16, %c1_17, %c1_18, %c0_19] : memref<2x6x6x256xbf16, #tpu.memory_space<vmem>>, vector<2x4x4x256xbf16>
    %c0_20 = arith.constant 0 : index
    %c1_21 = arith.constant 1 : index
    %c2_22 = arith.constant 2 : index
    %c0_23 = arith.constant 0 : index
    %10 = vector.load %arg1[%c0_20, %c1_21, %c2_22, %c0_23] : memref<2x6x6x256xbf16, #tpu.memory_space<vmem>>, vector<2x4x4x256xbf16>
    %11 = tpu.concatenate %8, %9, %10 in 3 : vector<2x4x4x256xbf16>, vector<2x4x4x256xbf16>, vector<2x4x4x256xbf16> -> vector<2x4x4x768xbf16>
    %12 = vector.shape_cast %11 : vector<2x4x4x768xbf16> to vector<32x768xbf16>
    %c1_24 = arith.constant 1 : index
    %c0_25 = arith.constant 0 : index
    %c0_26 = arith.constant 0 : index
    %13 = vector.load %arg2[%c1_24, %c0_25, %c0_26] : memref<3x768x512xbf16, #tpu.memory_space<vmem>>, vector<1x768x512xbf16>
    %14 = vector.shape_cast %13 : vector<1x768x512xbf16> to vector<768x512xbf16>
    %cst_27 = arith.constant dense<0.000000e+00> : vector<32x512xf32>
    %15 = tpu.matmul %12, %14, %cst_27 {dimension_numbers = #tpu.dot_dimension_numbers<[1], [0], [0], [1], [0, 0, 1, 1], [], []>} : vector<32x768xbf16>, vector<768x512xbf16>, vector<32x512xf32> -> vector<32x512xf32>
    %16 = arith.addf %7, %15 : vector<32x512xf32>
    %c0_28 = arith.constant 0 : index
    %c2_29 = arith.constant 2 : index
    %c0_30 = arith.constant 0 : index
    %c0_31 = arith.constant 0 : index
    %17 = vector.load %arg1[%c0_28, %c2_29, %c0_30, %c0_31] : memref<2x6x6x256xbf16, #tpu.memory_space<vmem>>, vector<2x4x4x256xbf16>
    %c0_32 = arith.constant 0 : index
    %c2_33 = arith.constant 2 : index
    %c1_34 = arith.constant 1 : index
    %c0_35 = arith.constant 0 : index
    %18 = vector.load %arg1[%c0_32, %c2_33, %c1_34, %c0_35] : memref<2x6x6x256xbf16, #tpu.memory_space<vmem>>, vector<2x4x4x256xbf16>
    %c0_36 = arith.constant 0 : index
    %c2_37 = arith.constant 2 : index
    %c2_38 = arith.constant 2 : index
    %c0_39 = arith.constant 0 : index
    %19 = vector.load %arg1[%c0_36, %c2_37, %c2_38, %c0_39] : memref<2x6x6x256xbf16, #tpu.memory_space<vmem>>, vector<2x4x4x256xbf16>
    %20 = tpu.concatenate %17, %18, %19 in 3 : vector<2x4x4x256xbf16>, vector<2x4x4x256xbf16>, vector<2x4x4x256xbf16> -> vector<2x4x4x768xbf16>
    %21 = vector.shape_cast %20 : vector<2x4x4x768xbf16> to vector<32x768xbf16>
    %c2_40 = arith.constant 2 : index
    %c0_41 = arith.constant 0 : index
    %c0_42 = arith.constant 0 : index
    %22 = vector.load %arg2[%c2_40, %c0_41, %c0_42] : memref<3x768x512xbf16, #tpu.memory_space<vmem>>, vector<1x768x512xbf16>
    %23 = vector.shape_cast %22 : vector<1x768x512xbf16> to vector<768x512xbf16>
    %cst_43 = arith.constant dense<0.000000e+00> : vector<32x512xf32>
    %24 = tpu.matmul %21, %23, %cst_43 {dimension_numbers = #tpu.dot_dimension_numbers<[1], [0], [0], [1], [0, 0, 1, 1], [], []>} : vector<32x768xbf16>, vector<768x512xbf16>, vector<32x512xf32> -> vector<32x512xf32>
    %25 = arith.addf %16, %24 : vector<32x512xf32>
    %c0_44 = arith.constant 0 : index
    %c0_45 = arith.constant 0 : index
    %26 = vector.load %arg3[%c0_44, %c0_45] : memref<1x512xf32, #tpu.memory_space<vmem>>, vector<1x512xf32>
    %27 = vector.broadcast %26 : vector<1x512xf32> to vector<32x512xf32>
    %28 = arith.addf %25, %27 : vector<32x512xf32>
    %cst_46 = arith.constant 0.000000e+00 : f32
    %29 = vector.broadcast %cst_46 : f32 to vector<32x512xf32>
    %30 = arith.maximumf %28, %29 : vector<32x512xf32>
    %31 = vector.shape_cast %30 : vector<32x512xf32> to vector<2x2x2x4x512xf32>
    %32 = vector.extract_strided_slice %31 {offsets = [0, 0, 0, 0, 0], sizes = [2, 2, 1, 4, 512], strides = [1, 1, 1, 1, 1]} : vector<2x2x2x4x512xf32> to vector<2x2x1x4x512xf32>
    %33 = vector.shape_cast %32 : vector<2x2x1x4x512xf32> to vector<2x2x4x512xf32>
    %34 = vector.extract_strided_slice %31 {offsets = [0, 0, 1, 0, 0], sizes = [2, 2, 1, 4, 512], strides = [1, 1, 1, 1, 1]} : vector<2x2x2x4x512xf32> to vector<2x2x1x4x512xf32>
    %35 = vector.shape_cast %34 : vector<2x2x1x4x512xf32> to vector<2x2x4x512xf32>
    %36 = arith.maximumf %33, %35 : vector<2x2x4x512xf32>
    %37 = vector.shape_cast %36 : vector<2x2x4x512xf32> to vector<2x2x2x2x512xf32>
    %38 = vector.extract_strided_slice %37 {offsets = [0, 0, 0, 0, 0], sizes = [2, 2, 2, 1, 512], strides = [1, 1, 1, 1, 1]} : vector<2x2x2x2x512xf32> to vector<2x2x2x1x512xf32>
    %39 = vector.shape_cast %38 : vector<2x2x2x1x512xf32> to vector<2x2x2x512xf32>
    %40 = vector.extract_strided_slice %37 {offsets = [0, 0, 0, 1, 0], sizes = [2, 2, 2, 1, 512], strides = [1, 1, 1, 1, 1]} : vector<2x2x2x2x512xf32> to vector<2x2x2x1x512xf32>
    %41 = vector.shape_cast %40 : vector<2x2x2x1x512xf32> to vector<2x2x2x512xf32>
    %42 = arith.maximumf %39, %41 : vector<2x2x2x512xf32>
    %43 = vector.shape_cast %42 : vector<2x2x2x512xf32> to vector<2x4x512xf32>
    %cst_47 = arith.constant dense<0.000000e+00> : vector<2x512xf32>
    %44 = vector.multi_reduction <add>, %43, %cst_47 [1] : vector<2x4x512xf32> to vector<2x512xf32>
    %cst_48 = arith.constant 2.500000e-01 : f32
    %45 = vector.broadcast %cst_48 : f32 to vector<2x512xf32>
    %46 = arith.mulf %44, %45 : vector<2x512xf32>
    %47 = arith.truncf %46 : vector<2x512xf32> to vector<2x512xbf16>
    %c0_49 = arith.constant 0 : index
    %c0_50 = arith.constant 0 : index
    %48 = vector.load %arg4[%c0_49, %c0_50] : memref<512x1024xbf16, #tpu.memory_space<vmem>>, vector<512x1024xbf16>
    %cst_51 = arith.constant dense<0.000000e+00> : vector<2x1024xf32>
    %49 = tpu.matmul %47, %48, %cst_51 {dimension_numbers = #tpu.dot_dimension_numbers<[1], [0], [0], [1], [0, 0, 1, 1], [], []>} : vector<2x512xbf16>, vector<512x1024xbf16>, vector<2x1024xf32> -> vector<2x1024xf32>
    %c0_52 = arith.constant 0 : index
    %c0_53 = arith.constant 0 : index
    %50 = vector.load %arg5[%c0_52, %c0_53] : memref<1x1024xf32, #tpu.memory_space<vmem>>, vector<1x1024xf32>
    %51 = vector.broadcast %50 : vector<1x1024xf32> to vector<2x1024xf32>
    %52 = arith.addf %49, %51 : vector<2x1024xf32>
    %c0_54 = arith.constant 0 : index
    %c0_55 = arith.constant 0 : index
    %53 = vector.load %arg6[%c0_54, %c0_55] : memref<2x1024xf32, #tpu.memory_space<vmem>>, vector<2x1024xf32>
    tpu.vector_store %arg6[%c0_54, %c0_55], %52 {strides = array<i32>} : memref<2x1024xf32, #tpu.memory_space<vmem>>, vector<2x1024xf32>,
    return
  }
  func.func @transform_0(%arg0: i32) -> (i32, i32, i32, i32) {
    %c0_i32 = arith.constant 0 : i32
    %c0_i32_0 = arith.constant 0 : i32
    %c0_i32_1 = arith.constant 0 : i32
    %c0_i32_2 = arith.constant 0 : i32
    return %arg0, %c0_i32, %c0_i32_0, %c0_i32_1 : i32, i32, i32, i32
  }
  func.func @transform_1(%arg0: i32) -> (i32, i32, i32) {
    %c0_i32 = arith.constant 0 : i32
    %c0_i32_0 = arith.constant 0 : i32
    %c0_i32_1 = arith.constant 0 : i32
    %c0_i32_2 = arith.constant 0 : i32
    return %c0_i32, %c0_i32_0, %c0_i32_1 : i32, i32, i32
  }
  func.func @transform_2(%arg0: i32) -> (i32, i32) {
    %c0_i32 = arith.constant 0 : i32
    %c0_i32_0 = arith.constant 0 : i32
    %c0_i32_1 = arith.constant 0 : i32
    return %c0_i32, %c0_i32_0 : i32, i32
  }
  func.func @transform_3(%arg0: i32) -> (i32, i32) {
    %c0_i32 = arith.constant 0 : i32
    %c0_i32_0 = arith.constant 0 : i32
    %c0_i32_1 = arith.constant 0 : i32
    return %c0_i32, %c0_i32_0 : i32, i32
  }
  func.func @transform_4(%arg0: i32) -> (i32, i32) {
    %c0_i32 = arith.constant 0 : i32
    %c0_i32_0 = arith.constant 0 : i32
    %c0_i32_1 = arith.constant 0 : i32
    return %c0_i32, %c0_i32_0 : i32, i32
  }
  func.func @transform_5(%arg0: i32) -> (i32, i32) {
    %c0_i32 = arith.constant 0 : i32
    %c0_i32_0 = arith.constant 0 : i32
    return %arg0, %c0_i32 : i32, i32
  }
}

</mosaic_0001>

<bundles_post_ra>
// kernel: amm_vgg_forward.3
= control target key start
LH: loop header
LB: loop body
LE: loop exit
PB: predicated region body
PF: predicated region fallthrough
CT: control target
= control target key end

     0   :  { %8 = vsyncpa [#allocation3], 0  ;;  %s2246_s12 = smov 0   ;;  %s2563_s0 = inlined_call_operand.vmem [shape: bf16[2,256,27], index: 0, kind: input, shape index: {}]   ;;  %s2564_s1 = inlined_call_operand.vmem [shape: bf16[27,128], index: 1, kind: input, shape index: {}]   ;;  %s2565_s2 = inlined_call_operand.hbm [shape: f32[1,128], index: 2, kind: input, shape index: {}]   ;;  %s2566_s3 = inlined_call_operand.vmem [shape: bf16[2,10,10,128], index: 3, kind: output, shape index: {}]  }
   0x1 LB: > { %s1796_s13 = sadd.s32 4294967295, %s2220_s12   ;;  %p1798_p0 = scmp.ge.s32.totalorder %s2220_s12, 1  ;;  %s2220_s12 = sphi %s2246_s12, %s14_s12  }
   0x2   : > { %p113_p1 = scmp.lt.s32.totalorder %s2220_s12, 3  ;;  %p2151_p3 = scmp.eq.s32.totalorder %s1796_s13, 0 }
   0x3   : > { %s2222_s15 = smov [#allocation2]  }
   0x4   : > { %p2254_p2 = pnand %p1798_p0, %p113_p1  ;;  %s129_s16 = sshll.u32 %s2222_s15, 4  ;;  %s130_s16 = int_to_ptr.vmem [resolvable:$true] %s129_s16 }
   0x5   : > { %s2195_s17 = scalar_lea.vmem %s130_s16, 16  ;;  %s2202_s18 = scalar_lea.vmem %s130_s16, 32 }
   0x6   : > { %p2147_p4 = pneg %p2254_p2  ;;  %p2196_p7 = scmp.ne.s32.totalorder %s130_s16, %s2195_s17 }
   0x7   : > { %p2203_p10 = scmp.lt.s32.totalorder %s130_s16, %s130_s16  ;;  %p2204_p11 = scmp.lt.s32.totalorder %s2202_s18, %s2195_s17 }
   0x8   : > { %p2148_p5 = pnand %p2151_p3, %p2147_p4 }
   0x9   : > { %p2205_p12 = por %p2204_p11, %p2203_p10 }
   0xa   : > { %p2186_p6 = pneg %p2148_p5 }
   0xc   : > { %p2198_p8 = pnand %p2196_p7, %p2186_p6 }
   0xe   : > { %p2199_p9 = pneg %p2198_p8 }
  0x10   : > { %p2206_p13 = pnand %p2205_p12, %p2199_p9 }
  0x12   : > { %2209 = shalt.err (!%p2206_p13)
}
  0x13   : > { %2150 = dma.hbm_to_vmem [thread:$0]  (!%p2148_p5), %s2565_s2, 16, %s130_s16, [#allocation3]  }
  0x14   : > { %150 = sbr.rel (%p2254_p2) target bundleno = 378 (0x17a), region = 32 }
  0x19   : > { %2215 = dma.done.wait (%p2151_p3), [#allocation3], 16  }
  0x1a   : > { %2217 = vsyncadd (%p2151_p3), [#allocation3], 4294967280  ;;  %p174_p0 = scmp.lt.s32.totalorder %s1796_s13, 1  ;;  %vm368_vm0 = vcmask 1044480   ;;  %vm369_vm1 = vcmask 1045504   ;;  %v2223_v0 = vmov 65535   ;;  %v604_v25 = vlaneseq }
  0x1b   : > { %v370_v1 = vsel %vm368_vm0, 4294967295, %v2223_v0  ;;  %v2224_v3 = vmov 0   ;;  %v2165_v4 = vld [vmem:[%s2564_s1 + $0x8] sm:$0x3f]   ;;  %v2166_v5 = vld [vmem:[%s2564_s1] sm:$0xff]   ;;  %vm319_vm2 = vcmask 220160  }
  0x1c   : > { %s2573_s13 = smov (!%p174_p0, %s1796_s13), 1  ;;  %v371_v2 = vsel %vm369_vm1, %v370_v1, 0  ;;  %v2225_v23 = vmov 1983009808   ;;  %v2336_v26 = vld [vmem:[#allocation2] ss:$0 sm:$0xff] }
  0x1d   : > { %s2142_s21 = smul.u32 80, %s2573_s13  ;;  %s2011_s22 = sshll.u32 %s2573_s13, 7  ;;  %v373_v6 = vand.u32 %v2165_v4, %v371_v2  ;;  %v602_v24 = vunpack.c.l.s4 %v2225_v23  ;;  %v605_v30 = vshrl.u32 %v604_v25, 7  ;;  %vm1534_vm3 = vcmask 1042434  }
  0x1e   : > { %s2276_s28 = scalar_lea.vmem %s2563_s0, %s2011_s22  ;;  %vm1537_vm4 = vcmask 1043459   ;;  %vm1540_vm5 = vcmask 1044484   ;;  %vm1681_vm6 = vcmask 1040384   ;;  %vm1682_vm7 = vsmask.f32 256 }
  0x1f   : > { %s2271_s25 = scalar_lea.vmem %s2566_s3, %s2142_s21  ;;  %v2167_v7 = vld [vmem:[%s2276_s28] sm:$0xff]   ;;  %2102 = vmatprep.subr.bf16.mxu0 %v373_v6  ;;  %2138 = vmatprep.subr.bf16.mxu1 %v373_v6  ;;  %v2169_v9 = vld [vmem:[%s2276_s28 + $0x8] sm:$0xff]   ;;  %v2171_v11 = vld [vmem:[%s2276_s28 + $0x10] sm:$0xff]   ;;  %v603_v29 = vunpack.c.0.s8 %v602_v24  ;;  %vm1543_vm8 = vcmask 1045509   ;;  %vm1546_vm9 = vcmask 1046534   ;;  %vm1549_vm10 = vcmask 1047559  }
  0x20   : > { %1192 = vst [vmem:[%s2271_s25] sm:$0xf] %v2224_v3  ;;  %1193 = vst [vmem:[%s2271_s25 + $0x4] sm:$0x1] %v2224_v3  ;;  %v2168_v8 = vld [vmem:[%s2276_s28 + $0x40] sm:$0xff]   ;;  %2103 = vmatpush3.bf16.msra.mxu0 %v373_v6  ;;  %2140 = vmatpush3.bf16.msra.mxu1 %v373_v6  ;;  %v2170_v10 = vld [vmem:[%s2276_s28 + $0x48] sm:$0xff]   ;;  %vm1675_vm11 = vcmask 1043456  }
  0x21   : > { %1210 = vst [vmem:[%s2271_s25 + $0x48] sm:$0xf] %v2224_v3  ;;  %1211 = vst [vmem:[%s2271_s25 + $0x4c] sm:$0x1] %v2224_v3  ;;  %2104 = vmatprep.subr.bf16.mxu0 %v2166_v5  ;;  %2139 = vmatprep.subr.bf16.mxu1 %v2166_v5  ;;  %v2172_v12 = vld [vmem:[%s2276_s28 + $0x50] sm:$0xff]   ;;  %v2173_v13 = vld [vmem:[%s2276_s28 + $0x18] sm:$0xff]   ;;  %v2342_v39 = vsub.s32 %v603_v29, %v605_v30 }
  0x22   : > { %1194 = vst [vmem:[%s2271_s25 + $0x8] sm:$0xf] %v2224_v3  ;;  %1195 = vst [vmem:[%s2271_s25 + $0xc] sm:$0x1] %v2224_v3  ;;  %2106 = vmatprep.mubr.msk.bf16.mxu0 %vm319_vm2, %v2167_v7  ;;  %2122 = vmatprep.mubr.msk.bf16.mxu1 %vm319_vm2, %v2168_v8  ;;  %v2174_v14 = vld [vmem:[%s2276_s28 + $0x58] sm:$0xff]   ;;  %v2175_v15 = vld [vmem:[%s2276_s28 + $0x20] sm:$0xff]  }
  0x23   : > { %1196 = vst [vmem:[%s2271_s25 + $0x10] sm:$0xf] %v2224_v3  ;;  %1197 = vst [vmem:[%s2271_s25 + $0x14] sm:$0x1] %v2224_v3  ;;  %v2176_v16 = vld [vmem:[%s2276_s28 + $0x60] sm:$0xff]   ;;  %v2177_v17 = vld [vmem:[%s2276_s28 + $0x28] sm:$0xff]  }
  0x24   : > { %1198 = vst [vmem:[%s2271_s25 + $0x18] sm:$0xf] %v2224_v3  ;;  %1199 = vst [vmem:[%s2271_s25 + $0x1c] sm:$0x1] %v2224_v3  ;;  %2105 = vmatpush3.bf16.msra.mxu0 %v2166_v5  ;;  %2141 = vmatpush3.bf16.msra.mxu1 %v2166_v5  ;;  %v2178_v18 = vld [vmem:[%s2276_s28 + $0x68] sm:$0xff]   ;;  %v2179_v19 = vld [vmem:[%s2276_s28 + $0x30] sm:$0xff]  }
  0x25   : > { %1200 = vst [vmem:[%s2271_s25 + $0x20] sm:$0xf] %v2224_v3  ;;  %1201 = vst [vmem:[%s2271_s25 + $0x24] sm:$0x1] %v2224_v3  ;;  %v2180_v20 = vld [vmem:[%s2276_s28 + $0x70] sm:$0xff]   ;;  %v2181_v21 = vld [vmem:[%s2276_s28 + $0x38] sm:$0xff]  }
  0x26   : > { %1202 = vst [vmem:[%s2271_s25 + $0x28] sm:$0xf] %v2224_v3  ;;  %1203 = vst [vmem:[%s2271_s25 + $0x2c] sm:$0x1] %v2224_v3  ;;  %v2182_v22 = vld [vmem:[%s2276_s28 + $0x78] sm:$0xff]  }
  0x27   : > { %1204 = vst [vmem:[%s2271_s25 + $0x30] sm:$0xf] %v2224_v3  ;;  %1205 = vst [vmem:[%s2271_s25 + $0x34] sm:$0x1] %v2224_v3  ;;  %2107 = vmatmul.mubr.msk.bf16.vlgmr.msra.gmra.mxu0 %vm319_vm2, %v2169_v9  ;;  %2123 = vmatmul.mubr.msk.bf16.vlgmr.msra.gmra.mxu1 %vm319_vm2, %v2170_v10  ;;  %vm1676_vm12 = vsmask.f32 7938 }
  0x28   : > { %1206 = vst [vmem:[%s2271_s25 + $0x38] sm:$0xf] %v2224_v3  ;;  %1207 = vst [vmem:[%s2271_s25 + $0x3c] sm:$0x1] %v2224_v3  ;;  %2110 = vmatprep.mubr.msk.bf16.mxu0 %vm319_vm2, %v2171_v11  ;;  %2126 = vmatprep.mubr.msk.bf16.mxu1 %vm319_vm2, %v2172_v12 }
  0x29   : > { %1208 = vst [vmem:[%s2271_s25 + $0x40] sm:$0xf] %v2224_v3  ;;  %1209 = vst [vmem:[%s2271_s25 + $0x44] sm:$0x1] %v2224_v3 }
  0x2a   : > { %vm2375_vm13 = vmand %vm1681_vm6, %vm1682_vm7 }
  0x2b   : > { %vm2393_vm14 = vmand %vm1675_vm11, %vm1676_vm12 }
  0x2f   : > { %2111 = vmatmul.mubr.msk.bf16.gmra.mxu0 %vm319_vm2, %v2173_v13  ;;  %2127 = vmatmul.mubr.msk.bf16.gmra.mxu1 %vm319_vm2, %v2174_v14 }
  0x30   : > { %2114 = vmatprep.mubr.msk.bf16.mxu0 %vm319_vm2, %v2175_v15  ;;  %2130 = vmatprep.mubr.msk.bf16.mxu1 %vm319_vm2, %v2176_v16 }
  0x37   : > { %2115 = vmatmul.mubr.msk.bf16.gmra.mxu0 %vm319_vm2, %v2177_v17  ;;  %2131 = vmatmul.mubr.msk.bf16.gmra.mxu1 %vm319_vm2, %v2178_v18 }
  0x38   : > { %2118 = vmatprep.mubr.msk.bf16.mxu0 %vm319_vm2, %v2179_v19  ;;  %2134 = vmatprep.mubr.msk.bf16.mxu1 %vm319_vm2, %v2180_v20 }
  0x3f   : > { %2119 = vmatmul.mubr.msk.bf16.gmra.mxu0 %vm319_vm2, %v2181_v21  ;;  %2135 = vmatmul.mubr.msk.bf16.gmra.mxu1 %vm319_vm2, %v2182_v22 }
  0xe7   : > { %v2108_v27 = vpop.f32.mrf.mxu0  ;;  %v2124_v28 = vpop.f32.mrf.mxu1 }
  0xe8   : > { %v418_v31 = vadd.f32 %v2108_v27, %v2336_v26  ;;  %v482_v32 = vadd.f32 %v2124_v28, %v2336_v26 }
  0xe9   : > { %v409_v33 = vpop.f32.mrf.mxu0  ;;  %v473_v34 = vpop.f32.mrf.mxu1 }
  0xea   : > { %v410_v35 = vadd.f32 %v2336_v26, %v409_v33  ;;  %v474_v36 = vadd.f32 %v2336_v26, %v473_v34  ;;  %v538_v37 = vmax.f32 %v418_v31, 0.0  ;;  %v554_v38 = vmax.f32 %v482_v32, 0.0 }
  0xeb   : > { %v2109_v40 = vpop.f32.mrf.mxu0  ;;  %v2125_v41 = vpop.f32.mrf.mxu1 }
  0xec   : > { %v536_v42 = vmax.f32 %v410_v35, 0.0  ;;  %v552_v43 = vmax.f32 %v474_v36, 0.0  ;;  %v421_v44 = vadd.f32 %v2109_v40, %v2336_v26  ;;  %v485_v45 = vadd.f32 %v2125_v41, %v2336_v26 }
  0xed   : > { %v412_v46 = vpop.f32.mrf.mxu0  ;;  %v476_v47 = vpop.f32.mrf.mxu1 }
  0xee   : > { %v568_v48 = vmax.f32 %v536_v42, %v538_v37  ;;  %v576_v49 = vmax.f32 %v552_v43, %v554_v38  ;;  %v539_v50 = vmax.f32 %v421_v44, 0.0  ;;  %v555_v51 = vmax.f32 %v485_v45, 0.0 }
  0xef   : > { %v413_v52 = vadd.f32 %v2336_v26, %v412_v46  ;;  %v477_v53 = vadd.f32 %v2336_v26, %v476_v47  ;;  %v2112_v54 = vpop.f32.mrf.mxu0  ;;  %v2128_v55 = vpop.f32.mrf.mxu1 }
  0xf0   : > { %v600_v56 = vcombine.high %v568_v48, %v568_v48  ;;  %v607_v57 = vrot.slane %v568_v48, %v2342_v39  ;;  %v736_v58 = vcombine.high %v576_v49, %v576_v49  ;;  %v743_v59 = vrot.slane %v576_v49, %v2342_v39 }
  0xf1   : > { %v537_v60 = vmax.f32 %v413_v52, 0.0  ;;  %v553_v61 = vmax.f32 %v477_v53, 0.0  ;;  %v2351_v62 = vadd.f32 %v2112_v54, %v2336_v26  ;;  %v2354_v63 = vadd.f32 %v2128_v55, %v2336_v26 }
  0xf2   : > { %v614_v0 = vrot.slane %v600_v56, %v2342_v39  ;;  %v615_v1 = vcombine.high %v607_v57, %v607_v57  ;;  %v1841_v2 = vrot.slane %v607_v57, 9  ;;  %v750_v3 = vrot.slane %v736_v58, %v2342_v39 }
  0xf3   : > { %v751_v4 = vcombine.high %v743_v59, %v743_v59  ;;  %v1873_v5 = vrot.slane %v743_v59, 9  ;;  %v569_v6 = vmax.f32 %v537_v60, %v539_v50  ;;  %v2358_v7 = vmax.f32 %v553_v61, %v555_v51 }
  0xf4   : > { %v616_v8 = vcombine.high %v614_v0, %v614_v0  ;;  %v1842_v9 = vrot.slane %v615_v1, 9  ;;  %v1843_v10 = vrot.slane %v614_v0, 9  ;;  %v1128_v11 = vmax.f32 %v607_v57, %v1841_v2 }
  0xf5   : > { %v752_v12 = vcombine.high %v750_v3, %v750_v3  ;;  %v1874_v13 = vrot.slane %v751_v4, 9  ;;  %v1875_v14 = vrot.slane %v750_v3, 9  ;;  %v1160_v15 = vmax.f32 %v743_v59, %v1873_v5 }
  0xf6   : > { %v1844_v16 = vrot.slane %v616_v8, 9  ;;  %v1129_v17 = vmax.f32 %v615_v1, %v1842_v9  ;;  %v1130_v18 = vmax.f32 %v614_v0, %v1843_v10  ;;  %v2012_v19 = vpack.c.bf16 %v1128_v11, %v1128_v11  ;;  %v425_v9 = vpop.f32.mrf.mxu0 }
  0xf7   : > { %v1876_v20 = vrot.slane %v752_v12, 9  ;;  %v1161_v21 = vmax.f32 %v751_v4, %v1874_v13  ;;  %v1162_v22 = vmax.f32 %v750_v3, %v1875_v14  ;;  %v2044_v23 = vpack.c.bf16 %v1160_v15, %v1160_v15 }
  0xf8   : > { %v1131_v24 = vmax.f32 %v616_v8, %v1844_v16  ;;  %v2013_v25 = vpack.c.bf16 %v1129_v17, %v1129_v17  ;;  %v2014_v27 = vpack.c.bf16 %v1130_v18, %v1130_v18  ;;  %v1468_v28 = vunpack.c.l.b16 %v2012_v19  ;;  %v489_v18 = vpop.f32.mrf.mxu1 }
  0xf9   : > { %v1163_v29 = vmax.f32 %v752_v12, %v1876_v20  ;;  %v2045_v30 = vpack.c.bf16 %v1161_v21, %v1161_v21  ;;  %v2046_v31 = vpack.c.bf16 %v1162_v22, %v1162_v22  ;;  %v1500_v32 = vunpack.c.l.b16 %v2044_v23  ;;  %v1979_v20 = vld [vmem:[%s2271_s25 + $0xc] sm:$0x1] }
  0xfa   : > { %v2015_v33 = vpack.c.bf16 %v1131_v24, %v1131_v24  ;;  %v1469_v34 = vunpack.c.l.b16 %v2013_v25  ;;  %v1470_v35 = vunpack.c.l.b16 %v2014_v27  ;;  %v1532_v36 = vrot.slane %v1468_v28, 7 }
  0xfb   : > { %v2047_v37 = vpack.c.bf16 %v1163_v29, %v1163_v29  ;;  %v1501_v38 = vunpack.c.l.b16 %v2045_v30  ;;  %v1502_v40 = vunpack.c.l.b16 %v2046_v31  ;;  %v1590_v41 = vrot.slane %v1500_v32, 7  ;;  %v2113_v29 = vpop.f32.mrf.mxu0 }
  0xfc   : > { %v1471_v42 = vunpack.c.l.b16 %v2015_v33  ;;  %v1533_v43 = vrot.slane %v1469_v34, 6  ;;  %v1536_v44 = vrot.slane %v1470_v35, 5  ;;  %v617_v45 = vcombine.high %v569_v6, %v569_v6 }
  0xfd   : > { %v1503_v46 = vunpack.c.l.b16 %v2047_v37  ;;  %v1591_v47 = vrot.slane %v1501_v38, 6  ;;  %v1593_v48 = vrot.slane %v1502_v40, 5  ;;  %v624_v49 = vrot.slane %v569_v6, %v2342_v39  ;;  %v1995_v38 = vld [vmem:[%s2271_s25 + $0x2c] sm:$0x1]  ;;  %v2129_v40 = vpop.f32.mrf.mxu1 }
  0xfe   : > { %v1535_v50 = vsel %vm1534_vm3, %v1533_v43, %v1532_v36  ;;  %v1539_v51 = vrot.slane %v1471_v42, 4  ;;  %v631_v52 = vrot.slane %v617_v45, %v2342_v39  ;;  %v753_v53 = vcombine.high %v2358_v7, %v2358_v7 }
  0xff   : > { %v1538_v54 = vsel %vm1537_vm4, %v1536_v44, %v1535_v50  ;;  %v1592_v55 = vsel %vm1534_vm3, %v1591_v47, %v1590_v41  ;;  %v1595_v56 = vrot.slane %v1503_v46, 4  ;;  %v632_v57 = vcombine.high %v624_v49, %v624_v49 }
 0x100   : > { %v1594_v58 = vsel %vm1537_vm4, %v1593_v48, %v1592_v55  ;;  %v633_v59 = vcombine.high %v631_v52, %v631_v52  ;;  %v1845_v60 = vrot.slane %v624_v49, 9  ;;  %v1847_v61 = vrot.slane %v631_v52, 9 }
 0x101   : > { %v1846_v0 = vrot.slane %v632_v57, 9  ;;  %v1541_v1 = vsel %vm1540_vm5, %v1539_v51, %v1538_v54  ;;  %v760_v2 = vrot.slane %v2358_v7, %v2342_v39  ;;  %v767_v3 = vrot.slane %v753_v53, %v2342_v39 }
 0x102   : > { %v1848_v4 = vrot.slane %v633_v59, 9  ;;  %v1132_v5 = vmax.f32 %v624_v49, %v1845_v60  ;;  %v1134_v6 = vmax.f32 %v631_v52, %v1847_v61  ;;  %v1596_v8 = vsel %vm1540_vm5, %v1595_v56, %v1594_v58  ;;  %v428_v49 = vpop.f32.mrf.mxu0  ;;  %v1977_v56 = vld [vmem:[%s2271_s25 + $0x8] sm:$0xf]  ;;  %v492_v58 = vpop.f32.mrf.mxu1 }
 0x103   : > { %v1133_v10 = vmax.f32 %v632_v57, %v1846_v0  ;;  %v768_v11 = vcombine.high %v760_v2, %v760_v2  ;;  %v769_v12 = vcombine.high %v767_v3, %v767_v3  ;;  %v1877_v13 = vrot.slane %v760_v2, 9 }
 0x104   : > { %v1135_v14 = vmax.f32 %v633_v59, %v1848_v4  ;;  %v2016_v15 = vpack.c.bf16 %v1132_v5, %v1132_v5  ;;  %v2018_v16 = vpack.c.bf16 %v1134_v6, %v1134_v6  ;;  %v1879_v17 = vrot.slane %v767_v3, 9  ;;  %v2116_v5 = vpop.f32.mrf.mxu0 }
 0x105   : > { %v2017_v19 = vpack.c.bf16 %v1133_v10, %v1133_v10  ;;  %v1878_v21 = vrot.slane %v768_v11, 9  ;;  %v1880_v22 = vrot.slane %v769_v12, 9  ;;  %v1164_v23 = vmax.f32 %v760_v2, %v1877_v13 }
 0x106   : > { %v1472_v24 = vunpack.c.l.b16 %v2016_v15  ;;  %v1474_v25 = vunpack.c.l.b16 %v2018_v16  ;;  %v2076_v27 = vpack.c.bf16 %v1135_v14, %v1135_v14  ;;  %v1166_v28 = vmax.f32 %v767_v3, %v1879_v17 }
 0x107   : > { %v1473_v30 = vunpack.c.l.b16 %v2017_v19  ;;  %v1165_v31 = vmax.f32 %v768_v11, %v1878_v21  ;;  %v1167_v32 = vmax.f32 %v769_v12, %v1880_v22  ;;  %v2048_v33 = vpack.c.bf16 %v1164_v23, %v1164_v23  ;;  %v1993_v12 = vld [vmem:[%s2271_s25 + $0x28] sm:$0xf] }
 0x108   : > { %v1542_v34 = vrot.slane %v1472_v24, 3  ;;  %v1548_v35 = vrot.slane %v1474_v25, 1  ;;  %v1685_v36 = vsel %vm2375_vm13, %v2076_v27, %v1979_v20  ;;  %v2050_v37 = vpack.c.bf16 %v1166_v28, %v1166_v28 }
 0x109   : > { %v1545_v41 = vrot.slane %v1473_v30, 2  ;;  %1980 = vst [vmem:[%s2271_s25 + $0xc] sm:$0x1] %v1685_v36  ;;  %v2049_v42 = vpack.c.bf16 %v1165_v31, %v1165_v31  ;;  %v1504_v43 = vunpack.c.l.b16 %v2048_v33  ;;  %v2080_v44 = vpack.c.bf16 %v1167_v32, %v1167_v32 }
 0x10a   : > { %v1544_v45 = vsel %vm1543_vm8, %v1542_v34, %v1541_v1  ;;  %v1506_v46 = vunpack.c.l.b16 %v2050_v37  ;;  %v542_v47 = vmax.f32 %v2351_v62, 0.0  ;;  %v558_v48 = vmax.f32 %v2354_v63, 0.0 }
 0x10b   : > { %v1547_v50 = vsel %vm1546_vm9, %v1545_v41, %v1544_v45  ;;  %v1505_v51 = vunpack.c.l.b16 %v2049_v42  ;;  %v1597_v52 = vrot.slane %v1504_v43, 3  ;;  %v1709_v53 = vsel %vm2375_vm13, %v2080_v44, %v1995_v38 }
 0x10c   : > { %v1550_v54 = vsel %vm1549_vm10, %v1548_v35, %v1547_v50  ;;  %v1601_v62 = vrot.slane %v1506_v46, 1  ;;  %1996 = vst [vmem:[%s2271_s25 + $0x2c] sm:$0x1] %v1709_v53  ;;  %v426_v63 = vadd.f32 %v2336_v26, %v425_v9  ;;  %v490_v57 = vadd.f32 %v2336_v26, %v489_v18 }
 0x10d   : > { %v1642_v59 = vpack.c.b16 %v1550_v54, %v1550_v54  ;;  %v1598_v60 = vsel %vm1543_vm8, %v1597_v52, %v1596_v8  ;;  %v1599_v61 = vrot.slane %v1505_v51, 2  ;;  %v437_v0 = vadd.f32 %v2113_v29, %v2336_v26 }
 0x10e   : > { %v540_v1 = vmax.f32 %v426_v63, 0.0  ;;  %v556_v2 = vmax.f32 %v490_v57, 0.0  ;;  %v501_v3 = vadd.f32 %v2129_v40, %v2336_v26  ;;  %v429_v4 = vadd.f32 %v2336_v26, %v428_v49 }
 0x10f   : > { %v1679_v6 = vsel %vm2393_vm14, %v1642_v59, %v1977_v56  ;;  %v1600_v9 = vsel %vm1546_vm9, %v1599_v61, %v1598_v60  ;;  %v543_v10 = vmax.f32 %v437_v0, 0.0  ;;  %v493_v11 = vadd.f32 %v2336_v26, %v492_v58 }
 0x110   : > { %1978 = vst [vmem:[%s2271_s25 + $0x8] sm:$0xf] %v1679_v6  ;;  %v1602_v8 = vsel %vm1549_vm10, %v1601_v62, %v1600_v9  ;;  %v570_v13 = vmax.f32 %v540_v1, %v542_v47  ;;  %v578_v14 = vmax.f32 %v556_v2, %v558_v48  ;;  %v559_v15 = vmax.f32 %v501_v3, 0.0 }
 0x111   : > { %v1650_v16 = vpack.c.b16 %v1602_v8, %v1602_v8  ;;  %v541_v17 = vmax.f32 %v429_v4, 0.0  ;;  %v557_v18 = vmax.f32 %v493_v11, 0.0  ;;  %v2413_v19 = vadd.f32 %v2116_v5, %v2336_v26 }
 0x112   : > { %v634_v20 = vcombine.high %v570_v13, %v570_v13  ;;  %v641_v21 = vrot.slane %v570_v13, %v2342_v39  ;;  %v770_v22 = vcombine.high %v578_v14, %v578_v14  ;;  %v777_v23 = vrot.slane %v578_v14, %v2342_v39 }
 0x113   : > { %v1706_v24 = vsel %vm2393_vm14, %v1650_v16, %v1993_v12  ;;  %v571_v25 = vmax.f32 %v541_v17, %v543_v10  ;;  %v2419_v27 = vmax.f32 %v557_v18, %v559_v15  ;;  %v546_v28 = vmax.f32 %v2413_v19, 0.0 }
 0x114   : > { %1994 = vst [vmem:[%s2271_s25 + $0x28] sm:$0xf] %v1706_v24  ;;  %v648_v29 = vrot.slane %v634_v20, %v2342_v39  ;;  %v649_v30 = vcombine.high %v641_v21, %v641_v21  ;;  %v1849_v31 = vrot.slane %v641_v21, 9  ;;  %v784_v32 = vrot.slane %v770_v22, %v2342_v39 }
 0x115   : > { %v785_v33 = vcombine.high %v777_v23, %v777_v23  ;;  %v1881_v34 = vrot.slane %v777_v23, 9  ;;  %v651_v35 = vcombine.high %v571_v25, %v571_v25  ;;  %v658_v36 = vrot.slane %v571_v25, %v2342_v39 }
 0x116   : > { %v650_v37 = vcombine.high %v648_v29, %v648_v29  ;;  %v1850_v38 = vrot.slane %v649_v30, 9  ;;  %v1851_v40 = vrot.slane %v648_v29, 9  ;;  %v1136_v41 = vmax.f32 %v641_v21, %v1849_v31 }
 0x117   : > { %v786_v42 = vcombine.high %v784_v32, %v784_v32  ;;  %v1882_v43 = vrot.slane %v785_v33, 9  ;;  %v1883_v44 = vrot.slane %v784_v32, 9  ;;  %v1168_v45 = vmax.f32 %v777_v23, %v1881_v34 }
 0x118   : > { %v1852_v46 = vrot.slane %v650_v37, 9  ;;  %v1137_v47 = vmax.f32 %v649_v30, %v1850_v38  ;;  %v1138_v48 = vmax.f32 %v648_v29, %v1851_v40  ;;  %v2020_v49 = vpack.c.bf16 %v1136_v41, %v1136_v41 }
 0x119   : > { %v1884_v50 = vrot.slane %v786_v42, 9  ;;  %v1169_v51 = vmax.f32 %v785_v33, %v1882_v43  ;;  %v1170_v52 = vmax.f32 %v784_v32, %v1883_v44  ;;  %v2052_v53 = vpack.c.bf16 %v1168_v45, %v1168_v45  ;;  %v2132_v32 = vpop.f32.mrf.mxu1  ;;  %v1983_v44 = vld [vmem:[%s2271_s25 + $0x14] sm:$0x1] }
 0x11a   : > { %v1139_v54 = vmax.f32 %v650_v37, %v1852_v46  ;;  %v2021_v56 = vpack.c.bf16 %v1137_v47, %v1137_v47  ;;  %v2022_v62 = vpack.c.bf16 %v1138_v48, %v1138_v48  ;;  %v1476_v63 = vunpack.c.l.b16 %v2020_v49 }
 0x11b   : > { %v1171_v57 = vmax.f32 %v786_v42, %v1884_v50  ;;  %v2053_v58 = vpack.c.bf16 %v1169_v51, %v1169_v51  ;;  %v2054_v59 = vpack.c.bf16 %v1170_v52, %v1170_v52  ;;  %v1508_v60 = vunpack.c.l.b16 %v2052_v53  ;;  %v441_v51 = vpop.f32.mrf.mxu0  ;;  %v505_v52 = vpop.f32.mrf.mxu1 }
 0x11c   : > { %v2023_v61 = vpack.c.bf16 %v1139_v54, %v1139_v54  ;;  %v1477_v0 = vunpack.c.l.b16 %v2021_v56  ;;  %v1478_v1 = vunpack.c.l.b16 %v2022_v62  ;;  %v1551_v2 = vrot.slane %v1476_v63, 7 }
 0x11d   : > { %v2055_v3 = vpack.c.bf16 %v1171_v57, %v1171_v57  ;;  %v1509_v4 = vunpack.c.l.b16 %v2053_v58  ;;  %v1510_v5 = vunpack.c.l.b16 %v2054_v59  ;;  %v1603_v6 = vrot.slane %v1508_v60, 7 }
 0x11e   : > { %v1479_v9 = vunpack.c.l.b16 %v2023_v61  ;;  %v1552_v10 = vrot.slane %v1477_v0, 6  ;;  %v1554_v11 = vrot.slane %v1478_v1, 5  ;;  %v665_v8 = vrot.slane %v651_v35, %v2342_v39 }
 0x11f   : > { %v1511_v12 = vunpack.c.l.b16 %v2055_v3  ;;  %v1604_v13 = vrot.slane %v1509_v4, 6  ;;  %v1606_v14 = vrot.slane %v1510_v5, 5  ;;  %v666_v15 = vcombine.high %v658_v36, %v658_v36  ;;  %v2117_v5 = vpop.f32.mrf.mxu0 }
 0x120   : > { %v1553_v16 = vsel %vm1534_vm3, %v1552_v10, %v1551_v2  ;;  %v1556_v17 = vrot.slane %v1479_v9, 4  ;;  %v667_v18 = vcombine.high %v665_v8, %v665_v8  ;;  %v1853_v20 = vrot.slane %v658_v36, 9 }
 0x121   : > { %v1555_v21 = vsel %vm1537_vm4, %v1554_v11, %v1553_v16  ;;  %v1605_v22 = vsel %vm1534_vm3, %v1604_v13, %v1603_v6  ;;  %v1608_v23 = vrot.slane %v1511_v12, 4  ;;  %v1854_v24 = vrot.slane %v666_v15, 9  ;;  %v2133_v6 = vpop.f32.mrf.mxu1  ;;  %v1981_v13 = vld [vmem:[%s2271_s25 + $0x10] sm:$0xf] }
 0x122   : > { %v1607_v25 = vsel %vm1537_vm4, %v1606_v14, %v1605_v22  ;;  %v1855_v29 = vrot.slane %v665_v8, 9  ;;  %v1856_v30 = vrot.slane %v667_v18, 9  ;;  %v1140_v31 = vmax.f32 %v658_v36, %v1853_v20 }
 0x123   : > { %v1141_v33 = vmax.f32 %v666_v15, %v1854_v24  ;;  %v1557_v34 = vsel %vm1540_vm5, %v1556_v17, %v1555_v21  ;;  %v787_v35 = vcombine.high %v2419_v27, %v2419_v27  ;;  %v794_v37 = vrot.slane %v2419_v27, %v2342_v39  ;;  %v1999_v15 = vld [vmem:[%s2271_s25 + $0x34] sm:$0x1] }
 0x124   : > { %v1142_v38 = vmax.f32 %v665_v8, %v1855_v29  ;;  %v1143_v40 = vmax.f32 %v667_v18, %v1856_v30  ;;  %v2024_v41 = vpack.c.bf16 %v1140_v31, %v1140_v31  ;;  %v1609_v42 = vsel %vm1540_vm5, %v1608_v23, %v1607_v25  ;;  %v444_v30 = vpop.f32.mrf.mxu0  ;;  %v508_v31 = vpop.f32.mrf.mxu1 }
 0x125   : > { %v2025_v43 = vpack.c.bf16 %v1141_v33, %v1141_v33  ;;  %v801_v45 = vrot.slane %v787_v35, %v2342_v39  ;;  %v802_v36 = vcombine.high %v794_v37, %v794_v37  ;;  %v1885_v46 = vrot.slane %v794_v37, 9 }
 0x126   : > { %v2026_v47 = vpack.c.bf16 %v1142_v38, %v1142_v38  ;;  %v1480_v48 = vunpack.c.l.b16 %v2024_v41  ;;  %v2077_v49 = vpack.c.bf16 %v1143_v40, %v1143_v40  ;;  %v514_v50 = vadd.f32 %v2132_v32, %v2336_v26 }
 0x127   : > { %v1481_v27 = vunpack.c.l.b16 %v2025_v43  ;;  %v803_v53 = vcombine.high %v801_v45, %v801_v45  ;;  %v1886_v54 = vrot.slane %v802_v36, 9  ;;  %v1887_v56 = vrot.slane %v801_v45, 9 }
 0x128   : > { %v1482_v62 = vunpack.c.l.b16 %v2026_v47  ;;  %v1558_v63 = vrot.slane %v1480_v48, 3  ;;  %v1691_v57 = vsel %vm2375_vm13, %v2077_v49, %v1983_v44  ;;  %v1172_v58 = vmax.f32 %v794_v37, %v1885_v46  ;;  %v1997_v47 = vld [vmem:[%s2271_s25 + $0x30] sm:$0xf] }
 0x129   : > { %v1560_v59 = vrot.slane %v1481_v27, 2  ;;  %1984 = vst [vmem:[%s2271_s25 + $0x14] sm:$0x1] %v1691_v57  ;;  %v1888_v60 = vrot.slane %v803_v53, 9  ;;  %v1173_v61 = vmax.f32 %v802_v36, %v1886_v54  ;;  %v1174_v0 = vmax.f32 %v801_v45, %v1887_v56 }
 0x12a   : > { %v1559_v1 = vsel %vm1543_vm8, %v1558_v63, %v1557_v34  ;;  %v1562_v2 = vrot.slane %v1482_v62, 1  ;;  %v2056_v3 = vpack.c.bf16 %v1172_v58, %v1172_v58  ;;  %v562_v4 = vmax.f32 %v514_v50, 0.0 }
 0x12b   : > { %v1561_v9 = vsel %vm1546_vm9, %v1560_v59, %v1559_v1  ;;  %v1175_v10 = vmax.f32 %v803_v53, %v1888_v60  ;;  %v2057_v11 = vpack.c.bf16 %v1173_v61, %v1173_v61  ;;  %v2058_v8 = vpack.c.bf16 %v1174_v0, %v1174_v0 }
 0x12c   : > { %v1563_v12 = vsel %vm1549_vm10, %v1562_v2, %v1561_v9  ;;  %v1512_v14 = vunpack.c.l.b16 %v2056_v3  ;;  %v442_v16 = vadd.f32 %v2336_v26, %v441_v51  ;;  %v506_v17 = vadd.f32 %v2336_v26, %v505_v52 }
 0x12d   : > { %v1644_v18 = vpack.c.b16 %v1563_v12, %v1563_v12  ;;  %v1513_v20 = vunpack.c.l.b16 %v2057_v11  ;;  %v1514_v21 = vunpack.c.l.b16 %v2058_v8  ;;  %v2081_v22 = vpack.c.bf16 %v1175_v10, %v1175_v10 }
 0x12e   : > { %v1610_v23 = vrot.slane %v1512_v14, 3  ;;  %v544_v24 = vmax.f32 %v442_v16, 0.0  ;;  %v560_v25 = vmax.f32 %v506_v17, 0.0  ;;  %v453_v29 = vadd.f32 %v2117_v5, %v2336_v26 }
 0x12f   : > { %v1688_v32 = vsel %vm2393_vm14, %v1644_v18, %v1981_v13  ;;  %v1612_v33 = vrot.slane %v1513_v20, 2  ;;  %v1614_v34 = vrot.slane %v1514_v21, 1  ;;  %v1715_v35 = vsel %vm2375_vm13, %v2081_v22, %v1999_v15 }
 0x130   : > { %1982 = vst [vmem:[%s2271_s25 + $0x10] sm:$0xf] %v1688_v32  ;;  %v1611_v37 = vsel %vm1543_vm8, %v1610_v23, %v1609_v42  ;;  %2000 = vst [vmem:[%s2271_s25 + $0x34] sm:$0x1] %v1715_v35  ;;  %v572_v38 = vmax.f32 %v544_v24, %v546_v28  ;;  %v580_v40 = vmax.f32 %v560_v25, %v562_v4  ;;  %v547_v41 = vmax.f32 %v453_v29, 0.0 }
 0x131   : > { %v1613_v43 = vsel %vm1546_vm9, %v1612_v33, %v1611_v37  ;;  %v2462_v44 = vadd.f32 %v2133_v6, %v2336_v26  ;;  %v445_v45 = vadd.f32 %v2336_v26, %v444_v30  ;;  %v2466_v36 = vadd.f32 %v2336_v26, %v508_v31 }
 0x132   : > { %v1615_v46 = vsel %vm1549_vm10, %v1614_v34, %v1613_v43  ;;  %v668_v42 = vcombine.high %v572_v38, %v572_v38  ;;  %v675_v19 = vrot.slane %v572_v38, %v2342_v39  ;;  %v804_v28 = vcombine.high %v580_v40, %v580_v40 }
 0x133   : > { %v1652_v48 = vpack.c.b16 %v1615_v46, %v1615_v46  ;;  %v811_v49 = vrot.slane %v580_v40, %v2342_v39  ;;  %v563_v50 = vmax.f32 %v2462_v44, 0.0  ;;  %v545_v51 = vmax.f32 %v445_v45, 0.0 }
 0x134   : > { %v682_v52 = vrot.slane %v668_v42, %v2342_v39  ;;  %v683_v27 = vcombine.high %v675_v19, %v675_v19  ;;  %v1857_v53 = vrot.slane %v675_v19, 9  ;;  %v818_v54 = vrot.slane %v804_v28, %v2342_v39 }
 0x135   : > { %v1712_v56 = vsel %vm2393_vm14, %v1652_v48, %v1997_v47  ;;  %v819_v62 = vcombine.high %v811_v49, %v811_v49  ;;  %v1889_v63 = vrot.slane %v811_v49, 9  ;;  %v573_v57 = vmax.f32 %v545_v51, %v547_v41  ;;  %v2120_v51 = vpop.f32.mrf.mxu0 }
 0x136   : > { %1998 = vst [vmem:[%s2271_s25 + $0x30] sm:$0xf] %v1712_v56  ;;  %v684_v58 = vcombine.high %v682_v52, %v682_v52  ;;  %v1858_v59 = vrot.slane %v683_v27, 9  ;;  %v1859_v60 = vrot.slane %v682_v52, 9  ;;  %v1144_v61 = vmax.f32 %v675_v19, %v1857_v53  ;;  %v2136_v56 = vpop.f32.mrf.mxu1 }
 0x137   : > { %v820_v0 = vcombine.high %v818_v54, %v818_v54  ;;  %v1890_v1 = vrot.slane %v819_v62, 9  ;;  %v1891_v2 = vrot.slane %v818_v54, 9  ;;  %v1176_v3 = vmax.f32 %v811_v49, %v1889_v63 }
 0x138   : > { %v1860_v4 = vrot.slane %v684_v58, 9  ;;  %v1145_v5 = vmax.f32 %v683_v27, %v1858_v59  ;;  %v1146_v6 = vmax.f32 %v682_v52, %v1859_v60  ;;  %v2028_v9 = vpack.c.bf16 %v1144_v61, %v1144_v61 }
 0x139   : > { %v1892_v10 = vrot.slane %v820_v0, 9  ;;  %v1177_v11 = vmax.f32 %v819_v62, %v1890_v1  ;;  %v1178_v8 = vmax.f32 %v818_v54, %v1891_v2  ;;  %v2060_v12 = vpack.c.bf16 %v1176_v3, %v1176_v3 }
 0x13a   : > { %v1147_v13 = vmax.f32 %v684_v58, %v1860_v4  ;;  %v2029_v14 = vpack.c.bf16 %v1145_v5, %v1145_v5  ;;  %v2030_v15 = vpack.c.bf16 %v1146_v6, %v1146_v6  ;;  %v1484_v16 = vunpack.c.l.b16 %v2028_v9 }
 0x13b   : > { %v1179_v17 = vmax.f32 %v820_v0, %v1892_v10  ;;  %v2061_v18 = vpack.c.bf16 %v1177_v11, %v1177_v11  ;;  %v2062_v20 = vpack.c.bf16 %v1178_v8, %v1178_v8  ;;  %v1516_v21 = vunpack.c.l.b16 %v2060_v12 }
 0x13c   : > { %v2031_v22 = vpack.c.bf16 %v1147_v13, %v1147_v13  ;;  %v1485_v23 = vunpack.c.l.b16 %v2029_v14  ;;  %v1486_v24 = vunpack.c.l.b16 %v2030_v15  ;;  %v1564_v25 = vrot.slane %v1484_v16, 7 }
 0x13d   : > { %v2063_v29 = vpack.c.bf16 %v1179_v17, %v1179_v17  ;;  %v1517_v30 = vunpack.c.l.b16 %v2061_v18  ;;  %v1518_v31 = vunpack.c.l.b16 %v2062_v20  ;;  %v1616_v32 = vrot.slane %v1516_v21, 7  ;;  %v457_v21 = vpop.f32.mrf.mxu0 }
 0x13e   : > { %v1487_v33 = vunpack.c.l.b16 %v2031_v22  ;;  %v1565_v34 = vrot.slane %v1485_v23, 6  ;;  %v1567_v35 = vrot.slane %v1486_v24, 5  ;;  %v685_v37 = vcombine.high %v573_v57, %v573_v57  ;;  %v521_v22 = vpop.f32.mrf.mxu1 }
 0x13f   : > { %v1519_v38 = vunpack.c.l.b16 %v2063_v29  ;;  %v1617_v40 = vrot.slane %v1517_v30, 6  ;;  %v1619_v41 = vrot.slane %v1518_v31, 5  ;;  %v692_v43 = vrot.slane %v573_v57, %v2342_v39 }
 0x140   : > { %v1566_v45 = vsel %vm1534_vm3, %v1565_v34, %v1564_v25  ;;  %v1569_v46 = vrot.slane %v1487_v33, 4  ;;  %v699_v47 = vrot.slane %v685_v37, %v2342_v39  ;;  %v561_v42 = vmax.f32 %v2466_v36, 0.0 }
 0x141   : > { %v1568_v19 = vsel %vm1537_vm4, %v1567_v35, %v1566_v45  ;;  %v1618_v28 = vsel %vm1534_vm3, %v1617_v40, %v1616_v32  ;;  %v1621_v48 = vrot.slane %v1519_v38, 4  ;;  %v700_v49 = vcombine.high %v692_v43, %v692_v43 }
 0x142   : > { %v1620_v52 = vsel %vm1537_vm4, %v1619_v41, %v1618_v28  ;;  %v701_v27 = vcombine.high %v699_v47, %v699_v47  ;;  %v1861_v53 = vrot.slane %v692_v43, 9  ;;  %v1863_v54 = vrot.slane %v699_v47, 9 }
 0x143   : > { %v1862_v62 = vrot.slane %v700_v49, 9  ;;  %v1570_v63 = vsel %vm1540_vm5, %v1569_v46, %v1568_v19  ;;  %v581_v36 = vmax.f32 %v561_v42, %v563_v50  ;;  %v2489_v57 = vsel %vm1540_vm5, %v1621_v48, %v1620_v52  ;;  %v1987_v50 = vld [vmem:[%s2271_s25 + $0x1c] sm:$0x1] }
 0x144   : > { %v1864_v58 = vrot.slane %v701_v27, 9  ;;  %v1148_v59 = vmax.f32 %v692_v43, %v1861_v53  ;;  %v1150_v60 = vmax.f32 %v699_v47, %v1863_v54  ;;  %v466_v61 = vadd.f32 %v2120_v51, %v2336_v26  ;;  %v1985_v47 = vld [vmem:[%s2271_s25 + $0x18] sm:$0xf]  ;;  %v2003_v19 = vld [vmem:[%s2271_s25 + $0x3c] sm:$0x1] }
 0x145   : > { %v1149_v0 = vmax.f32 %v700_v49, %v1862_v62  ;;  %v821_v1 = vcombine.high %v581_v36, %v581_v36  ;;  %v828_v2 = vrot.slane %v581_v36, %v2342_v39  ;;  %v530_v3 = vadd.f32 %v2136_v56, %v2336_v26  ;;  %v2121_v62 = vpop.f32.mrf.mxu0 }
 0x146   : > { %v1151_v4 = vmax.f32 %v701_v27, %v1864_v58  ;;  %v2032_v5 = vpack.c.bf16 %v1148_v59, %v1148_v59  ;;  %v2034_v6 = vpack.c.bf16 %v1150_v60, %v1150_v60  ;;  %v550_v44 = vmax.f32 %v466_v61, 0.0 }
 0x147   : > { %v2033_v9 = vpack.c.bf16 %v1149_v0, %v1149_v0  ;;  %v835_v10 = vrot.slane %v821_v1, %v2342_v39  ;;  %v836_v11 = vcombine.high %v828_v2, %v828_v2  ;;  %v1893_v8 = vrot.slane %v828_v2, 9 }
 0x148   : > { %v1488_v12 = vunpack.c.l.b16 %v2032_v5  ;;  %v1490_v13 = vunpack.c.l.b16 %v2034_v6  ;;  %v2078_v14 = vpack.c.bf16 %v1151_v4, %v1151_v4  ;;  %v566_v15 = vmax.f32 %v530_v3, 0.0  ;;  %v2001_v6 = vld [vmem:[%s2271_s25 + $0x38] sm:$0xf] }
 0x149   : > { %v1489_v16 = vunpack.c.l.b16 %v2033_v9  ;;  %v837_v17 = vcombine.high %v835_v10, %v835_v10  ;;  %v1894_v18 = vrot.slane %v836_v11, 9  ;;  %v1895_v20 = vrot.slane %v835_v10, 9 }
 0x14a   : > { %v1571_v23 = vrot.slane %v1488_v12, 3  ;;  %v1575_v24 = vrot.slane %v1490_v13, 1  ;;  %v1697_v25 = vsel %vm2375_vm13, %v2078_v14, %v1987_v50  ;;  %v1180_v29 = vmax.f32 %v828_v2, %v1893_v8 }
 0x14b   : > { %v1573_v30 = vrot.slane %v1489_v16, 2  ;;  %1988 = vst [vmem:[%s2271_s25 + $0x1c] sm:$0x1] %v1697_v25  ;;  %v1896_v31 = vrot.slane %v837_v17, 9  ;;  %v1181_v32 = vmax.f32 %v836_v11, %v1894_v18  ;;  %v1182_v33 = vmax.f32 %v835_v10, %v1895_v20 }
 0x14c   : > { %v1572_v34 = vsel %vm1543_vm8, %v1571_v23, %v1570_v63  ;;  %v2064_v35 = vpack.c.bf16 %v1180_v29, %v1180_v29  ;;  %v458_v37 = vadd.f32 %v2336_v26, %v457_v21  ;;  %v522_v38 = vadd.f32 %v2336_v26, %v521_v22 }
 0x14d   : > { %v1574_v40 = vsel %vm1546_vm9, %v1573_v30, %v1572_v34  ;;  %v1183_v41 = vmax.f32 %v837_v17, %v1896_v31  ;;  %v2065_v43 = vpack.c.bf16 %v1181_v32, %v1181_v32  ;;  %v2066_v45 = vpack.c.bf16 %v1182_v33, %v1182_v33  ;;  %v2137_v31 = vpop.f32.mrf.mxu1 }
 0x14e   : > { %v1576_v46 = vsel %vm1549_vm10, %v1575_v24, %v1574_v40  ;;  %v1520_v42 = vunpack.c.l.b16 %v2064_v35  ;;  %v548_v28 = vmax.f32 %v458_v37, 0.0  ;;  %v564_v48 = vmax.f32 %v522_v38, 0.0 }
 0x14f   : > { %v1646_v49 = vpack.c.b16 %v1576_v46, %v1576_v46  ;;  %v1521_v51 = vunpack.c.l.b16 %v2065_v43  ;;  %v1522_v52 = vunpack.c.l.b16 %v2066_v45  ;;  %v2082_v27 = vpack.c.bf16 %v1183_v41, %v1183_v41 }
 0x150   : > { %v1623_v53 = vrot.slane %v1520_v42, 3  ;;  %v574_v54 = vmax.f32 %v548_v28, %v550_v44  ;;  %v582_v56 = vmax.f32 %v564_v48, %v566_v15  ;;  %v2518_v4 = vadd.f32 %v2121_v62, %v2336_v26 }
 0x151   : > { %v1694_v63 = vsel %vm2393_vm14, %v1646_v49, %v1985_v47  ;;  %v1625_v36 = vrot.slane %v1521_v51, 2  ;;  %v1627_v58 = vrot.slane %v1522_v52, 1  ;;  %v1721_v59 = vsel %vm2375_vm13, %v2082_v27, %v2003_v19  ;;  %v2183_v47 = vld [vmem:[#allocation2] ss:$0 sm:$0xff]  ;;  %v460_v51 = vpop.f32.mrf.mxu0  ;;  %v524_v52 = vpop.f32.mrf.mxu1 }
 0x152   : > { %1986 = vst [vmem:[%s2271_s25 + $0x18] sm:$0xf] %v1694_v63  ;;  %v1624_v60 = vsel %vm1543_vm8, %v1623_v53, %v2489_v57  ;;  %2004 = vst [vmem:[%s2271_s25 + $0x3c] sm:$0x1] %v1721_v59  ;;  %v702_v61 = vcombine.high %v574_v54, %v574_v54  ;;  %v709_v0 = vrot.slane %v574_v54, %v2342_v39 }
 0x153   : > { %v838_v1 = vcombine.high %v582_v56, %v582_v56  ;;  %v1626_v2 = vsel %vm1546_vm9, %v1625_v36, %v1624_v60  ;;  %v845_v3 = vrot.slane %v582_v56, %v2342_v39  ;;  %v533_v42 = vadd.f32 %v2183_v47, %v2137_v31 }
 0x154   : > { %v1628_v5 = vsel %vm1549_vm10, %v1627_v58, %v1626_v2  ;;  %v716_v44 = vrot.slane %v702_v61, %v2342_v39  ;;  %v717_v9 = vcombine.high %v709_v0, %v709_v0  ;;  %v1865_v57 = vrot.slane %v709_v0, 9 }
 0x155   : > { %v1654_v50 = vpack.c.b16 %v1628_v5, %v1628_v5  ;;  %v852_v10 = vrot.slane %v838_v1, %v2342_v39  ;;  %v853_v11 = vcombine.high %v845_v3, %v845_v3  ;;  %v1897_v8 = vrot.slane %v845_v3, 9 }
 0x156   : > { %v718_v12 = vcombine.high %v716_v44, %v716_v44  ;;  %v1866_v13 = vrot.slane %v717_v9, 9  ;;  %v1867_v14 = vrot.slane %v716_v44, 9  ;;  %v1152_v15 = vmax.f32 %v709_v0, %v1865_v57 }
 0x157   : > { %v1718_v26 = vsel %vm2393_vm14, %v1654_v50, %v2001_v6  ;;  %v854_v16 = vcombine.high %v852_v10, %v852_v10  ;;  %v1898_v17 = vrot.slane %v853_v11, 9  ;;  %v1899_v18 = vrot.slane %v852_v10, 9 }
 0x158   : > { %2002 = vst [vmem:[%s2271_s25 + $0x38] sm:$0xf] %v1718_v26  ;;  %v1868_v20 = vrot.slane %v718_v12, 9  ;;  %v1153_v21 = vmax.f32 %v717_v9, %v1866_v13  ;;  %v1154_v22 = vmax.f32 %v716_v44, %v1867_v14  ;;  %v2036_v23 = vpack.c.bf16 %v1152_v15, %v1152_v15 }
 0x159   : > { %v1900_v24 = vrot.slane %v854_v16, 9  ;;  %v1184_v25 = vmax.f32 %v845_v3, %v1897_v8  ;;  %v1185_v29 = vmax.f32 %v853_v11, %v1898_v17  ;;  %v1186_v30 = vmax.f32 %v852_v10, %v1899_v18 }
 0x15a   : > { %v1155_v32 = vmax.f32 %v718_v12, %v1868_v20  ;;  %v2037_v33 = vpack.c.bf16 %v1153_v21, %v1153_v21  ;;  %v2038_v34 = vpack.c.bf16 %v1154_v22, %v1154_v22  ;;  %v1492_v35 = vunpack.c.l.b16 %v2036_v23 }
 0x15b   : > { %v1187_v37 = vmax.f32 %v854_v16, %v1900_v24  ;;  %v2068_v38 = vpack.c.bf16 %v1184_v25, %v1184_v25  ;;  %v2069_v40 = vpack.c.bf16 %v1185_v29, %v1185_v29  ;;  %v2070_v41 = vpack.c.bf16 %v1186_v30, %v1186_v30 }
 0x15c   : > { %v2039_v43 = vpack.c.bf16 %v1155_v32, %v1155_v32  ;;  %v1493_v45 = vunpack.c.l.b16 %v2037_v33  ;;  %v1494_v46 = vunpack.c.l.b16 %v2038_v34  ;;  %v1577_v53 = vrot.slane %v1492_v35, 7 }
 0x15d   : > { %v2071_v19 = vpack.c.bf16 %v1187_v37, %v1187_v37  ;;  %v1524_v28 = vunpack.c.l.b16 %v2068_v38  ;;  %v1525_v48 = vunpack.c.l.b16 %v2069_v40  ;;  %v1526_v49 = vunpack.c.l.b16 %v2070_v41 }
 0x15e   : > { %v1578_v27 = vrot.slane %v1493_v45, 6  ;;  %v551_v56 = vmax.f32 %v2518_v4, 0.0  ;;  %v1495_v62 = vunpack.c.l.b16 %v2039_v43  ;;  %v461_v36 = vadd.f32 %v2183_v47, %v460_v51 }
 0x15f   : > { %v1630_v54 = vrot.slane %v1525_v48, 6  ;;  %v1629_v63 = vrot.slane %v1524_v28, 7  ;;  %v525_v58 = vadd.f32 %v2183_v47, %v524_v52  ;;  %v1580_v59 = vrot.slane %v1494_v46, 5  ;;  %v1991_v47 = vld [vmem:[%s2271_s25 + $0x24] sm:$0x1] }
 0x160   : > { %v1527_v60 = vunpack.c.l.b16 %v2071_v19  ;;  %v1632_v61 = vrot.slane %v1526_v49, 5  ;;  %v567_v0 = vmax.f32 %v533_v42, 0.0  ;;  %v1579_v1 = vsel %vm1534_vm3, %v1578_v27, %v1577_v53  ;;  %v2007_v53 = vld [vmem:[%s2271_s25 + $0x44] sm:$0x1] }
 0x161   : > { %v1631_v2 = vsel %vm1534_vm3, %v1630_v54, %v1629_v63  ;;  %v549_v3 = vmax.f32 %v461_v36, 0.0  ;;  %v565_v5 = vmax.f32 %v525_v58, 0.0  ;;  %v1581_v9 = vsel %vm1537_vm4, %v1580_v59, %v1579_v1 }
 0x162   : > { %v1582_v57 = vrot.slane %v1495_v62, 4  ;;  %v1633_v4 = vsel %vm1537_vm4, %v1632_v61, %v1631_v2  ;;  %v1634_v50 = vrot.slane %v1527_v60, 4 }
 0x163   : > { %v575_v6 = vmax.f32 %v549_v3, %v551_v56  ;;  %v583_v44 = vmax.f32 %v565_v5, %v567_v0 }
 0x164   : > { %v1583_v16 = vsel %vm1540_vm5, %v1582_v57, %v1581_v9  ;;  %v1635_v20 = vsel %vm1540_vm5, %v1634_v50, %v1633_v4  ;;  %v2005_v4 = vld [vmem:[%s2271_s25 + $0x40] sm:$0xf] }
 0x165   : > { %v719_v10 = vcombine.high %v575_v6, %v575_v6  ;;  %v726_v11 = vrot.slane %v575_v6, %v2342_v39  ;;  %v855_v8 = vcombine.high %v583_v44, %v583_v44  ;;  %v862_v12 = vrot.slane %v583_v44, %v2342_v39  ;;  %v1989_v6 = vld [vmem:[%s2271_s25 + $0x20] sm:$0xf] }
 0x167   : > { %v733_v13 = vrot.slane %v719_v10, %v2342_v39  ;;  %v734_v14 = vcombine.high %v726_v11, %v726_v11  ;;  %v1869_v15 = vrot.slane %v726_v11, 9  ;;  %v869_v26 = vrot.slane %v855_v8, %v2342_v39 }
 0x168   : > { %v870_v17 = vcombine.high %v862_v12, %v862_v12  ;;  %v1901_v18 = vrot.slane %v862_v12, 9 }
 0x169   : > { %v735_v21 = vcombine.high %v733_v13, %v733_v13  ;;  %v1870_v22 = vrot.slane %v734_v14, 9  ;;  %v1871_v23 = vrot.slane %v733_v13, 9  ;;  %v1156_v24 = vmax.f32 %v726_v11, %v1869_v15 }
 0x16a   : > { %v871_v25 = vcombine.high %v869_v26, %v869_v26  ;;  %v1902_v29 = vrot.slane %v870_v17, 9  ;;  %v1903_v30 = vrot.slane %v869_v26, 9  ;;  %v1188_v31 = vmax.f32 %v862_v12, %v1901_v18 }
 0x16b   : > { %v1872_v32 = vrot.slane %v735_v21, 9  ;;  %v1157_v33 = vmax.f32 %v734_v14, %v1870_v22  ;;  %v1158_v34 = vmax.f32 %v733_v13, %v1871_v23  ;;  %v2040_v35 = vpack.c.bf16 %v1156_v24, %v1156_v24 }
 0x16c   : > { %v1904_v39 = vrot.slane %v871_v25, 9  ;;  %v1189_v37 = vmax.f32 %v870_v17, %v1902_v29  ;;  %v1190_v38 = vmax.f32 %v869_v26, %v1903_v30  ;;  %v2072_v40 = vpack.c.bf16 %v1188_v31, %v1188_v31 }
 0x16d   : > { %v1159_v41 = vmax.f32 %v735_v21, %v1872_v32  ;;  %v2041_v43 = vpack.c.bf16 %v1157_v33, %v1157_v33  ;;  %v2042_v45 = vpack.c.bf16 %v1158_v34, %v1158_v34  ;;  %v1496_v46 = vunpack.c.l.b16 %v2040_v35 }
 0x16e   : > { %v1191_v42 = vmax.f32 %v871_v25, %v1904_v39  ;;  %v2073_v19 = vpack.c.bf16 %v1189_v37, %v1189_v37  ;;  %v2074_v28 = vpack.c.bf16 %v1190_v38, %v1190_v38  ;;  %v1528_v48 = vunpack.c.l.b16 %v2072_v40 }
 0x16f   : > { %v1497_v49 = vunpack.c.l.b16 %v2041_v43  ;;  %v1498_v51 = vunpack.c.l.b16 %v2042_v45  ;;  %v1584_v52 = vrot.slane %v1496_v46, 3  ;;  %v2079_v27 = vpack.c.bf16 %v1159_v41, %v1159_v41 }
 0x170   : > { %v1529_v54 = vunpack.c.l.b16 %v2073_v19  ;;  %v1530_v56 = vunpack.c.l.b16 %v2074_v28  ;;  %v1636_v62 = vrot.slane %v1528_v48, 3  ;;  %v2083_v63 = vpack.c.bf16 %v1191_v42, %v1191_v42 }
 0x171   : > { %v1585_v36 = vsel %vm1543_vm8, %v1584_v52, %v1583_v16  ;;  %v1586_v58 = vrot.slane %v1497_v49, 2  ;;  %v1588_v59 = vrot.slane %v1498_v51, 1  ;;  %v1703_v60 = vsel %vm2375_vm13, %v2079_v27, %v1991_v47 }
 0x172   : > { %1992 = vst [vmem:[%s2271_s25 + $0x24] sm:$0x1] %v1703_v60  ;;  %v1637_v61 = vsel %vm1543_vm8, %v1636_v62, %v1635_v20  ;;  %v1638_v0 = vrot.slane %v1529_v54, 2  ;;  %v1640_v1 = vrot.slane %v1530_v56, 1  ;;  %v1727_v2 = vsel %vm2375_vm13, %v2083_v63, %v2007_v53 }
 0x173   : > { %v1587_v3 = vsel %vm1546_vm9, %v1586_v58, %v1585_v36  ;;  %2008 = vst [vmem:[%s2271_s25 + $0x44] sm:$0x1] %v1727_v2 }
 0x174   : > { %v1589_v5 = vsel %vm1549_vm10, %v1588_v59, %v1587_v3  ;;  %v1639_v44 = vsel %vm1546_vm9, %v1638_v0, %v1637_v61 }
 0x175   : > { %v1648_v9 = vpack.c.b16 %v1589_v5, %v1589_v5  ;;  %v1641_v57 = vsel %vm1549_vm10, %v1640_v1, %v1639_v44 }
 0x176   : > { %v1656_v50 = vpack.c.b16 %v1641_v57, %v1641_v57 }
 0x177   : > { %v1700_v10 = vsel %vm2393_vm14, %v1648_v9, %v1989_v6 }
 0x178   : > { %1990 = vst [vmem:[%s2271_s25 + $0x20] sm:$0xf] %v1700_v10  ;;  %v1724_v7 = vsel %vm2393_vm14, %v1656_v50, %v2005_v4 }
 0x179   : > { %2006 = vst [vmem:[%s2271_s25 + $0x40] sm:$0xf] %v1724_v7 }
 0x17a PF: > { %s14_s12 = sadd.s32 1, %s2220_s12  }
 0x17b   : > { %p11_p1 = scmp.ge.s32.totalorder %s14_s12, 4  }
 0x17d   :  { %13 = sbr.rel (!%p11_p1) target bundleno = 1 (0x1), region = 68 }
 0x182   :  { %1750 = vsyncpa [#allocation3], 1 }
 0x183   :  { %1752 = vsyncpa [#allocation3 + $0x1], 1 }

// kernel: amm_vgg_forward.4
= control target key start
LH: loop header
LB: loop body
LE: loop exit
PB: predicated region body
PF: predicated region fallthrough
CT: control target
= control target key end

     0   :  { %v4946_v1 = vmov 0   ;;  %vm3941_vm0 = vcmask 1042432   ;;  %vm3942_vm1 = vsmask.f32 2306  ;;  %vm3944_vm2 = vcmask 1046532   ;;  %s7056_s1 = inlined_call_operand.vmem [shape: bf16[3,384,256], index: 1, kind: input, shape index: {}]   ;;  %s7057_s0 = inlined_call_operand.vmem [shape: bf16[2,10,10,128], index: 0, kind: input, shape index: {}]   ;;  %s7058_s3 = inlined_call_operand.vmem [shape: bf16[2,6,6,256], index: 3, kind: output, shape index: {}]   ;;  %s7059_s2 = inlined_call_operand.vmem [shape: f32[1,256], index: 2, kind: input, shape index: {}]  }
   0x1   :  { %v4610_v0 = vld [vmem:[%s7056_s1 + $0x1f4] ss:$8 sps:$4 sm:$0xff]   ;;  %1218 = vmatprep.mubr.bf16.mxu1 %v4946_v1  ;;  %v4614_v3 = vld [vmem:[%s7056_s1 + $0x1f0] ss:$8 sps:$4 sm:$0xff]   ;;  %v4616_v5 = vld [vmem:[%s7056_s1 + $0x1e4] ss:$8 sps:$4 sm:$0xff]  }
   0x2   :  { %v4612_v2 = vld [vmem:[%s7056_s1 + $0x2f4] ss:$8 sps:$4 sm:$0xff]   ;;  %1073 = vmatprep.subr.bf16.mxu0 %v4610_v0  ;;  %v4615_v4 = vld [vmem:[%s7056_s1 + $0x2f0] ss:$8 sps:$4 sm:$0xff]   ;;  %v4618_v6 = vld [vmem:[%s7056_s1 + $0x2e4] ss:$8 sps:$4 sm:$0xff]  }
   0x3   :  { %1186 = vmatprep.subr.bf16.mxu1 %v4612_v2  ;;  %1074 = vmatpush1.bf16.msra.mxu0 %v4614_v3  ;;  %v4620_v7 = vld [vmem:[%s7056_s1 + $0x1e0] ss:$8 sps:$4 sm:$0xff]   ;;  %v4622_v9 = vld [vmem:[%s7056_s1 + $0x1d4] ss:$8 sps:$4 sm:$0xff]   ;;  %v4626_v11 = vld [vmem:[%s7056_s1 + $0x1d0] ss:$8 sps:$4 sm:$0xff]  }
   0x4   :  { %1187 = vmatpush1.bf16.msra.mxu1 %v4615_v4  ;;  %1075 = vmatprep.subr.bf16.mxu0 %v4616_v5  ;;  %v4621_v8 = vld [vmem:[%s7056_s1 + $0x2e0] ss:$8 sps:$4 sm:$0xff]   ;;  %v4624_v10 = vld [vmem:[%s7056_s1 + $0x2d4] ss:$8 sps:$4 sm:$0xff]   ;;  %v4627_v12 = vld [vmem:[%s7056_s1 + $0x2d0] ss:$8 sps:$4 sm:$0xff]  }
   0x5   :  { %1188 = vmatprep.subr.bf16.mxu1 %v4618_v6  ;;  %v4628_v13 = vld [vmem:[%s7056_s1 + $0x1c4] ss:$8 sps:$4 sm:$0xff]   ;;  %v4632_v15 = vld [vmem:[%s7056_s1 + $0x1c0] ss:$8 sps:$4 sm:$0xff]   ;;  %v4634_v17 = vld [vmem:[%s7056_s1 + $0x1b4] ss:$8 sps:$4 sm:$0xff]  }
   0x6   :  { %v4630_v14 = vld [vmem:[%s7056_s1 + $0x2c4] ss:$8 sps:$4 sm:$0xff]   ;;  %v4633_v16 = vld [vmem:[%s7056_s1 + $0x2c0] ss:$8 sps:$4 sm:$0xff]   ;;  %v4636_v18 = vld [vmem:[%s7056_s1 + $0x2b4] ss:$8 sps:$4 sm:$0xff]  }
   0x7   :  { %1076 = vmatpush1.bf16.msra.mxu0 %v4620_v7  ;;  %v4638_v19 = vld [vmem:[%s7056_s1 + $0x1b0] ss:$8 sps:$4 sm:$0xff]   ;;  %v4640_v21 = vld [vmem:[%s7056_s1 + $0x1a4] ss:$8 sps:$4 sm:$0xff]   ;;  %v4644_v23 = vld [vmem:[%s7056_s1 + $0x1a0] ss:$8 sps:$4 sm:$0xff]  }
   0x8   :  { %1189 = vmatpush1.bf16.msra.mxu1 %v4621_v8  ;;  %1077 = vmatprep.subr.bf16.mxu0 %v4622_v9  ;;  %v4639_v20 = vld [vmem:[%s7056_s1 + $0x2b0] ss:$8 sps:$4 sm:$0xff]   ;;  %v4642_v22 = vld [vmem:[%s7056_s1 + $0x2a4] ss:$8 sps:$4 sm:$0xff]   ;;  %v4645_v24 = vld [vmem:[%s7056_s1 + $0x2a0] ss:$8 sps:$4 sm:$0xff]  }
   0x9   :  { %1190 = vmatprep.subr.bf16.mxu1 %v4624_v10  ;;  %v4646_v25 = vld [vmem:[%s7056_s1 + $0x194] ss:$8 sps:$4 sm:$0xff]   ;;  %v4650_v27 = vld [vmem:[%s7056_s1 + $0x190] ss:$8 sps:$4 sm:$0xff]   ;;  %v5053_v28 = vld [vmem:[%s7057_s0 + $0xc] sm:$0x1] }
   0xa   :  { %v4648_v26 = vld [vmem:[%s7056_s1 + $0x294] ss:$8 sps:$4 sm:$0xff]   ;;  %v4040_v30 = vld [vmem:[%s7057_s0 + $0x8] sm:$0xe]  ;;  %v4041_v31 = vld [vmem:[%s7057_s0 + $0x10] sm:$0xe] }
   0xb   :  { %1078 = vmatpush1.bf16.msra.mxu0 %v4626_v11  ;;  %v5058_v29 = vld [vmem:[%s7057_s0 + $0x14] sm:$0x1]  ;;  %v4651_v32 = vld [vmem:[%s7056_s1 + $0x290] ss:$8 sps:$4 sm:$0xff]   ;;  %v4652_v33 = vld [vmem:[%s7056_s1 + $0x184] ss:$8 sps:$4 sm:$0xff]   ;;  %v4072_v34 = vcombine.low %v4040_v30, %v5053_v28 }
   0xc   :  { %1191 = vmatpush1.bf16.msra.mxu1 %v4627_v12  ;;  %1079 = vmatprep.subr.bf16.mxu0 %v4628_v13  ;;  %v4073_v35 = vcombine.low %v4041_v31, %v5058_v29  ;;  %v4654_v36 = vld [vmem:[%s7056_s1 + $0x284] ss:$8 sps:$4 sm:$0xff]   ;;  %v4656_v37 = vld [vmem:[%s7056_s1 + $0x180] ss:$8 sps:$4 sm:$0xff]   ;;  %v4658_v41 = vld [vmem:[%s7056_s1 + $0x274] ss:$8 sps:$4 sm:$0xff]  }
   0xd   :  { %1192 = vmatprep.subr.bf16.mxu1 %v4630_v14  ;;  %v688_v38 = vrot.slane %v4072_v34, 1  ;;  %v4657_v40 = vld [vmem:[%s7056_s1 + $0x280] ss:$8 sps:$4 sm:$0xff]   ;;  %v4664_v42 = vld [vmem:[%s7056_s1 + $0x74] ss:$8 sps:$4 sm:$0xff]   ;;  %3157 = vst [vmem:[%s7058_s3] sm:$0x77] %v4946_v1  ;;  %vm6737_vm7 = vmand %vm3941_vm0, %vm3942_vm1 }
   0xe   :  { %v689_v39 = vrot.slane %v4073_v35, 1  ;;  %v4026_v43 = vld [vmem:[%s7057_s0 + $0x1c] sm:$0x1]  ;;  %v5095_v44 = vld [vmem:[%s7057_s0 + $0x24] sm:$0x1]  ;;  %vm3811_vm4 = vcmask 1042434  }
   0xf   :  { %1080 = vmatpush1.bf16.msra.mxu0 %v4632_v15  ;;  %v4042_v45 = vld [vmem:[%s7057_s0 + $0x18] sm:$0xe]  ;;  %v4043_v46 = vld [vmem:[%s7057_s0 + $0x20] sm:$0xe]  ;;  %v4666_v52 = vld [vmem:[%s7056_s1 + $0x264] ss:$8 sps:$4 sm:$0xff]  }
  0x10   :  { %1193 = vmatpush1.bf16.msra.mxu1 %v4633_v16  ;;  %1081 = vmatprep.subr.bf16.mxu0 %v4634_v17  ;;  %v4138_v47 = vcombine.low %v688_v38, %v689_v39  ;;  %v4662_v48 = vld [vmem:[%s7056_s1 + $0x70] ss:$8 sps:$4 sm:$0xff]   ;;  %v4074_v49 = vcombine.low %v4042_v45, %v4026_v43  ;;  %v4075_v50 = vcombine.low %v4043_v46, %v5095_v44  ;;  %v4670_v53 = vld [vmem:[%s7056_s1 + $0x64] ss:$8 sps:$4 sm:$0xff]   ;;  %v4668_v54 = vld [vmem:[%s7056_s1 + $0x60] ss:$8 sps:$4 sm:$0xff]  }
  0x11   :  { %1194 = vmatprep.subr.bf16.mxu1 %v4636_v18  ;;  %v4665_v51 = vld [vmem:[%s7056_s1 + $0x270] ss:$8 sps:$4 sm:$0xff]   ;;  %v4671_v57 = vld [vmem:[%s7056_s1 + $0x260] ss:$8 sps:$4 sm:$0xff]   ;;  %v4672_v58 = vld [vmem:[%s7056_s1 + $0x254] ss:$8 sps:$4 sm:$0xff]  }
  0x12   :  { %v690_v55 = vrot.slane %v4074_v49, 1  ;;  %v691_v56 = vrot.slane %v4075_v50, 1  ;;  %v4680_v59 = vld [vmem:[%s7056_s1 + $0x54] ss:$8 sps:$4 sm:$0xff]   ;;  %v5131_v60 = vld [vmem:[%s7057_s0 + $0x2c] sm:$0x1] }
  0x13   :  { %1082 = vmatpush1.bf16.msra.mxu0 %v4638_v19  ;;  %v5136_v61 = vld [vmem:[%s7057_s0 + $0x34] sm:$0x1]  ;;  %v4044_v62 = vld [vmem:[%s7057_s0 + $0x28] sm:$0xe]  ;;  %v4045_v63 = vld [vmem:[%s7057_s0 + $0x30] sm:$0xe] }
  0x14   :  { %1195 = vmatpush1.bf16.msra.mxu1 %v4639_v20  ;;  %1083 = vmatprep.subr.bf16.mxu0 %v4640_v21  ;;  %v5148_v0 = vld [vmem:[%s7057_s0 + $0x18] sm:$0xf]  ;;  %v4141_v2 = vcombine.low %v690_v55, %v691_v56  ;;  %v4076_v5 = vcombine.low %v4044_v62, %v5131_v60  ;;  %v4077_v6 = vcombine.low %v4045_v63, %v5136_v61  ;;  %v4682_v7 = vld [vmem:[%s7056_s1 + $0x244] ss:$8 sps:$4 sm:$0xff]   ;;  %v4684_v9 = vld [vmem:[%s7056_s1 + $0x40] ss:$8 sps:$4 sm:$0xff]  }
  0x15   :  { %1196 = vmatprep.subr.bf16.mxu1 %v4642_v22  ;;  %v4678_v3 = vld [vmem:[%s7056_s1 + $0x50] ss:$8 sps:$4 sm:$0xff]   ;;  %v4686_v8 = vld [vmem:[%s7056_s1 + $0x44] ss:$8 sps:$4 sm:$0xff]   ;;  %v4687_v10 = vld [vmem:[%s7056_s1 + $0x240] ss:$8 sps:$4 sm:$0xff]   ;;  %v5179_v15 = vcombine.low %v5148_v0, %v4026_v43 }
  0x16   :  { %v4681_v4 = vld [vmem:[%s7056_s1 + $0x250] ss:$8 sps:$4 sm:$0xff]   ;;  %v5173_v11 = vld [vmem:[%s7057_s0 + $0x20] sm:$0xf]  ;;  %v4688_v12 = vld [vmem:[%s7056_s1 + $0x234] ss:$8 sps:$4 sm:$0xff]  }
  0x17   :  { %1084 = vmatpush1.bf16.msra.mxu0 %v4644_v23  ;;  %v692_v13 = vrot.slane %v4076_v5, 1  ;;  %v693_v14 = vrot.slane %v4077_v6, 1  ;;  %v4696_v16 = vld [vmem:[%s7056_s1 + $0x34] ss:$8 sps:$4 sm:$0xff]   ;;  %v5192_v18 = vld [vmem:[%s7057_s0 + $0x44] sm:$0x1] }
  0x18   :  { %1197 = vmatpush1.bf16.msra.mxu1 %v4645_v24  ;;  %1085 = vmatprep.subr.bf16.mxu0 %v4646_v25  ;;  %v5187_v17 = vld [vmem:[%s7057_s0 + $0x3c] sm:$0x1]  ;;  %v4046_v19 = vld [vmem:[%s7057_s0 + $0x38] sm:$0xe]  ;;  %v4047_v20 = vld [vmem:[%s7057_s0 + $0x40] sm:$0xe] }
  0x19   :  { %1198 = vmatprep.subr.bf16.mxu1 %v4648_v26  ;;  %v4078_v21 = vcombine.low %v4046_v19, %v5187_v17  ;;  %v4079_v22 = vcombine.low %v4047_v20, %v5192_v18  ;;  %v5206_v23 = vld [vmem:[%s7057_s0 + $0x28] sm:$0xf]  ;;  %v4144_v24 = vcombine.low %v692_v13, %v693_v14  ;;  %v4694_v25 = vld [vmem:[%s7056_s1 + $0x30] ss:$8 sps:$4 sm:$0xff]   ;;  %v5213_v26 = vcombine.low %v5173_v11, %v5095_v44  ;;  %v5259_v44 = vld [vmem:[%s7057_s0 + $0x5c] sm:$0x1] }
  0x1a   :  { %v545_v30 = vshll.u32 %v5179_v15, 16  ;;  %v5222_v31 = vld [vmem:[%s7057_s0 + $0x30] sm:$0xf]  ;;  %v4700_v34 = vld [vmem:[%s7056_s1 + $0x20] ss:$8 sps:$4 sm:$0xff]   ;;  %v5268_v46 = vcombine.low %v5206_v23, %v5131_v60  ;;  %vm3814_vm5 = vcmask 1043459  }
  0x1b   :  { %1086 = vmatpush1.bf16.msra.mxu0 %v4650_v27  ;;  %v4697_v27 = vld [vmem:[%s7056_s1 + $0x230] ss:$8 sps:$4 sm:$0xff]   ;;  %v4703_v35 = vld [vmem:[%s7056_s1 + $0x220] ss:$8 sps:$4 sm:$0xff]   ;;  %v5264_v45 = vld [vmem:[%s7057_s0 + $0x64] sm:$0x1] }
  0x1c   :  { %1199 = vmatpush1.bf16.msra.mxu1 %v4651_v32  ;;  %1087 = vmatprep.subr.bf16.mxu0 %v4652_v33  ;;  %v4698_v32 = vld [vmem:[%s7056_s1 + $0x224] ss:$8 sps:$4 sm:$0xff]   ;;  %v5239_v38 = vld [vmem:[%s7057_s0 + $0x8] sm:$0xf]  ;;  %v5244_v39 = vld [vmem:[%s7057_s0 + $0x10] sm:$0xf] }
  0x1d   :  { %1200 = vmatprep.subr.bf16.mxu1 %v4654_v36  ;;  %v4702_v33 = vld [vmem:[%s7056_s1 + $0x24] ss:$8 sps:$4 sm:$0xff]   ;;  %v694_v36 = vrot.slane %v4078_v21, 1  ;;  %v4057_v43 = vcombine.low %v5244_v39, %v5058_v29  ;;  %v4048_v29 = vld [vmem:[%s7057_s0 + $0x58] sm:$0xe]  ;;  %v550_v55 = vshrl.u32 %v5213_v26, 16 }
  0x1e   :  { %v4710_v56 = vld [vmem:[%s7056_s1 + $0x10] ss:$8 sps:$4 sm:$0xff]   ;;  %v547_v63 = vrot.slane %v545_v30, 1  ;;  %v4718_v5 = vld [vmem:[%s7056_s1 + $0x4] ss:$8 sps:$4 sm:$0xff]   ;;  %vm3817_vm6 = vcmask 1044484  }
  0x1f   :  { %1088 = vmatpush1.bf16.msra.mxu0 %v4656_v37  ;;  %v695_v37 = vrot.slane %v4079_v22, 1  ;;  %v4713_v62 = vld [vmem:[%s7056_s1 + $0x210] ss:$8 sps:$4 sm:$0xff]   ;;  %v4050_v13 = vld [vmem:[%s7057_s0 + $0x68] sm:$0xe] }
  0x20   :  { %1201 = vmatpush1.bf16.msra.mxu1 %v4657_v40  ;;  %1089 = vmatprep.subr.bf16.mxu0 %v4658_v41  ;;  %v4704_v40 = vld [vmem:[%s7056_s1 + $0x214] ss:$8 sps:$4 sm:$0xff]   ;;  %v4719_v14 = vld [vmem:[%s7056_s1 + $0x200] ss:$8 sps:$4 sm:$0xff]   ;;  %v4051_v22 = vld [vmem:[%s7057_s0 + $0x70] sm:$0xe] }
  0x21   :  { %1587 = vmatprep.subr.bf16.mxu1 %v4664_v42  ;;  %v4712_v41 = vld [vmem:[%s7056_s1 + $0x14] ss:$8 sps:$4 sm:$0xff]   ;;  %v4056_v42 = vcombine.low %v5239_v38, %v5053_v28  ;;  %v5272_v28 = vcombine.low %v5222_v31, %v5136_v61  ;;  %v5292_v61 = vld [vmem:[%s7057_s0 + $0x38] sm:$0xf]  ;;  %3158 = vst [vmem:[%s7058_s3 + $0x8] sm:$0x77] %v4946_v1 }
  0x22   :  { %v5327_v21 = vld [vmem:[%s7057_s0 + $0x74] sm:$0x1]  ;;  %3159 = vst [vmem:[%s7058_s3 + $0x10] sm:$0x77] %v4946_v1  ;;  %3160 = vst [vmem:[%s7058_s3 + $0x18] sm:$0x77] %v4946_v1 }
  0x23   :  { %1219 = vmatmul.mubr.bf16.vlgmr.msra.gmra.mxu1 %v4138_v47  ;;  %1090 = vmatpush2.bf16.msra.mxu0 %v4665_v51  ;;  %v4049_v47 = vld [vmem:[%s7057_s0 + $0x60] sm:$0xe]  ;;  %v529_v49 = vshrl.u32 %v4056_v42, 16  ;;  %v531_v50 = vshll.u32 %v4056_v42, 16  ;;  %v536_v51 = vshrl.u32 %v4057_v43, 16 }
  0x24   :  { %1588 = vmatpush1.bf16.msra.mxu1 %v4662_v48  ;;  %1091 = vmatprep.subr.bf16.mxu0 %v4666_v52  ;;  %v552_v48 = vshll.u32 %v5213_v26, 16  ;;  %v538_v52 = vshll.u32 %v4057_v43, 16  ;;  %v4081_v60 = vcombine.low %v4049_v47, %v5264_v45  ;;  %v4732_v26 = vld [vmem:[%s7056_s1 + $0x174] ss:$8 sps:$4 sm:$0xff]   ;;  %v4730_v42 = vld [vmem:[%s7056_s1 + $0x170] ss:$8 sps:$4 sm:$0xff]  }
  0x25   :  { %1589 = vmatprep.subr.bf16.mxu1 %v4670_v53  ;;  %1228 = vmatprep.mubr.bf16.mxu1 %v4946_v1  ;;  %v4147_v53 = vcombine.low %v694_v36, %v695_v37  ;;  %v4083_v37 = vcombine.low %v4051_v22, %v5327_v21  ;;  %v5377_v47 = vld [vmem:[%s7057_s0 + $0x7c] sm:$0x1]  ;;  %v4758_v22 = vld [vmem:[%s7056_s1 + $0x150] ss:$8 sps:$4 sm:$0xff]   ;;  %3161 = vst [vmem:[%s7058_s3 + $0x20] sm:$0x77] %v4946_v1 }
  0x26   :  { %v697_v19 = vrot.slane %v4081_v60, 1  ;;  %3162 = vst [vmem:[%s7058_s3 + $0x28] sm:$0x77] %v4946_v1  ;;  %3163 = vst [vmem:[%s7058_s3 + $0x30] sm:$0x77] %v4946_v1 }
  0x27   :  { %1092 = vmatpush2.bf16.msra.mxu0 %v4671_v57  ;;  %v533_v57 = vrot.slane %v531_v50, 1  ;;  %v699_v50 = vrot.slane %v4083_v37, 1  ;;  %v4142_v37 = vcombine.low %v5206_v23, %v5222_v31  ;;  %v4755_v23 = vld [vmem:[%s7056_s1 + $0xb0] ss:$8 sps:$4 sm:$0xff]   ;;  %3164 = vst [vmem:[%s7058_s3 + $0x38] sm:$0x77] %v4946_v1 }
  0x28   :  { %1590 = vmatpush1.bf16.msra.mxu1 %v4668_v54  ;;  %1093 = vmatprep.subr.bf16.mxu0 %v4672_v58  ;;  %v543_v54 = vshrl.u32 %v5179_v15, 16  ;;  %v540_v58 = vrot.slane %v538_v52, 1  ;;  %v4053_v52 = vld [vmem:[%s7057_s0 + $0x80] sm:$0xe]  ;;  %3165 = vst [vmem:[%s7058_s3 + $0x40] sm:$0x77] %v4946_v1 }
  0x29   :  { %1591 = vmatprep.subr.bf16.mxu1 %v4680_v59  ;;  %v4080_v59 = vcombine.low %v4048_v29, %v5259_v44  ;;  %v534_v6 = vor.u32 %v533_v57, %v529_v49  ;;  %v4733_v29 = vld [vmem:[%s7056_s1 + $0xe0] ss:$8 sps:$4 sm:$0xff]   ;;  %3166 = vst [vmem:[%s7058_s3 + $0x48] sm:$0x77] %v4946_v1  ;;  %3167 = vst [vmem:[%s7058_s3 + $0x50] sm:$0x77] %v4946_v1 }
  0x2a   :  { %v548_v20 = vor.u32 %v547_v63, %v543_v54  ;;  %v5398_v57 = vld [vmem:[%s7057_s0 + $0x60] sm:$0xf]  ;;  %v4741_v63 = vld [vmem:[%s7056_s1 + $0xd0] ss:$8 sps:$4 sm:$0xff]   ;;  %3168 = vst [vmem:[%s7058_s3 + $0x58] sm:$0x77] %v4946_v1 }
  0x2b   :  { %1229 = vmatmul.mubr.bf16.gmra.mxu1 %v4141_v2  ;;  %1094 = vmatpush2.bf16.msra.mxu0 %v4681_v4  ;;  %v554_v2 = vrot.slane %v552_v48, 1  ;;  %v4714_v4 = vld [vmem:[%s7056_s1 + $0x204] ss:$8 sps:$4 sm:$0xff]   ;;  %v4052_v48 = vld [vmem:[%s7057_s0 + $0x78] sm:$0xe] }
  0x2c   :  { %1592 = vmatpush1.bf16.msra.mxu1 %v4678_v3  ;;  %1095 = vmatprep.subr.bf16.mxu0 %v4682_v7  ;;  %v5300_v3 = vld [vmem:[%s7057_s0 + $0x40] sm:$0xf]  ;;  %v541_v7 = vor.u32 %v540_v58, %v536_v51  ;;  %v5386_v51 = vld [vmem:[%s7057_s0 + $0x84] sm:$0x1]  ;;  %v4084_v60 = vcombine.low %v4052_v48, %v5377_v47  ;;  %vm3945_vm3 = vsmask.f32 6418 }
  0x2d   :  { %1593 = vmatprep.subr.bf16.mxu1 %v4686_v8  ;;  %1238 = vmatprep.mubr.bf16.mxu1 %v4946_v1  ;;  %v559_v8 = vshll.u32 %v5268_v46, 16  ;;  %vm6743_vm8 = vmand %vm3944_vm2, %vm3945_vm3 }
  0x2e   :  { %v4137_v15 = vcombine.low %v534_v6, %v541_v7  ;;  %v4139_v6 = vcombine.low %v5148_v0, %v5173_v11  ;;  %v5434_v0 = vld [vmem:[%s7057_s0 + $0x94] sm:$0x1]  ;;  %v5439_v11 = vld [vmem:[%s7057_s0 + $0x68] sm:$0xf]  ;;  %vm6761_vm9 = vmor %vm6743_vm8, %vm6737_vm7 }
  0x2f   :  { %1096 = vmatpush2.bf16.msra.mxu0 %v4687_v10  ;;  %v4716_v10 = vld [vmem:[%s7056_s1] ss:$8 sps:$4 sm:$0xff]  }
  0x30   :  { %1594 = vmatpush1.bf16.msra.mxu1 %v4684_v9  ;;  %1097 = vmatprep.subr.bf16.mxu0 %v4688_v12  ;;  %v566_v9 = vshll.u32 %v5272_v28, 16  ;;  %v5316_v12 = vld [vmem:[%s7057_s0 + $0x6c] sm:$0x1] }
  0x31   :  { %1595 = vmatprep.subr.bf16.mxu1 %v4696_v16  ;;  %v696_v16 = vrot.slane %v4080_v59, 1  ;;  %v4082_v30 = vcombine.low %v4050_v13, %v5316_v12  ;;  %1105 = vmatprep.mubr.bf16.mxu0 %v4137_v15  ;;  %v4743_v59 = vld [vmem:[%s7056_s1 + $0xd4] ss:$8 sps:$4 sm:$0xff]   ;;  %v5429_v13 = vld [vmem:[%s7057_s0 + $0x8c] sm:$0x1] }
  0x32   :  { %v4054_v15 = vld [vmem:[%s7057_s0 + $0x88] sm:$0xe] }
  0x33   :  { %1239 = vmatmul.mubr.bf16.gmra.mxu1 %v4144_v24  ;;  %1098 = vmatpush2.bf16.msra.mxu0 %v4697_v27  ;;  %v5334_v24 = vcombine.low %v5292_v61, %v5187_v17  ;;  %v555_v27 = vor.u32 %v554_v2, %v550_v55  ;;  %v557_v17 = vshrl.u32 %v5268_v46, 16  ;;  %v4150_v36 = vcombine.low %v696_v16, %v697_v19  ;;  %v4746_v46 = vld [vmem:[%s7056_s1 + $0x164] ss:$8 sps:$4 sm:$0xff]   ;;  %v4055_v16 = vld [vmem:[%s7057_s0 + $0x90] sm:$0xe] }
  0x34   :  { %1596 = vmatpush1.bf16.msra.mxu1 %v4694_v25  ;;  %1099 = vmatprep.subr.bf16.mxu0 %v4698_v32  ;;  %v4729_v25 = vld [vmem:[%s7056_s1 + $0xf4] ss:$8 sps:$4 sm:$0xff]   ;;  %v5345_v32 = vcombine.low %v5300_v3, %v5192_v18  ;;  %v5356_v18 = vld [vmem:[%s7057_s0 + $0x58] sm:$0xf]  ;;  %v698_v43 = vrot.slane %v4082_v30, 1 }
  0x35   :  { %1597 = vmatprep.subr.bf16.mxu1 %v4702_v33  ;;  %1248 = vmatprep.mubr.bf16.mxu1 %v4946_v1  ;;  %v561_v33 = vrot.slane %v559_v8, 1  ;;  %v5402_v58 = vcombine.low %v5356_v18, %v5259_v44  ;;  %v4085_v44 = vcombine.low %v4053_v52, %v5386_v51  ;;  %v4749_v8 = vld [vmem:[%s7056_s1 + $0xc4] ss:$8 sps:$4 sm:$0xff]   ;;  %v4747_v19 = vld [vmem:[%s7056_s1 + $0xc0] ss:$8 sps:$4 sm:$0xff]  }
  0x36   :  { %v580_v49 = vshll.u32 %v5345_v32, 16  ;;  %v4153_v7 = vcombine.low %v698_v43, %v699_v50  ;;  %v5465_v30 = vld [vmem:[%s7057_s0] sm:$0xf] }
  0x37   :  { %1100 = vmatpush2.bf16.msra.mxu0 %v4703_v35  ;;  %v4136_v35 = vcombine.low %v5239_v38, %v5244_v39  ;;  %v4735_v38 = vld [vmem:[%s7056_s1 + $0xe4] ss:$8 sps:$4 sm:$0xff]   ;;  %v4140_v39 = vcombine.low %v548_v20, %v555_v27  ;;  %v562_v54 = vor.u32 %v561_v33, %v557_v17  ;;  %v701_v20 = vrot.slane %v4085_v44, 1  ;;  %v4772_v43 = vld [vmem:[%s7056_s1 + $0x140] ss:$8 sps:$4 sm:$0xff]  }
  0x38   :  { %1598 = vmatpush1.bf16.msra.mxu1 %v4700_v34  ;;  %1101 = vmatprep.subr.bf16.mxu0 %v4704_v40  ;;  %v564_v34 = vshrl.u32 %v5272_v28, 16  ;;  %v568_v40 = vrot.slane %v566_v9, 1  ;;  %v573_v28 = vshll.u32 %v5334_v24, 16  ;;  %v5424_v9 = vcombine.low %v5398_v57, %v5264_v45  ;;  %v5444_v45 = vld [vmem:[%s7057_s0 + $0x70] sm:$0xf] }
  0x39   :  { %1599 = vmatprep.subr.bf16.mxu1 %v4712_v41  ;;  %v4727_v41 = vld [vmem:[%s7056_s1 + $0xf0] ss:$8 sps:$4 sm:$0xff]   ;;  %v4774_v27 = vld [vmem:[%s7056_s1 + $0x144] ss:$8 sps:$4 sm:$0xff]   ;;  %v4086_v17 = vcombine.low %v4054_v15, %v5429_v13  ;;  %v4087_v33 = vcombine.low %v4055_v16, %v5434_v0  ;;  %v4786_v44 = vld [vmem:[%s7056_s1 + $0x134] ss:$8 sps:$4 sm:$0xff]  }
  0x3a   :  { %v569_v55 = vor.u32 %v568_v40, %v564_v34  ;;  %v575_v2 = vrot.slane %v573_v28, 1  ;;  %v594_v34 = vshll.u32 %v5424_v9, 16  ;;  %v4757_v40 = vld [vmem:[%s7056_s1 + $0xb4] ss:$8 sps:$4 sm:$0xff]  }
  0x3b   :  { %1249 = vmatmul.mubr.bf16.gmra.mxu1 %v4147_v53  ;;  %1102 = vmatpush2.bf16.msra.mxu0 %v4713_v62  ;;  %v4744_v53 = vld [vmem:[%s7056_s1 + $0x160] ss:$8 sps:$4 sm:$0xff]   ;;  %v4760_v62 = vld [vmem:[%s7056_s1 + $0x154] ss:$8 sps:$4 sm:$0xff]   ;;  %v5518_v50 = vrot.slane %v4086_v17, 1  ;;  %v5520_v52 = vrot.slane %v4087_v33, 1 }
  0x3c   :  { %1600 = vmatpush1.bf16.msra.mxu1 %v4710_v56  ;;  %1103 = vmatprep.subr.bf16.mxu0 %v4714_v4  ;;  %v571_v56 = vshrl.u32 %v5334_v24, 16  ;;  %v578_v4 = vshrl.u32 %v5345_v32, 16  ;;  %v5470_v32 = vld [vmem:[%s7057_s0 + $0x8] sm:$0xf]  ;;  %v4777_v17 = vld [vmem:[%s7056_s1 + $0x84] ss:$8 sps:$4 sm:$0xff]  }
  0x3d   :  { %1601 = vmatprep.subr.bf16.mxu1 %v4718_v5  ;;  %1258 = vmatprep.mubr.bf16.mxu1 %v4946_v1  ;;  %v582_v5 = vrot.slane %v580_v49, 1  ;;  %v4763_v49 = vld [vmem:[%s7056_s1 + $0xa4] ss:$8 sps:$4 sm:$0xff]  }
  0x3e   :  { %v576_v24 = vor.u32 %v575_v2, %v571_v56 }
  0x3f   :  { %1104 = vmatpush2.bf16.msra.mxu0 %v4719_v14  ;;  %v700_v14 = vrot.slane %v4084_v60, 1 }
  0x40   :  { %1602 = vmatpush1.bf16.msra.mxu1 %v4716_v10  ;;  %1700 = vmatprep.subr.bf16.mxu0 %v4732_v26  ;;  %v4143_v10 = vcombine.low %v562_v54, %v569_v55  ;;  %v587_v26 = vshll.u32 %v5402_v58, 16  ;;  %v596_v54 = vrot.slane %v594_v34, 1  ;;  %v5526_v55 = vld [vmem:[%s7057_s0 + $0x80] sm:$0xf] }
  0x41   :  { %1603 = vmatprep.subr.bf16.mxu1 %v4729_v25  ;;  %v583_v25 = vor.u32 %v582_v5, %v578_v4  ;;  %v4156_v28 = vcombine.low %v700_v14, %v701_v20  ;;  %v5542_v5 = vld [vmem:[%s7057_s0 + $0x10] sm:$0xf] }
  0x42   :  { %1106 = vmatmul.mubr.bf16.vlgmr.msra.gmra.mxu0 %v4136_v35  ;;  %v5478_v35 = vld [vmem:[%s7057_s0 + $0x4] sm:$0x1] }
  0x43   :  { %1259 = vmatmul.mubr.bf16.gmra.mxu1 %v4150_v36  ;;  %1701 = vmatpush1.bf16.msra.mxu0 %v4730_v42  ;;  %v5483_v36 = vld [vmem:[%s7057_s0 + $0xc] sm:$0x1]  ;;  %v4146_v31 = vcombine.low %v576_v24, %v583_v25  ;;  %v5578_v24 = vcombine.low %v5526_v55, %v5386_v51  ;;  %v4159_v25 = vcombine.low %v5518_v50, %v5520_v52 }
  0x44   :  { %1604 = vmatpush2.bf16.msra.mxu1 %v4727_v41  ;;  %1115 = vmatprep.mubr.bf16.mxu0 %v4140_v39  ;;  %v3976_v41 = vcombine.low %v5465_v30, %v5478_v35  ;;  %v3977_v42 = vcombine.low %v5470_v32, %v5483_v36  ;;  %v5501_v39 = vcombine.low %v5444_v45, %v5327_v21  ;;  %v5513_v21 = vld [vmem:[%s7057_s0 + $0x78] sm:$0xf] }
  0x45   :  { %1605 = vmatprep.subr.bf16.mxu1 %v4735_v38  ;;  %1268 = vmatprep.mubr.bf16.mxu1 %v4946_v1  ;;  %v5497_v38 = vcombine.low %v5439_v11, %v5316_v12  ;;  %v589_v12 = vrot.slane %v587_v26, 1  ;;  %v5570_v16 = vcombine.low %v5513_v21, %v5377_v47  ;;  %v4769_v47 = vld [vmem:[%s7056_s1 + $0x90] ss:$8 sps:$4 sm:$0xff]   ;;  %v622_v50 = vshll.u32 %v5578_v24, 16 }
  0x46   :  { %1702 = vmatprep.subr.bf16.mxu0 %v4746_v46  ;;  %v585_v46 = vshrl.u32 %v5402_v58, 16  ;;  %v153_v48 = vshll.u32 %v3977_v42, 16  ;;  %v144_v56 = vshrl.u32 %v3976_v41, 16  ;;  %v608_v4 = vshll.u32 %v5501_v39, 16 }
  0x47   :  { %1703 = vmatpush1.bf16.msra.mxu0 %v4744_v53  ;;  %v592_v53 = vshrl.u32 %v5424_v9, 16  ;;  %v601_v2 = vshll.u32 %v5497_v38, 16  ;;  %v5554_v9 = vld [vmem:[%s7057_s0 + $0x14] sm:$0x1]  ;;  %v599_v26 = vshrl.u32 %v5497_v38, 16  ;;  %v606_v51 = vshrl.u32 %v5501_v39, 16 }
  0x48   :  { %1606 = vmatpush2.bf16.msra.mxu1 %v4733_v29  ;;  %1704 = vmatprep.subr.bf16.mxu0 %v4760_v62  ;;  %v146_v29 = vshll.u32 %v3976_v41, 16  ;;  %v155_v60 = vrot.slane %v153_v48, 1  ;;  %v4784_v62 = vld [vmem:[%s7056_s1 + $0x130] ss:$8 sps:$4 sm:$0xff]   ;;  %v3978_v14 = vcombine.low %v5542_v5, %v5554_v9  ;;  %v610_v34 = vrot.slane %v608_v4, 1 }
  0x49   :  { %1607 = vmatprep.subr.bf16.mxu1 %v4743_v59  ;;  %v151_v59 = vshrl.u32 %v3977_v42, 16  ;;  %v603_v33 = vrot.slane %v601_v2, 1  ;;  %v4797_v38 = vld [vmem:[%s7056_s1 + $0x120] ss:$8 sps:$4 sm:$0xff]   ;;  %v4787_v4 = vld [vmem:[%s7056_s1 + $0x370] ss:$8 sps:$4 sm:$0xff]  }
  0x4a   :  { %1116 = vmatmul.mubr.bf16.gmra.mxu0 %v4139_v6  ;;  %v148_v58 = vrot.slane %v146_v29, 1  ;;  %v4145_v6 = vcombine.low %v5292_v61, %v5300_v3  ;;  %v4771_v61 = vld [vmem:[%s7056_s1 + $0x94] ss:$8 sps:$4 sm:$0xff]   ;;  %v597_v3 = vor.u32 %v596_v54, %v592_v53  ;;  %v158_v41 = vshrl.u32 %v3978_v14, 16  ;;  %v5601_v39 = vld [vmem:[%s7057_s0 + $0x28] sm:$0xf] }
  0x4b   :  { %1269 = vmatmul.mubr.bf16.gmra.mxu1 %v4153_v7  ;;  %1125 = vmatprep.mubr.bf16.mxu0 %v4143_v10  ;;  %v590_v7 = vor.u32 %v589_v12, %v585_v46  ;;  %v5559_v10 = vld [vmem:[%s7057_s0 + $0x1c] sm:$0x1]  ;;  %v156_v20 = vor.u32 %v155_v60, %v151_v59  ;;  %v5596_v46 = vld [vmem:[%s7057_s0 + $0x20] sm:$0xf]  ;;  %v5607_v12 = vld [vmem:[%s7057_s0 + $0x24] sm:$0x1]  ;;  %v611_v59 = vor.u32 %v610_v34, %v606_v51 }
  0x4c   :  { %1608 = vmatpush2.bf16.msra.mxu1 %v4741_v63  ;;  %1278 = vmatprep.mubr.bf16.mxu1 %v4946_v1  ;;  %v4761_v63 = vld [vmem:[%s7056_s1 + $0xa0] ss:$8 sps:$4 sm:$0xff]   ;;  %v5612_v29 = vld [vmem:[%s7057_s0 + $0x2c] sm:$0x1]  ;;  %v3980_v52 = vcombine.low %v5596_v46, %v5607_v12  ;;  %v4812_v54 = vld [vmem:[%s7056_s1 + $0x114] ss:$8 sps:$4 sm:$0xff]  }
  0x4d   :  { %1609 = vmatprep.subr.bf16.mxu1 %v4749_v8  ;;  %1705 = vmatpush1.bf16.msra.mxu0 %v4758_v22  ;;  %v5549_v8 = vld [vmem:[%s7057_s0 + $0x18] sm:$0xf]  ;;  %v4799_v22 = vld [vmem:[%s7056_s1 + $0x124] ss:$8 sps:$4 sm:$0xff]   ;;  %v5617_v48 = vld [vmem:[%s7057_s0 + $0x88] sm:$0xf]  ;;  %v3981_v53 = vcombine.low %v5601_v39, %v5612_v29 }
  0x4e   :  { %1706 = vmatprep.subr.bf16.mxu0 %v4774_v27  ;;  %v3979_v15 = vcombine.low %v5549_v8, %v5559_v10  ;;  %v160_v27 = vshll.u32 %v3978_v14, 16  ;;  %v174_v2 = vshll.u32 %v3980_v52, 16  ;;  %v4208_v14 = vcombine.low %v5465_v30, %v5470_v32  ;;  %v4790_v51 = vld [vmem:[%s7056_s1 + $0x360] ss:$8 sps:$4 sm:$0xff]  }
  0x4f   :  { %v179_v32 = vshrl.u32 %v3981_v53, 16 }
  0x50   :  { %1610 = vmatpush2.bf16.msra.mxu1 %v4747_v19  ;;  %v149_v19 = vor.u32 %v148_v58, %v144_v56  ;;  %v162_v42 = vrot.slane %v160_v27, 1  ;;  %v5630_v56 = vld [vmem:[%s7057_s0 + $0x90] sm:$0xf]  ;;  %v4775_v58 = vld [vmem:[%s7056_s1 + $0x80] ss:$8 sps:$4 sm:$0xff]  }
  0x51   :  { %1611 = vmatprep.subr.bf16.mxu1 %v4757_v40  ;;  %1707 = vmatpush1.bf16.msra.mxu0 %v4772_v43  ;;  %v4149_v40 = vcombine.low %v590_v7, %v597_v3  ;;  %v181_v3 = vshll.u32 %v3981_v53, 16  ;;  %v4211_v53 = vcombine.low %v5542_v5, %v5549_v8 }
  0x52   :  { %1126 = vmatmul.mubr.bf16.gmra.mxu0 %v4142_v37  ;;  %1708 = vmatprep.subr.bf16.mxu0 %v4786_v44  ;;  %v167_v37 = vshll.u32 %v3979_v15, 16  ;;  %v163_v60 = vor.u32 %v162_v42, %v158_v41  ;;  %v4789_v44 = vld [vmem:[%s7056_s1 + $0x374] ss:$8 sps:$4 sm:$0xff]   ;;  %v4823_v41 = vld [vmem:[%s7056_s1 + $0x100] ss:$8 sps:$4 sm:$0xff]  }
  0x53   :  { %1279 = vmatmul.mubr.bf16.gmra.mxu1 %v4156_v28  ;;  %1135 = vmatprep.mubr.bf16.mxu0 %v4146_v31  ;;  %v4209_v31 = vcombine.low %v149_v19, %v156_v20  ;;  %v615_v28 = vshll.u32 %v5570_v16, 16  ;;  %v172_v19 = vshrl.u32 %v3980_v52, 16  ;;  %v5662_v20 = vld [vmem:[%s7057_s0 + $0x38] sm:$0xf]  ;;  %v4802_v42 = vld [vmem:[%s7056_s1 + $0x354] ss:$8 sps:$4 sm:$0xff]   ;;  %v4151_v52 = vcombine.low %v5439_v11, %v5444_v45 }
  0x54   :  { %1612 = vmatpush2.bf16.msra.mxu1 %v4755_v23  ;;  %1288 = vmatprep.mubr.bf16.mxu1 %v4946_v1  ;;  %v165_v23 = vshrl.u32 %v3979_v15, 16  ;;  %v169_v43 = vrot.slane %v167_v37, 1  ;;  %v624_v15 = vrot.slane %v622_v50, 1  ;;  %v5707_v50 = vld [vmem:[%s7057_s0 + $0x58] sm:$0xf] }
  0x55   :  { %1613 = vmatprep.subr.bf16.mxu1 %v4763_v49  ;;  %1709 = vmatpush1.bf16.msra.mxu0 %v4784_v62  ;;  %v604_v49 = vor.u32 %v603_v33, %v599_v26  ;;  %v617_v7 = vrot.slane %v615_v28, 1  ;;  %v183_v26 = vrot.slane %v181_v3, 1  ;;  %v4825_v33 = vld [vmem:[%s7056_s1 + $0x104] ss:$8 sps:$4 sm:$0xff]  }
  0x56   :  { %1710 = vmatprep.subr.bf16.mxu0 %v4799_v22  ;;  %v170_v62 = vor.u32 %v169_v43, %v165_v23  ;;  %v4805_v11 = vld [vmem:[%s7056_s1 + $0x344] ss:$8 sps:$4 sm:$0xff]  }
  0x57   :  { %v4152_v22 = vcombine.low %v604_v49, %v611_v59  ;;  %v184_v43 = vor.u32 %v183_v26, %v179_v32  ;;  %v5702_v49 = vld [vmem:[%s7057_s0 + $0x50] sm:$0xf]  ;;  %v5724_v59 = vld [vmem:[%s7057_s0 + $0x5c] sm:$0x1]  ;;  %v5765_v26 = vld [vmem:[%s7057_s0 + $0x6c] sm:$0x1] }
  0x58   :  { %1614 = vmatpush2.bf16.msra.mxu1 %v4761_v63  ;;  %v4148_v63 = vcombine.low %v5356_v18, %v5398_v57  ;;  %v4810_v18 = vld [vmem:[%s7056_s1 + $0x110] ss:$8 sps:$4 sm:$0xff]   ;;  %v5650_v57 = vcombine.low %v5617_v48, %v5429_v13  ;;  %v5666_v13 = vcombine.low %v5630_v56, %v5434_v0  ;;  %v4212_v30 = vcombine.low %v163_v60, %v170_v62  ;;  %v4792_v0 = vld [vmem:[%s7056_s1 + $0x364] ss:$8 sps:$4 sm:$0xff]  }
  0x59   :  { %1615 = vmatprep.subr.bf16.mxu1 %v4771_v61  ;;  %1711 = vmatpush1.bf16.msra.mxu0 %v4797_v38  ;;  %v620_v61 = vshrl.u32 %v5578_v24, 16  ;;  %v5671_v24 = vld [vmem:[%s7057_s0 + $0x34] sm:$0x1] }
  0x5a   :  { %1136 = vmatmul.mubr.bf16.gmra.mxu0 %v4145_v6  ;;  %v613_v6 = vshrl.u32 %v5570_v16, 16  ;;  %1712 = vmatprep.subr.bf16.mxu0 %v4812_v54  ;;  %v5657_v16 = vld [vmem:[%s7057_s0 + $0x30] sm:$0xf]  ;;  %v636_v23 = vshll.u32 %v5666_v13, 16  ;;  %v627_v5 = vshrl.u32 %v5650_v57, 16  ;;  %v634_v60 = vshrl.u32 %v5666_v13, 16 }
  0x5b   :  { %1289 = vmatmul.mubr.bf16.gmra.mxu1 %v4159_v25  ;;  %1145 = vmatprep.mubr.bf16.mxu0 %v4149_v40  ;;  %v5676_v25 = vld [vmem:[%s7057_s0 + $0x3c] sm:$0x1]  ;;  %v3982_v27 = vcombine.low %v5657_v16, %v5671_v24  ;;  %v625_v37 = vor.u32 %v624_v15, %v620_v61  ;;  %v629_v40 = vshll.u32 %v5650_v57, 16  ;;  %v4800_v54 = vld [vmem:[%s7056_s1 + $0x350] ss:$8 sps:$4 sm:$0xff]  }
  0x5c   :  { %1616 = vmatpush2.bf16.msra.mxu1 %v4769_v47  ;;  %1619 = vmatprep.mubr.bf16.mxu1 %v4209_v31  ;;  %v176_v47 = vrot.slane %v174_v2, 1  ;;  %v618_v34 = vor.u32 %v617_v7, %v613_v6  ;;  %v638_v62 = vrot.slane %v636_v23, 1  ;;  %v3985_v2 = vcombine.low %v5707_v50, %v5724_v59  ;;  %v4815_v57 = vld [vmem:[%s7056_s1 + $0x334] ss:$8 sps:$4 sm:$0xff]   ;;  %v48_v23 = vld [vmem:[%s7057_s0 + $0x8] sm:$0xe] }
  0x5d   :  { %1617 = vmatprep.subr.bf16.mxu1 %v4777_v17  ;;  %v3983_v17 = vcombine.low %v5662_v20, %v5676_v25  ;;  %1713 = vmatpush1.bf16.msra.mxu0 %v4810_v18  ;;  %v188_v38 = vshll.u32 %v3982_v27, 16  ;;  %v631_v8 = vrot.slane %v629_v40, 1  ;;  %v4803_v18 = vld [vmem:[%s7056_s1 + $0x340] ss:$8 sps:$4 sm:$0xff]  }
  0x5e   :  { %v177_v31 = vor.u32 %v176_v47, %v172_v19  ;;  %1714 = vmatprep.subr.bf16.mxu0 %v4825_v33  ;;  %v4155_v45 = vcombine.low %v618_v34, %v625_v37  ;;  %v639_v15 = vor.u32 %v638_v62, %v634_v60  ;;  %v209_v13 = vshll.u32 %v3985_v2, 16  ;;  %v5760_v47 = vld [vmem:[%s7057_s0 + $0x64] sm:$0x1]  ;;  %v4813_v33 = vld [vmem:[%s7056_s1 + $0x330] ss:$8 sps:$4 sm:$0xff]  }
  0x5f   :  { %v195_v28 = vshll.u32 %v3983_v17, 16  ;;  %v190_v7 = vrot.slane %v188_v38, 1  ;;  %v193_v61 = vshrl.u32 %v3983_v17, 16  ;;  %v4214_v17 = vcombine.low %v5596_v46, %v5601_v39  ;;  %v4816_v38 = vld [vmem:[%s7056_s1 + $0x320] ss:$8 sps:$4 sm:$0xff]  }
  0x60   :  { %1618 = vmatpush2.bf16.msra.mxu1 %v4775_v58  ;;  %v5719_v58 = vld [vmem:[%s7057_s0 + $0x54] sm:$0x1]  ;;  %v4215_v6 = vcombine.low %v177_v31, %v184_v43  ;;  %v207_v40 = vshrl.u32 %v3985_v2, 16  ;;  %v5793_v31 = vld [vmem:[%s7057_s0 + $0x70] sm:$0xf]  ;;  %v4157_v60 = vcombine.low %v5617_v48, %v5630_v56  ;;  %v4217_v62 = vcombine.low %v5657_v16, %v5662_v20 }
  0x61   :  { %2487 = vmatprep.subr.bf16.mxu1 %v4789_v44  ;;  %1715 = vmatpush1.bf16.msra.mxu0 %v4823_v41  ;;  %v3984_v44 = vcombine.low %v5702_v49, %v5719_v58  ;;  %v197_v3 = vrot.slane %v195_v28, 1  ;;  %v211_v41 = vrot.slane %v209_v13, 1  ;;  %v5798_v43 = vld [vmem:[%s7057_s0 + $0x78] sm:$0xf]  ;;  %v5844_v13 = vld [vmem:[%s7057_s0 + $0x80] sm:$0xf] }
  0x62   :  { %1146 = vmatmul.mubr.bf16.gmra.mxu0 %v4148_v63  ;;  %v186_v63 = vshrl.u32 %v3982_v27, 16  ;;  %v4154_v27 = vcombine.low %v5513_v21, %v5526_v55  ;;  %v4818_v21 = vld [vmem:[%s7056_s1 + $0x324] ss:$8 sps:$4 sm:$0xff]  }
  0x63   :  { %1620 = vmatmul.mubr.bf16.vlgmr.msra.gmra.mxu1 %v4208_v14  ;;  %1155 = vmatprep.mubr.bf16.mxu0 %v4152_v22  ;;  %v632_v14 = vor.u32 %v631_v8, %v627_v5  ;;  %v202_v19 = vshll.u32 %v3984_v44, 16  ;;  %v5750_v22 = vld [vmem:[%s7057_s0 + $0x60] sm:$0xf]  ;;  %v3993_v8 = vcombine.low %v48_v23, %v5483_v36  ;;  %v4831_v36 = vld [vmem:[%s7056_s1 + $0x304] ss:$8 sps:$4 sm:$0xff]  }
  0x64   :  { %2488 = vmatpush1.bf16.msra.mxu1 %v4787_v4  ;;  %1629 = vmatprep.mubr.bf16.mxu1 %v4212_v30  ;;  %v5738_v4 = vld [vmem:[%s7056_s1 + $0x474] ss:$8 sps:$4 sm:$0xff]   ;;  %v5755_v30 = vld [vmem:[%s7057_s0 + $0x68] sm:$0xf]  ;;  %v191_v32 = vor.u32 %v190_v7, %v186_v63  ;;  %v3986_v46 = vcombine.low %v5750_v22, %v5760_v47 }
  0x65   :  { %2489 = vmatprep.subr.bf16.mxu1 %v4792_v0  ;;  %2600 = vmatprep.subr.bf16.mxu0 %v5738_v4  ;;  %v198_v0 = vor.u32 %v197_v3, %v193_v61  ;;  %v4158_v34 = vcombine.low %v632_v14, %v639_v15  ;;  %v204_v37 = vrot.slane %v202_v19, 1  ;;  %v3987_v39 = vcombine.low %v5755_v30, %v5765_v26  ;;  %v4829_v3 = vld [vmem:[%s7056_s1 + $0x300] ss:$8 sps:$4 sm:$0xff]   ;;  %v50_v14 = vld [vmem:[%s7057_s0 + $0x18] sm:$0xe] }
  0x66   :  { %v214_v48 = vshrl.u32 %v3986_v46, 16  ;;  %v304_v61 = vrot.slane %v3993_v8, 1  ;;  %v4841_v23 = vld [vmem:[%s7056_s1 + $0x3e0] ss:$8 sps:$4 sm:$0xff]  }
  0x67   :  { %v4218_v55 = vcombine.low %v191_v32, %v198_v0  ;;  %v223_v5 = vshll.u32 %v3987_v39, 16  ;;  %v221_v16 = vshrl.u32 %v3987_v39, 16  ;;  %v5849_v32 = vld [vmem:[%s7057_s0 + $0x88] sm:$0xf]  ;;  %v5872_v39 = vld [vmem:[%s7056_s1 + $0x470] ss:$8 sps:$4 sm:$0xff]  }
  0x68   :  { %2490 = vmatpush1.bf16.msra.mxu1 %v4790_v51  ;;  %v200_v51 = vshrl.u32 %v3984_v44, 16  ;;  %v51_v8 = vld [vmem:[%s7057_s0 + $0x20] sm:$0xe] }
  0x69   :  { %2491 = vmatprep.subr.bf16.mxu1 %v4802_v42  ;;  %v47_v42 = vld [vmem:[%s7057_s0] sm:$0xe]  ;;  %v225_v20 = vrot.slane %v223_v5, 1 }
  0x6a   :  { %1156 = vmatmul.mubr.bf16.gmra.mxu0 %v4151_v52  ;;  %v3992_v28 = vcombine.low %v47_v42, %v5478_v35  ;;  %v205_v52 = vor.u32 %v204_v37, %v200_v51  ;;  %v4828_v35 = vld [vmem:[%s7056_s1 + $0x314] ss:$8 sps:$4 sm:$0xff]   ;;  %v4220_v51 = vcombine.low %v5702_v49, %v5707_v50 }
  0x6b   :  { %1630 = vmatmul.mubr.bf16.gmra.mxu1 %v4211_v53  ;;  %1165 = vmatprep.mubr.bf16.mxu0 %v4155_v45  ;;  %v212_v53 = vor.u32 %v211_v41, %v207_v40  ;;  %v216_v45 = vshll.u32 %v3986_v46, 16  ;;  %v3995_v40 = vcombine.low %v50_v14, %v5559_v10  ;;  %v4835_v46 = vld [vmem:[%s7056_s1 + $0x3f0] ss:$8 sps:$4 sm:$0xff]   ;;  %v4843_v10 = vld [vmem:[%s7056_s1 + $0x3e4] ss:$8 sps:$4 sm:$0xff]  }
  0x6c   :  { %2492 = vmatpush1.bf16.msra.mxu1 %v4800_v54  ;;  %1639 = vmatprep.mubr.bf16.mxu1 %v4215_v6  ;;  %v5804_v54 = vld [vmem:[%s7057_s0 + $0x74] sm:$0x1]  ;;  %v303_v2 = vrot.slane %v3992_v28, 1  ;;  %v4826_v6 = vld [vmem:[%s7056_s1 + $0x310] ss:$8 sps:$4 sm:$0xff]  }
  0x6d   :  { %2493 = vmatprep.subr.bf16.mxu1 %v4805_v11  ;;  %v5809_v11 = vld [vmem:[%s7057_s0 + $0x7c] sm:$0x1]  ;;  %v3988_v63 = vcombine.low %v5793_v31, %v5804_v54  ;;  %v4221_v7 = vcombine.low %v205_v52, %v212_v53  ;;  %v218_v56 = vrot.slane %v216_v45, 1  ;;  %v306_v52 = vrot.slane %v3995_v40, 1  ;;  %v53_v14 = vld [vmem:[%s7057_s0 + $0x30] sm:$0xe] }
  0x6e   :  { %v3989_v44 = vcombine.low %v5798_v43, %v5809_v11  ;;  %v4851_v53 = vld [vmem:[%s7056_s1 + $0x3d4] ss:$8 sps:$4 sm:$0xff]   ;;  %v4855_v40 = vld [vmem:[%s7056_s1 + $0x3c0] ss:$8 sps:$4 sm:$0xff]  }
  0x6f   :  { %v230_v15 = vshll.u32 %v3988_v63, 16  ;;  %v219_v0 = vor.u32 %v218_v56, %v214_v48  ;;  %v228_v41 = vshrl.u32 %v3988_v63, 16  ;;  %v5931_v48 = vld [vmem:[%s7057_s0 + $0x1c] sm:$0x1] }
  0x70   :  { %2494 = vmatpush1.bf16.msra.mxu1 %v4803_v18  ;;  %v49_v18 = vld [vmem:[%s7057_s0 + $0x10] sm:$0xe]  ;;  %v237_v19 = vshll.u32 %v3989_v44, 16 }
  0x71   :  { %2495 = vmatprep.subr.bf16.mxu1 %v4815_v57  ;;  %v4837_v57 = vld [vmem:[%s7056_s1 + $0x3f4] ss:$8 sps:$4 sm:$0xff]   ;;  %v3994_v37 = vcombine.low %v49_v18, %v5554_v9  ;;  %v232_v42 = vrot.slane %v230_v15, 1  ;;  %v4857_v15 = vld [vmem:[%s7056_s1 + $0x3c4] ss:$8 sps:$4 sm:$0xff]  }
  0x72   :  { %1166 = vmatmul.mubr.bf16.gmra.mxu0 %v4154_v27  ;;  %v226_v27 = vor.u32 %v225_v20, %v221_v16  ;;  %v4849_v16 = vld [vmem:[%s7056_s1 + $0x3d0] ss:$8 sps:$4 sm:$0xff]  }
  0x73   :  { %1640 = vmatmul.mubr.bf16.gmra.mxu1 %v4214_v17  ;;  %1175 = vmatprep.mubr.bf16.mxu0 %v4158_v34  ;;  %v5855_v17 = vld [vmem:[%s7057_s0 + $0x84] sm:$0x1]  ;;  %v4210_v34 = vcombine.low %v303_v2, %v304_v61  ;;  %v305_v28 = vrot.slane %v3994_v37, 1  ;;  %v233_v45 = vor.u32 %v232_v42, %v228_v41  ;;  %v5912_v2 = vld [vmem:[%s7057_s0 + $0x10] sm:$0xf] }
  0x74   :  { %2496 = vmatpush1.bf16.msra.mxu1 %v4813_v33  ;;  %1649 = vmatprep.mubr.bf16.mxu1 %v4218_v55  ;;  %v5860_v33 = vld [vmem:[%s7057_s0 + $0x8c] sm:$0x1]  ;;  %v239_v55 = vrot.slane %v237_v19, 1  ;;  %v3990_v49 = vcombine.low %v5844_v13, %v5855_v17  ;;  %v4224_v50 = vcombine.low %v219_v0, %v226_v27  ;;  %v5956_v0 = vld [vmem:[%s7056_s1 + $0x450] ss:$8 sps:$4 sm:$0xff]  }
  0x75   :  { %2497 = vmatprep.subr.bf16.mxu1 %v4818_v21  ;;  %v235_v21 = vshrl.u32 %v3989_v44, 16  ;;  %v3991_v9 = vcombine.low %v5849_v32, %v5860_v33  ;;  %v5907_v44 = vld [vmem:[%s7056_s1 + $0x454] ss:$8 sps:$4 sm:$0xff]   ;;  %v4213_v56 = vcombine.low %v305_v28, %v306_v52  ;;  %v5962_v37 = vld [vmem:[%s7056_s1 + $0x444] ss:$8 sps:$4 sm:$0xff]  }
  0x76   :  { %v242_v61 = vshrl.u32 %v3990_v49, 16  ;;  %v4865_v41 = vld [vmem:[%s7056_s1 + $0x3b4] ss:$8 sps:$4 sm:$0xff]  }
  0x77   :  { %v240_v5 = vor.u32 %v239_v55, %v235_v21  ;;  %v251_v63 = vshll.u32 %v3991_v9, 16  ;;  %v249_v18 = vshrl.u32 %v3991_v9, 16  ;;  %v5980_v9 = vld [vmem:[%s7057_s0 + $0x20] sm:$0xf] }
  0x78   :  { %2498 = vmatpush1.bf16.msra.mxu1 %v4816_v38  ;;  %v5887_v38 = vld [vmem:[%s7056_s1 + $0x464] ss:$8 sps:$4 sm:$0xff]  }
  0x79   :  { %2499 = vmatprep.subr.bf16.mxu1 %v4828_v35  ;;  %v5895_v35 = vld [vmem:[%s7056_s1 + $0x460] ss:$8 sps:$4 sm:$0xff]   ;;  %v4227_v20 = vcombine.low %v233_v45, %v240_v5 }
  0x7a   :  { %1176 = vmatmul.mubr.bf16.gmra.mxu0 %v4157_v60  ;;  %v52_v60 = vld [vmem:[%s7057_s0 + $0x28] sm:$0xe] }
  0x7b   :  { %1650 = vmatmul.mubr.bf16.gmra.mxu1 %v4217_v62  ;;  %1732 = vmatprep.mubr.bf16.mxu0 %v4946_v1  ;;  %v244_v62 = vshll.u32 %v3990_v49, 16 }
  0x7c   :  { %2500 = vmatpush1.bf16.msra.mxu1 %v4826_v6  ;;  %1659 = vmatprep.mubr.bf16.mxu1 %v4221_v7  ;;  %v5917_v6 = vld [vmem:[%s7057_s0 + $0x18] sm:$0xf]  ;;  %v4223_v7 = vcombine.low %v5750_v22, %v5755_v30  ;;  %v3996_v22 = vcombine.low %v51_v8, %v5607_v12  ;;  %v3997_v30 = vcombine.low %v52_v60, %v5612_v29 }
  0x7d   :  { %2501 = vmatprep.subr.bf16.mxu1 %v4831_v36  ;;  %v5926_v36 = vld [vmem:[%s7057_s0 + $0x14] sm:$0x1]  ;;  %v54_v12 = vld [vmem:[%s7057_s0 + $0x38] sm:$0xe]  ;;  %v4329_v19 = vcombine.low %v5917_v6, %v5931_v48 }
  0x7e   :  { %v4328_v29 = vcombine.low %v5912_v2, %v5926_v36  ;;  %v307_v27 = vrot.slane %v3996_v22, 1  ;;  %v3999_v55 = vcombine.low %v54_v12, %v5676_v25  ;;  %v5991_v25 = vld [vmem:[%s7057_s0 + $0x24] sm:$0x1]  ;;  %v6024_v22 = vld [vmem:[%s7056_s1 + $0x434] ss:$8 sps:$4 sm:$0xff]  }
  0x7f   :  { %v1952_v49 = vshll.u32 %v4329_v19, 16  ;;  %v1950_v60 = vshrl.u32 %v4329_v19, 16 }
  0x80   :  { %2502 = vmatpush1.bf16.msra.mxu1 %v4829_v3  ;;  %v246_v3 = vrot.slane %v244_v62, 1  ;;  %v310_v5 = vrot.slane %v3999_v55, 1  ;;  %v1943_v8 = vshrl.u32 %v4328_v29, 16  ;;  %v4871_v62 = vld [vmem:[%s7056_s1 + $0x3a4] ss:$8 sps:$4 sm:$0xff]  }
  0x81   :  { %2503 = vmatprep.subr.bf16.mxu1 %v4837_v57  ;;  %v253_v57 = vrot.slane %v251_v63, 1 }
  0x82   :  { %1733 = vmatmul.mubr.bf16.vlgmr.msra.gmra.mxu0 %v4210_v34  ;;  %v3998_v34 = vcombine.low %v53_v14, %v5671_v24  ;;  %v247_v42 = vor.u32 %v246_v3, %v242_v61  ;;  %v5974_v24 = vld [vmem:[%s7056_s1 + $0x440] ss:$8 sps:$4 sm:$0xff]   ;;  %v6034_v61 = vld [vmem:[%s7056_s1 + $0x424] ss:$8 sps:$4 sm:$0xff]   ;;  %v6039_v3 = vld [vmem:[%s7057_s0 + $0x30] sm:$0xf] }
  0x83   :  { %1660 = vmatmul.mubr.bf16.gmra.mxu1 %v4220_v51  ;;  %2601 = vmatpush1.bf16.msra.mxu0 %v5872_v39  ;;  %v308_v51 = vrot.slane %v3997_v30, 1  ;;  %v254_v21 = vor.u32 %v253_v57, %v249_v18  ;;  %v6029_v30 = vld [vmem:[%s7056_s1 + $0x430] ss:$8 sps:$4 sm:$0xff]   ;;  %v6049_v57 = vld [vmem:[%s7057_s0 + $0x34] sm:$0x1] }
  0x84   :  { %2504 = vmatpush2.bf16.msra.mxu1 %v4835_v46  ;;  %1669 = vmatprep.mubr.bf16.mxu1 %v4224_v50  ;;  %v1945_v46 = vshll.u32 %v4328_v29, 16  ;;  %v5996_v50 = vld [vmem:[%s7057_s0 + $0x2c] sm:$0x1]  ;;  %v309_v52 = vrot.slane %v3998_v34, 1  ;;  %v6044_v18 = vld [vmem:[%s7057_s0 + $0x38] sm:$0xf] }
  0x85   :  { %2505 = vmatprep.subr.bf16.mxu1 %v4843_v10  ;;  %1742 = vmatprep.mubr.bf16.mxu0 %v4946_v1  ;;  %v5985_v10 = vld [vmem:[%s7057_s0 + $0x28] sm:$0xf]  ;;  %v4216_v28 = vcombine.low %v307_v27, %v308_v51  ;;  %v4230_v45 = vcombine.low %v247_v42, %v254_v21  ;;  %v6054_v14 = vld [vmem:[%s7057_s0 + $0x3c] sm:$0x1]  ;;  %v4332_v42 = vcombine.low %v6039_v3, %v6049_v57 }
  0x86   :  { %2602 = vmatprep.subr.bf16.mxu0 %v5887_v38  ;;  %v1947_v63 = vrot.slane %v1945_v46, 1  ;;  %v4333_v21 = vcombine.low %v6044_v18, %v6054_v14 }
  0x87   :  { %2603 = vmatpush1.bf16.msra.mxu0 %v5895_v35 }
  0x88   :  { %2506 = vmatpush2.bf16.msra.mxu1 %v4841_v23  ;;  %2604 = vmatprep.subr.bf16.mxu0 %v5907_v44  ;;  %v4226_v23 = vcombine.low %v5793_v31, %v5798_v43  ;;  %v1954_v31 = vrot.slane %v1952_v49, 1  ;;  %v4330_v43 = vcombine.low %v5980_v9, %v5991_v25  ;;  %v1948_v12 = vor.u32 %v1947_v63, %v1943_v8  ;;  %v6100_v63 = vld [vmem:[%s7057_s0 + $0x40] sm:$0xf] }
  0x89   :  { %2507 = vmatprep.subr.bf16.mxu1 %v4851_v53  ;;  %v4863_v53 = vld [vmem:[%s7056_s1 + $0x3b0] ss:$8 sps:$4 sm:$0xff]   ;;  %v1980_v8 = vshll.u32 %v4333_v21, 16 }
  0x8a   :  { %1743 = vmatmul.mubr.bf16.gmra.mxu0 %v4213_v56  ;;  %v4869_v56 = vld [vmem:[%s7056_s1 + $0x3a0] ss:$8 sps:$4 sm:$0xff]   ;;  %v1955_v29 = vor.u32 %v1954_v31, %v1950_v60  ;;  %v1959_v19 = vshll.u32 %v4330_v43, 16  ;;  %v6091_v60 = vld [vmem:[%s7056_s1 + $0x414] ss:$8 sps:$4 sm:$0xff]  }
  0x8b   :  { %1670 = vmatmul.mubr.bf16.gmra.mxu1 %v4223_v7  ;;  %1752 = vmatprep.mubr.bf16.mxu0 %v4946_v1  ;;  %v4331_v7 = vcombine.low %v5985_v10, %v5996_v50 }
  0x8c   :  { %2508 = vmatpush2.bf16.msra.mxu1 %v4849_v16  ;;  %1679 = vmatprep.mubr.bf16.mxu1 %v4227_v20  ;;  %v55_v16 = vld [vmem:[%s7057_s0 + $0x50] sm:$0xe]  ;;  %v56_v20 = vld [vmem:[%s7057_s0 + $0x58] sm:$0xe]  ;;  %v1961_v55 = vrot.slane %v1959_v19, 1 }
  0x8d   :  { %2509 = vmatprep.subr.bf16.mxu1 %v4857_v15  ;;  %2605 = vmatpush1.bf16.msra.mxu0 %v5956_v0  ;;  %v4879_v15 = vld [vmem:[%s7056_s1 + $0x394] ss:$8 sps:$4 sm:$0xff]   ;;  %v1966_v27 = vshll.u32 %v4331_v7, 16  ;;  %v4000_v51 = vcombine.low %v55_v16, %v5719_v58  ;;  %v4001_v34 = vcombine.low %v56_v20, %v5724_v59  ;;  %v4877_v58 = vld [vmem:[%s7056_s1 + $0x390] ss:$8 sps:$4 sm:$0xff]   ;;  %v1957_v59 = vshrl.u32 %v4330_v43, 16 }
  0x8e   :  { %2606 = vmatprep.subr.bf16.mxu0 %v5962_v37  ;;  %v1964_v46 = vshrl.u32 %v4331_v7, 16  ;;  %v6105_v7 = vld [vmem:[%s7057_s0 + $0x48] sm:$0xf]  ;;  %v6115_v16 = vld [vmem:[%s7057_s0 + $0x4c] sm:$0x1] }
  0x8f   :  { %v1968_v49 = vrot.slane %v1966_v27, 1  ;;  %v1962_v31 = vor.u32 %v1961_v55, %v1957_v59  ;;  %v6125_v19 = vld [vmem:[%s7056_s1 + $0x410] ss:$8 sps:$4 sm:$0xff]   ;;  %v1971_v27 = vshrl.u32 %v4332_v42, 16 }
  0x90   :  { %2510 = vmatpush2.bf16.msra.mxu1 %v4855_v40  ;;  %v4229_v40 = vcombine.low %v5844_v13, %v5849_v32  ;;  %v4885_v13 = vld [vmem:[%s7056_s1 + $0x384] ss:$8 sps:$4 sm:$0xff]   ;;  %v4409_v32 = vcombine.low %v1948_v12, %v1955_v29  ;;  %v59_v59 = vld [vmem:[%s7057_s0 + $0x70] sm:$0xe] }
  0x91   :  { %2511 = vmatprep.subr.bf16.mxu1 %v4865_v41  ;;  %2607 = vmatpush1.bf16.msra.mxu0 %v5974_v24  ;;  %v4219_v41 = vcombine.low %v309_v52, %v310_v5  ;;  %v57_v52 = vld [vmem:[%s7057_s0 + $0x60] sm:$0xe]  ;;  %v1973_v5 = vshll.u32 %v4332_v42, 16  ;;  %v1969_v43 = vor.u32 %v1968_v49, %v1964_v46  ;;  %v6137_v42 = vld [vmem:[%s7056_s1 + $0x404] ss:$8 sps:$4 sm:$0xff]  }
  0x92   :  { %1753 = vmatmul.mubr.bf16.gmra.mxu0 %v4216_v28  ;;  %2608 = vmatprep.subr.bf16.mxu0 %v6024_v22  ;;  %v312_v28 = vrot.slane %v4001_v34, 1  ;;  %v4002_v12 = vcombine.low %v57_v52, %v5760_v47  ;;  %v1978_v34 = vshrl.u32 %v4333_v21, 16  ;;  %v4335_v47 = vcombine.low %v6105_v7, %v6115_v16  ;;  %v6155_v46 = vld [vmem:[%s7057_s0 + $0x60] sm:$0xf]  ;;  %v6166_v49 = vld [vmem:[%s7057_s0 + $0x64] sm:$0x1] }
  0x93   :  { %1680 = vmatmul.mubr.bf16.gmra.mxu1 %v4226_v23  ;;  %1762 = vmatprep.mubr.bf16.mxu0 %v4946_v1  ;;  %v311_v23 = vrot.slane %v4000_v51, 1  ;;  %v1975_v51 = vrot.slane %v1973_v5, 1  ;;  %v4411_v52 = vcombine.low %v5980_v9, %v5985_v10  ;;  %v61_v10 = vld [vmem:[%s7057_s0 + $0x80] sm:$0xe] }
  0x94   :  { %2512 = vmatpush2.bf16.msra.mxu1 %v4863_v53  ;;  %1689 = vmatprep.mubr.bf16.mxu1 %v4230_v45  ;;  %v6083_v53 = vld [vmem:[%s7056_s1 + $0x420] ss:$8 sps:$4 sm:$0xff]   ;;  %v1994_v55 = vshll.u32 %v4335_v47, 16 }
  0x95   :  { %2513 = vmatprep.subr.bf16.mxu1 %v4871_v62  ;;  %2609 = vmatpush1.bf16.msra.mxu0 %v6029_v30  ;;  %v58_v45 = vld [vmem:[%s7057_s0 + $0x68] sm:$0xe]  ;;  %v4222_v20 = vcombine.low %v311_v23, %v312_v28  ;;  %v1976_v21 = vor.u32 %v1975_v51, %v1971_v27  ;;  %v6171_v23 = vld [vmem:[%s7057_s0 + $0x6c] sm:$0x1]  ;;  %v6200_v51 = vld [vmem:[%s7057_s0 + $0x74] sm:$0x1] }
  0x96   :  { %2610 = vmatprep.subr.bf16.mxu0 %v6034_v61  ;;  %v4883_v62 = vld [vmem:[%s7056_s1 + $0x380] ss:$8 sps:$4 sm:$0xff]   ;;  %v4003_v29 = vcombine.low %v58_v45, %v5765_v26  ;;  %v4412_v26 = vcombine.low %v1962_v31, %v1969_v43  ;;  %v1996_v43 = vrot.slane %v1994_v55, 1 }
  0x98   :  { %2514 = vmatpush2.bf16.msra.mxu1 %v4869_v56  ;;  %v6110_v56 = vld [vmem:[%s7057_s0 + $0x44] sm:$0x1] }
  0x99   :  { %2515 = vmatprep.subr.bf16.mxu1 %v4879_v15  ;;  %v4408_v15 = vcombine.low %v5912_v2, %v5917_v6  ;;  %2611 = vmatpush1.bf16.msra.mxu0 %v6083_v53  ;;  %v4334_v2 = vcombine.low %v6100_v63, %v6110_v56  ;;  %v313_v6 = vrot.slane %v4002_v12, 1 }
  0x9a   :  { %1763 = vmatmul.mubr.bf16.gmra.mxu0 %v4219_v41  ;;  %2612 = vmatprep.subr.bf16.mxu0 %v6091_v60  ;;  %v314_v41 = vrot.slane %v4003_v29, 1 }
  0x9b   :  { %1690 = vmatmul.mubr.bf16.gmra.mxu1 %v4229_v40  ;;  %1772 = vmatprep.mubr.bf16.mxu0 %v4946_v1  ;;  %v1982_v40 = vrot.slane %v1980_v8, 1  ;;  %v1985_v8 = vshrl.u32 %v4334_v2, 16 }
  0x9c   :  { %2516 = vmatpush2.bf16.msra.mxu1 %v4877_v58  ;;  %2519 = vmatprep.mubr.bf16.mxu1 %v4409_v32  ;;  %v1987_v32 = vshll.u32 %v4334_v2, 16  ;;  %v4225_v28 = vcombine.low %v313_v6, %v314_v41  ;;  %v4414_v2 = vcombine.low %v6039_v3, %v6044_v18 }
  0x9d   :  { %2517 = vmatprep.subr.bf16.mxu1 %v4885_v13  ;;  %2613 = vmatpush1.bf16.msra.mxu0 %v6125_v19  ;;  %v1983_v58 = vor.u32 %v1982_v40, %v1978_v34  ;;  %v60_v13 = vld [vmem:[%s7057_s0 + $0x78] sm:$0xe]  ;;  %v6211_v40 = vld [vmem:[%s7057_s0 + $0x7c] sm:$0x1] }
  0x9e   :  { %2614 = vmatprep.subr.bf16.mxu0 %v6137_v42  ;;  %v4005_v5 = vcombine.low %v60_v13, %v5809_v11  ;;  %v1989_v31 = vrot.slane %v1987_v32, 1  ;;  %v6206_v34 = vld [vmem:[%s7057_s0 + $0x78] sm:$0xf] }
  0x9f   :  { %v4415_v45 = vcombine.low %v1976_v21, %v1983_v58  ;;  %v4339_v32 = vcombine.low %v6206_v34, %v6211_v40 }
  0xa0   :  { %2518 = vmatpush2.bf16.msra.mxu1 %v4883_v62  ;;  %v1992_v62 = vshrl.u32 %v4335_v47, 16  ;;  %v316_v11 = vrot.slane %v4005_v5, 1  ;;  %v4006_v47 = vcombine.low %v61_v10, %v5855_v17  ;;  %v4312_v17 = vld [vmem:[%s7057_s0 + $0x10] sm:$0xe] }
  0xa1   :  { %4592 = vmatprep.subr.bf16.mxu1 %v5738_v4  ;;  %v6145_v4 = vld [vmem:[%s7056_s1 + $0x400] ss:$8 sps:$4 sm:$0xff]   ;;  %v4344_v5 = vcombine.low %v4312_v17, %v5926_v36 }
  0xa2   :  { %1773 = vmatmul.mubr.bf16.gmra.mxu0 %v4222_v20  ;;  %v4336_v20 = vcombine.low %v6155_v46, %v6166_v49  ;;  %v1997_v12 = vor.u32 %v1996_v43, %v1992_v62  ;;  %v4417_v62 = vcombine.low %v6100_v63, %v6105_v7  ;;  %v2020_v43 = vshrl.u32 %v4339_v32, 16 }
  0xa3   :  { %2520 = vmatmul.mubr.bf16.vlgmr.msra.gmra.mxu1 %v4408_v15  ;;  %1782 = vmatprep.mubr.bf16.mxu0 %v4946_v1  ;;  %v1990_v15 = vor.u32 %v1989_v31, %v1985_v8  ;;  %v2102_v36 = vrot.slane %v4344_v5, 1 }
  0xa4   :  { %4600 = vmatpush1.bf16.msra.mxu1 %v5872_v39  ;;  %2529 = vmatprep.mubr.bf16.mxu1 %v4412_v26  ;;  %v6161_v39 = vld [vmem:[%s7057_s0 + $0x68] sm:$0xf]  ;;  %v2001_v29 = vshll.u32 %v4336_v20, 16  ;;  %v1999_v6 = vshrl.u32 %v4336_v20, 16 }
  0xa5   :  { %4593 = vmatprep.subr.bf16.mxu1 %v5887_v38  ;;  %v4004_v38 = vcombine.low %v59_v59, %v5804_v54  ;;  %2615 = vmatpush1.bf16.msra.mxu0 %v6145_v4  ;;  %v4337_v9 = vcombine.low %v6161_v39, %v6171_v23  ;;  %v4418_v58 = vcombine.low %v1990_v15, %v1997_v12  ;;  %v6279_v12 = vld [vmem:[%s7057_s0 + $0x98] sm:$0xf] }
  0xa6   :  { %v2003_v59 = vrot.slane %v2001_v29, 1  ;;  %v6284_v29 = vld [vmem:[%s7057_s0 + $0x94] sm:$0x1] }
  0xa7   :  { %v315_v54 = vrot.slane %v4004_v38, 1  ;;  %v2008_v27 = vshll.u32 %v4337_v9, 16  ;;  %v2006_v41 = vshrl.u32 %v4337_v9, 16  ;;  %v6245_v38 = vld [vmem:[%s7057_s0 + $0x88] sm:$0xf] }
  0xa8   :  { %4601 = vmatpush1.bf16.msra.mxu1 %v5895_v35  ;;  %v62_v35 = vld [vmem:[%s7057_s0 + $0x88] sm:$0xe]  ;;  %v2004_v18 = vor.u32 %v2003_v59, %v1999_v6 }
  0xa9   :  { %4594 = vmatprep.subr.bf16.mxu1 %v5907_v44  ;;  %v6195_v44 = vld [vmem:[%s7057_s0 + $0x70] sm:$0xf]  ;;  %v4007_v26 = vcombine.low %v62_v35, %v5860_v33  ;;  %v2010_v13 = vrot.slane %v2008_v27, 1  ;;  %v4313_v33 = vld [vmem:[%s7057_s0 + $0x18] sm:$0xe] }
  0xaa   :  { %1783 = vmatmul.mubr.bf16.gmra.mxu0 %v4225_v28  ;;  %v4338_v21 = vcombine.low %v6195_v44, %v6200_v51  ;;  %v2022_v28 = vshll.u32 %v4339_v32, 16  ;;  %v4345_v8 = vcombine.low %v4313_v33, %v5931_v48  ;;  %v6289_v27 = vld [vmem:[%s7057_s0 + $0x9c] sm:$0x1]  ;;  %v4317_v32 = vld [vmem:[%s7057_s0 + $0x38] sm:$0xe] }
  0xab   :  { %2530 = vmatmul.mubr.bf16.gmra.mxu1 %v4411_v52  ;;  %1792 = vmatprep.mubr.bf16.mxu0 %v4946_v1  ;;  %v318_v3 = vrot.slane %v4007_v26, 1  ;;  %v2011_v55 = vor.u32 %v2010_v13, %v2006_v41  ;;  %v6239_v52 = vld [vmem:[%s7057_s0 + $0x84] sm:$0x1]  ;;  %v4343_v13 = vcombine.low %v6279_v12, %v6289_v27 }
  0xac   :  { %2539 = vmatprep.mubr.bf16.mxu1 %v4415_v45  ;;  %4602 = vmatpush1.bf16.msra.mxu1 %v5956_v0  ;;  %v4228_v0 = vcombine.low %v315_v54, %v316_v11  ;;  %v6250_v45 = vld [vmem:[%s7057_s0 + $0x8c] sm:$0x1]  ;;  %v2013_v31 = vshrl.u32 %v4338_v21, 16  ;;  %v2024_v11 = vrot.slane %v2022_v28, 1  ;;  %v2103_v48 = vrot.slane %v4345_v8, 1 }
  0xad   :  { %4595 = vmatprep.subr.bf16.mxu1 %v5962_v37  ;;  %v317_v37 = vrot.slane %v4006_v47, 1  ;;  %v4421_v9 = vcombine.low %v2004_v18, %v2011_v55  ;;  %v4341_v10 = vcombine.low %v6245_v38, %v6250_v45  ;;  %v2050_v33 = vshll.u32 %v4343_v13, 16 }
  0xae   :  { %v2025_v35 = vor.u32 %v2024_v11, %v2020_v43  ;;  %v4410_v47 = vcombine.low %v2102_v36, %v2103_v48  ;;  %v4349_v18 = vcombine.low %v4317_v32, %v6054_v14  ;;  %v2048_v5 = vshrl.u32 %v4343_v13, 16  ;;  %v4319_v14 = vld [vmem:[%s7057_s0 + $0x48] sm:$0xe]  ;;  %v4324_v11 = vld [vmem:[%s7057_s0 + $0x80] sm:$0xe] }
  0xaf   :  { %v2036_v15 = vshll.u32 %v4341_v10, 16  ;;  %v2034_v41 = vshrl.u32 %v4341_v10, 16  ;;  %v2052_v8 = vrot.slane %v2050_v33, 1  ;;  %v4325_v10 = vld [vmem:[%s7057_s0 + $0x88] sm:$0xe] }
  0xb0   :  { %4603 = vmatpush1.bf16.msra.mxu1 %v5974_v24  ;;  %v2015_v24 = vshll.u32 %v4338_v21, 16 }
  0xb1   :  { %4596 = vmatprep.subr.bf16.mxu1 %v6024_v22  ;;  %v6234_v22 = vld [vmem:[%s7057_s0 + $0x80] sm:$0xf]  ;;  %v2053_v43 = vor.u32 %v2052_v8, %v2048_v5 }
  0xb2   :  { %1793 = vmatmul.mubr.bf16.gmra.mxu0 %v4228_v0  ;;  %v4340_v20 = vcombine.low %v6234_v22, %v6239_v52  ;;  %v2017_v54 = vrot.slane %v2015_v24, 1 }
  0xb3   :  { %2540 = vmatmul.mubr.bf16.gmra.mxu1 %v4414_v2  ;;  %1802 = vmatprep.mubr.bf16.mxu0 %v4946_v1  ;;  %v4420_v2 = vcombine.low %v6155_v46, %v6161_v39  ;;  %v4316_v39 = vld [vmem:[%s7057_s0 + $0x30] sm:$0xe] }
  0xb4   :  { %2549 = vmatprep.mubr.bf16.mxu1 %v4418_v58  ;;  %4604 = vmatpush1.bf16.msra.mxu1 %v6029_v30  ;;  %v4231_v30 = vcombine.low %v317_v37, %v318_v3  ;;  %v2029_v63 = vshll.u32 %v4340_v20, 16  ;;  %v2018_v7 = vor.u32 %v2017_v54, %v2013_v31  ;;  %v2027_v0 = vshrl.u32 %v4340_v20, 16 }
  0xb5   :  { %4597 = vmatprep.subr.bf16.mxu1 %v6034_v61  ;;  %v4314_v61 = vld [vmem:[%s7057_s0 + $0x20] sm:$0xe]  ;;  %v2038_v58 = vrot.slane %v2036_v15, 1  ;;  %v4348_v3 = vcombine.low %v4316_v39, %v6049_v57 }
  0xb6   :  { %v2031_v6 = vrot.slane %v2029_v63, 1  ;;  %v4424_v21 = vcombine.low %v2018_v7, %v2025_v35  ;;  %v4318_v57 = vld [vmem:[%s7057_s0 + $0x40] sm:$0xe] }
  0xb7   :  { %v4350_v20 = vcombine.low %v4318_v57, %v6110_v56  ;;  %v4320_v56 = vld [vmem:[%s7057_s0 + $0x60] sm:$0xe] }
  0xb8   :  { %4605 = vmatpush1.bf16.msra.mxu1 %v6083_v53  ;;  %v4315_v53 = vld [vmem:[%s7057_s0 + $0x28] sm:$0xe]  ;;  %v4352_v7 = vcombine.low %v4320_v56, %v6166_v49  ;;  %v4323_v49 = vld [vmem:[%s7057_s0 + $0x78] sm:$0xe] }
  0xb9   :  { %4598 = vmatprep.subr.bf16.mxu1 %v6091_v60  ;;  %v6273_v60 = vld [vmem:[%s7057_s0 + $0x90] sm:$0xf]  ;;  %v4347_v26 = vcombine.low %v4315_v53, %v5996_v50  ;;  %v2032_v50 = vor.u32 %v2031_v6, %v2027_v0  ;;  %v2108_v36 = vrot.slane %v4350_v20, 1 }
  0xba   :  { %1803 = vmatmul.mubr.bf16.gmra.mxu0 %v4231_v30  ;;  %v4342_v59 = vcombine.low %v6273_v60, %v6284_v29  ;;  %v2107_v30 = vrot.slane %v4349_v18, 1 }
  0xbb   :  { %2550 = vmatmul.mubr.bf16.gmra.mxu1 %v4417_v62  ;;  %2632 = vmatprep.mubr.bf16.mxu0 %v4946_v1  ;;  %v2105_v46 = vrot.slane %v4347_v26, 1  ;;  %v2106_v62 = vrot.slane %v4348_v3, 1  ;;  %v4355_v26 = vcombine.low %v4323_v49, %v6211_v40 }
  0xbc   :  { %2559 = vmatprep.mubr.bf16.mxu1 %v4421_v9  ;;  %4606 = vmatpush1.bf16.msra.mxu1 %v6125_v19  ;;  %v4346_v19 = vcombine.low %v4314_v61, %v5991_v25  ;;  %v2043_v17 = vshll.u32 %v4342_v59, 16  ;;  %v2041_v55 = vshrl.u32 %v4342_v59, 16  ;;  %v4351_v9 = vcombine.low %v4319_v14, %v6115_v16  ;;  %v4321_v16 = vld [vmem:[%s7057_s0 + $0x68] sm:$0xe] }
  0xbd   :  { %4599 = vmatprep.subr.bf16.mxu1 %v6137_v42  ;;  %v2039_v42 = vor.u32 %v2038_v58, %v2034_v41  ;;  %v4429_v61 = vcombine.low %v6273_v60, %v6279_v12  ;;  %v4353_v35 = vcombine.low %v4321_v16, %v6171_v23  ;;  %v4326_v23 = vld [vmem:[%s7057_s0 + $0x90] sm:$0xe]  ;;  %v2113_v58 = vrot.slane %v4355_v26, 1 }
  0xbe   :  { %v2104_v25 = vrot.slane %v4346_v19, 1  ;;  %v2045_v28 = vrot.slane %v2043_v17, 1  ;;  %v2109_v48 = vrot.slane %v4351_v9, 1  ;;  %v4358_v0 = vcombine.low %v4326_v23, %v6284_v29 }
  0xbf   :  { %v4427_v24 = vcombine.low %v2032_v50, %v2039_v42 }
  0xc0   :  { %4607 = vmatpush1.bf16.msra.mxu1 %v6145_v4  ;;  %v4423_v4 = vcombine.low %v6195_v44, %v6206_v34  ;;  %v4413_v37 = vcombine.low %v2104_v25, %v2105_v46  ;;  %v2046_v31 = vor.u32 %v2045_v28, %v2041_v55  ;;  %v4426_v44 = vcombine.low %v6234_v22, %v6245_v38 }
  0xc1   :  { %v4416_v34 = vcombine.low %v2106_v62, %v2107_v30  ;;  %v4356_v22 = vcombine.low %v4324_v11, %v6239_v52  ;;  %v4357_v38 = vcombine.low %v4325_v10, %v6250_v45  ;;  %v4419_v63 = vcombine.low %v2108_v36, %v2109_v48  ;;  %v4322_v52 = vld [vmem:[%s7057_s0 + $0x70] sm:$0xe]  ;;  %v4327_v45 = vld [vmem:[%s7057_s0 + $0x98] sm:$0xe] }
  0xc2   :  { %2633 = vmatmul.mubr.bf16.vlgmr.msra.gmra.mxu0 %v4410_v47  ;;  %v4430_v54 = vcombine.low %v2046_v31, %v2053_v43  ;;  %v2111_v47 = vrot.slane %v4353_v35, 1  ;;  %v4354_v12 = vcombine.low %v4322_v52, %v6200_v51  ;;  %v4359_v6 = vcombine.low %v4327_v45, %v6289_v27 }
  0xc3   :  { %2560 = vmatmul.mubr.bf16.gmra.mxu1 %v4420_v2  ;;  %2642 = vmatprep.mubr.bf16.mxu0 %v4946_v1  ;;  %v2114_v53 = vrot.slane %v4356_v22, 1  ;;  %v2115_v15 = vrot.slane %v4357_v38, 1  ;;  %v2110_v2 = vrot.slane %v4352_v7, 1  ;;  %v2116_v59 = vrot.slane %v4358_v0, 1 }
  0xc4   :  { %2569 = vmatprep.mubr.bf16.mxu1 %v4424_v21  ;;  %v2112_v21 = vrot.slane %v4354_v12, 1  ;;  %v2117_v13 = vrot.slane %v4359_v6, 1 }
  0xc5   :  { %v4428_v60 = vcombine.low %v2114_v53, %v2115_v15  ;;  %v4422_v19 = vcombine.low %v2110_v2, %v2111_v47 }
  0xc6   :  { %v4425_v46 = vcombine.low %v2112_v21, %v2113_v58  ;;  %v4431_v50 = vcombine.low %v2116_v59, %v2117_v13 }
  0xca   :  { %2643 = vmatmul.mubr.bf16.gmra.mxu0 %v4413_v37 }
  0xcb   :  { %2570 = vmatmul.mubr.bf16.gmra.mxu1 %v4423_v4  ;;  %2652 = vmatprep.mubr.bf16.mxu0 %v4946_v1 }
  0xcc   :  { %2579 = vmatprep.mubr.bf16.mxu1 %v4427_v24 }
  0xd2   :  { %2653 = vmatmul.mubr.bf16.gmra.mxu0 %v4416_v34 }
  0xd3   :  { %2580 = vmatmul.mubr.bf16.gmra.mxu1 %v4426_v44  ;;  %2662 = vmatprep.mubr.bf16.mxu0 %v4946_v1 }
  0xd4   :  { %2589 = vmatprep.mubr.bf16.mxu1 %v4430_v54 }
  0xda   :  { %2663 = vmatmul.mubr.bf16.gmra.mxu0 %v4419_v63 }
  0xdb   :  { %2590 = vmatmul.mubr.bf16.gmra.mxu1 %v4429_v61  ;;  %2672 = vmatprep.mubr.bf16.mxu0 %v4946_v1 }
  0xdc   :  { %2692 = vmatprep.mubr.bf16.mxu1 %v4946_v1 }
  0xe2   :  { %2673 = vmatmul.mubr.bf16.gmra.mxu0 %v4422_v19 }
  0xe3   :  { %v1220_v41 = vpop.f32.mrf.mxu1  ;;  %2693 = vmatmul.mubr.bf16.vlgmr.msra.gmra.mxu1 %v4428_v60  ;;  %2682 = vmatprep.mubr.bf16.mxu0 %v4946_v1 }
  0xe4   :  { %2702 = vmatprep.mubr.bf16.mxu1 %v4946_v1 }
  0xe5   :  { %v1222_v25 = vpop.f32.mrf.mxu1 }
  0xe7   :  { %v1224_v51 = vpop.f32.mrf.mxu1 }
  0xe9   :  { %v1226_v40 = vpop.f32.mrf.mxu1 }
  0xea   :  { %2683 = vmatmul.mubr.bf16.gmra.mxu0 %v4425_v46 }
  0xeb   :  { %v1230_v42 = vpop.f32.mrf.mxu1  ;;  %2703 = vmatmul.mubr.bf16.gmra.mxu1 %v4431_v50 }
  0xed   :  { %v1232_v29 = vpop.f32.mrf.mxu1 }
  0xef   :  { %v1234_v27 = vpop.f32.mrf.mxu1 }
  0xf1   :  { %v1236_v39 = vpop.f32.mrf.mxu1 }
  0xf3   :  { %v1240_v32 = vpop.f32.mrf.mxu1 }
  0xf5   :  { %v1242_v17 = vpop.f32.mrf.mxu1 }
  0xf7   :  { %v1244_v33 = vpop.f32.mrf.mxu1 }
  0xf9   :  { %v1246_v4 = vpop.f32.mrf.mxu1 }
  0xfb   :  { %v1250_v37 = vpop.f32.mrf.mxu1 }
  0xfd   :  { %v1252_v3 = vpop.f32.mrf.mxu1 }
  0xff   :  { %v1254_v18 = vpop.f32.mrf.mxu1 }
 0x101   :  { %v1256_v55 = vpop.f32.mrf.mxu1 }
 0x102   :  { %v1107_v24 = vpop.f32.mrf.mxu0 }
 0x103   :  { %v1260_v28 = vpop.f32.mrf.mxu1  ;;  %v1221_v5 = vadd.f32 %v1220_v41, %v1107_v24 }
 0x104   :  { %v1109_v8 = vpop.f32.mrf.mxu0 }
 0x105   :  { %v6362_v62 = vpop.f32.mrf.mxu1  ;;  %v6364_v30 = vadd.f32 %v1222_v25, %v1109_v8 }
 0x106   :  { %v1111_v31 = vpop.f32.mrf.mxu0 }
 0x107   :  { %v6366_v43 = vpop.f32.mrf.mxu1  ;;  %v6368_v57 = vadd.f32 %v1224_v51, %v1111_v31 }
 0x108   :  { %v1113_v14 = vpop.f32.mrf.mxu0 }
 0x109   :  { %v6370_v44 = vpop.f32.mrf.mxu1  ;;  %v6372_v34 = vadd.f32 %v1226_v40, %v1113_v14 }
 0x10a   :  { %v1117_v20 = vpop.f32.mrf.mxu0 }
 0x10b   :  { %v6374_v9 = vpop.f32.mrf.mxu1  ;;  %v6376_v54 = vadd.f32 %v1230_v42, %v1117_v20 }
 0x10c   :  { %v1119_v11 = vpop.f32.mrf.mxu0 }
 0x10d   :  { %v6378_v10 = vpop.f32.mrf.mxu1  ;;  %v6380_v36 = vadd.f32 %v1232_v29, %v1119_v11 }
 0x10e   :  { %v1121_v48 = vpop.f32.mrf.mxu0 }
 0x10f   :  { %v6382_v56 = vpop.f32.mrf.mxu1  ;;  %v6384_v16 = vadd.f32 %v1234_v27, %v1121_v48 }
 0x110   :  { %v1123_v22 = vpop.f32.mrf.mxu0 }
 0x111   :  { %v6386_v38 = vpop.f32.mrf.mxu1  ;;  %v1237_v61 = vadd.f32 %v1236_v39, %v1123_v22 }
 0x112   :  { %v1127_v63 = vpop.f32.mrf.mxu0 }
 0x113   :  { %v1280_v7 = vpop.f32.mrf.mxu1  ;;  %v1241_v35 = vadd.f32 %v1240_v32, %v1127_v63 }
 0x114   :  { %v1129_v53 = vpop.f32.mrf.mxu0 }
 0x115   :  { %v1282_v15 = vpop.f32.mrf.mxu1  ;;  %v1243_v2 = vadd.f32 %v1242_v17, %v1129_v53 }
 0x116   :  { %v1131_v47 = vpop.f32.mrf.mxu0 }
 0x117   :  { %v1284_v52 = vpop.f32.mrf.mxu1  ;;  %v1245_v49 = vadd.f32 %v1244_v33, %v1131_v47 }
 0x118   :  { %v1133_v23 = vpop.f32.mrf.mxu0 }
 0x119   :  { %v1286_v45 = vpop.f32.mrf.mxu1  ;;  %v1247_v60 = vadd.f32 %v1246_v4, %v1133_v23 }
 0x11a   :  { %v1137_v12 = vpop.f32.mrf.mxu0 }
 0x11b   :  { %v1290_v19 = vpop.f32.mrf.mxu1  ;;  %v1251_v26 = vadd.f32 %v1250_v37, %v1137_v12 }
 0x11c   :  { %v1139_v0 = vpop.f32.mrf.mxu0 }
 0x11d   :  { %v1292_v6 = vpop.f32.mrf.mxu1  ;;  %v1253_v41 = vadd.f32 %v1252_v3, %v1139_v0 }
 0x11e   :  { %v1141_v1 = vpop.f32.mrf.mxu0 }
 0x11f   :  { %v1294_v21 = vpop.f32.mrf.mxu1  ;;  %v1255_v58 = vadd.f32 %v1254_v18, %v1141_v1 }
 0x120   :  { %v1143_v59 = vpop.f32.mrf.mxu0 }
 0x121   :  { %v6436_v13 = vpop.f32.mrf.mxu1  ;;  %v6438_v25 = vadd.f32 %v1256_v55, %v1143_v59 }
 0x122   :  { %v1147_v51 = vpop.f32.mrf.mxu0 }
 0x123   :  { %v1621_v46 = vpop.f32.mrf.mxu1  ;;  %v6440_v50 = vadd.f32 %v1260_v28, %v1147_v51 }
 0x124   :  { %v6442_v40 = vadd.f32 %v1621_v46, %v1221_v5  ;;  %v1149_v42 = vpop.f32.mrf.mxu0 }
 0x125   :  { %v1623_v29 = vpop.f32.mrf.mxu1  ;;  %v6445_v27 = vadd.f32 %v6362_v62, %v1149_v42 }
 0x126   :  { %v6448_v39 = vadd.f32 %v1623_v29, %v6364_v30  ;;  %v1151_v32 = vpop.f32.mrf.mxu0 }
 0x127   :  { %v1625_v17 = vpop.f32.mrf.mxu1  ;;  %v6451_v33 = vadd.f32 %v6366_v43, %v1151_v32 }
 0x128   :  { %v6454_v4 = vadd.f32 %v1625_v17, %v6368_v57  ;;  %v1153_v37 = vpop.f32.mrf.mxu0 }
 0x129   :  { %v1627_v3 = vpop.f32.mrf.mxu1  ;;  %v6457_v18 = vadd.f32 %v6370_v44, %v1153_v37 }
 0x12a   :  { %v1157_v55 = vpop.f32.mrf.mxu0 }
 0x12b   :  { %v1631_v24 = vpop.f32.mrf.mxu1  ;;  %v6460_v28 = vadd.f32 %v6374_v9, %v1157_v55 }
 0x12c   :  { %v6463_v5 = vadd.f32 %v1631_v24, %v6376_v54  ;;  %v1159_v8 = vpop.f32.mrf.mxu0 }
 0x12d   :  { %v1633_v62 = vpop.f32.mrf.mxu1  ;;  %v6466_v30 = vadd.f32 %v6378_v10, %v1159_v8 }
 0x12e   :  { %v6469_v31 = vadd.f32 %v1633_v62, %v6380_v36  ;;  %v1161_v43 = vpop.f32.mrf.mxu0 }
 0x12f   :  { %v1635_v57 = vpop.f32.mrf.mxu1  ;;  %v6472_v14 = vadd.f32 %v6382_v56, %v1161_v43 }
 0x130   :  { %v6475_v44 = vadd.f32 %v1635_v57, %v6384_v16  ;;  %v1163_v20 = vpop.f32.mrf.mxu0 }
 0x131   :  { %v1637_v9 = vpop.f32.mrf.mxu1  ;;  %v6478_v54 = vadd.f32 %v6386_v38, %v1163_v20 }
 0x132   :  { %v6480_v11 = vadd.f32 %v1637_v9, %v1237_v61  ;;  %v1167_v10 = vpop.f32.mrf.mxu0 }
 0x133   :  { %v1641_v48 = vpop.f32.mrf.mxu1  ;;  %v6482_v22 = vadd.f32 %v1280_v7, %v1167_v10 }
 0x134   :  { %v6484_v36 = vadd.f32 %v1641_v48, %v1241_v35  ;;  %v1169_v63 = vpop.f32.mrf.mxu0 }
 0x135   :  { %v1643_v53 = vpop.f32.mrf.mxu1  ;;  %v6486_v56 = vadd.f32 %v1282_v15, %v1169_v63 }
 0x136   :  { %v6488_v47 = vadd.f32 %v1643_v53, %v1243_v2  ;;  %v1171_v16 = vpop.f32.mrf.mxu0 }
 0x137   :  { %v1645_v23 = vpop.f32.mrf.mxu1  ;;  %v6490_v12 = vadd.f32 %v1284_v52, %v1171_v16 }
 0x138   :  { %v6492_v38 = vadd.f32 %v1645_v23, %v1245_v49  ;;  %v1173_v61 = vpop.f32.mrf.mxu0 }
 0x139   :  { %v1647_v0 = vpop.f32.mrf.mxu1  ;;  %v6494_v1 = vadd.f32 %v1286_v45, %v1173_v61 }
 0x13a   :  { %v6496_v7 = vadd.f32 %v1647_v0, %v1247_v60  ;;  %v1177_v35 = vpop.f32.mrf.mxu0 }
 0x13b   :  { %v1651_v59 = vpop.f32.mrf.mxu1  ;;  %v6498_v51 = vadd.f32 %v1290_v19, %v1177_v35 }
 0x13c   :  { %v6500_v15 = vadd.f32 %v1651_v59, %v1251_v26  ;;  %v1179_v2 = vpop.f32.mrf.mxu0 }
 0x13d   :  { %v1653_v46 = vpop.f32.mrf.mxu1  ;;  %v6502_v42 = vadd.f32 %v1292_v6, %v1179_v2 }
 0x13e   :  { %v6504_v52 = vadd.f32 %v1653_v46, %v1253_v41  ;;  %v1181_v49 = vpop.f32.mrf.mxu0 }
 0x13f   :  { %v1655_v29 = vpop.f32.mrf.mxu1  ;;  %v6506_v32 = vadd.f32 %v1294_v21, %v1181_v49 }
 0x140   :  { %v6508_v45 = vadd.f32 %v1655_v29, %v1255_v58  ;;  %v1183_v60 = vpop.f32.mrf.mxu0 }
 0x141   :  { %v1657_v17 = vpop.f32.mrf.mxu1  ;;  %v6511_v37 = vadd.f32 %v6436_v13, %v1183_v60 }
 0x142   :  { %v6514_v19 = vadd.f32 %v1657_v17, %v6438_v25  ;;  %v1734_v55 = vpop.f32.mrf.mxu0  ;;  %v1628_v25 = vadd.f32 %v1627_v3, %v6372_v34 }
 0x143   :  { %v1661_v26 = vpop.f32.mrf.mxu1  ;;  %v6520_v41 = vadd.f32 %v1734_v55, %v6442_v40 }
 0x144   :  { %v6517_v6 = vadd.f32 %v1661_v26, %v6440_v50  ;;  %v1736_v24 = vpop.f32.mrf.mxu0 }
 0x145   :  { %v1663_v21 = vpop.f32.mrf.mxu1  ;;  %v6526_v8 = vadd.f32 %v1736_v24, %v6448_v39 }
 0x146   :  { %v6523_v58 = vadd.f32 %v1663_v21, %v6445_v27  ;;  %v1738_v62 = vpop.f32.mrf.mxu0 }
 0x147   :  { %v1665_v13 = vpop.f32.mrf.mxu1  ;;  %v6531_v50 = vadd.f32 %v1738_v62, %v6454_v4 }
 0x148   :  { %v1666_v43 = vadd.f32 %v1665_v13, %v6451_v33  ;;  %v1740_v40 = vpop.f32.mrf.mxu0 }
 0x149   :  { %v1667_v57 = vpop.f32.mrf.mxu1  ;;  %v6534_v9 = vadd.f32 %v1740_v40, %v1628_v25 }
 0x14a   :  { %v1668_v20 = vadd.f32 %v1667_v57, %v6457_v18  ;;  %v1744_v10 = vpop.f32.mrf.mxu0 }
 0x14b   :  { %v1671_v27 = vpop.f32.mrf.mxu1  ;;  %v6538_v48 = vadd.f32 %v1744_v10, %v6463_v5 }
 0x14c   :  { %v1672_v39 = vadd.f32 %v1671_v27, %v6460_v28  ;;  %v1746_v34 = vpop.f32.mrf.mxu0 }
 0x14d   :  { %v1673_v63 = vpop.f32.mrf.mxu1  ;;  %v6542_v4 = vadd.f32 %v1746_v34, %v6469_v31 }
 0x14e   :  { %v1674_v33 = vadd.f32 %v1673_v63, %v6466_v30  ;;  %v1748_v53 = vpop.f32.mrf.mxu0 }
 0x14f   :  { %v1675_v3 = vpop.f32.mrf.mxu1  ;;  %v6546_v16 = vadd.f32 %v1748_v53, %v6475_v44 }
 0x150   :  { %v1676_v18 = vadd.f32 %v1675_v3, %v6472_v14  ;;  %v1750_v61 = vpop.f32.mrf.mxu0 }
 0x151   :  { %v1677_v23 = vpop.f32.mrf.mxu1  ;;  %v6550_v5 = vadd.f32 %v1750_v61, %v6480_v11 }
 0x152   :  { %v1678_v28 = vadd.f32 %v1677_v23, %v6478_v54  ;;  %v1754_v35 = vpop.f32.mrf.mxu0 }
 0x153   :  { %v1681_v0 = vpop.f32.mrf.mxu1  ;;  %v6554_v31 = vadd.f32 %v1754_v35, %v6484_v36 }
 0x154   :  { %v1682_v30 = vadd.f32 %v1681_v0, %v6482_v22  ;;  %v1756_v2 = vpop.f32.mrf.mxu0 }
 0x155   :  { %v1683_v59 = vpop.f32.mrf.mxu1  ;;  %v6558_v44 = vadd.f32 %v1756_v2, %v6488_v47 }
 0x156   :  { %v1684_v14 = vadd.f32 %v1683_v59, %v6486_v56  ;;  %v1758_v49 = vpop.f32.mrf.mxu0 }
 0x157   :  { %v1685_v46 = vpop.f32.mrf.mxu1  ;;  %v6562_v11 = vadd.f32 %v1758_v49, %v6492_v38 }
 0x158   :  { %v1686_v54 = vadd.f32 %v1685_v46, %v6490_v12  ;;  %v1760_v60 = vpop.f32.mrf.mxu0 }
 0x159   :  { %v1687_v29 = vpop.f32.mrf.mxu1  ;;  %v6566_v36 = vadd.f32 %v1760_v60, %v6496_v7 }
 0x15a   :  { %v1688_v22 = vadd.f32 %v1687_v29, %v6494_v1  ;;  %v1764_v26 = vpop.f32.mrf.mxu0 }
 0x15b   :  { %v1691_v17 = vpop.f32.mrf.mxu1  ;;  %v6570_v47 = vadd.f32 %v1764_v26, %v6500_v15 }
 0x15c   :  { %v1692_v56 = vadd.f32 %v1691_v17, %v6498_v51  ;;  %v1766_v21 = vpop.f32.mrf.mxu0 }
 0x15d   :  { %v1693_v55 = vpop.f32.mrf.mxu1  ;;  %v6574_v38 = vadd.f32 %v1766_v21, %v6504_v52 }
 0x15e   :  { %v1694_v12 = vadd.f32 %v1693_v55, %v6502_v42  ;;  %v1768_v13 = vpop.f32.mrf.mxu0 }
 0x15f   :  { %v1695_v24 = vpop.f32.mrf.mxu1  ;;  %v6578_v7 = vadd.f32 %v1768_v13, %v6508_v45 }
 0x160   :  { %v1696_v1 = vadd.f32 %v1695_v24, %v6506_v32  ;;  %v1770_v25 = vpop.f32.mrf.mxu0  ;;  %v2747_v24 = vlaneseq }
 0x161   :  { %v1697_v62 = vpop.f32.mrf.mxu1  ;;  %v6582_v15 = vadd.f32 %v1770_v25, %v6514_v19 }
 0x162   :  { %v1698_v51 = vadd.f32 %v1697_v62, %v6511_v37  ;;  %v1774_v57 = vpop.f32.mrf.mxu0 }
 0x163   :  { %v2521_v40 = vpop.f32.mrf.mxu1  ;;  %v6585_v42 = vadd.f32 %v1774_v57, %v6517_v6 }
 0x164   :  { %v1776_v52 = vpop.f32.mrf.mxu0 }
 0x165   :  { %v2523_v27 = vpop.f32.mrf.mxu1  ;;  %v6588_v10 = vadd.f32 %v1776_v52, %v6523_v58  ;;  %v6636_v52 = vshrl.u32 %v2747_v24, 7 }
 0x166   :  { %v1778_v32 = vpop.f32.mrf.mxu0 }
 0x167   :  { %v2525_v45 = vpop.f32.mrf.mxu1  ;;  %v6590_v63 = vadd.f32 %v1778_v32, %v1666_v43 }
 0x168   :  { %v1780_v34 = vpop.f32.mrf.mxu0 }
 0x169   :  { %v6592_v3 = vpop.f32.mrf.mxu1  ;;  %v6594_v37 = vadd.f32 %v1780_v34, %v1668_v20 }
 0x16a   :  { %v1784_v19 = vpop.f32.mrf.mxu0 }
 0x16b   :  { %v6596_v53 = vpop.f32.mrf.mxu1  ;;  %v6598_v23 = vadd.f32 %v1784_v19, %v1672_v39 }
 0x16c   :  { %v1786_v6 = vpop.f32.mrf.mxu0 }
 0x16d   :  { %7060 = vst [vmem:[#allocation2_spill] sm:$0xff] %v6598_v23  ;;  %v6600_v61 = vpop.f32.mrf.mxu1  ;;  %v6602_v0 = vadd.f32 %v1786_v6, %v1674_v33 }
 0x16e   :  { %v1788_v58 = vpop.f32.mrf.mxu0 }
 0x16f   :  { %7061 = vst [vmem:[#allocation3_spill] sm:$0xff] %v6602_v0  ;;  %v6604_v35 = vpop.f32.mrf.mxu1  ;;  %v6606_v43 = vadd.f32 %v1788_v58, %v1676_v18 }
 0x170   :  { %v1790_v59 = vpop.f32.mrf.mxu0 }
 0x171   :  { %7062 = vst [vmem:[#allocation4_spill] sm:$0xff] %v6606_v43  ;;  %v6608_v2 = vpop.f32.mrf.mxu1  ;;  %v6610_v20 = vadd.f32 %v1790_v59, %v1678_v28 }
 0x172   :  { %v1794_v46 = vpop.f32.mrf.mxu0 }
 0x173   :  { %7063 = vst [vmem:[#allocation5_spill] sm:$0xff] %v6610_v20  ;;  %v6612_v49 = vpop.f32.mrf.mxu1  ;;  %v6614_v39 = vadd.f32 %v1794_v46, %v1682_v30  ;;  %v4947_v20 = vmov 1983009808  }
 0x174   :  { %v1796_v29 = vpop.f32.mrf.mxu0 }
 0x175   :  { %v6616_v60 = vpop.f32.mrf.mxu1  ;;  %v6618_v33 = vadd.f32 %v1796_v29, %v1684_v14  ;;  %v2753_v29 = vsub.s32 1, %v6636_v52 }
 0x176   :  { %v1798_v17 = vpop.f32.mrf.mxu0 }
 0x177   :  { %v6620_v26 = vpop.f32.mrf.mxu1  ;;  %v6622_v18 = vadd.f32 %v1798_v17, %v1686_v54 }
 0x178   :  { %v1800_v55 = vpop.f32.mrf.mxu0 }
 0x179   :  { %v6624_v21 = vpop.f32.mrf.mxu1  ;;  %v6626_v28 = vadd.f32 %v1800_v55, %v1688_v22 }
 0x17a   :  { %v1804_v13 = vpop.f32.mrf.mxu0 }
 0x17b   :  { %v6628_v62 = vpop.f32.mrf.mxu1  ;;  %v6630_v30 = vadd.f32 %v1804_v13, %v1692_v56  ;;  %v6647_v56 = vsub.s32 0, %v6636_v52 }
 0x17c   :  { %v1806_v25 = vpop.f32.mrf.mxu0 }
 0x17d   :  { %7064 = vst [vmem:[#allocation6_spill] sm:$0xff] %v6630_v30  ;;  %v6632_v57 = vpop.f32.mrf.mxu1  ;;  %v6634_v14 = vadd.f32 %v1806_v25, %v1694_v12  ;;  %v2745_v12 = vld [vmem:[%s7059_s2] sm:$0x3] }
 0x17e   :  { %v1808_v54 = vpop.f32.mrf.mxu0 }
 0x17f   :  { %7065 = vst [vmem:[#allocation7_spill] sm:$0xff] %v6634_v14  ;;  %v6638_v32 = vpop.f32.mrf.mxu1  ;;  %v6640_v34 = vadd.f32 %v1808_v54, %v1696_v1 }
 0x180   :  { %v1810_v22 = vpop.f32.mrf.mxu0 }
 0x181   :  { %7066 = vst [vmem:[#allocation8_spill] sm:$0xff] %v6640_v34  ;;  %v6642_v19 = vpop.f32.mrf.mxu1  ;;  %v6644_v6 = vadd.f32 %v1810_v22, %v1698_v51  ;;  %v6659_v51 = vrot.slane %v2745_v12, %v6647_v56  ;;  %v6664_v22 = vrot.slane %v2745_v12, %v2753_v29  ;;  %v2856_v34 = vunpack.c.l.s4 %v4947_v20 }
 0x182   :  { %v2634_v59 = vpop.f32.mrf.mxu0 }
 0x183   :  { %7067 = vst [vmem:[#allocation9_spill] sm:$0xff] %v6644_v6  ;;  %v6649_v58 = vpop.f32.mrf.mxu1  ;;  %v2635_v46 = vadd.f32 %v2634_v59, %v2521_v40  ;;  %v2857_v29 = vunpack.c.0.s8 %v2856_v34 }
 0x184   :  { %v2636_v17 = vpop.f32.mrf.mxu0 }
 0x185   :  { %v6655_v1 = vpop.f32.mrf.mxu1  ;;  %v2713_v55 = vadd.f32 %v2635_v46, %v6520_v41  ;;  %v2637_v24 = vadd.f32 %v2636_v17, %v2523_v27 }
 0x186   :  { %v2638_v25 = vpop.f32.mrf.mxu0 }
 0x187   :  { %v6661_v13 = vpop.f32.mrf.mxu1  ;;  %v2714_v54 = vadd.f32 %v2637_v24, %v6526_v8  ;;  %v2639_v6 = vadd.f32 %v2638_v25, %v2525_v45  ;;  %v2757_v14 = vadd.f32 %v6659_v51, %v2713_v55 }
 0x188   :  { %v2640_v59 = vpop.f32.mrf.mxu0 }
 0x189   :  { %v6666_v40 = vpop.f32.mrf.mxu1  ;;  %v2715_v41 = vadd.f32 %v2639_v6, %v6531_v50  ;;  %v2641_v46 = vadd.f32 %v2640_v59, %v6592_v3  ;;  %v2758_v0 = vadd.f32 %v6664_v22, %v2714_v54  ;;  %v2789_v55 = vmax.f32 %v2757_v14, 0.0 }
 0x18a   :  { %v2644_v17 = vpop.f32.mrf.mxu0 }
 0x18b   :  { %v6671_v27 = vpop.f32.mrf.mxu1  ;;  %v2759_v8 = vadd.f32 %v6659_v51, %v2715_v41  ;;  %v2716_v45 = vadd.f32 %v2641_v46, %v6534_v9  ;;  %v2645_v12 = vadd.f32 %v2644_v17, %v6596_v53  ;;  %v2790_v41 = vmax.f32 %v2758_v0, 0.0 }
 0x18c   :  { %7068 = vst [vmem:[#allocation10_spill] sm:$0xff] %v6671_v27  ;;  %v2646_v20 = vpop.f32.mrf.mxu0 }
 0x18d   :  { %v6677_v24 = vpop.f32.mrf.mxu1  ;;  %v2791_v25 = vmax.f32 %v2759_v8, 0.0  ;;  %v2760_v50 = vadd.f32 %v6664_v22, %v2716_v45  ;;  %v2647_v3 = vadd.f32 %v2646_v20, %v6600_v61  ;;  %v2717_v6 = vadd.f32 %v2645_v12, %v6538_v48 }
 0x18e   :  { %7069 = vst [vmem:[#allocation11_spill] sm:$0xff] %v6677_v24  ;;  %v2648_v54 = vpop.f32.mrf.mxu0  ;;  %v6689_v8 = vsub.s32 %v2857_v29, %v6636_v52 }
 0x18f   :  { %v6682_v59 = vpop.f32.mrf.mxu1  ;;  %v2821_v43 = vmax.f32 %v2789_v55, %v2791_v25  ;;  %v2792_v9 = vmax.f32 %v2760_v50, 0.0  ;;  %v2718_v53 = vadd.f32 %v2647_v3, %v6542_v4  ;;  %v2649_v34 = vadd.f32 %v2648_v54, %v6604_v35 }
 0x190   :  { %7070 = vst [vmem:[#allocation12_spill] sm:$0xff] %v6682_v59  ;;  %v2650_v14 = vpop.f32.mrf.mxu0  ;;  %v2761_v48 = vadd.f32 %v6659_v51, %v2717_v6  ;;  %v6697_v55 = vsub.s32 2, %v6636_v52 }
 0x191   :  { %v6686_v46 = vpop.f32.mrf.mxu1  ;;  %v2822_v17 = vmax.f32 %v2790_v41, %v2792_v9  ;;  %v2651_v61 = vadd.f32 %v2650_v14, %v6608_v2  ;;  %v2762_v45 = vadd.f32 %v6664_v22, %v2718_v53  ;;  %v2719_v0 = vadd.f32 %v2649_v34, %v6546_v16 }
 0x192   :  { %7071 = vst [vmem:[#allocation13_spill] sm:$0xff] %v6686_v46  ;;  %v2654_v12 = vpop.f32.mrf.mxu0  ;;  %v2793_v54 = vmax.f32 %v2761_v48, 0.0 }
 0x193   :  { %v2853_v20 = vcombine.low %v2821_v43, %v2822_v17  ;;  %v2854_v4 = vcombine.high %v2821_v43, %v2822_v17  ;;  %v2720_v35 = vadd.f32 %v2651_v61, %v6550_v5  ;;  %v2763_v25 = vadd.f32 %v6659_v51, %v2719_v0  ;;  %v6700_v29 = vpop.f32.mrf.mxu1 }
 0x194   :  { %v2655_v2 = vadd.f32 %v2654_v12, %v6612_v49  ;;  %v2656_v50 = vpop.f32.mrf.mxu0  ;;  %v2794_v5 = vmax.f32 %v2762_v45, 0.0 }
 0x195   :  { %v2861_v3 = vrot.slane %v2853_v20, %v6689_v8  ;;  %v2868_v6 = vrot.slane %v2854_v4, %v6689_v8  ;;  %v2764_v16 = vadd.f32 %v6664_v22, %v2720_v35  ;;  %v2657_v43 = vadd.f32 %v2656_v50, %v6616_v60  ;;  %v6711_v12 = vpop.f32.mrf.mxu1 }
 0x196   :  { %v2795_v41 = vmax.f32 %v2763_v25, 0.0  ;;  %v2721_v52 = vadd.f32 %v2655_v2, %v6554_v31  ;;  %v2658_v17 = vpop.f32.mrf.mxu0 }
 0x197   :  { %v2869_v9 = vcombine.high %v2861_v3, %v2861_v3  ;;  %v2870_v53 = vcombine.high %v2868_v6, %v2868_v6  ;;  %v4480_v34 = vrot.slane %v2861_v3, 9  ;;  %v4482_v14 = vrot.slane %v2868_v6, 9 }
 0x198   :  { %v2823_v49 = vmax.f32 %v2793_v54, %v2795_v41  ;;  %v2796_v61 = vmax.f32 %v2764_v16, 0.0  ;;  %v6709_v0 = vadd.f32 %v6659_v51, %v2721_v52  ;;  %v2722_v60 = vadd.f32 %v2657_v43, %v6558_v44  ;;  %v6723_v41 = vpop.f32.mrf.mxu1 }
 0x199   :  { %v4481_v48 = vrot.slane %v2869_v9, 9  ;;  %v4483_v45 = vrot.slane %v2870_v53, 9  ;;  %v3125_v20 = vmax.f32 %v2861_v3, %v4480_v34  ;;  %v3127_v31 = vmax.f32 %v2868_v6, %v4482_v14  ;;  %v2660_v34 = vpop.f32.mrf.mxu0 }
 0x19a   :  { %v2824_v4 = vmax.f32 %v2794_v5, %v2796_v61  ;;  %v6716_v25 = vadd.f32 %v6664_v22, %v2722_v60  ;;  %v2659_v2 = vadd.f32 %v2658_v17, %v6620_v26  ;;  %v6733_v46 = vpop.f32.mrf.mxu1 }
 0x19b   :  { %v3126_v50 = vmax.f32 %v2869_v9, %v4481_v48  ;;  %v3128_v16 = vmax.f32 %v2870_v53, %v4483_v45  ;;  %v3204_v54 = vrot.slane %v3125_v20, %v6647_v56  ;;  %v3208_v44 = vrot.slane %v3125_v20, %v6697_v55 }
 0x19c   :  { %v3220_v3 = vrot.slane %v3127_v31, %v6647_v56  ;;  %v3224_v6 = vrot.slane %v3127_v31, %v6697_v55  ;;  %v2871_v43 = vcombine.low %v2823_v49, %v2824_v4  ;;  %v2872_v5 = vcombine.high %v2823_v49, %v2824_v4 }
 0x19d   :  { %v3212_v52 = vrot.slane %v3126_v50, %v6647_v56  ;;  %v3216_v26 = vrot.slane %v3126_v50, %v6697_v55  ;;  %v3228_v9 = vrot.slane %v3128_v16, %v6647_v56  ;;  %v3232_v53 = vrot.slane %v3128_v16, %v6697_v55 }
 0x19e   :  { %v4560_v14 = vpack.c.bf16 %v3208_v44, %v3204_v54  ;;  %v4562_v17 = vpack.c.bf16 %v3224_v6, %v3220_v3  ;;  %v2879_v61 = vrot.slane %v2871_v43, %v6689_v8  ;;  %v2886_v60 = vrot.slane %v2872_v5, %v6689_v8  ;;  %v2664_v3 = vpop.f32.mrf.mxu0 }
 0x19f   :  { %v4561_v48 = vpack.c.bf16 %v3216_v26, %v3212_v52  ;;  %v4563_v45 = vpack.c.bf16 %v3232_v53, %v3228_v9  ;;  %v2723_v20 = vadd.f32 %v2659_v2, %v6562_v11 }
 0x1a0   :  { %v3745_v31 = vunpack.c.l.b16 %v4560_v14  ;;  %v3746_v4 = vunpack.c.h.b16 %v4560_v14  ;;  %v3749_v50 = vunpack.c.l.b16 %v4562_v17  ;;  %v3750_v35 = vunpack.c.h.b16 %v4562_v17 }
 0x1a1   :  { %v3747_v16 = vunpack.c.l.b16 %v4561_v48  ;;  %v3748_v59 = vunpack.c.h.b16 %v4561_v48  ;;  %v3751_v54 = vunpack.c.l.b16 %v4563_v45  ;;  %v3752_v44 = vunpack.c.h.b16 %v4563_v45  ;;  %v6747_v45 = vpop.f32.mrf.mxu1 }
 0x1a2   :  { %v3809_v6 = vrot.slane %v3745_v31, 7  ;;  %v3813_v43 = vrot.slane %v3749_v50, 5  ;;  %v3819_v5 = vrot.slane %v3746_v4, 7  ;;  %v3822_v52 = vrot.slane %v3750_v35, 5 }
 0x1a3   :  { %v3810_v26 = vrot.slane %v3747_v16, 6  ;;  %v3816_v9 = vrot.slane %v3751_v54, 4  ;;  %v3820_v53 = vrot.slane %v3748_v59, 6  ;;  %v3824_v49 = vrot.slane %v3752_v44, 4  ;;  %v2666_v16 = vpop.f32.mrf.mxu0 }
 0x1a4   :  { %v2887_v14 = vcombine.high %v2879_v61, %v2879_v61  ;;  %v2888_v17 = vcombine.high %v2886_v60, %v2886_v60  ;;  %v4484_v48 = vrot.slane %v2879_v61, 9  ;;  %v4486_v35 = vrot.slane %v2886_v60, 9 }
 0x1a5   :  { %v3812_v59 = vsel %vm3811_vm4, %v3810_v26, %v3809_v6  ;;  %v3821_v31 = vsel %vm3811_vm4, %v3820_v53, %v3819_v5  ;;  %v2767_v4 = vadd.f32 %v6659_v51, %v2723_v20  ;;  %v2661_v50 = vadd.f32 %v2660_v34, %v6624_v21  ;;  %v4544_v21 = vld [vmem:[%s7058_s3 + $0x8] sm:$0x77] }
 0x1a6   :  { %v3815_v54 = vsel %vm3814_vm5, %v3813_v43, %v3812_v59  ;;  %v3823_v44 = vsel %vm3814_vm5, %v3822_v52, %v3821_v31  ;;  %v4485_v24 = vrot.slane %v2887_v14, 9  ;;  %v4487_v30 = vrot.slane %v2888_v17, 9  ;;  %v2668_v59 = vpop.f32.mrf.mxu0 }
 0x1a7   :  { %v3818_v23 = vsel %vm3817_vm6, %v3816_v9, %v3815_v54  ;;  %v3825_v27 = vsel %vm3817_vm6, %v3824_v49, %v3823_v44  ;;  %v3129_v34 = vmax.f32 %v2879_v61, %v4484_v48  ;;  %v3131_v20 = vmax.f32 %v2886_v60, %v4486_v35  ;;  %v6768_v9 = vpop.f32.mrf.mxu1 }
 0x1a8   :  { %v3924_v43 = vpack.c.b16 %v3825_v27, %v3818_v23  ;;  %v3130_v5 = vmax.f32 %v2887_v14, %v4485_v24  ;;  %v3132_v52 = vmax.f32 %v2888_v17, %v4487_v30  ;;  %v2799_v26 = vmax.f32 %v2767_v4, 0.0 }
 0x1a9   :  { %v3236_v49 = vrot.slane %v3129_v34, %v6647_v56  ;;  %v3240_v53 = vrot.slane %v3129_v34, %v6697_v55  ;;  %v3252_v11 = vrot.slane %v3131_v20, %v6647_v56  ;;  %v3256_v2 = vrot.slane %v3131_v20, %v6697_v55  ;;  %v6788_v44 = vpop.f32.mrf.mxu1 }
 0x1aa   :  { %v3949_v31 = vsel %vm6761_vm9, %v3924_v43, %v4544_v21  ;;  %v3244_v61 = vrot.slane %v3130_v5, %v6647_v56  ;;  %v3248_v23 = vrot.slane %v3130_v5, %v6697_v55  ;;  %v3260_v30 = vrot.slane %v3132_v52, %v6647_v56  ;;  %v2670_v5 = vpop.f32.mrf.mxu0 }
 0x1ab   :  { %4545 = vst [vmem:[%s7058_s3 + $0x8] sm:$0x77] %v3949_v31  ;;  %v3264_v27 = vrot.slane %v3132_v52, %v6697_v55  ;;  %v4564_v24 = vpack.c.bf16 %v3240_v53, %v3236_v49  ;;  %v4566_v60 = vpack.c.bf16 %v3256_v2, %v3252_v11  ;;  %v7078_v14 = vmax.f32 %v6709_v0, 0.0 }
 0x1ac   :  { %v4565_v48 = vpack.c.bf16 %v3248_v23, %v3244_v61  ;;  %v2724_v35 = vadd.f32 %v2661_v50, %v6566_v36  ;;  %v2665_v4 = vadd.f32 %v2664_v3, %v6628_v62  ;;  %v2667_v54 = vadd.f32 %v2666_v16, %v6632_v57  ;;  %v6791_v16 = vpop.f32.mrf.mxu1 }
 0x1ad   :  { %v2825_v17 = vmax.f32 %v7078_v14, %v2799_v26  ;;  %v4567_v21 = vpack.c.bf16 %v3264_v27, %v3260_v30  ;;  %v3753_v34 = vunpack.c.l.b16 %v4564_v24  ;;  %v3754_v20 = vunpack.c.h.b16 %v4564_v24  ;;  %v2674_v27 = vpop.f32.mrf.mxu0 }
 0x1ae   :  { %v3757_v43 = vunpack.c.l.b16 %v4566_v60  ;;  %v3755_v52 = vunpack.c.l.b16 %v4565_v48  ;;  %v3756_v49 = vunpack.c.h.b16 %v4565_v48  ;;  %v3758_v53 = vunpack.c.h.b16 %v4566_v60 }
 0x1af   :  { %v2768_v0 = vadd.f32 %v6664_v22, %v2724_v35  ;;  %v3759_v26 = vunpack.c.l.b16 %v4567_v21  ;;  %v3760_v11 = vunpack.c.h.b16 %v4567_v21  ;;  %v3826_v2 = vrot.slane %v3753_v34, 7 }
 0x1b0   :  { %v3829_v36 = vrot.slane %v3757_v43, 5  ;;  %v3827_v50 = vrot.slane %v3755_v52, 6  ;;  %v3833_v62 = vrot.slane %v3754_v20, 7  ;;  %v3834_v3 = vrot.slane %v3756_v49, 6  ;;  %v4546_v52 = vld [vmem:[%s7058_s3 + $0x10] sm:$0x77] }
 0x1b1   :  { %v3836_v57 = vrot.slane %v3758_v53, 5  ;;  %v3831_v31 = vrot.slane %v3759_v26, 4  ;;  %v3838_v61 = vrot.slane %v3760_v11, 4  ;;  %v2800_v23 = vmax.f32 %v2768_v0, 0.0 }
 0x1b2   :  { %v2725_v30 = vadd.f32 %v2665_v4, %v6570_v47  ;;  %v3828_v24 = vsel %vm3811_vm4, %v3827_v50, %v3826_v2  ;;  %v3835_v60 = vsel %vm3811_vm4, %v3834_v3, %v3833_v62  ;;  %v2726_v14 = vadd.f32 %v2667_v54, %v6574_v38 }
 0x1b3   :  { %v2669_v48 = vadd.f32 %v2668_v59, %v6638_v32  ;;  %v3830_v35 = vsel %vm3814_vm5, %v3829_v36, %v3828_v24  ;;  %v3837_v21 = vsel %vm3814_vm5, %v3836_v57, %v3835_v60  ;;  %v7079_v34 = vmax.f32 %v6716_v25, 0.0  ;;  %v2694_v32 = vpop.f32.mrf.mxu1  ;;  %v2676_v25 = vpop.f32.mrf.mxu0 }
 0x1b4   :  { %v2769_v43 = vadd.f32 %v6659_v51, %v2725_v30  ;;  %v3832_v47 = vsel %vm3817_vm6, %v3831_v31, %v3830_v35  ;;  %v3839_v4 = vsel %vm3817_vm6, %v3838_v61, %v3837_v21  ;;  %v2770_v53 = vadd.f32 %v6664_v22, %v2726_v14 }
 0x1b5   :  { %v2826_v20 = vmax.f32 %v7079_v34, %v2800_v23  ;;  %v2727_v38 = vadd.f32 %v2669_v48, %v6578_v7  ;;  %v3925_v59 = vpack.c.b16 %v3839_v4, %v3832_v47  ;;  %v2671_v11 = vadd.f32 %v2670_v5, %v6642_v19 }
 0x1b6   :  { %v2801_v0 = vmax.f32 %v2769_v43, 0.0  ;;  %v2675_v2 = vadd.f32 %v2674_v27, %v6649_v58  ;;  %v2695_v62 = vadd.f32 %v2694_v32, %v6700_v29  ;;  %v2677_v58 = vadd.f32 %v2676_v25, %v6655_v1 }
 0x1b7   :  { %v2889_v54 = vcombine.low %v2825_v17, %v2826_v20  ;;  %v2890_v49 = vcombine.high %v2825_v17, %v2826_v20  ;;  %v2771_v26 = vadd.f32 %v6659_v51, %v2727_v38  ;;  %v3952_v36 = vsel %vm6761_vm9, %v3925_v59, %v4546_v52  ;;  %v2696_v38 = vpop.f32.mrf.mxu1 }
 0x1b8   :  { %4547 = vst [vmem:[%s7058_s3 + $0x10] sm:$0x77] %v3952_v36  ;;  %v2728_v3 = vadd.f32 %v2671_v11, %v6582_v15  ;;  %v2729_v19 = vadd.f32 %v2675_v2, %v6585_v42  ;;  %v2737_v27 = vadd.f32 %v2695_v62, %v6614_v39  ;;  %v2802_v48 = vmax.f32 %v2770_v53, 0.0 }
 0x1b9   :  { %v2897_v50 = vrot.slane %v2889_v54, %v6689_v8  ;;  %v2904_v7 = vrot.slane %v2890_v49, %v6689_v8  ;;  %v2803_v17 = vmax.f32 %v2771_v26, 0.0  ;;  %v2730_v52 = vadd.f32 %v2677_v58, %v6588_v10 }
 0x1ba   :  { %v2772_v30 = vadd.f32 %v6664_v22, %v2728_v3  ;;  %v6826_v29 = vadd.f32 %v6659_v51, %v2729_v19  ;;  %v6831_v35 = vadd.f32 %v6659_v51, %v2737_v27  ;;  %v2698_v27 = vpop.f32.mrf.mxu1 }
 0x1bb   :  { %v2905_v5 = vcombine.high %v2897_v50, %v2897_v50  ;;  %v2906_v57 = vcombine.high %v2904_v7, %v2904_v7  ;;  %v4488_v31 = vrot.slane %v2897_v50, 9  ;;  %v4490_v61 = vrot.slane %v2904_v7, 9 }
 0x1bc   :  { %v2827_v23 = vmax.f32 %v2801_v0, %v2803_v17  ;;  %v2804_v42 = vmax.f32 %v2772_v30, 0.0  ;;  %v2805_v1 = vmax.f32 %v6826_v29, 0.0  ;;  %v2813_v36 = vmax.f32 %v6831_v35, 0.0  ;;  %v7083_v35 = vld [vmem:[#allocation11_spill] sm:$0xff] }
 0x1bd   :  { %v4489_v24 = vrot.slane %v2905_v5, 9  ;;  %v4491_v60 = vrot.slane %v2906_v57, 9  ;;  %v3133_v14 = vmax.f32 %v2897_v50, %v4488_v31  ;;  %v3135_v15 = vmax.f32 %v2904_v7, %v4490_v61 }
 0x1be   :  { %v2828_v4 = vmax.f32 %v2802_v48, %v2804_v42  ;;  %v2697_v50 = vadd.f32 %v2696_v38, %v6711_v12  ;;  %v6845_v30 = vadd.f32 %v6664_v22, %v2730_v52 }
 0x1bf   :  { %v3134_v21 = vmax.f32 %v2905_v5, %v4489_v24  ;;  %v3136_v34 = vmax.f32 %v2906_v57, %v4491_v60  ;;  %v3268_v20 = vrot.slane %v3133_v14, %v6647_v56  ;;  %v3272_v43 = vrot.slane %v3133_v14, %v6697_v55 }
 0x1c0   :  { %v3284_v47 = vrot.slane %v3135_v15, %v6647_v56  ;;  %v3288_v39 = vrot.slane %v3135_v15, %v6697_v55  ;;  %v2907_v0 = vcombine.low %v2827_v23, %v2828_v4  ;;  %v2908_v26 = vcombine.high %v2827_v23, %v2828_v4  ;;  %v2678_v23 = vpop.f32.mrf.mxu0 }
 0x1c1   :  { %v3276_v32 = vrot.slane %v3134_v21, %v6647_v56  ;;  %v3280_v59 = vrot.slane %v3134_v21, %v6697_v55  ;;  %v3292_v54 = vrot.slane %v3136_v34, %v6647_v56  ;;  %v3296_v49 = vrot.slane %v3136_v34, %v6697_v55 }
 0x1c2   :  { %v4568_v53 = vpack.c.bf16 %v3272_v43, %v3268_v20  ;;  %v4570_v25 = vpack.c.bf16 %v3288_v39, %v3284_v47  ;;  %v2915_v48 = vrot.slane %v2907_v0, %v6689_v8  ;;  %v2922_v42 = vrot.slane %v2908_v26, %v6689_v8 }
 0x1c3   :  { %v4569_v11 = vpack.c.bf16 %v3280_v59, %v3276_v32  ;;  %v4571_v2 = vpack.c.bf16 %v3296_v49, %v3292_v54  ;;  %v2738_v21 = vadd.f32 %v2697_v50, %v6618_v33  ;;  %v2679_v43 = vadd.f32 %v2678_v23, %v6661_v13  ;;  %v4548_v33 = vld [vmem:[%s7058_s3 + $0x18] sm:$0x77]  ;;  %v2680_v50 = vpop.f32.mrf.mxu0 }
 0x1c4   :  { %v3761_v10 = vunpack.c.l.b16 %v4568_v53  ;;  %v3762_v7 = vunpack.c.h.b16 %v4568_v53  ;;  %v3765_v62 = vunpack.c.l.b16 %v4570_v25  ;;  %v3766_v17 = vunpack.c.h.b16 %v4570_v25 }
 0x1c5   :  { %v3763_v3 = vunpack.c.l.b16 %v4569_v11  ;;  %v3764_v19 = vunpack.c.h.b16 %v4569_v11  ;;  %v3767_v58 = vunpack.c.l.b16 %v4571_v2  ;;  %v3768_v5 = vunpack.c.h.b16 %v4571_v2 }
 0x1c6   :  { %v3840_v57 = vrot.slane %v3761_v10, 7  ;;  %v3843_v31 = vrot.slane %v3765_v62, 5  ;;  %v3847_v61 = vrot.slane %v3762_v7, 7  ;;  %v3850_v12 = vrot.slane %v3766_v17, 5 }
 0x1c7   :  { %v3841_v24 = vrot.slane %v3763_v3, 6  ;;  %v3845_v60 = vrot.slane %v3767_v58, 4  ;;  %v3848_v14 = vrot.slane %v3764_v19, 6  ;;  %v3852_v15 = vrot.slane %v3768_v5, 4  ;;  %v2700_v58 = vpop.f32.mrf.mxu1 }
 0x1c8   :  { %v2699_v47 = vadd.f32 %v2698_v27, %v6723_v41  ;;  %v2923_v52 = vcombine.high %v2915_v48, %v2915_v48  ;;  %v2924_v38 = vcombine.high %v2922_v42, %v2922_v42  ;;  %v4492_v54 = vrot.slane %v2915_v48, 9 }
 0x1c9   :  { %v3842_v34 = vsel %vm3811_vm4, %v3841_v24, %v3840_v57  ;;  %v3849_v20 = vsel %vm3811_vm4, %v3848_v14, %v3847_v61  ;;  %v4494_v49 = vrot.slane %v2922_v42, 9  ;;  %v2806_v41 = vmax.f32 %v6845_v30, 0.0  ;;  %v2684_v14 = vpop.f32.mrf.mxu0  ;;  %v7087_v30 = vld [vmem:[#allocation7_spill] sm:$0xff] }
 0x1ca   :  { %v3844_v39 = vsel %vm3814_vm5, %v3843_v31, %v3842_v34  ;;  %v3851_v4 = vsel %vm3814_vm5, %v3850_v12, %v3849_v20  ;;  %v4493_v13 = vrot.slane %v2923_v52, 9  ;;  %v4495_v25 = vrot.slane %v2924_v38, 9 }
 0x1cb   :  { %v3846_v32 = vsel %vm3817_vm6, %v3845_v60, %v3844_v39  ;;  %v3853_v59 = vsel %vm3817_vm6, %v3852_v15, %v3851_v4  ;;  %v3137_v0 = vmax.f32 %v2915_v48, %v4492_v54  ;;  %v3139_v26 = vmax.f32 %v2922_v42, %v4494_v49  ;;  %v2686_v49 = vpop.f32.mrf.mxu0 }
 0x1cc   :  { %v3926_v53 = vpack.c.b16 %v3853_v59, %v3846_v32  ;;  %v2731_v11 = vadd.f32 %v2679_v43, %v6590_v63  ;;  %v2739_v2 = vadd.f32 %v2699_v47, %v6622_v18  ;;  %v3138_v7 = vmax.f32 %v2923_v52, %v4493_v13 }
 0x1cd   :  { %v3140_v62 = vmax.f32 %v2924_v38, %v4495_v25  ;;  %v6867_v17 = vadd.f32 %v6664_v22, %v2738_v21  ;;  %v3300_v3 = vrot.slane %v3137_v0, %v6647_v56  ;;  %v3304_v19 = vrot.slane %v3137_v0, %v6697_v55  ;;  %v2704_v38 = vpop.f32.mrf.mxu1 }
 0x1ce   :  { %v3955_v10 = vsel %vm6761_vm9, %v3926_v53, %v4548_v33  ;;  %v3316_v63 = vrot.slane %v3139_v26, %v6647_v56  ;;  %v3320_v18 = vrot.slane %v3139_v26, %v6697_v55  ;;  %v3308_v5 = vrot.slane %v3138_v7, %v6647_v56 }
 0x1cf   :  { %4549 = vst [vmem:[%s7058_s3 + $0x18] sm:$0x77] %v3955_v10  ;;  %v3312_v57 = vrot.slane %v3138_v7, %v6697_v55  ;;  %v3324_v31 = vrot.slane %v3140_v62, %v6647_v56  ;;  %v3328_v61 = vrot.slane %v3140_v62, %v6697_v55  ;;  %v4572_v23 = vpack.c.bf16 %v3304_v19, %v3300_v3  ;;  %v7080_v10 = vld [vmem:[#allocation10_spill] sm:$0xff]  ;;  %v2706_v3 = vpop.f32.mrf.mxu1 }
 0x1d0   :  { %v4574_v27 = vpack.c.bf16 %v3320_v18, %v3316_v63  ;;  %v2775_v24 = vadd.f32 %v6659_v51, %v2731_v11  ;;  %v2783_v60 = vadd.f32 %v6659_v51, %v2739_v2  ;;  %v2681_v48 = vadd.f32 %v2680_v50, %v6666_v40 }
 0x1d1   :  { %v4573_v12 = vpack.c.bf16 %v3312_v57, %v3308_v5  ;;  %v4575_v15 = vpack.c.bf16 %v3328_v61, %v3324_v31  ;;  %v2701_v42 = vadd.f32 %v2700_v58, %v6733_v46  ;;  %v3769_v21 = vunpack.c.l.b16 %v4572_v23 }
 0x1d2   :  { %v3770_v34 = vunpack.c.h.b16 %v4572_v23  ;;  %v3773_v20 = vunpack.c.l.b16 %v4574_v27  ;;  %v3774_v43 = vunpack.c.h.b16 %v4574_v27  ;;  %v2807_v0 = vmax.f32 %v2775_v24, 0.0  ;;  %v7081_v23 = vld [vmem:[#allocation2_spill] sm:$0xff] }
 0x1d3   :  { %v3771_v47 = vunpack.c.l.b16 %v4573_v12  ;;  %v3772_v39 = vunpack.c.h.b16 %v4573_v12  ;;  %v3775_v4 = vunpack.c.l.b16 %v4575_v15  ;;  %v3776_v52 = vunpack.c.h.b16 %v4575_v15  ;;  %v7084_v12 = vld [vmem:[#allocation12_spill] sm:$0xff] }
 0x1d4   :  { %v3854_v32 = vrot.slane %v3769_v21, 7  ;;  %v3857_v59 = vrot.slane %v3773_v20, 5  ;;  %v3861_v33 = vrot.slane %v3770_v34, 7  ;;  %v3864_v54 = vrot.slane %v3774_v43, 5  ;;  %v7085_v43 = vld [vmem:[#allocation4_spill] sm:$0xff] }
 0x1d5   :  { %v3855_v53 = vrot.slane %v3771_v47, 6  ;;  %v3859_v13 = vrot.slane %v3775_v4, 4  ;;  %v3862_v25 = vrot.slane %v3772_v39, 6  ;;  %v3866_v40 = vrot.slane %v3776_v52, 4  ;;  %v7086_v4 = vld [vmem:[#allocation3_spill] sm:$0xff] }
 0x1d6   :  { %v2815_v46 = vmax.f32 %v2783_v60, 0.0  ;;  %v2732_v26 = vadd.f32 %v2681_v48, %v6594_v37  ;;  %v2740_v11 = vadd.f32 %v2701_v42, %v6626_v28  ;;  %v2685_v7 = vadd.f32 %v2684_v14, %v7080_v10  ;;  %v2688_v28 = vpop.f32.mrf.mxu0  ;;  %v2708_v48 = vpop.f32.mrf.mxu1 }
 0x1d7   :  { %v3856_v2 = vsel %vm3811_vm4, %v3855_v53, %v3854_v32  ;;  %v3863_v50 = vsel %vm3811_vm4, %v3862_v25, %v3861_v33  ;;  %v2705_v62 = vadd.f32 %v2704_v38, %v6747_v45  ;;  %v2829_v18 = vmax.f32 %v2805_v1, %v2807_v0  ;;  %v4550_v45 = vld [vmem:[%s7058_s3 + $0x20] sm:$0x77] }
 0x1d8   :  { %v3858_v19 = vsel %vm3814_vm5, %v3857_v59, %v3856_v2  ;;  %v3865_v63 = vsel %vm3814_vm5, %v3864_v54, %v3863_v50  ;;  %v2833_v37 = vmax.f32 %v2813_v36, %v2815_v46  ;;  %v2776_v57 = vadd.f32 %v6664_v22, %v2732_v26  ;;  %v7082_v1 = vld [vmem:[#allocation6_spill] sm:$0xff]  ;;  %v2690_v54 = vpop.f32.mrf.mxu0  ;;  %v7089_v50 = vld [vmem:[#allocation13_spill] sm:$0xff] }
 0x1d9   :  { %v3860_v58 = vsel %vm3817_vm6, %v3859_v13, %v3858_v19  ;;  %v3867_v5 = vsel %vm3817_vm6, %v3866_v40, %v3865_v63  ;;  %v2784_v31 = vadd.f32 %v6664_v22, %v2740_v11  ;;  %v2733_v29 = vadd.f32 %v2685_v7, %v7081_v23  ;;  %v7088_v13 = vld [vmem:[#allocation8_spill] sm:$0xff] }
 0x1da   :  { %v3927_v61 = vpack.c.b16 %v3867_v5, %v3860_v58  ;;  %v2741_v27 = vadd.f32 %v2705_v62, %v7082_v1  ;;  %v2687_v36 = vadd.f32 %v2686_v49, %v7083_v35  ;;  %v2814_v24 = vmax.f32 %v6867_v17, 0.0 }
 0x1db   :  { %v2808_v60 = vmax.f32 %v2776_v57, 0.0  ;;  %v2816_v14 = vmax.f32 %v2784_v31, 0.0  ;;  %v2689_v15 = vadd.f32 %v2688_v28, %v7084_v12  ;;  %v6911_v21 = vadd.f32 %v6659_v51, %v2733_v29 }
 0x1dc   :  { %v3958_v42 = vsel %vm6761_vm9, %v3927_v61, %v4550_v45  ;;  %v2707_v34 = vadd.f32 %v2706_v3, %v6768_v9  ;;  %v6921_v39 = vadd.f32 %v6659_v51, %v2741_v27  ;;  %v6924_v52 = vadd.f32 %v2687_v36, %v7086_v4 }
 0x1dd   :  { %4551 = vst [vmem:[%s7058_s3 + $0x20] sm:$0x77] %v3958_v42  ;;  %v2830_v17 = vmax.f32 %v2806_v41, %v2808_v60  ;;  %v2834_v20 = vmax.f32 %v2814_v24, %v2816_v14  ;;  %v2735_v47 = vadd.f32 %v2689_v15, %v7085_v43  ;;  %v2709_v38 = vadd.f32 %v2708_v48, %v6788_v44 }
 0x1de   :  { %v2809_v49 = vmax.f32 %v6911_v21, 0.0  ;;  %v6929_v41 = vadd.f32 %v2707_v34, %v7087_v30  ;;  %v2817_v26 = vmax.f32 %v6921_v39, 0.0  ;;  %v6945_v10 = vadd.f32 %v2690_v54, %v7089_v50 }
 0x1df   :  { %v2925_v32 = vcombine.low %v2829_v18, %v2830_v17  ;;  %v2926_v9 = vcombine.high %v2829_v18, %v2830_v17  ;;  %v2961_v59 = vcombine.low %v2833_v37, %v2834_v20  ;;  %v2962_v33 = vcombine.high %v2833_v37, %v2834_v20 }
 0x1e0   :  { %v6932_v53 = vadd.f32 %v6659_v51, %v2735_v47  ;;  %v2743_v25 = vadd.f32 %v2709_v38, %v7088_v13 }
 0x1e1   :  { %v2933_v40 = vrot.slane %v2925_v32, %v6689_v8  ;;  %v2940_v0 = vrot.slane %v2926_v9, %v6689_v8  ;;  %v2969_v44 = vrot.slane %v2961_v59, %v6689_v8  ;;  %v2976_v46 = vrot.slane %v2962_v33, %v6689_v8 }
 0x1e2   :  { %v2811_v11 = vmax.f32 %v6932_v53, 0.0  ;;  %v6942_v2 = vadd.f32 %v6659_v51, %v2743_v25 }
 0x1e3   :  { %v2941_v7 = vcombine.high %v2933_v40, %v2933_v40  ;;  %v2942_v62 = vcombine.high %v2940_v0, %v2940_v0  ;;  %v4496_v3 = vrot.slane %v2933_v40, 9  ;;  %v4498_v19 = vrot.slane %v2940_v0, 9 }
 0x1e4   :  { %v2977_v63 = vcombine.high %v2969_v44, %v2969_v44  ;;  %v2978_v18 = vcombine.high %v2976_v46, %v2976_v46  ;;  %v4504_v37 = vrot.slane %v2969_v44, 9  ;;  %v4506_v28 = vrot.slane %v2976_v46, 9 }
 0x1e5   :  { %v4497_v58 = vrot.slane %v2941_v7, 9  ;;  %v4499_v5 = vrot.slane %v2942_v62, 9  ;;  %v3141_v45 = vmax.f32 %v2933_v40, %v4496_v3  ;;  %v3143_v57 = vmax.f32 %v2940_v0, %v4498_v19 }
 0x1e6   :  { %v4505_v31 = vrot.slane %v2977_v63, 9  ;;  %v4507_v61 = vrot.slane %v2978_v18, 9  ;;  %v3149_v23 = vmax.f32 %v2969_v44, %v4504_v37  ;;  %v3151_v51 = vmax.f32 %v2976_v46, %v4506_v28 }
 0x1e7   :  { %v3142_v29 = vmax.f32 %v2941_v7, %v4497_v58  ;;  %v3144_v1 = vmax.f32 %v2942_v62, %v4499_v5  ;;  %v3332_v27 = vrot.slane %v3141_v45, %v6647_v56  ;;  %v3336_v35 = vrot.slane %v3141_v45, %v6697_v55 }
 0x1e8   :  { %v3348_v36 = vrot.slane %v3143_v57, %v6647_v56  ;;  %v3352_v24 = vrot.slane %v3143_v57, %v6697_v55  ;;  %v3150_v60 = vmax.f32 %v2977_v63, %v4505_v31  ;;  %v3152_v14 = vmax.f32 %v2978_v18, %v4507_v61 }
 0x1e9   :  { %v3340_v12 = vrot.slane %v3142_v29, %v6647_v56  ;;  %v3344_v15 = vrot.slane %v3142_v29, %v6697_v55  ;;  %v3356_v48 = vrot.slane %v3144_v1, %v6647_v56  ;;  %v3360_v42 = vrot.slane %v3144_v1, %v6697_v55 }
 0x1ea   :  { %v4576_v34 = vpack.c.bf16 %v3336_v35, %v3332_v27  ;;  %v4578_v17 = vpack.c.bf16 %v3352_v24, %v3348_v36  ;;  %v3396_v20 = vrot.slane %v3149_v23, %v6647_v56  ;;  %v3400_v43 = vrot.slane %v3149_v23, %v6697_v55  ;;  %v4552_v27 = vld [vmem:[%s7058_s3 + $0x38] sm:$0x77] }
 0x1eb   :  { %v4577_v47 = vpack.c.bf16 %v3344_v15, %v3340_v12  ;;  %v4579_v4 = vpack.c.bf16 %v3360_v42, %v3356_v48  ;;  %v3404_v38 = vrot.slane %v3150_v60, %v6647_v56  ;;  %v3408_v32 = vrot.slane %v3150_v60, %v6697_v55 }
 0x1ec   :  { %v3777_v9 = vunpack.c.l.b16 %v4576_v34  ;;  %v3778_v59 = vunpack.c.h.b16 %v4576_v34  ;;  %v3781_v33 = vunpack.c.l.b16 %v4578_v17  ;;  %v3782_v54 = vunpack.c.h.b16 %v4578_v17 }
 0x1ed   :  { %v3779_v30 = vunpack.c.l.b16 %v4577_v47  ;;  %v3780_v13 = vunpack.c.h.b16 %v4577_v47  ;;  %v3783_v25 = vunpack.c.l.b16 %v4579_v4  ;;  %v3784_v40 = vunpack.c.h.b16 %v4579_v4  ;;  %v2710_v4 = vpop.f32.mrf.mxu1 }
 0x1ee   :  { %v3868_v0 = vrot.slane %v3777_v9, 7  ;;  %v3871_v44 = vrot.slane %v3781_v33, 5  ;;  %v3875_v46 = vrot.slane %v3778_v59, 7  ;;  %v3878_v50 = vrot.slane %v3782_v54, 5 }
 0x1ef   :  { %v3869_v7 = vrot.slane %v3779_v30, 6  ;;  %v3873_v62 = vrot.slane %v3783_v25, 4  ;;  %v3876_v3 = vrot.slane %v3780_v13, 6  ;;  %v3880_v19 = vrot.slane %v3784_v40, 4  ;;  %v7090_v30 = vld [vmem:[#allocation5_spill] sm:$0xff] }
 0x1f0   :  { %v3412_v63 = vrot.slane %v3151_v51, %v6647_v56  ;;  %v3416_v18 = vrot.slane %v3151_v51, %v6697_v55  ;;  %v3420_v37 = vrot.slane %v3152_v14, %v6647_v56  ;;  %v3424_v28 = vrot.slane %v3152_v14, %v6697_v55 }
 0x1f1   :  { %v3870_v58 = vsel %vm3811_vm4, %v3869_v7, %v3868_v0  ;;  %v3877_v5 = vsel %vm3811_vm4, %v3876_v3, %v3875_v46  ;;  %v4584_v45 = vpack.c.bf16 %v3400_v43, %v3396_v20  ;;  %v4585_v57 = vpack.c.bf16 %v3408_v32, %v3404_v38 }
 0x1f2   :  { %v3872_v31 = vsel %vm3814_vm5, %v3871_v44, %v3870_v58  ;;  %v3879_v61 = vsel %vm3814_vm5, %v3878_v50, %v3877_v5  ;;  %v4586_v23 = vpack.c.bf16 %v3416_v18, %v3412_v63  ;;  %v4587_v29 = vpack.c.bf16 %v3424_v28, %v3420_v37 }
 0x1f3   :  { %v3874_v1 = vsel %vm3817_vm6, %v3873_v62, %v3872_v31  ;;  %v3881_v51 = vsel %vm3817_vm6, %v3880_v19, %v3879_v61  ;;  %v3793_v35 = vunpack.c.l.b16 %v4584_v45  ;;  %v3794_v36 = vunpack.c.h.b16 %v4584_v45 }
 0x1f4   :  { %v3928_v24 = vpack.c.b16 %v3881_v51, %v3874_v1  ;;  %v3795_v60 = vunpack.c.l.b16 %v4585_v57  ;;  %v3796_v14 = vunpack.c.h.b16 %v4585_v57  ;;  %v3797_v12 = vunpack.c.l.b16 %v4586_v23 }
 0x1f5   :  { %v3798_v15 = vunpack.c.h.b16 %v4586_v23  ;;  %v3799_v48 = vunpack.c.l.b16 %v4587_v29  ;;  %v3800_v42 = vunpack.c.h.b16 %v4587_v29  ;;  %v2778_v34 = vadd.f32 %v6664_v22, %v6924_v52 }
 0x1f6   :  { %v3961_v17 = vsel %vm6761_vm9, %v3928_v24, %v4552_v27  ;;  %v3896_v20 = vrot.slane %v3793_v35, 7  ;;  %v3897_v43 = vrot.slane %v3795_v60, 6  ;;  %v3899_v47 = vrot.slane %v3797_v12, 5 }
 0x1f7   :  { %4553 = vst [vmem:[%s7058_s3 + $0x38] sm:$0x77] %v3961_v17  ;;  %v3901_v38 = vrot.slane %v3799_v48, 4  ;;  %v3903_v32 = vrot.slane %v3794_v36, 7  ;;  %v3904_v9 = vrot.slane %v3796_v14, 6  ;;  %v3906_v59 = vrot.slane %v3798_v15, 5 }
 0x1f8   :  { %v3898_v33 = vsel %vm3811_vm4, %v3897_v43, %v3896_v20  ;;  %v2831_v52 = vmax.f32 %v2809_v49, %v2811_v11  ;;  %v2819_v54 = vmax.f32 %v6942_v2, 0.0  ;;  %v2736_v13 = vadd.f32 %v6945_v10, %v7090_v30  ;;  %v4556_v11 = vld [vmem:[%s7058_s3 + $0x48] sm:$0x77]  ;;  %v7091_v10 = vld [vmem:[#allocation9_spill] sm:$0xff] }
 0x1f9   :  { %v3900_v25 = vsel %vm3814_vm5, %v3899_v47, %v3898_v33  ;;  %v3905_v40 = vsel %vm3811_vm4, %v3904_v9, %v3903_v32  ;;  %v3908_v0 = vrot.slane %v3800_v42, 4  ;;  %v2711_v44 = vadd.f32 %v2710_v4, %v6791_v16 }
 0x1fa   :  { %v3902_v46 = vsel %vm3817_vm6, %v3901_v38, %v3900_v25  ;;  %v3907_v50 = vsel %vm3814_vm5, %v3906_v59, %v3905_v40  ;;  %v2835_v21 = vmax.f32 %v2817_v26, %v2819_v54  ;;  %v2780_v49 = vadd.f32 %v6664_v22, %v2736_v13 }
 0x1fb   :  { %v3909_v53 = vsel %vm3817_vm6, %v3908_v0, %v3907_v50  ;;  %v2786_v2 = vadd.f32 %v6664_v22, %v6929_v41  ;;  %v2744_v16 = vadd.f32 %v2711_v44, %v7091_v10  ;;  %v2810_v62 = vmax.f32 %v2778_v34, 0.0 }
 0x1fc   :  { %v3930_v7 = vpack.c.b16 %v3909_v53, %v3902_v46  ;;  %v2812_v3 = vmax.f32 %v2780_v49, 0.0 }
 0x1fd   :  { %v2788_v19 = vadd.f32 %v6664_v22, %v2744_v16  ;;  %v2818_v63 = vmax.f32 %v2786_v2, 0.0 }
 0x1fe   :  { %v3967_v39 = vsel %vm6761_vm9, %v3930_v7, %v4556_v11  ;;  %v2832_v26 = vmax.f32 %v2810_v62, %v2812_v3 }
 0x1ff   :  { %4557 = vst [vmem:[%s7058_s3 + $0x48] sm:$0x77] %v3967_v39  ;;  %v2820_v18 = vmax.f32 %v2788_v19, 0.0 }
 0x200   :  { %v2943_v37 = vcombine.low %v2831_v52, %v2832_v26  ;;  %v2944_v28 = vcombine.high %v2831_v52, %v2832_v26 }
 0x201   :  { %v2836_v41 = vmax.f32 %v2818_v63, %v2820_v18 }
 0x202   :  { %v2951_v58 = vrot.slane %v2943_v37, %v6689_v8  ;;  %v2958_v5 = vrot.slane %v2944_v28, %v6689_v8 }
 0x203   :  { %v2979_v45 = vcombine.low %v2835_v21, %v2836_v41  ;;  %v2980_v57 = vcombine.high %v2835_v21, %v2836_v41 }
 0x204   :  { %v2959_v22 = vcombine.high %v2951_v58, %v2951_v58  ;;  %v2960_v31 = vcombine.high %v2958_v5, %v2958_v5  ;;  %v4500_v61 = vrot.slane %v2951_v58, 9  ;;  %v4502_v23 = vrot.slane %v2958_v5, 9 }
 0x205   :  { %v2987_v29 = vrot.slane %v2979_v45, %v6689_v8  ;;  %v2994_v1 = vrot.slane %v2980_v57, %v6689_v8 }
 0x206   :  { %v4501_v51 = vrot.slane %v2959_v22, 9  ;;  %v4503_v27 = vrot.slane %v2960_v31, 9  ;;  %v3145_v35 = vmax.f32 %v2951_v58, %v4500_v61  ;;  %v3147_v36 = vmax.f32 %v2958_v5, %v4502_v23  ;;  %v4554_v23 = vld [vmem:[%s7058_s3 + $0x40] sm:$0x77] }
 0x207   :  { %v2995_v24 = vcombine.high %v2987_v29, %v2987_v29  ;;  %v2996_v60 = vcombine.high %v2994_v1, %v2994_v1  ;;  %v4508_v14 = vrot.slane %v2987_v29, 9  ;;  %v4510_v12 = vrot.slane %v2994_v1, 9 }
 0x208   :  { %v3146_v15 = vmax.f32 %v2959_v22, %v4501_v51  ;;  %v3148_v48 = vmax.f32 %v2960_v31, %v4503_v27  ;;  %v3364_v42 = vrot.slane %v3145_v35, %v6647_v56  ;;  %v3368_v34 = vrot.slane %v3145_v35, %v6697_v55 }
 0x209   :  { %v3380_v17 = vrot.slane %v3147_v36, %v6647_v56  ;;  %v3384_v20 = vrot.slane %v3147_v36, %v6697_v55  ;;  %v4509_v43 = vrot.slane %v2995_v24, 9  ;;  %v4511_v8 = vrot.slane %v2996_v60, 9 }
 0x20a   :  { %v3372_v47 = vrot.slane %v3146_v15, %v6647_v56  ;;  %v3376_v4 = vrot.slane %v3146_v15, %v6697_v55  ;;  %v3388_v38 = vrot.slane %v3148_v48, %v6647_v56  ;;  %v3392_v32 = vrot.slane %v3148_v48, %v6697_v55 }
 0x20b   :  { %v4580_v9 = vpack.c.bf16 %v3368_v34, %v3364_v42  ;;  %v4582_v59 = vpack.c.bf16 %v3384_v20, %v3380_v17  ;;  %v3153_v33 = vmax.f32 %v2987_v29, %v4508_v14  ;;  %v3154_v52 = vmax.f32 %v2995_v24, %v4509_v43 }
 0x20c   :  { %v4581_v54 = vpack.c.bf16 %v3376_v4, %v3372_v47  ;;  %v4583_v30 = vpack.c.bf16 %v3392_v32, %v3388_v38  ;;  %v3155_v13 = vmax.f32 %v2994_v1, %v4510_v12  ;;  %v3156_v25 = vmax.f32 %v2996_v60, %v4511_v8 }
 0x20d   :  { %v3785_v40 = vunpack.c.l.b16 %v4580_v9  ;;  %v3786_v0 = vunpack.c.h.b16 %v4580_v9  ;;  %v3789_v44 = vunpack.c.l.b16 %v4582_v59  ;;  %v3790_v46 = vunpack.c.h.b16 %v4582_v59 }
 0x20e   :  { %v3787_v50 = vunpack.c.l.b16 %v4581_v54  ;;  %v3788_v21 = vunpack.c.h.b16 %v4581_v54  ;;  %v3791_v49 = vunpack.c.l.b16 %v4583_v30  ;;  %v3792_v53 = vunpack.c.h.b16 %v4583_v30  ;;  %v4558_v54 = vld [vmem:[%s7058_s3 + $0x50] sm:$0x77] }
 0x20f   :  { %v3882_v11 = vrot.slane %v3785_v40, 7  ;;  %v3885_v2 = vrot.slane %v3789_v44, 5  ;;  %v3889_v10 = vrot.slane %v3786_v0, 7  ;;  %v3892_v16 = vrot.slane %v3790_v46, 5 }
 0x210   :  { %v3883_v7 = vrot.slane %v3787_v50, 6  ;;  %v3887_v62 = vrot.slane %v3791_v49, 4  ;;  %v3890_v3 = vrot.slane %v3788_v21, 6  ;;  %v3894_v19 = vrot.slane %v3792_v53, 4 }
 0x211   :  { %v3428_v39 = vrot.slane %v3153_v33, %v6647_v56  ;;  %v3432_v26 = vrot.slane %v3153_v33, %v6697_v55  ;;  %v3436_v63 = vrot.slane %v3154_v52, %v6647_v56  ;;  %v3440_v18 = vrot.slane %v3154_v52, %v6697_v55 }
 0x212   :  { %v3884_v37 = vsel %vm3811_vm4, %v3883_v7, %v3882_v11  ;;  %v3891_v28 = vsel %vm3811_vm4, %v3890_v3, %v3889_v10  ;;  %v3444_v41 = vrot.slane %v3155_v13, %v6647_v56  ;;  %v3448_v58 = vrot.slane %v3155_v13, %v6697_v55 }
 0x213   :  { %v3886_v5 = vsel %vm3814_vm5, %v3885_v2, %v3884_v37  ;;  %v3893_v45 = vsel %vm3814_vm5, %v3892_v16, %v3891_v28  ;;  %v3452_v57 = vrot.slane %v3156_v25, %v6647_v56  ;;  %v3456_v22 = vrot.slane %v3156_v25, %v6697_v55 }
 0x214   :  { %v3888_v31 = vsel %vm3817_vm6, %v3887_v62, %v3886_v5  ;;  %v3895_v61 = vsel %vm3817_vm6, %v3894_v19, %v3893_v45  ;;  %v4588_v29 = vpack.c.bf16 %v3432_v26, %v3428_v39  ;;  %v4589_v1 = vpack.c.bf16 %v3440_v18, %v3436_v63 }
 0x215   :  { %v3929_v51 = vpack.c.b16 %v3895_v61, %v3888_v31  ;;  %v4590_v27 = vpack.c.bf16 %v3448_v58, %v3444_v41  ;;  %v4591_v35 = vpack.c.bf16 %v3456_v22, %v3452_v57 }
 0x216   :  { %v3801_v36 = vunpack.c.l.b16 %v4588_v29  ;;  %v3802_v24 = vunpack.c.h.b16 %v4588_v29  ;;  %v3803_v60 = vunpack.c.l.b16 %v4589_v1  ;;  %v3804_v14 = vunpack.c.h.b16 %v4589_v1 }
 0x217   :  { %v3964_v56 = vsel %vm6761_vm9, %v3929_v51, %v4554_v23  ;;  %v3805_v55 = vunpack.c.l.b16 %v4590_v27  ;;  %v3806_v12 = vunpack.c.h.b16 %v4590_v27  ;;  %v3807_v15 = vunpack.c.l.b16 %v4591_v35 }
 0x218   :  { %4555 = vst [vmem:[%s7058_s3 + $0x40] sm:$0x77] %v3964_v56  ;;  %v3808_v48 = vunpack.c.h.b16 %v4591_v35  ;;  %v3910_v42 = vrot.slane %v3801_v36, 7  ;;  %v3911_v34 = vrot.slane %v3803_v60, 6  ;;  %v3917_v20 = vrot.slane %v3802_v24, 7 }
 0x219   :  { %v3913_v17 = vrot.slane %v3805_v55, 5  ;;  %v3918_v43 = vrot.slane %v3804_v14, 6  ;;  %v3915_v47 = vrot.slane %v3807_v15, 4  ;;  %v3920_v4 = vrot.slane %v3806_v12, 5 }
 0x21a   :  { %v3912_v8 = vsel %vm3811_vm4, %v3911_v34, %v3910_v42  ;;  %v3922_v9 = vrot.slane %v3808_v48, 4 }
 0x21b   :  { %v3914_v38 = vsel %vm3814_vm5, %v3913_v17, %v3912_v8  ;;  %v3919_v32 = vsel %vm3811_vm4, %v3918_v43, %v3917_v20 }
 0x21c   :  { %v3916_v59 = vsel %vm3817_vm6, %v3915_v47, %v3914_v38  ;;  %v3921_v33 = vsel %vm3814_vm5, %v3920_v4, %v3919_v32 }
 0x21d   :  { %v3923_v52 = vsel %vm3817_vm6, %v3922_v9, %v3921_v33 }
 0x21e   :  { %v3931_v30 = vpack.c.b16 %v3923_v52, %v3916_v59 }
 0x220   :  { %v3970_v13 = vsel %vm6761_vm9, %v3931_v30, %v4558_v54 }
 0x221   :  { %4559 = vst [vmem:[%s7058_s3 + $0x50] sm:$0x77] %v3970_v13 }

// kernel: amm_vgg_forward.5
= control target key start
LH: loop header
LB: loop body
LE: loop exit
PB: predicated region body
PF: predicated region fallthrough
CT: control target
= control target key end

     0   :  { %v11139_v41 = vmov 1983009808   ;;  %v305_v43 = vlaneseq  ;;  %s14668_s0 = inlined_call_operand.vmem [shape: bf16[2,6,6,256], index: 0, kind: input, shape index: {}]   ;;  %s14669_s1 = inlined_call_operand.vmem [shape: bf16[3,768,512], index: 1, kind: input, shape index: {}]   ;;  %s14670_s2 = inlined_call_operand.vmem [shape: f32[1,512], index: 2, kind: input, shape index: {}]   ;;  %s14671_s3 = inlined_call_operand.vmem [shape: bf16[512,1024], index: 3, kind: input, shape index: {}]   ;;  %s14672_s4 = inlined_call_operand.vmem [shape: f32[1,1024], index: 4, kind: input, shape index: {}]   ;;  %s14673_s5 = inlined_call_operand.hbm [shape: f32[2,1024], index: 5, kind: output, shape index: {}]  }
   0x1   :  { %v10157_v0 = vld [vmem:[%s14669_s1 + $0x6e4] ss:$16 sps:$4 sm:$0xff]   ;;  %v10161_v2 = vld [vmem:[%s14669_s1 + $0x6e0] ss:$16 sps:$4 sm:$0xff]   ;;  %v303_v42 = vunpack.c.l.s4 %v11139_v41  ;;  %v8747_v53 = vld [vmem:[%s14668_s0 + $0x8] sm:$0x77] }
   0x2   :  { %v10159_v1 = vld [vmem:[%s14669_s1 + $0x8e4] ss:$16 sps:$4 sm:$0xff]   ;;  %2431 = vmatprep.subr.bf16.mxu0 %v10157_v0  ;;  %v10162_v3 = vld [vmem:[%s14669_s1 + $0x8e0] ss:$16 sps:$4 sm:$0xff]   ;;  %v11306_v49 = vshrl.u32 %v305_v43, 7  ;;  %v8779_v58 = vcombine.low %v8747_v53, %v8747_v53  ;;  %v8780_v59 = vcombine.high %v8747_v53, %v8747_v53 }
   0x3   :  { %2484 = vmatprep.subr.bf16.mxu1 %v10159_v1  ;;  %v10163_v4 = vld [vmem:[%s14669_s1 + $0x6c4] ss:$16 sps:$4 sm:$0xff]   ;;  %2432 = vmatpush1.bf16.msra.mxu0 %v10161_v2  ;;  %v10167_v6 = vld [vmem:[%s14669_s1 + $0x6c0] ss:$16 sps:$4 sm:$0xff]   ;;  %v304_v48 = vunpack.c.0.s8 %v303_v42  ;;  %v8749_v62 = vld [vmem:[%s14668_s0 + $0x18] sm:$0x77] }
   0x4   :  { %2485 = vmatpush1.bf16.msra.mxu1 %v10162_v3  ;;  %v10165_v5 = vld [vmem:[%s14669_s1 + $0x8c4] ss:$16 sps:$4 sm:$0xff]   ;;  %2433 = vmatprep.subr.bf16.mxu0 %v10163_v4  ;;  %v10168_v7 = vld [vmem:[%s14669_s1 + $0x8c0] ss:$16 sps:$4 sm:$0xff]   ;;  %v8783_v4 = vcombine.low %v8749_v62, %v8749_v62 }
   0x5   :  { %2486 = vmatprep.subr.bf16.mxu1 %v10165_v5  ;;  %v10169_v8 = vld [vmem:[%s14669_s1 + $0x6a4] ss:$16 sps:$4 sm:$0xff]   ;;  %v10173_v10 = vld [vmem:[%s14669_s1 + $0x6a0] ss:$16 sps:$4 sm:$0xff]   ;;  %v11333_v60 = vsub.s32 %v304_v48, %v11306_v49  ;;  %v8784_v5 = vcombine.high %v8749_v62, %v8749_v62 }
   0x6   :  { %v10171_v9 = vld [vmem:[%s14669_s1 + $0x8a4] ss:$16 sps:$4 sm:$0xff]   ;;  %v10174_v11 = vld [vmem:[%s14669_s1 + $0x8a0] ss:$16 sps:$4 sm:$0xff]  }
   0x7   :  { %2434 = vmatpush1.bf16.msra.mxu0 %v10167_v6  ;;  %v10175_v12 = vld [vmem:[%s14669_s1 + $0x684] ss:$16 sps:$4 sm:$0xff]   ;;  %v10179_v14 = vld [vmem:[%s14669_s1 + $0x680] ss:$16 sps:$4 sm:$0xff]   ;;  %14676 = vst [vmem:[#allocation5_spill] sm:$0xff] %v11333_v60 }
   0x8   :  { %2487 = vmatpush1.bf16.msra.mxu1 %v10168_v7  ;;  %2435 = vmatprep.subr.bf16.mxu0 %v10169_v8  ;;  %v10177_v13 = vld [vmem:[%s14669_s1 + $0x884] ss:$16 sps:$4 sm:$0xff]   ;;  %v10180_v15 = vld [vmem:[%s14669_s1 + $0x880] ss:$16 sps:$4 sm:$0xff]  }
   0x9   :  { %2488 = vmatprep.subr.bf16.mxu1 %v10171_v9  ;;  %v10181_v16 = vld [vmem:[%s14669_s1 + $0x664] ss:$16 sps:$4 sm:$0xff]   ;;  %v10185_v18 = vld [vmem:[%s14669_s1 + $0x660] ss:$16 sps:$4 sm:$0xff]  }
   0xa   :  { %v10183_v17 = vld [vmem:[%s14669_s1 + $0x864] ss:$16 sps:$4 sm:$0xff]   ;;  %v10186_v19 = vld [vmem:[%s14669_s1 + $0x860] ss:$16 sps:$4 sm:$0xff]  }
   0xb   :  { %2436 = vmatpush1.bf16.msra.mxu0 %v10173_v10  ;;  %v10187_v20 = vld [vmem:[%s14669_s1 + $0x644] ss:$16 sps:$4 sm:$0xff]   ;;  %v10191_v22 = vld [vmem:[%s14669_s1 + $0x640] ss:$16 sps:$4 sm:$0xff]  }
   0xc   :  { %2489 = vmatpush1.bf16.msra.mxu1 %v10174_v11  ;;  %2437 = vmatprep.subr.bf16.mxu0 %v10175_v12  ;;  %v10189_v21 = vld [vmem:[%s14669_s1 + $0x844] ss:$16 sps:$4 sm:$0xff]   ;;  %v10192_v23 = vld [vmem:[%s14669_s1 + $0x840] ss:$16 sps:$4 sm:$0xff]   ;;  %v791_v11 = vshrl.u32 %v8779_v58, 16  ;;  %v793_v12 = vshll.u32 %v8779_v58, 16 }
   0xd   :  { %2490 = vmatprep.subr.bf16.mxu1 %v10177_v13  ;;  %v10193_v24 = vld [vmem:[%s14669_s1 + $0x624] ss:$16 sps:$4 sm:$0xff]   ;;  %v10197_v26 = vld [vmem:[%s14669_s1 + $0x620] ss:$16 sps:$4 sm:$0xff]  }
   0xe   :  { %v10195_v25 = vld [vmem:[%s14669_s1 + $0x824] ss:$16 sps:$4 sm:$0xff]   ;;  %v10198_v27 = vld [vmem:[%s14669_s1 + $0x820] ss:$16 sps:$4 sm:$0xff]  }
   0xf   :  { %2438 = vmatpush1.bf16.msra.mxu0 %v10179_v14  ;;  %v10199_v28 = vld [vmem:[%s14669_s1 + $0x604] ss:$16 sps:$4 sm:$0xff]   ;;  %v10203_v30 = vld [vmem:[%s14669_s1 + $0x600] ss:$16 sps:$4 sm:$0xff]  }
  0x10   :  { %2491 = vmatpush1.bf16.msra.mxu1 %v10180_v15  ;;  %2439 = vmatprep.subr.bf16.mxu0 %v10181_v16  ;;  %v10201_v29 = vld [vmem:[%s14669_s1 + $0x804] ss:$16 sps:$4 sm:$0xff]   ;;  %v10204_v31 = vld [vmem:[%s14669_s1 + $0x800] ss:$16 sps:$4 sm:$0xff]   ;;  %v798_v16 = vshrl.u32 %v8780_v59, 16 }
  0x11   :  { %2492 = vmatprep.subr.bf16.mxu1 %v10183_v17  ;;  %v10205_v32 = vld [vmem:[%s14669_s1 + $0x7e4] ss:$16 sps:$4 sm:$0xff]   ;;  %v10209_v34 = vld [vmem:[%s14669_s1 + $0x7e0] ss:$16 sps:$4 sm:$0xff]   ;;  %v800_v17 = vshll.u32 %v8780_v59, 16 }
  0x12   :  { %v10207_v33 = vld [vmem:[%s14669_s1 + $0x9e4] ss:$16 sps:$4 sm:$0xff]   ;;  %v10210_v35 = vld [vmem:[%s14669_s1 + $0x9e0] ss:$16 sps:$4 sm:$0xff]  }
  0x13   :  { %2440 = vmatpush1.bf16.msra.mxu0 %v10185_v18  ;;  %v10211_v36 = vld [vmem:[%s14669_s1 + $0x7c4] ss:$16 sps:$4 sm:$0xff]   ;;  %v10215_v38 = vld [vmem:[%s14669_s1 + $0x7c0] ss:$16 sps:$4 sm:$0xff]  }
  0x14   :  { %2493 = vmatpush1.bf16.msra.mxu1 %v10186_v19  ;;  %2441 = vmatprep.subr.bf16.mxu0 %v10187_v20  ;;  %v10213_v37 = vld [vmem:[%s14669_s1 + $0x9c4] ss:$16 sps:$4 sm:$0xff]   ;;  %v10216_v39 = vld [vmem:[%s14669_s1 + $0x9c0] ss:$16 sps:$4 sm:$0xff]   ;;  %v795_v19 = vrot.slane %v793_v12, 1 }
  0x15   :  { %2494 = vmatprep.subr.bf16.mxu1 %v10189_v21  ;;  %v10217_v40 = vld [vmem:[%s14669_s1 + $0x7a4] ss:$16 sps:$4 sm:$0xff]   ;;  %v10221_v45 = vld [vmem:[%s14669_s1 + $0x7a0] ss:$16 sps:$4 sm:$0xff]  }
  0x16   :  { %v10219_v44 = vld [vmem:[%s14669_s1 + $0x9a4] ss:$16 sps:$4 sm:$0xff]   ;;  %v10222_v46 = vld [vmem:[%s14669_s1 + $0x9a0] ss:$16 sps:$4 sm:$0xff]  }
  0x17   :  { %2442 = vmatpush1.bf16.msra.mxu0 %v10191_v22  ;;  %v10223_v47 = vld [vmem:[%s14669_s1 + $0x784] ss:$16 sps:$4 sm:$0xff]   ;;  %v10227_v51 = vld [vmem:[%s14669_s1 + $0x780] ss:$16 sps:$4 sm:$0xff]  }
  0x18   :  { %2495 = vmatpush1.bf16.msra.mxu1 %v10192_v23  ;;  %2443 = vmatprep.subr.bf16.mxu0 %v10193_v24  ;;  %v10225_v50 = vld [vmem:[%s14669_s1 + $0x984] ss:$16 sps:$4 sm:$0xff]   ;;  %v10228_v52 = vld [vmem:[%s14669_s1 + $0x980] ss:$16 sps:$4 sm:$0xff]   ;;  %v802_v24 = vrot.slane %v800_v17, 1 }
  0x19   :  { %2496 = vmatprep.subr.bf16.mxu1 %v10195_v25  ;;  %v10229_v54 = vld [vmem:[%s14669_s1 + $0x764] ss:$16 sps:$4 sm:$0xff]   ;;  %v10139_v56 = vld.sshfl [vmem:[%s14668_s0 + $0x8] sm:$0xf pattern:$0x76325410] }
  0x1a   :  { %v10231_v55 = vld [vmem:[%s14669_s1 + $0x964] ss:$16 sps:$4 sm:$0xff]   ;;  %v10141_v1 = vld.sshfl [vmem:[%s14668_s0 + $0x18] sm:$0xf pattern:$0x76325410] }
  0x1b   :  { %2444 = vmatpush1.bf16.msra.mxu0 %v10197_v26  ;;  %v8748_v57 = vld [vmem:[%s14668_s0 + $0x10] sm:$0x77]  ;;  %v8750_v3 = vld [vmem:[%s14668_s0 + $0x20] sm:$0x77]  ;;  %v819_v26 = vshrl.u32 %v8783_v4, 16 }
  0x1c   :  { %2497 = vmatpush1.bf16.msra.mxu1 %v10198_v27  ;;  %2445 = vmatprep.subr.bf16.mxu0 %v10199_v28  ;;  %v10140_v61 = vld.sshfl [vmem:[%s14668_s0 + $0x10] sm:$0xf pattern:$0x76325410]  ;;  %v8781_v63 = vcombine.low %v8748_v57, %v8748_v57  ;;  %v8782_v0 = vcombine.high %v8748_v57, %v8748_v57  ;;  %v8785_v9 = vcombine.low %v8750_v3, %v8750_v3 }
  0x1d   :  { %2498 = vmatprep.subr.bf16.mxu1 %v10201_v29  ;;  %v9003_v2 = vcombine.low %v10139_v56, %v10140_v61  ;;  %v10233_v6 = vld [vmem:[%s14669_s1 + $0x760] ss:$16 sps:$4 sm:$0xff]   ;;  %v11356_v10 = vcombine.high %v8750_v3, %v8750_v3  ;;  %v10235_v13 = vld [vmem:[%s14669_s1 + $0x744] ss:$16 sps:$4 sm:$0xff]   ;;  %v796_v27 = vor.u32 %v795_v19, %v791_v11  ;;  %v821_v29 = vshll.u32 %v8783_v4, 16 }
  0x1e   :  { %v10234_v7 = vld [vmem:[%s14669_s1 + $0x960] ss:$16 sps:$4 sm:$0xff]   ;;  %v10237_v18 = vld [vmem:[%s14669_s1 + $0x944] ss:$16 sps:$4 sm:$0xff]   ;;  %v805_v20 = vshrl.u32 %v8781_v63, 16  ;;  %v807_v21 = vshll.u32 %v8781_v63, 16 }
  0x1f   :  { %2446 = vmatpush1.bf16.msra.mxu0 %v10203_v30  ;;  %v10142_v8 = vld.sshfl [vmem:[%s14668_s0 + $0x20] sm:$0xf pattern:$0x76325410]  ;;  %v11362_v15 = vrot.slane %v9003_v2, %v11333_v60  ;;  %v812_v22 = vshrl.u32 %v8782_v0, 16  ;;  %v814_v25 = vshll.u32 %v8782_v0, 16 }
  0x20   :  { %2499 = vmatpush1.bf16.msra.mxu1 %v10204_v31  ;;  %2447 = vmatprep.subr.bf16.mxu0 %v10205_v32  ;;  %v9005_v14 = vcombine.low %v10141_v1, %v10142_v8  ;;  %v809_v28 = vrot.slane %v807_v21, 1  ;;  %v826_v30 = vshrl.u32 %v8784_v5, 16  ;;  %v10239_v31 = vld [vmem:[%s14669_s1 + $0x740] ss:$16 sps:$4 sm:$0xff]   ;;  %v835_v41 = vshll.u32 %v8785_v9, 16 }
  0x21   :  { %2500 = vmatprep.subr.bf16.mxu1 %v10207_v33  ;;  %v10240_v32 = vld [vmem:[%s14669_s1 + $0x940] ss:$16 sps:$4 sm:$0xff]   ;;  %v10243_v42 = vld [vmem:[%s14669_s1 + $0x924] ss:$16 sps:$4 sm:$0xff]  }
  0x22   :  { %v1375_v23 = vrot.slane %v9005_v14, %v11333_v60  ;;  %v837_v48 = vrot.slane %v835_v41, 1  ;;  %v10247_v56 = vld [vmem:[%s14669_s1 + $0x704] ss:$16 sps:$4 sm:$0xff]   ;;  %v10251_v0 = vld [vmem:[%s14669_s1 + $0x700] ss:$16 sps:$4 sm:$0xff]  }
  0x23   :  { %2448 = vmatpush2.bf16.msra.mxu0 %v10209_v34  ;;  %v803_v34 = vor.u32 %v802_v24, %v798_v16  ;;  %v10249_v59 = vld [vmem:[%s14669_s1 + $0x904] ss:$16 sps:$4 sm:$0xff]   ;;  %v10252_v4 = vld [vmem:[%s14669_s1 + $0x900] ss:$16 sps:$4 sm:$0xff]   ;;  %v10264_v16 = vld [vmem:[%s14669_s1 + $0x6e8] ss:$16 sps:$4 sm:$0xff]  }
  0x24   :  { %2501 = vmatpush2.bf16.msra.mxu1 %v10210_v35  ;;  %2449 = vmatprep.subr.bf16.mxu0 %v10211_v36  ;;  %v11375_v33 = vcombine.high %v11362_v15, %v1375_v23  ;;  %v816_v35 = vrot.slane %v814_v25, 1  ;;  %v828_v36 = vshll.u32 %v8784_v5, 16  ;;  %v10263_v5 = vld [vmem:[%s14669_s1 + $0xae4] ss:$16 sps:$4 sm:$0xff]   ;;  %v10261_v11 = vld [vmem:[%s14669_s1 + $0xae0] ss:$16 sps:$4 sm:$0xff]  }
  0x25   :  { %2502 = vmatprep.subr.bf16.mxu1 %v10213_v37  ;;  %v10241_v37 = vld [vmem:[%s14669_s1 + $0x724] ss:$16 sps:$4 sm:$0xff]   ;;  %v10267_v17 = vld [vmem:[%s14669_s1 + $0xac0] ss:$16 sps:$4 sm:$0xff]   ;;  %v10276_v24 = vld [vmem:[%s14669_s1 + $0x6a8] ss:$16 sps:$4 sm:$0xff]  }
  0x26   :  { %v817_v43 = vor.u32 %v816_v35, %v812_v22  ;;  %2463 = vmatprep.mubr.bf16.mxu0 %v11375_v33  ;;  %v10275_v19 = vld [vmem:[%s14669_s1 + $0xaa4] ss:$16 sps:$4 sm:$0xff]   ;;  %v10273_v21 = vld [vmem:[%s14669_s1 + $0xaa0] ss:$16 sps:$4 sm:$0xff]   ;;  %v10278_v22 = vld [vmem:[%s14669_s1 + $0x6ac] ss:$16 sps:$4 sm:$0xff]  }
  0x27   :  { %2450 = vmatpush2.bf16.msra.mxu0 %v10215_v38  ;;  %v810_v38 = vor.u32 %v809_v28, %v805_v20  ;;  %v10270_v20 = vld [vmem:[%s14669_s1 + $0x6c8] ss:$16 sps:$4 sm:$0xff]   ;;  %v10279_v25 = vld [vmem:[%s14669_s1 + $0xa80] ss:$16 sps:$4 sm:$0xff]   ;;  %v10296_v35 = vld [vmem:[%s14669_s1 + $0x64c] ss:$16 sps:$4 sm:$0xff]  }
  0x28   :  { %2503 = vmatpush2.bf16.msra.mxu1 %v10216_v39  ;;  %2451 = vmatprep.subr.bf16.mxu0 %v10217_v40  ;;  %v823_v39 = vrot.slane %v821_v29, 1  ;;  %v833_v40 = vshrl.u32 %v8785_v9, 16  ;;  %v10282_v28 = vld [vmem:[%s14669_s1 + $0x688] ss:$16 sps:$4 sm:$0xff]   ;;  %v10285_v29 = vld [vmem:[%s14669_s1 + $0xa60] ss:$16 sps:$4 sm:$0xff]  }
  0x29   :  { %2504 = vmatprep.subr.bf16.mxu1 %v10219_v44  ;;  %v830_v44 = vrot.slane %v828_v36, 1  ;;  %v10299_v36 = vld [vmem:[%s14669_s1 + $0xa24] ss:$16 sps:$4 sm:$0xff]  }
  0x2a   :  { %v838_v57 = vor.u32 %v837_v48, %v833_v40 }
  0x2b   :  { %2452 = vmatpush2.bf16.msra.mxu0 %v10221_v45  ;;  %v840_v45 = vshrl.u32 %v11356_v10, 16 }
  0x2c   :  { %2505 = vmatpush2.bf16.msra.mxu1 %v10222_v46  ;;  %2453 = vmatprep.subr.bf16.mxu0 %v10223_v47  ;;  %v842_v46 = vshll.u32 %v11356_v10, 16  ;;  %v824_v47 = vor.u32 %v823_v39, %v819_v26  ;;  %v11416_v10 = vcombine.low %v11362_v15, %v1375_v23  ;;  %v10281_v23 = vld [vmem:[%s14669_s1 + $0xa84] ss:$16 sps:$4 sm:$0xff]   ;;  %v10284_v26 = vld [vmem:[%s14669_s1 + $0x68c] ss:$16 sps:$4 sm:$0xff]  }
  0x2d   :  { %2506 = vmatprep.subr.bf16.mxu1 %v10225_v50  ;;  %v959_v50 = vcombine.low %v796_v27, %v803_v34  ;;  %v10287_v27 = vld [vmem:[%s14669_s1 + $0xa64] ss:$16 sps:$4 sm:$0xff]   ;;  %v10291_v34 = vld [vmem:[%s14669_s1 + $0xa40] ss:$16 sps:$4 sm:$0xff]  }
  0x2e   :  { %v844_v53 = vrot.slane %v842_v46, 1  ;;  %v8752_v39 = vld [vmem:[%s14668_s0 + $0x40] sm:$0x77] }
  0x2f   :  { %2454 = vmatpush2.bf16.msra.mxu0 %v10227_v51  ;;  %v10245_v51 = vld [vmem:[%s14669_s1 + $0x720] ss:$16 sps:$4 sm:$0xff]   ;;  %v973_v58 = vrot.slane %v959_v50, %v11333_v60 }
  0x30   :  { %2507 = vmatpush2.bf16.msra.mxu1 %v10228_v52  ;;  %2455 = vmatprep.subr.bf16.mxu0 %v10229_v54  ;;  %v831_v52 = vor.u32 %v830_v44, %v826_v30  ;;  %v984_v54 = vcombine.low %v810_v38, %v817_v43  ;;  %v845_v61 = vor.u32 %v844_v53, %v840_v45  ;;  %v10290_v30 = vld [vmem:[%s14669_s1 + $0x66c] ss:$16 sps:$4 sm:$0xff]   ;;  %v10144_v43 = vld.sshfl [vmem:[%s14668_s0 + $0x40] sm:$0xf pattern:$0x76325410] }
  0x31   :  { %2508 = vmatprep.subr.bf16.mxu1 %v10231_v55  ;;  %v10246_v55 = vld [vmem:[%s14669_s1 + $0x920] ss:$16 sps:$4 sm:$0xff]   ;;  %v10143_v38 = vld.sshfl [vmem:[%s14668_s0 + $0x38] sm:$0xf pattern:$0x76325410]  ;;  %v8789_v45 = vcombine.low %v8752_v39, %v8752_v39 }
  0x32   :  { %v998_v62 = vrot.slane %v984_v54, %v11333_v60  ;;  %v1009_v63 = vcombine.low %v824_v47, %v831_v52  ;;  %v1034_v2 = vcombine.low %v838_v57, %v845_v61  ;;  %v8753_v44 = vld [vmem:[%s14668_s0 + $0x48] sm:$0x77]  ;;  %v10297_v46 = vld [vmem:[%s14669_s1 + $0xa20] ss:$16 sps:$4 sm:$0xff]   ;;  %v9007_v48 = vcombine.low %v10143_v38, %v10144_v43 }
  0x33   :  { %2456 = vmatpush2.bf16.msra.mxu0 %v10233_v6  ;;  %v10145_v47 = vld.sshfl [vmem:[%s14668_s0 + $0x48] sm:$0xf pattern:$0x76325410]  ;;  %v8754_v50 = vld [vmem:[%s14668_s0 + $0x50] sm:$0x77]  ;;  %v8791_v52 = vcombine.low %v8753_v44, %v8753_v44  ;;  %v8792_v53 = vcombine.high %v8753_v44, %v8753_v44 }
  0x34   :  { %2509 = vmatpush2.bf16.msra.mxu1 %v10234_v7  ;;  %2457 = vmatprep.subr.bf16.mxu0 %v10235_v13  ;;  %v1023_v1 = vrot.slane %v1009_v63, %v11333_v60  ;;  %v9004_v3 = vcombine.low %v973_v58, %v998_v62  ;;  %v1048_v6 = vrot.slane %v1034_v2, %v11333_v60  ;;  %v10266_v7 = vld [vmem:[%s14669_s1 + $0x6ec] ss:$16 sps:$4 sm:$0xff]   ;;  %v10269_v13 = vld [vmem:[%s14669_s1 + $0xac4] ss:$16 sps:$4 sm:$0xff]   ;;  %v10312_v44 = vld [vmem:[%s14669_s1 + $0x7e8] ss:$16 sps:$4 sm:$0xff]  }
  0x35   :  { %2510 = vmatprep.subr.bf16.mxu1 %v10237_v18  ;;  %v10272_v18 = vld [vmem:[%s14669_s1 + $0x6cc] ss:$16 sps:$4 sm:$0xff]   ;;  %v10146_v54 = vld.sshfl [vmem:[%s14668_s0 + $0x50] sm:$0xf pattern:$0x76325410]  ;;  %v1415_v62 = vrot.slane %v9007_v48, %v11333_v60 }
  0x36   :  { %v9006_v8 = vcombine.low %v1023_v1, %v1048_v6  ;;  %v1368_v9 = vrot.slane %v9004_v3, %v11333_v60  ;;  %v9009_v61 = vcombine.low %v10145_v47, %v10146_v54  ;;  %v10305_v1 = vld [vmem:[%s14669_s1 + $0xa04] ss:$16 sps:$4 sm:$0xff]   ;;  %v861_v3 = vshrl.u32 %v8789_v45, 16  ;;  %v8757_v54 = vld [vmem:[%s14668_s0 + $0x18] sm:$0x66] }
  0x37   :  { %2458 = vmatpush2.bf16.msra.mxu0 %v10239_v31  ;;  %v10288_v31 = vld [vmem:[%s14669_s1 + $0x668] ss:$16 sps:$4 sm:$0xff]  }
  0x38   :  { %2511 = vmatpush2.bf16.msra.mxu1 %v10240_v32  ;;  %2459 = vmatprep.subr.bf16.mxu0 %v10241_v37  ;;  %v1382_v12 = vrot.slane %v9006_v8, %v11333_v60  ;;  %v10293_v32 = vld [vmem:[%s14669_s1 + $0xa44] ss:$16 sps:$4 sm:$0xff]   ;;  %v8751_v37 = vld [vmem:[%s14668_s0 + $0x38] sm:$0x77]  ;;  %v1429_v6 = vrot.slane %v9009_v61, %v11333_v60  ;;  %v10315_v61 = vld [vmem:[%s14669_s1 + $0xbc0] ss:$16 sps:$4 sm:$0xff]  }
  0x39   :  { %2512 = vmatprep.subr.bf16.mxu1 %v10243_v42  ;;  %v8787_v40 = vcombine.low %v8751_v37, %v8751_v37  ;;  %v8788_v41 = vcombine.high %v8751_v37, %v8751_v37  ;;  %v10294_v42 = vld [vmem:[%s14669_s1 + $0x648] ss:$16 sps:$4 sm:$0xff]  }
  0x3a   :  { %v11425_v14 = vcombine.high %v1368_v9, %v1382_v12  ;;  %v11428_v15 = vcombine.low %v1368_v9, %v1382_v12  ;;  %v875_v9 = vshrl.u32 %v8791_v52, 16  ;;  %v11556_v38 = vcombine.low %v1415_v62, %v1429_v6 }
  0x3b   :  { %2460 = vmatpush2.bf16.msra.mxu0 %v10245_v51  ;;  %v8790_v51 = vcombine.high %v8752_v39, %v8752_v39  ;;  %v847_v57 = vshrl.u32 %v8787_v40, 16  ;;  %v849_v58 = vshll.u32 %v8787_v40, 16  ;;  %v854_v63 = vshrl.u32 %v8788_v41, 16  ;;  %v10309_v39 = vld [vmem:[%s14669_s1 + $0xbe0] ss:$16 sps:$4 sm:$0xff]  }
  0x3c   :  { %2513 = vmatpush2.bf16.msra.mxu1 %v10246_v55  ;;  %2461 = vmatprep.subr.bf16.mxu0 %v10247_v56  ;;  %v11522_v55 = vcombine.low %v8754_v50, %v8754_v50  ;;  %v11524_v56 = vcombine.high %v8754_v50, %v8754_v50  ;;  %v10314_v40 = vld [vmem:[%s14669_s1 + $0x7ec] ss:$16 sps:$4 sm:$0xff]  }
  0x3d   :  { %2514 = vmatprep.subr.bf16.mxu1 %v10249_v59  ;;  %2516 = vmatprep.mubr.bf16.mxu1 %v11425_v14  ;;  %v10302_v59 = vld [vmem:[%s14669_s1 + $0x62c] ss:$16 sps:$4 sm:$0xff]   ;;  %v851_v2 = vrot.slane %v849_v58, 1  ;;  %v870_v8 = vshll.u32 %v8790_v51, 16 }
  0x3f   :  { %2462 = vmatpush2.bf16.msra.mxu0 %v10251_v0  ;;  %v856_v0 = vshll.u32 %v8788_v41, 16  ;;  %v852_v12 = vor.u32 %v851_v2, %v847_v57  ;;  %v10323_v2 = vld [vmem:[%s14669_s1 + $0xba4] ss:$16 sps:$4 sm:$0xff]  }
  0x40   :  { %2515 = vmatpush2.bf16.msra.mxu1 %v10252_v4  ;;  %2537 = vmatprep.subr.bf16.mxu0 %v10263_v5  ;;  %v863_v4 = vshll.u32 %v8789_v45, 16  ;;  %v868_v5 = vshrl.u32 %v8790_v51, 16  ;;  %v10317_v45 = vld [vmem:[%s14669_s1 + $0xbc4] ss:$16 sps:$4 sm:$0xff]  }
  0x41   :  { %2590 = vmatprep.subr.bf16.mxu1 %v10266_v7  ;;  %v858_v7 = vrot.slane %v856_v0, 1 }
  0x42   :  { %2464 = vmatmul.mubr.bf16.vlgmr.msra.gmra.mxu0 %v11416_v10 }
  0x43   :  { %2538 = vmatpush1.bf16.msra.mxu0 %v10261_v11  ;;  %2517 = vmatmul.mubr.bf16.vlgmr.msra.gmra.mxu1 %v11428_v15  ;;  %v10300_v11 = vld [vmem:[%s14669_s1 + $0x628] ss:$16 sps:$4 sm:$0xff]  }
  0x44   :  { %2539 = vmatprep.subr.bf16.mxu0 %v10269_v13  ;;  %2591 = vmatpush1.bf16.msra.mxu1 %v10264_v16  ;;  %v865_v13 = vrot.slane %v863_v4, 1  ;;  %v877_v16 = vshll.u32 %v8791_v52, 16  ;;  %v8755_v52 = vld [vmem:[%s14668_s0 + $0x8] sm:$0x66]  ;;  %v8800_v4 = vcombine.high %v8757_v54, %v8757_v54 }
  0x45   :  { %2592 = vmatprep.subr.bf16.mxu1 %v10272_v18  ;;  %v10303_v18 = vld [vmem:[%s14669_s1 + $0xa00] ss:$16 sps:$4 sm:$0xff]   ;;  %v8796_v57 = vcombine.high %v8755_v52, %v8755_v52 }
  0x47   :  { %2540 = vmatpush1.bf16.msra.mxu0 %v10267_v17  ;;  %v882_v17 = vshrl.u32 %v8792_v53, 16 }
  0x48   :  { %2541 = vmatprep.subr.bf16.mxu0 %v10275_v19  ;;  %2593 = vmatpush1.bf16.msra.mxu1 %v10270_v20  ;;  %v10308_v19 = vld [vmem:[%s14669_s1 + $0x60c] ss:$16 sps:$4 sm:$0xff]   ;;  %v11543_v20 = vcombine.high %v1415_v62, %v1429_v6 }
  0x49   :  { %2594 = vmatprep.subr.bf16.mxu1 %v10278_v22  ;;  %v872_v22 = vrot.slane %v870_v8, 1  ;;  %v10320_v62 = vld [vmem:[%s14669_s1 + $0x7cc] ss:$16 sps:$4 sm:$0xff]  }
  0x4a   :  { %2473 = vmatprep.mubr.bf16.mxu0 %v11543_v20 }
  0x4b   :  { %2542 = vmatpush1.bf16.msra.mxu0 %v10273_v21  ;;  %v859_v21 = vor.u32 %v858_v7, %v854_v63  ;;  %v10318_v7 = vld [vmem:[%s14669_s1 + $0x7c8] ss:$16 sps:$4 sm:$0xff]  }
  0x4c   :  { %2543 = vmatprep.subr.bf16.mxu0 %v10281_v23  ;;  %2595 = vmatpush1.bf16.msra.mxu1 %v10276_v24  ;;  %v884_v23 = vshll.u32 %v8792_v53, 16  ;;  %v10311_v24 = vld [vmem:[%s14669_s1 + $0xbe4] ss:$16 sps:$4 sm:$0xff]  }
  0x4d   :  { %2596 = vmatprep.subr.bf16.mxu1 %v10284_v26  ;;  %v879_v26 = vrot.slane %v877_v16, 1  ;;  %v1059_v37 = vcombine.low %v852_v12, %v859_v21  ;;  %2474 = vmatmul.mubr.bf16.gmra.mxu0 %v11556_v38  ;;  %v8756_v53 = vld [vmem:[%s14668_s0 + $0x10] sm:$0x66]  ;;  %v943_v12 = vrot.slane %v8796_v57, 1  ;;  %v10326_v21 = vld [vmem:[%s14669_s1 + $0x7ac] ss:$16 sps:$4 sm:$0xff]  }
  0x4e   :  { %v8797_v58 = vcombine.low %v8756_v53, %v8756_v53 }
  0x4f   :  { %2544 = vmatpush1.bf16.msra.mxu0 %v10279_v25  ;;  %v866_v25 = vor.u32 %v865_v13, %v861_v3  ;;  %v1073_v47 = vrot.slane %v1059_v37, %v11333_v60  ;;  %v8799_v3 = vcombine.low %v8757_v54, %v8757_v54  ;;  %v10321_v13 = vld [vmem:[%s14669_s1 + $0xba0] ss:$16 sps:$4 sm:$0xff]  }
  0x50   :  { %2545 = vmatprep.subr.bf16.mxu0 %v10287_v27  ;;  %2597 = vmatpush1.bf16.msra.mxu1 %v10282_v28  ;;  %v889_v27 = vshrl.u32 %v11522_v55, 16  ;;  %v891_v28 = vshll.u32 %v11522_v55, 16  ;;  %v8758_v55 = vld [vmem:[%s14668_s0 + $0x20] sm:$0x66]  ;;  %v944_v16 = vrot.slane %v8797_v58, 1 }
  0x51   :  { %2598 = vmatprep.subr.bf16.mxu1 %v10290_v30  ;;  %v886_v30 = vrot.slane %v884_v23, 1  ;;  %v8802_v6 = vcombine.high %v8758_v55, %v8758_v55 }
  0x53   :  { %2546 = vmatpush1.bf16.msra.mxu0 %v10285_v29  ;;  %v873_v29 = vor.u32 %v872_v22, %v868_v5  ;;  %v887_v41 = vor.u32 %v886_v30, %v882_v17  ;;  %v8801_v5 = vcombine.low %v8758_v55, %v8758_v55  ;;  %v8760_v30 = vld [vmem:[%s14668_s0 + $0x40] sm:$0x66] }
  0x54   :  { %2547 = vmatprep.subr.bf16.mxu0 %v10293_v32  ;;  %2599 = vmatpush1.bf16.msra.mxu1 %v10288_v31  ;;  %v896_v31 = vshrl.u32 %v11524_v56, 16  ;;  %v898_v32 = vshll.u32 %v11524_v56, 16  ;;  %v8795_v56 = vcombine.low %v8755_v52, %v8755_v52 }
  0x55   :  { %2600 = vmatprep.subr.bf16.mxu1 %v10296_v35  ;;  %v880_v35 = vor.u32 %v879_v26, %v875_v9  ;;  %v1084_v43 = vcombine.low %v866_v25, %v873_v29  ;;  %v948_v23 = vrot.slane %v8801_v5, 1  ;;  %v10329_v26 = vld [vmem:[%s14669_s1 + $0xb84] ss:$16 sps:$4 sm:$0xff]   ;;  %v8759_v29 = vld [vmem:[%s14668_s0 + $0x38] sm:$0x66] }
  0x56   :  { %v8803_v37 = vcombine.low %v8759_v29, %v8759_v29 }
  0x57   :  { %2548 = vmatpush1.bf16.msra.mxu0 %v10291_v34  ;;  %v10306_v34 = vld [vmem:[%s14669_s1 + $0x608] ss:$16 sps:$4 sm:$0xff]   ;;  %v1098_v50 = vrot.slane %v1084_v43, %v11333_v60  ;;  %v1109_v51 = vcombine.low %v880_v35, %v887_v41  ;;  %v8804_v43 = vcombine.high %v8759_v29, %v8759_v29 }
  0x58   :  { %2549 = vmatprep.subr.bf16.mxu0 %v10299_v36  ;;  %2601 = vmatpush1.bf16.msra.mxu1 %v10294_v42  ;;  %v893_v36 = vrot.slane %v891_v28, 1  ;;  %v900_v42 = vrot.slane %v898_v32, 1 }
  0x59   :  { %2602 = vmatprep.subr.bf16.mxu1 %v10302_v59  ;;  %v8798_v59 = vcombine.high %v8756_v53, %v8756_v53  ;;  %v1123_v63 = vrot.slane %v1109_v51, %v11333_v60  ;;  %v10335_v51 = vld [vmem:[%s14669_s1 + $0xb64] ss:$16 sps:$4 sm:$0xff]   ;;  %v8806_v53 = vcombine.high %v8760_v30, %v8760_v30 }
  0x5a   :  { %v901_v48 = vor.u32 %v900_v42, %v896_v31  ;;  %v10324_v31 = vld [vmem:[%s14669_s1 + $0x7a8] ss:$16 sps:$4 sm:$0xff]   ;;  %v8762_v42 = vld [vmem:[%s14668_s0 + $0x50] sm:$0x66] }
  0x5b   :  { %2550 = vmatpush1.bf16.msra.mxu0 %v10297_v46  ;;  %v894_v46 = vor.u32 %v893_v36, %v889_v27  ;;  %v945_v17 = vrot.slane %v8798_v59, 1  ;;  %v8761_v36 = vld [vmem:[%s14668_s0 + $0x48] sm:$0x66]  ;;  %v8809_v58 = vcombine.low %v8762_v42, %v8762_v42  ;;  %v8810_v59 = vcombine.high %v8762_v42, %v8762_v42 }
  0x5c   :  { %2551 = vmatprep.subr.bf16.mxu0 %v10305_v1  ;;  %2603 = vmatpush1.bf16.msra.mxu1 %v10300_v11  ;;  %v9008_v1 = vcombine.low %v1073_v47, %v1098_v50  ;;  %v942_v11 = vrot.slane %v8795_v56, 1  ;;  %v950_v50 = vrot.slane %v8803_v37, 1  ;;  %v8807_v54 = vcombine.low %v8761_v36, %v8761_v36  ;;  %v10330_v56 = vld [vmem:[%s14669_s1 + $0x788] ss:$16 sps:$4 sm:$0xff]   ;;  %v10378_v42 = vld [vmem:[%s14669_s1 + $0xaec] ss:$16 sps:$4 sm:$0xff]  }
  0x5d   :  { %2604 = vmatprep.subr.bf16.mxu1 %v10308_v19  ;;  %v1134_v0 = vcombine.low %v894_v46, %v901_v48  ;;  %v947_v19 = vrot.slane %v8800_v4, 1  ;;  %v1000_v27 = vcombine.low %v944_v16, %v945_v17  ;;  %v8808_v55 = vcombine.high %v8761_v36, %v8761_v36  ;;  %v10336_v17 = vld [vmem:[%s14669_s1 + $0x768] ss:$16 sps:$4 sm:$0xff]  }
  0x5e   :  { %v1422_v9 = vrot.slane %v9008_v1, %v11333_v60  ;;  %v975_v25 = vcombine.low %v942_v11, %v943_v12  ;;  %v953_v1 = vrot.slane %v8806_v53, 1 }
  0x5f   :  { %2552 = vmatpush1.bf16.msra.mxu0 %v10303_v18  ;;  %v1148_v8 = vrot.slane %v1134_v0, %v11333_v60  ;;  %v946_v18 = vrot.slane %v8799_v3, 1  ;;  %v10338_v3 = vld [vmem:[%s14669_s1 + $0x76c] ss:$16 sps:$4 sm:$0xff]   ;;  %v955_v5 = vrot.slane %v8808_v55, 1 }
  0x60   :  { %2553 = vmatprep.subr.bf16.mxu0 %v10311_v24  ;;  %2605 = vmatpush1.bf16.msra.mxu1 %v10306_v34  ;;  %v949_v24 = vrot.slane %v8802_v6, 1  ;;  %v982_v34 = vrot.slane %v975_v25, %v11333_v60  ;;  %v956_v6 = vrot.slane %v8809_v58, 1  ;;  %v10350_v25 = vld [vmem:[%s14669_s1 + $0x748] ss:$16 sps:$4 sm:$0xff]   ;;  %v10398_v55 = vld [vmem:[%s14669_s1 + $0xaac] ss:$16 sps:$4 sm:$0xff]  }
  0x61   :  { %2606 = vmatprep.subr.bf16.mxu1 %v10314_v40  ;;  %v9010_v22 = vcombine.low %v1123_v63, %v1148_v8  ;;  %v1025_v28 = vcombine.low %v946_v18, %v947_v19  ;;  %v1007_v40 = vrot.slane %v1000_v27, %v11333_v60  ;;  %v10349_v8 = vld [vmem:[%s14669_s1 + $0xb44] ss:$16 sps:$4 sm:$0xff]   ;;  %v10347_v18 = vld [vmem:[%s14669_s1 + $0xb40] ss:$16 sps:$4 sm:$0xff]   ;;  %v10352_v19 = vld [vmem:[%s14669_s1 + $0x74c] ss:$16 sps:$4 sm:$0xff]  }
  0x62   :  { %v1050_v35 = vcombine.low %v948_v23, %v949_v24  ;;  %v10358_v27 = vld [vmem:[%s14669_s1 + $0x72c] ss:$16 sps:$4 sm:$0xff]  }
  0x63   :  { %2554 = vmatpush2.bf16.msra.mxu0 %v10309_v39  ;;  %v1436_v32 = vrot.slane %v9010_v22, %v11333_v60  ;;  %v10327_v39 = vld [vmem:[%s14669_s1 + $0xb80] ss:$16 sps:$4 sm:$0xff]   ;;  %v1032_v41 = vrot.slane %v1025_v28, %v11333_v60  ;;  %v1387_v52 = vcombine.low %v982_v34, %v1007_v40  ;;  %v10361_v28 = vld [vmem:[%s14669_s1 + $0xb04] ss:$16 sps:$4 sm:$0xff]   ;;  %v10364_v34 = vld [vmem:[%s14669_s1 + $0x70c] ss:$16 sps:$4 sm:$0xff]  }
  0x64   :  { %2555 = vmatprep.subr.bf16.mxu0 %v10317_v45  ;;  %2607 = vmatpush2.bf16.msra.mxu1 %v10312_v44  ;;  %v8805_v44 = vcombine.low %v8760_v30, %v8760_v30  ;;  %v10332_v45 = vld [vmem:[%s14669_s1 + $0x78c] ss:$16 sps:$4 sm:$0xff]   ;;  %v1057_v48 = vrot.slane %v1050_v35, %v11333_v60 }
  0x65   :  { %2608 = vmatprep.subr.bf16.mxu1 %v10320_v62  ;;  %v11634_v46 = vcombine.high %v1422_v9, %v1436_v32  ;;  %v11636_v47 = vcombine.low %v1422_v9, %v1436_v32  ;;  %v10333_v62 = vld [vmem:[%s14669_s1 + $0xb60] ss:$16 sps:$4 sm:$0xff]   ;;  %v1395_v63 = vrot.slane %v1387_v52, %v11333_v60  ;;  %v10375_v35 = vld [vmem:[%s14669_s1 + $0x8ec] ss:$16 sps:$4 sm:$0xff]   ;;  %v10382_v52 = vld [vmem:[%s14669_s1 + $0xac8] ss:$16 sps:$4 sm:$0xff]  }
  0x66   :  { %v1388_v57 = vcombine.low %v1032_v41, %v1057_v48  ;;  %v952_v0 = vrot.slane %v8805_v44, 1  ;;  %v10359_v32 = vld [vmem:[%s14669_s1 + $0xb00] ss:$16 sps:$4 sm:$0xff]   ;;  %v10373_v41 = vld [vmem:[%s14669_s1 + $0x8e8] ss:$16 sps:$4 sm:$0xff]  }
  0x67   :  { %2556 = vmatpush2.bf16.msra.mxu0 %v10315_v61  ;;  %2526 = vmatprep.mubr.bf16.mxu1 %v11634_v46  ;;  %v951_v61 = vrot.slane %v8804_v43, 1  ;;  %v10381_v43 = vld [vmem:[%s14669_s1 + $0x8cc] ss:$16 sps:$4 sm:$0xff]   ;;  %v10379_v48 = vld [vmem:[%s14669_s1 + $0x8c8] ss:$16 sps:$4 sm:$0xff]  }
  0x68   :  { %2557 = vmatprep.subr.bf16.mxu0 %v10323_v2  ;;  %2609 = vmatpush2.bf16.msra.mxu1 %v10318_v7  ;;  %v954_v2 = vrot.slane %v8807_v54, 1  ;;  %v1402_v4 = vrot.slane %v1388_v57, %v11333_v60  ;;  %v957_v7 = vrot.slane %v8810_v59, 1  ;;  %v1100_v11 = vcombine.low %v952_v0, %v953_v1  ;;  %v10393_v54 = vld [vmem:[%s14669_s1 + $0x8a8] ss:$16 sps:$4 sm:$0xff]   ;;  %v10404_v57 = vld [vmem:[%s14669_s1 + $0xa8c] ss:$16 sps:$4 sm:$0xff]  }
  0x69   :  { %2610 = vmatprep.subr.bf16.mxu1 %v10326_v21  ;;  %2527 = vmatmul.mubr.bf16.gmra.mxu1 %v11636_v47  ;;  %v1075_v9 = vcombine.low %v950_v50, %v951_v61  ;;  %v10384_v50 = vld [vmem:[%s14669_s1 + $0xacc] ss:$16 sps:$4 sm:$0xff]   ;;  %v10402_v59 = vld [vmem:[%s14669_s1 + $0xa88] ss:$16 sps:$4 sm:$0xff]  }
  0x6a   :  { %v11658_v12 = vcombine.high %v1395_v63, %v1402_v4  ;;  %2622 = vmatprep.mubr.bf16.mxu1 %v11375_v33  ;;  %v1150_v16 = vcombine.low %v956_v6, %v957_v7  ;;  %v10355_v33 = vld [vmem:[%s14669_s1 + $0xb24] ss:$16 sps:$4 sm:$0xff]   ;;  %v1107_v22 = vrot.slane %v1100_v11, %v11333_v60  ;;  %v11707_v40 = vcombine.low %v1395_v63, %v1402_v4  ;;  %v10407_v58 = vld [vmem:[%s14669_s1 + $0x86c] ss:$16 sps:$4 sm:$0xff]   ;;  %v10405_v61 = vld [vmem:[%s14669_s1 + $0x868] ss:$16 sps:$4 sm:$0xff]  }
  0x6b   :  { %2558 = vmatpush2.bf16.msra.mxu0 %v10321_v13  ;;  %v1125_v13 = vcombine.low %v954_v2, %v955_v5  ;;  %v1082_v21 = vrot.slane %v1075_v9, %v11333_v60  ;;  %v10411_v63 = vld [vmem:[%s14669_s1 + $0x848] ss:$16 sps:$4 sm:$0xff]   ;;  %v10416_v0 = vld [vmem:[%s14669_s1 + $0xa4c] ss:$16 sps:$4 sm:$0xff]  }
  0x6c   :  { %2559 = vmatprep.subr.bf16.mxu0 %v10329_v26  ;;  %2611 = vmatpush2.bf16.msra.mxu1 %v10324_v31  ;;  %v1157_v24 = vrot.slane %v1150_v16, %v11333_v60  ;;  %v10353_v26 = vld [vmem:[%s14669_s1 + $0xb20] ss:$16 sps:$4 sm:$0xff]   ;;  %v10356_v31 = vld [vmem:[%s14669_s1 + $0x728] ss:$16 sps:$4 sm:$0xff]   ;;  %v10419_v1 = vld [vmem:[%s14669_s1 + $0x82c] ss:$16 sps:$4 sm:$0xff]  }
  0x6d   :  { %2612 = vmatprep.subr.bf16.mxu1 %v10332_v45  ;;  %2569 = vmatprep.mubr.bf16.mxu0 %v11658_v12  ;;  %v1132_v23 = vrot.slane %v1125_v13, %v11333_v60  ;;  %v1441_v29 = vcombine.low %v1082_v21, %v1107_v22  ;;  %v10376_v45 = vld [vmem:[%s14669_s1 + $0xae8] ss:$16 sps:$4 sm:$0xff]   ;;  %v10422_v4 = vld [vmem:[%s14669_s1 + $0xa2c] ss:$16 sps:$4 sm:$0xff]  }
  0x6e   :  { %v10414_v2 = vld [vmem:[%s14669_s1 + $0xa48] ss:$16 sps:$4 sm:$0xff]   ;;  %v10425_v5 = vld [vmem:[%s14669_s1 + $0x80c] ss:$16 sps:$4 sm:$0xff]  }
  0x6f   :  { %2560 = vmatpush2.bf16.msra.mxu0 %v10327_v39  ;;  %v1442_v30 = vcombine.low %v1132_v23, %v1157_v24  ;;  %v1449_v36 = vrot.slane %v1441_v29, %v11333_v60  ;;  %v10362_v39 = vld [vmem:[%s14669_s1 + $0x708] ss:$16 sps:$4 sm:$0xff]   ;;  %v10431_v9 = vld [vmem:[%s14669_s1 + $0x9ec] ss:$16 sps:$4 sm:$0xff]  }
  0x70   :  { %2561 = vmatprep.subr.bf16.mxu0 %v10335_v51  ;;  %2613 = vmatpush2.bf16.msra.mxu1 %v10330_v56  ;;  %v10395_v51 = vld [vmem:[%s14669_s1 + $0x8ac] ss:$16 sps:$4 sm:$0xff]   ;;  %v10399_v56 = vld [vmem:[%s14669_s1 + $0x888] ss:$16 sps:$4 sm:$0xff]  }
  0x71   :  { %2614 = vmatprep.subr.bf16.mxu1 %v10338_v3  ;;  %v1456_v37 = vrot.slane %v1442_v30, %v11333_v60  ;;  %v10417_v3 = vld [vmem:[%s14669_s1 + $0x828] ss:$16 sps:$4 sm:$0xff]   ;;  %v10434_v13 = vld [vmem:[%s14669_s1 + $0xbec] ss:$16 sps:$4 sm:$0xff]  }
  0x72   :  { %v10420_v6 = vld [vmem:[%s14669_s1 + $0xa28] ss:$16 sps:$4 sm:$0xff]   ;;  %v10437_v16 = vld [vmem:[%s14669_s1 + $0x9cc] ss:$16 sps:$4 sm:$0xff]  }
  0x73   :  { %2562 = vmatpush2.bf16.msra.mxu0 %v10333_v62  ;;  %v11718_v44 = vcombine.high %v1449_v36, %v1456_v37  ;;  %v11738_v53 = vcombine.low %v1449_v36, %v1456_v37  ;;  %v10410_v62 = vld [vmem:[%s14669_s1 + $0xa6c] ss:$16 sps:$4 sm:$0xff]   ;;  %v10423_v7 = vld [vmem:[%s14669_s1 + $0x808] ss:$16 sps:$4 sm:$0xff]  }
  0x74   :  { %2563 = vmatprep.subr.bf16.mxu0 %v10349_v8  ;;  %2615 = vmatpush2.bf16.msra.mxu1 %v10336_v17  ;;  %v10428_v8 = vld [vmem:[%s14669_s1 + $0xa0c] ss:$16 sps:$4 sm:$0xff]   ;;  %v10426_v11 = vld [vmem:[%s14669_s1 + $0xa08] ss:$16 sps:$4 sm:$0xff]  }
  0x75   :  { %2616 = vmatprep.subr.bf16.mxu1 %v10352_v19  ;;  %v10432_v17 = vld [vmem:[%s14669_s1 + $0xbe8] ss:$16 sps:$4 sm:$0xff]   ;;  %v10440_v19 = vld [vmem:[%s14669_s1 + $0xbcc] ss:$16 sps:$4 sm:$0xff]  }
  0x76   :  { %v10443_v21 = vld [vmem:[%s14669_s1 + $0x9ac] ss:$16 sps:$4 sm:$0xff]   ;;  %v10441_v22 = vld [vmem:[%s14669_s1 + $0x9a8] ss:$16 sps:$4 sm:$0xff]  }
  0x77   :  { %2564 = vmatpush2.bf16.msra.mxu0 %v10347_v18  ;;  %v10435_v18 = vld [vmem:[%s14669_s1 + $0x9c8] ss:$16 sps:$4 sm:$0xff]   ;;  %v10446_v23 = vld [vmem:[%s14669_s1 + $0xbac] ss:$16 sps:$4 sm:$0xff]  }
  0x78   :  { %2565 = vmatprep.subr.bf16.mxu0 %v10355_v33  ;;  %2617 = vmatpush2.bf16.msra.mxu1 %v10350_v25  ;;  %v10438_v33 = vld [vmem:[%s14669_s1 + $0xbc8] ss:$16 sps:$4 sm:$0xff]   ;;  %v10449_v24 = vld [vmem:[%s14669_s1 + $0x98c] ss:$16 sps:$4 sm:$0xff]  }
  0x79   :  { %2618 = vmatprep.subr.bf16.mxu1 %v10358_v27  ;;  %v10444_v25 = vld [vmem:[%s14669_s1 + $0xba8] ss:$16 sps:$4 sm:$0xff]   ;;  %v10452_v27 = vld [vmem:[%s14669_s1 + $0xb8c] ss:$16 sps:$4 sm:$0xff]  }
  0x7a   :  { %v10450_v29 = vld [vmem:[%s14669_s1 + $0xb88] ss:$16 sps:$4 sm:$0xff]   ;;  %v10464_v36 = vld [vmem:[%s14669_s1 + $0xb4c] ss:$16 sps:$4 sm:$0xff]  }
  0x7b   :  { %2566 = vmatpush2.bf16.msra.mxu0 %v10353_v26  ;;  %v10447_v26 = vld [vmem:[%s14669_s1 + $0x988] ss:$16 sps:$4 sm:$0xff]   ;;  %v10467_v37 = vld [vmem:[%s14669_s1 + $0x92c] ss:$16 sps:$4 sm:$0xff]  }
  0x7c   :  { %2567 = vmatprep.subr.bf16.mxu0 %v10361_v28  ;;  %2619 = vmatpush2.bf16.msra.mxu1 %v10356_v31  ;;  %v10455_v28 = vld [vmem:[%s14669_s1 + $0x96c] ss:$16 sps:$4 sm:$0xff]   ;;  %v10453_v30 = vld [vmem:[%s14669_s1 + $0x968] ss:$16 sps:$4 sm:$0xff]  }
  0x7d   :  { %2620 = vmatprep.subr.bf16.mxu1 %v10364_v34  ;;  %v10458_v31 = vld [vmem:[%s14669_s1 + $0xb6c] ss:$16 sps:$4 sm:$0xff]   ;;  %v10456_v34 = vld [vmem:[%s14669_s1 + $0xb68] ss:$16 sps:$4 sm:$0xff]  }
  0x7f   :  { %2568 = vmatpush2.bf16.msra.mxu0 %v10359_v32  ;;  %v10461_v32 = vld [vmem:[%s14669_s1 + $0x94c] ss:$16 sps:$4 sm:$0xff]  }
  0x80   :  { %2643 = vmatprep.subr.bf16.mxu0 %v10375_v35  ;;  %2621 = vmatpush2.bf16.msra.mxu1 %v10362_v39  ;;  %v10459_v35 = vld [vmem:[%s14669_s1 + $0x948] ss:$16 sps:$4 sm:$0xff]  }
  0x81   :  { %2696 = vmatprep.subr.bf16.mxu1 %v10378_v42  ;;  %v10462_v39 = vld [vmem:[%s14669_s1 + $0xb48] ss:$16 sps:$4 sm:$0xff]   ;;  %v10470_v42 = vld [vmem:[%s14669_s1 + $0xb2c] ss:$16 sps:$4 sm:$0xff]  }
  0x82   :  { %2570 = vmatmul.mubr.bf16.vlgmr.msra.gmra.mxu0 %v11707_v40 }
  0x83   :  { %2644 = vmatpush1.bf16.msra.mxu0 %v10373_v41  ;;  %2579 = vmatprep.mubr.bf16.mxu0 %v11718_v44  ;;  %v10465_v41 = vld [vmem:[%s14669_s1 + $0x928] ss:$16 sps:$4 sm:$0xff]  }
  0x84   :  { %2645 = vmatprep.subr.bf16.mxu0 %v10381_v43  ;;  %2623 = vmatmul.mubr.bf16.vlgmr.msra.gmra.mxu1 %v11416_v10  ;;  %v10401_v10 = vld [vmem:[%s14669_s1 + $0x88c] ss:$16 sps:$4 sm:$0xff]   ;;  %v10468_v43 = vld [vmem:[%s14669_s1 + $0xb28] ss:$16 sps:$4 sm:$0xff]  }
  0x85   :  { %2697 = vmatpush1.bf16.msra.mxu1 %v10376_v45  ;;  %2632 = vmatprep.mubr.bf16.mxu1 %v11543_v20  ;;  %v10396_v20 = vld [vmem:[%s14669_s1 + $0xaa8] ss:$16 sps:$4 sm:$0xff]   ;;  %v10473_v45 = vld [vmem:[%s14669_s1 + $0x90c] ss:$16 sps:$4 sm:$0xff]  }
  0x86   :  { %2698 = vmatprep.subr.bf16.mxu1 %v10384_v50  ;;  %v10476_v50 = vld [vmem:[%s14669_s1 + $0xb0c] ss:$16 sps:$4 sm:$0xff]  }
  0x87   :  { %2646 = vmatpush1.bf16.msra.mxu0 %v10379_v48  ;;  %v10471_v48 = vld [vmem:[%s14669_s1 + $0x908] ss:$16 sps:$4 sm:$0xff]  }
  0x88   :  { %2647 = vmatprep.subr.bf16.mxu0 %v10395_v51  ;;  %v10479_v51 = vld [vmem:[%s14669_s1 + $0xe4] ss:$16 sps:$4 sm:$0xff]  }
  0x89   :  { %2699 = vmatpush1.bf16.msra.mxu1 %v10382_v52  ;;  %v10131_v52 = vld.sshfl [vmem:[%s14668_s0] sm:$0xf pattern:$0x76325410] }
  0x8a   :  { %2580 = vmatmul.mubr.bf16.gmra.mxu0 %v11738_v53  ;;  %2700 = vmatprep.subr.bf16.mxu1 %v10398_v55  ;;  %v29_v55 = vld [vmem:[%s14668_s0] sm:$0x77] }
  0x8b   :  { %2648 = vmatpush1.bf16.msra.mxu0 %v10393_v54  ;;  %2675 = vmatprep.mubr.bf16.mxu0 %v11425_v14  ;;  %v10413_v14 = vld [vmem:[%s14669_s1 + $0x84c] ss:$16 sps:$4 sm:$0xff]  }
  0x8c   :  { %2649 = vmatprep.subr.bf16.mxu0 %v10401_v10  ;;  %2633 = vmatmul.mubr.bf16.gmra.mxu1 %v11556_v38  ;;  %v10408_v38 = vld [vmem:[%s14669_s1 + $0xa68] ss:$16 sps:$4 sm:$0xff]  }
  0x8d   :  { %2701 = vmatpush1.bf16.msra.mxu1 %v10396_v20  ;;  %2728 = vmatprep.mubr.bf16.mxu1 %v11658_v12  ;;  %v10429_v12 = vld [vmem:[%s14669_s1 + $0x9e8] ss:$16 sps:$4 sm:$0xff]   ;;  %v10133_v20 = vld.sshfl [vmem:[%s14668_s0 + $0x10] sm:$0xf pattern:$0x76325410] }
  0x8e   :  { %2702 = vmatprep.subr.bf16.mxu1 %v10404_v57  ;;  %v10132_v54 = vld.sshfl [vmem:[%s14668_s0 + $0x8] sm:$0xf pattern:$0x76325410] }
  0x8f   :  { %2650 = vmatpush1.bf16.msra.mxu0 %v10399_v56  ;;  %v10474_v10 = vld [vmem:[%s14669_s1 + $0xb08] ss:$16 sps:$4 sm:$0xff]   ;;  %v9203_v56 = vcombine.low %v10131_v52, %v10132_v54 }
  0x90   :  { %2651 = vmatprep.subr.bf16.mxu0 %v10407_v58  ;;  %v30_v57 = vld [vmem:[%s14668_s0 + $0x8] sm:$0x77]  ;;  %v8707_v58 = vcombine.low %v29_v55, %v29_v55 }
  0x91   :  { %2703 = vmatpush1.bf16.msra.mxu1 %v10402_v59  ;;  %v8708_v59 = vcombine.high %v29_v55, %v29_v55 }
  0x92   :  { %2704 = vmatprep.subr.bf16.mxu1 %v10410_v62  ;;  %v10134_v62 = vld.sshfl [vmem:[%s14668_s0 + $0x18] sm:$0xf pattern:$0x76325410] }
  0x93   :  { %2652 = vmatpush1.bf16.msra.mxu0 %v10405_v61  ;;  %v10477_v61 = vld [vmem:[%s14669_s1 + $0xe0] ss:$16 sps:$4 sm:$0xff]  }
  0x94   :  { %2653 = vmatprep.subr.bf16.mxu0 %v10413_v14  ;;  %v31_v14 = vld [vmem:[%s14668_s0 + $0x10] sm:$0x77] }
  0x95   :  { %2705 = vmatpush1.bf16.msra.mxu1 %v10408_v38  ;;  %v8709_v38 = vcombine.low %v30_v57, %v30_v57 }
  0x96   :  { %2706 = vmatprep.subr.bf16.mxu1 %v10416_v0  ;;  %v9205_v0 = vcombine.low %v10133_v20, %v10134_v62 }
  0x97   :  { %2654 = vmatpush1.bf16.msra.mxu0 %v10411_v63  ;;  %v8710_v63 = vcombine.high %v30_v57, %v30_v57 }
  0x98   :  { %2655 = vmatprep.subr.bf16.mxu0 %v10419_v1  ;;  %v11938_v1 = vrot.slane %v9203_v56, %v11333_v60 }
  0x99   :  { %2707 = vmatpush1.bf16.msra.mxu1 %v10414_v2  ;;  %v32_v2 = vld [vmem:[%s14668_s0 + $0x18] sm:$0x77] }
  0x9a   :  { %2708 = vmatprep.subr.bf16.mxu1 %v10422_v4  ;;  %v10485_v4 = vld [vmem:[%s14669_s1 + $0xc4] ss:$16 sps:$4 sm:$0xff]  }
  0x9b   :  { %2656 = vmatpush1.bf16.msra.mxu0 %v10417_v3  ;;  %v10482_v3 = vld [vmem:[%s14669_s1 + $0x2e4] ss:$16 sps:$4 sm:$0xff]  }
  0x9c   :  { %2657 = vmatprep.subr.bf16.mxu0 %v10425_v5  ;;  %v8711_v5 = vcombine.low %v31_v14, %v31_v14 }
  0x9d   :  { %2709 = vmatpush1.bf16.msra.mxu1 %v10420_v6  ;;  %v8712_v6 = vcombine.high %v31_v14, %v31_v14  ;;  %v10495_v14 = vld [vmem:[%s14669_s1 + $0x80] ss:$16 sps:$4 sm:$0xff]  }
  0x9e   :  { %2710 = vmatprep.subr.bf16.mxu1 %v10428_v8  ;;  %v128_v8 = vshll.u32 %v8707_v58, 16 }
  0x9f   :  { %2658 = vmatpush1.bf16.msra.mxu0 %v10423_v7  ;;  %v126_v7 = vshrl.u32 %v8707_v58, 16 }
  0xa0   :  { %2659 = vmatprep.subr.bf16.mxu0 %v10431_v9  ;;  %v8713_v9 = vcombine.low %v32_v2, %v32_v2 }
  0xa1   :  { %2711 = vmatpush1.bf16.msra.mxu1 %v10426_v11  ;;  %v133_v11 = vshrl.u32 %v8708_v59, 16 }
  0xa2   :  { %2712 = vmatprep.subr.bf16.mxu1 %v10434_v13  ;;  %v140_v13 = vshrl.u32 %v8709_v38, 16 }
  0xa3   :  { %2660 = vmatpush2.bf16.msra.mxu0 %v10429_v12  ;;  %v135_v12 = vshll.u32 %v8708_v59, 16  ;;  %v10492_v59 = vld [vmem:[%s14669_s1 + $0x2a0] ss:$16 sps:$4 sm:$0xff]  }
  0xa4   :  { %2661 = vmatprep.subr.bf16.mxu0 %v10437_v16  ;;  %v10480_v16 = vld [vmem:[%s14669_s1 + $0x2e0] ss:$16 sps:$4 sm:$0xff]  }
  0xa5   :  { %2713 = vmatpush2.bf16.msra.mxu1 %v10432_v17  ;;  %v130_v17 = vrot.slane %v128_v8, 1 }
  0xa6   :  { %2714 = vmatprep.subr.bf16.mxu1 %v10440_v19  ;;  %v147_v19 = vshrl.u32 %v8710_v63, 16 }
  0xa7   :  { %2662 = vmatpush2.bf16.msra.mxu0 %v10435_v18  ;;  %v142_v18 = vshll.u32 %v8709_v38, 16  ;;  %v10500_v38 = vld [vmem:[%s14669_s1 + $0x284] ss:$16 sps:$4 sm:$0xff]  }
  0xa8   :  { %2663 = vmatprep.subr.bf16.mxu0 %v10443_v21  ;;  %v149_v21 = vshll.u32 %v8710_v63, 16 }
  0xa9   :  { %2715 = vmatpush2.bf16.msra.mxu1 %v10438_v33  ;;  %v10483_v33 = vld [vmem:[%s14669_s1 + $0xc0] ss:$16 sps:$4 sm:$0xff]  }
  0xaa   :  { %2716 = vmatprep.subr.bf16.mxu1 %v10446_v23  ;;  %v8714_v23 = vcombine.high %v32_v2, %v32_v2 }
  0xab   :  { %2664 = vmatpush2.bf16.msra.mxu0 %v10441_v22  ;;  %v11957_v22 = vrot.slane %v9205_v0, %v11333_v60 }
  0xac   :  { %2665 = vmatprep.subr.bf16.mxu0 %v10449_v24  ;;  %v137_v24 = vrot.slane %v135_v12, 1  ;;  %v10507_v12 = vld [vmem:[%s14669_s1 + $0x40] ss:$16 sps:$4 sm:$0xff]  }
  0xad   :  { %2717 = vmatpush2.bf16.msra.mxu1 %v10444_v25  ;;  %v154_v25 = vshrl.u32 %v8711_v5, 16  ;;  %v11982_v55 = vcombine.high %v11938_v1, %v11957_v22 }
  0xae   :  { %2718 = vmatprep.subr.bf16.mxu1 %v10452_v27  ;;  %v131_v27 = vor.u32 %v130_v17, %v126_v7 }
  0xaf   :  { %2666 = vmatpush2.bf16.msra.mxu0 %v10447_v26  ;;  %v10488_v26 = vld [vmem:[%s14669_s1 + $0x2c4] ss:$16 sps:$4 sm:$0xff]  }
  0xb0   :  { %2667 = vmatprep.subr.bf16.mxu0 %v10455_v28  ;;  %v144_v28 = vrot.slane %v142_v18, 1  ;;  %v10510_v18 = vld [vmem:[%s14669_s1 + $0x240] ss:$16 sps:$4 sm:$0xff]  }
  0xb1   :  { %2719 = vmatpush2.bf16.msra.mxu1 %v10450_v29  ;;  %v151_v29 = vrot.slane %v149_v21, 1  ;;  %v10518_v21 = vld [vmem:[%s14669_s1 + $0x224] ss:$16 sps:$4 sm:$0xff]  }
  0xb2   :  { %2720 = vmatprep.subr.bf16.mxu1 %v10458_v31  ;;  %v138_v31 = vor.u32 %v137_v24, %v133_v11  ;;  %v10516_v24 = vld [vmem:[%s14669_s1 + $0x220] ss:$16 sps:$4 sm:$0xff]  }
  0xb3   :  { %2668 = vmatpush2.bf16.msra.mxu0 %v10453_v30  ;;  %v10491_v30 = vld [vmem:[%s14669_s1 + $0xa4] ss:$16 sps:$4 sm:$0xff]  }
  0xb4   :  { %2669 = vmatprep.subr.bf16.mxu0 %v10461_v32  ;;  %v161_v32 = vshrl.u32 %v8712_v6, 16 }
  0xb5   :  { %2721 = vmatpush2.bf16.msra.mxu1 %v10456_v34  ;;  %v163_v34 = vshll.u32 %v8712_v6, 16  ;;  %v10506_v6 = vld [vmem:[%s14669_s1 + $0x264] ss:$16 sps:$4 sm:$0xff]  }
  0xb6   :  { %2722 = vmatprep.subr.bf16.mxu1 %v10464_v36  ;;  %v145_v36 = vor.u32 %v144_v28, %v140_v13  ;;  %v10512_v13 = vld [vmem:[%s14669_s1 + $0x244] ss:$16 sps:$4 sm:$0xff]  }
  0xb7   :  { %2670 = vmatpush2.bf16.msra.mxu0 %v10459_v35  ;;  %v168_v35 = vshrl.u32 %v8713_v9, 16 }
  0xb8   :  { %2671 = vmatprep.subr.bf16.mxu0 %v10467_v37  ;;  %v152_v37 = vor.u32 %v151_v29, %v147_v19  ;;  %v10513_v19 = vld [vmem:[%s14669_s1 + $0x20] ss:$16 sps:$4 sm:$0xff]   ;;  %v34_v29 = vld [vmem:[%s14668_s0 + $0x38] sm:$0x77] }
  0xb9   :  { %2723 = vmatpush2.bf16.msra.mxu1 %v10462_v39 }
  0xba   :  { %2724 = vmatprep.subr.bf16.mxu1 %v10470_v42  ;;  %v10486_v42 = vld [vmem:[%s14669_s1 + $0x2c0] ss:$16 sps:$4 sm:$0xff]   ;;  %v319_v54 = vcombine.low %v145_v36, %v152_v37  ;;  %v8717_v36 = vcombine.low %v34_v29, %v34_v29 }
  0xbb   :  { %2672 = vmatpush2.bf16.msra.mxu0 %v10465_v41  ;;  %v170_v41 = vshll.u32 %v8713_v9, 16  ;;  %v10504_v9 = vld [vmem:[%s14669_s1 + $0x260] ss:$16 sps:$4 sm:$0xff]  }
  0xbc   :  { %2673 = vmatprep.subr.bf16.mxu0 %v10473_v45  ;;  %v177_v45 = vshll.u32 %v8714_v23, 16  ;;  %v333_v58 = vrot.slane %v319_v54, %v11333_v60 }
  0xbd   :  { %2725 = vmatpush2.bf16.msra.mxu1 %v10468_v43  ;;  %v175_v43 = vshrl.u32 %v8714_v23, 16  ;;  %v172_v52 = vrot.slane %v170_v41, 1  ;;  %v33_v23 = vld [vmem:[%s14668_s0 + $0x30] sm:$0x77]  ;;  %v8718_v41 = vcombine.high %v34_v29, %v34_v29 }
  0xbe   :  { %2726 = vmatprep.subr.bf16.mxu1 %v10476_v50  ;;  %v10494_v50 = vld [vmem:[%s14669_s1 + $0x2a4] ss:$16 sps:$4 sm:$0xff]   ;;  %v179_v20 = vrot.slane %v177_v45, 1  ;;  %v8715_v28 = vcombine.low %v33_v23, %v33_v23 }
  0xbf   :  { %2674 = vmatpush2.bf16.msra.mxu0 %v10471_v48  ;;  %v294_v48 = vcombine.low %v131_v27, %v138_v31  ;;  %v173_v57 = vor.u32 %v172_v52, %v168_v35  ;;  %v10527_v27 = vld [vmem:[%s14669_s1 + $0x1e4] ss:$16 sps:$4 sm:$0xff]   ;;  %v10522_v31 = vld [vmem:[%s14669_s1 + $0x200] ss:$16 sps:$4 sm:$0xff]  }
  0xc0   :  { %3829 = vmatprep.subr.bf16.mxu0 %v10479_v51  ;;  %v10530_v35 = vld [vmem:[%s14669_s1 + $0x3e4] ss:$16 sps:$4 sm:$0xff]   ;;  %v184_v37 = vshll.u32 %v8715_v28, 16  ;;  %v182_v54 = vshrl.u32 %v8715_v28, 16 }
  0xc1   :  { %2727 = vmatpush2.bf16.msra.mxu1 %v10474_v10  ;;  %v308_v56 = vrot.slane %v294_v48, %v11333_v60  ;;  %v10539_v52 = vld [vmem:[%s14669_s1 + $0x1a4] ss:$16 sps:$4 sm:$0xff]  }
  0xc2   :  { %2676 = vmatmul.mubr.bf16.vlgmr.msra.gmra.mxu0 %v11428_v15  ;;  %3882 = vmatprep.subr.bf16.mxu1 %v10482_v3  ;;  %v156_v15 = vshll.u32 %v8711_v5, 16  ;;  %v10498_v3 = vld [vmem:[%s14669_s1 + $0x280] ss:$16 sps:$4 sm:$0xff]  }
  0xc3   :  { %3830 = vmatpush1.bf16.msra.mxu0 %v10477_v61  ;;  %2685 = vmatprep.mubr.bf16.mxu0 %v11634_v46  ;;  %v165_v46 = vrot.slane %v163_v34, 1  ;;  %v180_v61 = vor.u32 %v179_v20, %v175_v43  ;;  %v9204_v2 = vcombine.low %v308_v56, %v333_v58  ;;  %v10525_v34 = vld [vmem:[%s14669_s1 + $0x1e0] ss:$16 sps:$4 sm:$0xff]   ;;  %v205_v58 = vshll.u32 %v8718_v41, 16 }
  0xc4   :  { %3831 = vmatprep.subr.bf16.mxu0 %v10485_v4  ;;  %2729 = vmatmul.mubr.bf16.vlgmr.msra.gmra.mxu1 %v11707_v40  ;;  %v158_v39 = vrot.slane %v156_v15, 1  ;;  %v10489_v40 = vld [vmem:[%s14669_s1 + $0xa0] ss:$16 sps:$4 sm:$0xff]   ;;  %v8716_v15 = vcombine.high %v33_v23, %v33_v23  ;;  %v10548_v23 = vld [vmem:[%s14669_s1 + $0x384] ss:$16 sps:$4 sm:$0xff]  }
  0xc5   :  { %3883 = vmatpush1.bf16.msra.mxu1 %v10480_v16  ;;  %2738 = vmatprep.mubr.bf16.mxu1 %v11718_v44  ;;  %v10497_v44 = vld [vmem:[%s14669_s1 + $0x84] ss:$16 sps:$4 sm:$0xff]   ;;  %v166_v10 = vor.u32 %v165_v46, %v161_v32  ;;  %v369_v0 = vcombine.low %v173_v57, %v180_v61  ;;  %v10501_v4 = vld [vmem:[%s14669_s1 + $0x60] ss:$16 sps:$4 sm:$0xff]   ;;  %v12016_v8 = vrot.slane %v9204_v2, %v11333_v60  ;;  %v36_v32 = vld [vmem:[%s14668_s0 + $0x48] sm:$0x77] }
  0xc6   :  { %3884 = vmatprep.subr.bf16.mxu1 %v10488_v26  ;;  %v159_v51 = vor.u32 %v158_v39, %v154_v25  ;;  %v10515_v16 = vld [vmem:[%s14669_s1 + $0x24] ss:$16 sps:$4 sm:$0xff]   ;;  %v10519_v25 = vld [vmem:[%s14669_s1] ss:$16 sps:$4 sm:$0xff]   ;;  %v191_v46 = vshll.u32 %v8716_v15, 16  ;;  %v8721_v48 = vcombine.low %v36_v32, %v36_v32  ;;  %v189_v56 = vshrl.u32 %v8716_v15, 16 }
  0xc7   :  { %3832 = vmatpush1.bf16.msra.mxu0 %v10483_v33  ;;  %v383_v5 = vrot.slane %v369_v0, %v11333_v60  ;;  %v10521_v33 = vld [vmem:[%s14669_s1 + $0x4] ss:$16 sps:$4 sm:$0xff]   ;;  %v10528_v43 = vld [vmem:[%s14669_s1 + $0x3e0] ss:$16 sps:$4 sm:$0xff]   ;;  %v203_v0 = vshrl.u32 %v8718_v41, 16 }
  0xc8   :  { %3833 = vmatprep.subr.bf16.mxu0 %v10491_v30  ;;  %v344_v62 = vcombine.low %v159_v51, %v166_v10  ;;  %v10524_v26 = vld [vmem:[%s14669_s1 + $0x204] ss:$16 sps:$4 sm:$0xff]   ;;  %v198_v10 = vshll.u32 %v8717_v36, 16  ;;  %v10534_v20 = vld [vmem:[%s14669_s1 + $0x3c0] ss:$16 sps:$4 sm:$0xff]   ;;  %v193_v57 = vrot.slane %v191_v46, 1 }
  0xc9   :  { %3885 = vmatpush1.bf16.msra.mxu1 %v10486_v42  ;;  %v35_v30 = vld [vmem:[%s14668_s0 + $0x40] sm:$0x77] }
  0xca   :  { %2686 = vmatmul.mubr.bf16.gmra.mxu0 %v11636_v47  ;;  %3886 = vmatprep.subr.bf16.mxu1 %v10494_v50  ;;  %v10503_v47 = vld [vmem:[%s14669_s1 + $0x64] ss:$16 sps:$4 sm:$0xff]   ;;  %v358_v63 = vrot.slane %v344_v62, %v11333_v60  ;;  %v8719_v42 = vcombine.low %v35_v30, %v35_v30  ;;  %v8720_v45 = vcombine.high %v35_v30, %v35_v30  ;;  %v10531_v50 = vld [vmem:[%s14669_s1 + $0x1c0] ss:$16 sps:$4 sm:$0xff]  }
  0xcb   :  { %3834 = vmatpush1.bf16.msra.mxu0 %v10489_v40  ;;  %3861 = vmatprep.mubr.bf16.mxu0 %v11982_v55  ;;  %v10533_v39 = vld [vmem:[%s14669_s1 + $0x1c4] ss:$16 sps:$4 sm:$0xff]   ;;  %v8722_v40 = vcombine.high %v36_v32, %v36_v32  ;;  %v10537_v61 = vld [vmem:[%s14669_s1 + $0x1a0] ss:$16 sps:$4 sm:$0xff]  }
  0xcc   :  { %3835 = vmatprep.subr.bf16.mxu0 %v10497_v44  ;;  %2739 = vmatmul.mubr.bf16.gmra.mxu1 %v11738_v53  ;;  %v10509_v53 = vld [vmem:[%s14669_s1 + $0x44] ss:$16 sps:$4 sm:$0xff]   ;;  %v9206_v7 = vcombine.low %v358_v63, %v383_v5  ;;  %v186_v44 = vrot.slane %v184_v37, 1  ;;  %v219_v62 = vshll.u32 %v8720_v45, 16  ;;  %v196_v63 = vshrl.u32 %v8717_v36, 16 }
  0xcd   :  { %3887 = vmatpush1.bf16.msra.mxu1 %v10492_v59  ;;  %v10536_v51 = vld [vmem:[%s14669_s1 + $0x3c4] ss:$16 sps:$4 sm:$0xff]   ;;  %v212_v59 = vshll.u32 %v8719_v42, 16  ;;  %v210_v5 = vshrl.u32 %v8719_v42, 16  ;;  %v10549_v32 = vld [vmem:[%s14669_s1 + $0x160] ss:$16 sps:$4 sm:$0xff]  }
  0xce   :  { %3888 = vmatprep.subr.bf16.mxu1 %v10500_v38  ;;  %v12022_v11 = vrot.slane %v9206_v7, %v11333_v60  ;;  %v233_v38 = vshll.u32 %v8722_v40, 16  ;;  %v10545_v2 = vld [vmem:[%s14669_s1 + $0x184] ss:$16 sps:$4 sm:$0xff]   ;;  %v207_v7 = vrot.slane %v205_v58, 1  ;;  %v10555_v37 = vld [vmem:[%s14669_s1 + $0x140] ss:$16 sps:$4 sm:$0xff]  }
  0xcf   :  { %3836 = vmatpush1.bf16.msra.mxu0 %v10495_v14  ;;  %v226_v14 = vshll.u32 %v8721_v48, 16  ;;  %v10557_v36 = vld [vmem:[%s14669_s1 + $0x144] ss:$16 sps:$4 sm:$0xff]  }
  0xd0   :  { %3837 = vmatprep.subr.bf16.mxu0 %v10503_v47  ;;  %v12035_v17 = vcombine.high %v12016_v8, %v12022_v11  ;;  %v10542_v47 = vld [vmem:[%s14669_s1 + $0x3a4] ss:$16 sps:$4 sm:$0xff]   ;;  %v10138_v58 = vld.sshfl [vmem:[%s14668_s0 + $0x48] sm:$0xf pattern:$0x76325410] }
  0xd1   :  { %3889 = vmatpush1.bf16.msra.mxu1 %v10498_v3  ;;  %v187_v3 = vor.u32 %v186_v44, %v182_v54  ;;  %v39_v54 = vld [vmem:[%s14668_s0 + $0x10] sm:$0x66]  ;;  %v40_v44 = vld [vmem:[%s14668_s0 + $0x18] sm:$0x66] }
  0xd2   :  { %3890 = vmatprep.subr.bf16.mxu1 %v10506_v6  ;;  %3914 = vmatprep.mubr.bf16.mxu1 %v12035_v17  ;;  %v217_v6 = vshrl.u32 %v8720_v45, 16  ;;  %v37_v45 = vld [vmem:[%s14668_s0] sm:$0x66] }
  0xd3   :  { %3838 = vmatpush1.bf16.msra.mxu0 %v10501_v4  ;;  %v200_v4 = vrot.slane %v198_v10, 1  ;;  %v8723_v10 = vcombine.low %v37_v45, %v37_v45 }
  0xd4   :  { %3839 = vmatprep.subr.bf16.mxu0 %v10509_v53  ;;  %v194_v53 = vor.u32 %v193_v57, %v189_v56 }
  0xd5   :  { %3891 = vmatpush1.bf16.msra.mxu1 %v10504_v9  ;;  %v214_v9 = vrot.slane %v212_v59, 1  ;;  %v8727_v59 = vcombine.low %v39_v54, %v39_v54 }
  0xd6   :  { %3892 = vmatprep.subr.bf16.mxu1 %v10512_v13  ;;  %v221_v13 = vrot.slane %v219_v62, 1  ;;  %v394_v30 = vcombine.low %v187_v3, %v194_v53  ;;  %v8729_v62 = vcombine.low %v40_v44, %v40_v44 }
  0xd7   :  { %3840 = vmatpush1.bf16.msra.mxu0 %v10507_v12  ;;  %v224_v12 = vshrl.u32 %v8721_v48, 16  ;;  %v38_v48 = vld [vmem:[%s14668_s0 + $0x8] sm:$0x66] }
  0xd8   :  { %3841 = vmatprep.subr.bf16.mxu0 %v10515_v16  ;;  %v228_v16 = vrot.slane %v226_v14, 1  ;;  %v222_v28 = vor.u32 %v221_v13, %v217_v6  ;;  %v12144_v41 = vrot.slane %v394_v30, %v11333_v60  ;;  %v8725_v56 = vcombine.low %v38_v48, %v38_v48  ;;  %v10561_v6 = vld [vmem:[%s14669_s1 + $0x120] ss:$16 sps:$4 sm:$0xff]   ;;  %v10566_v13 = vld [vmem:[%s14669_s1 + $0x324] ss:$16 sps:$4 sm:$0xff]  }
  0xd9   :  { %3893 = vmatpush1.bf16.msra.mxu1 %v10510_v18  ;;  %v231_v18 = vshrl.u32 %v8722_v40, 16  ;;  %v10563_v40 = vld [vmem:[%s14669_s1 + $0x124] ss:$16 sps:$4 sm:$0xff]   ;;  %v8726_v57 = vcombine.high %v38_v48, %v38_v48  ;;  %v8730_v14 = vcombine.high %v40_v44, %v40_v44 }
  0xda   :  { %3894 = vmatprep.subr.bf16.mxu1 %v10518_v21  ;;  %v10540_v21 = vld [vmem:[%s14669_s1 + $0x3a0] ss:$16 sps:$4 sm:$0xff]   ;;  %v229_v29 = vor.u32 %v228_v16, %v224_v12  ;;  %v10595_v44 = vld [vmem:[%s14669_s1 + $0x4a4] ss:$16 sps:$4 sm:$0xff]  }
  0xdb   :  { %3842 = vmatpush1.bf16.msra.mxu0 %v10513_v19  ;;  %v235_v19 = vrot.slane %v233_v38, 1  ;;  %v277_v38 = vrot.slane %v8723_v10, 1  ;;  %v284_v12 = vrot.slane %v8730_v14, 1  ;;  %v10593_v14 = vld [vmem:[%s14669_s1 + $0x4a0] ss:$16 sps:$4 sm:$0xff]  }
  0xdc   :  { %3843 = vmatprep.subr.bf16.mxu0 %v10521_v33  ;;  %v10543_v33 = vld [vmem:[%s14669_s1 + $0x180] ss:$16 sps:$4 sm:$0xff]  }
  0xdd   :  { %3895 = vmatpush1.bf16.msra.mxu1 %v10516_v24  ;;  %v10551_v24 = vld [vmem:[%s14669_s1 + $0x164] ss:$16 sps:$4 sm:$0xff]   ;;  %v236_v15 = vor.u32 %v235_v19, %v231_v18 }
  0xde   :  { %3896 = vmatprep.subr.bf16.mxu1 %v10524_v26  ;;  %v208_v26 = vor.u32 %v207_v7, %v203_v0  ;;  %v280_v0 = vrot.slane %v8726_v57, 1  ;;  %v10569_v19 = vld [vmem:[%s14669_s1 + $0x104] ss:$16 sps:$4 sm:$0xff]  }
  0xdf   :  { %3844 = vmatpush1.bf16.msra.mxu0 %v10519_v25  ;;  %v201_v25 = vor.u32 %v200_v4, %v196_v63  ;;  %v279_v63 = vrot.slane %v8725_v56, 1  ;;  %v283_v4 = vrot.slane %v8729_v62, 1 }
  0xe0   :  { %3845 = vmatprep.subr.bf16.mxu0 %v10527_v27  ;;  %v215_v27 = vor.u32 %v214_v9, %v210_v5  ;;  %v10558_v5 = vld [vmem:[%s14669_s1 + $0x340] ss:$16 sps:$4 sm:$0xff]  }
  0xe1   :  { %3897 = vmatpush1.bf16.msra.mxu1 %v10522_v31  ;;  %v10546_v31 = vld [vmem:[%s14669_s1 + $0x380] ss:$16 sps:$4 sm:$0xff]   ;;  %v419_v42 = vcombine.low %v201_v25, %v208_v26 }
  0xe2   :  { %3898 = vmatprep.subr.bf16.mxu1 %v10530_v35  ;;  %v10552_v35 = vld [vmem:[%s14669_s1 + $0x360] ss:$16 sps:$4 sm:$0xff]   ;;  %v444_v46 = vcombine.low %v215_v27, %v222_v28 }
  0xe3   :  { %3846 = vmatpush2.bf16.msra.mxu0 %v10525_v34  ;;  %v10554_v34 = vld [vmem:[%s14669_s1 + $0x364] ss:$16 sps:$4 sm:$0xff]   ;;  %v433_v53 = vrot.slane %v419_v42, %v11333_v60  ;;  %v10564_v25 = vld [vmem:[%s14669_s1 + $0x320] ss:$16 sps:$4 sm:$0xff]  }
  0xe4   :  { %3847 = vmatprep.subr.bf16.mxu0 %v10533_v39  ;;  %v10560_v39 = vld [vmem:[%s14669_s1 + $0x344] ss:$16 sps:$4 sm:$0xff]   ;;  %v458_v7 = vrot.slane %v444_v46, %v11333_v60  ;;  %v10567_v26 = vld [vmem:[%s14669_s1 + $0x100] ss:$16 sps:$4 sm:$0xff]  }
  0xe5   :  { %3899 = vmatpush2.bf16.msra.mxu1 %v10528_v43  ;;  %v469_v43 = vcombine.low %v229_v29, %v236_v15  ;;  %v9208_v27 = vcombine.low %v12144_v41, %v433_v53  ;;  %v10572_v29 = vld [vmem:[%s14669_s1 + $0x304] ss:$16 sps:$4 sm:$0xff]   ;;  %v10581_v46 = vld [vmem:[%s14669_s1 + $0x4e0] ss:$16 sps:$4 sm:$0xff]  }
  0xe6   :  { %3900 = vmatprep.subr.bf16.mxu1 %v10536_v51  ;;  %v10136_v51 = vld.sshfl [vmem:[%s14668_s0 + $0x38] sm:$0xf pattern:$0x76325410] }
  0xe7   :  { %3848 = vmatpush2.bf16.msra.mxu0 %v10531_v50  ;;  %v10135_v50 = vld.sshfl [vmem:[%s14668_s0 + $0x30] sm:$0xf pattern:$0x76325410]  ;;  %v483_v9 = vrot.slane %v469_v43, %v11333_v60  ;;  %v2820_v41 = vrot.slane %v9208_v27, %v11333_v60  ;;  %v10586_v43 = vld [vmem:[%s14669_s1 + $0xec] ss:$16 sps:$4 sm:$0xff]  }
  0xe8   :  { %3849 = vmatprep.subr.bf16.mxu0 %v10539_v52  ;;  %v10137_v52 = vld.sshfl [vmem:[%s14668_s0 + $0x40] sm:$0xf pattern:$0x76325410]  ;;  %v9207_v16 = vcombine.low %v10135_v50, %v10136_v51  ;;  %v10584_v51 = vld [vmem:[%s14669_s1 + $0xe8] ss:$16 sps:$4 sm:$0xff]  }
  0xe9   :  { %3901 = vmatpush2.bf16.msra.mxu1 %v10534_v20  ;;  %v8724_v20 = vcombine.high %v37_v45, %v37_v45  ;;  %v9209_v18 = vcombine.low %v10137_v52, %v10138_v58  ;;  %v9210_v28 = vcombine.low %v458_v7, %v483_v9  ;;  %v10607_v7 = vld [vmem:[%s14669_s1 + $0x480] ss:$16 sps:$4 sm:$0xff]   ;;  %v10612_v9 = vld [vmem:[%s14669_s1 + $0x8c] ss:$16 sps:$4 sm:$0xff]  }
  0xea   :  { %3902 = vmatprep.subr.bf16.mxu1 %v10542_v47  ;;  %v2813_v15 = vrot.slane %v9207_v16, %v11333_v60  ;;  %v10610_v16 = vld [vmem:[%s14669_s1 + $0x88] ss:$16 sps:$4 sm:$0xff]   ;;  %v10630_v27 = vld [vmem:[%s14669_s1 + $0x2c] ss:$16 sps:$4 sm:$0xff]  }
  0xeb   :  { %3850 = vmatpush2.bf16.msra.mxu0 %v10537_v61  ;;  %v8728_v61 = vcombine.high %v39_v54, %v39_v54  ;;  %v278_v47 = vrot.slane %v8724_v20, 1  ;;  %v2827_v30 = vrot.slane %v9209_v18, %v11333_v60  ;;  %v2834_v42 = vrot.slane %v9210_v28, %v11333_v60  ;;  %v10587_v54 = vld [vmem:[%s14669_s1 + $0x4c0] ss:$16 sps:$4 sm:$0xff]   ;;  %v10633_v28 = vld [vmem:[%s14669_s1 + $0x404] ss:$16 sps:$4 sm:$0xff]  }
  0xec   :  { %3851 = vmatprep.subr.bf16.mxu0 %v10545_v2  ;;  %v281_v2 = vrot.slane %v8727_v59, 1  ;;  %v10590_v59 = vld [vmem:[%s14669_s1 + $0xc8] ss:$16 sps:$4 sm:$0xff]   ;;  %v10613_v18 = vld [vmem:[%s14669_s1 + $0x460] ss:$16 sps:$4 sm:$0xff]  }
  0xed   :  { %3903 = vmatpush2.bf16.msra.mxu1 %v10540_v21  ;;  %v282_v3 = vrot.slane %v8728_v61, 1  ;;  %v310_v21 = vcombine.low %v277_v38, %v278_v47  ;;  %v12235_v52 = vcombine.high %v2820_v41, %v2834_v42  ;;  %v12259_v61 = vcombine.low %v2813_v15, %v2827_v30  ;;  %v10598_v38 = vld [vmem:[%s14669_s1 + $0xac] ss:$16 sps:$4 sm:$0xff]  }
  0xee   :  { %3904 = vmatprep.subr.bf16.mxu1 %v10548_v23 }
  0xef   :  { %3852 = vmatpush2.bf16.msra.mxu0 %v10543_v33  ;;  %v335_v33 = vcombine.low %v279_v63, %v280_v0  ;;  %v360_v23 = vcombine.low %v281_v2, %v282_v3  ;;  %v10609_v63 = vld [vmem:[%s14669_s1 + $0x484] ss:$16 sps:$4 sm:$0xff]  }
  0xf0   :  { %3853 = vmatprep.subr.bf16.mxu0 %v10551_v24  ;;  %v385_v24 = vcombine.low %v283_v4, %v284_v12  ;;  %v12277_v4 = vcombine.low %v2820_v41, %v2834_v42  ;;  %v10643_v41 = vld [vmem:[%s14669_s1 + $0x5c0] ss:$16 sps:$4 sm:$0xff]   ;;  %v10648_v42 = vld [vmem:[%s14669_s1 + $0x1cc] ss:$16 sps:$4 sm:$0xff]  }
  0xf1   :  { %3905 = vmatpush2.bf16.msra.mxu1 %v10546_v31  ;;  %v10583_v31 = vld [vmem:[%s14669_s1 + $0x4e4] ss:$16 sps:$4 sm:$0xff]  }
  0xf2   :  { %3906 = vmatprep.subr.bf16.mxu1 %v10554_v34  ;;  %v342_v34 = vrot.slane %v335_v33, %v11333_v60  ;;  %v10619_v33 = vld [vmem:[%s14669_s1 + $0x440] ss:$16 sps:$4 sm:$0xff]  }
  0xf3   :  { %3854 = vmatpush2.bf16.msra.mxu0 %v10549_v32  ;;  %v317_v32 = vrot.slane %v310_v21, %v11333_v60  ;;  %v10621_v21 = vld [vmem:[%s14669_s1 + $0x444] ss:$16 sps:$4 sm:$0xff]  }
  0xf4   :  { %3855 = vmatprep.subr.bf16.mxu0 %v10557_v36  ;;  %v392_v36 = vrot.slane %v385_v24, %v11333_v60  ;;  %v10627_v24 = vld [vmem:[%s14669_s1 + $0x424] ss:$16 sps:$4 sm:$0xff]  }
  0xf5   :  { %3907 = vmatpush2.bf16.msra.mxu1 %v10552_v35  ;;  %v367_v35 = vrot.slane %v360_v23, %v11333_v60  ;;  %v2785_v45 = vcombine.low %v317_v32, %v342_v34  ;;  %v10624_v23 = vld [vmem:[%s14669_s1 + $0x4c] ss:$16 sps:$4 sm:$0xff]   ;;  %v10634_v32 = vld [vmem:[%s14669_s1 + $0x8] ss:$16 sps:$4 sm:$0xff]   ;;  %v10637_v34 = vld [vmem:[%s14669_s1 + $0x5e0] ss:$16 sps:$4 sm:$0xff]  }
  0xf6   :  { %3908 = vmatprep.subr.bf16.mxu1 %v10560_v39  ;;  %v12212_v39 = vcombine.low %v11938_v1, %v11957_v22  ;;  %v10589_v1 = vld [vmem:[%s14669_s1 + $0x4c4] ss:$16 sps:$4 sm:$0xff]   ;;  %v12225_v22 = vcombine.high %v2813_v15, %v2827_v30  ;;  %v10631_v15 = vld [vmem:[%s14669_s1 + $0x400] ss:$16 sps:$4 sm:$0xff]   ;;  %v10636_v30 = vld [vmem:[%s14669_s1 + $0xc] ss:$16 sps:$4 sm:$0xff]  }
  0xf7   :  { %3856 = vmatpush2.bf16.msra.mxu0 %v10555_v37  ;;  %v10570_v37 = vld [vmem:[%s14669_s1 + $0x300] ss:$16 sps:$4 sm:$0xff]   ;;  %v2786_v48 = vcombine.low %v367_v35, %v392_v36  ;;  %v12248_v10 = vrot.slane %v2785_v45, %v11333_v60  ;;  %v10642_v35 = vld [vmem:[%s14669_s1 + $0x1ec] ss:$16 sps:$4 sm:$0xff]   ;;  %v10640_v36 = vld [vmem:[%s14669_s1 + $0x1e8] ss:$16 sps:$4 sm:$0xff]  }
  0xf8   :  { %3857 = vmatprep.subr.bf16.mxu0 %v10563_v40  ;;  %v12229_v40 = vcombine.low %v12016_v8, %v12022_v11  ;;  %v10592_v8 = vld [vmem:[%s14669_s1 + $0xcc] ss:$16 sps:$4 sm:$0xff]   ;;  %v43_v45 = vld [vmem:[%s14668_s0 + $0x40] sm:$0x66] }
  0xf9   :  { %3909 = vmatpush2.bf16.msra.mxu1 %v10558_v5  ;;  %v12251_v20 = vrot.slane %v2786_v48, %v11333_v60  ;;  %v44_v48 = vld [vmem:[%s14668_s0 + $0x48] sm:$0x66] }
  0xfa   :  { %3910 = vmatprep.subr.bf16.mxu1 %v10566_v13  ;;  %v10615_v13 = vld [vmem:[%s14669_s1 + $0x464] ss:$16 sps:$4 sm:$0xff]  }
  0xfb   :  { %3858 = vmatpush2.bf16.msra.mxu0 %v10561_v6  ;;  %v12275_v0 = vcombine.high %v12248_v10, %v12251_v20  ;;  %v10596_v6 = vld [vmem:[%s14669_s1 + $0xa8] ss:$16 sps:$4 sm:$0xff]  }
  0xfc   :  { %3859 = vmatprep.subr.bf16.mxu0 %v10569_v19  ;;  %v10618_v19 = vld [vmem:[%s14669_s1 + $0x6c] ss:$16 sps:$4 sm:$0xff]  }
  0xfd   :  { %3911 = vmatpush2.bf16.msra.mxu1 %v10564_v25  ;;  %v10622_v25 = vld [vmem:[%s14669_s1 + $0x48] ss:$16 sps:$4 sm:$0xff]  }
  0xfe   :  { %3912 = vmatprep.subr.bf16.mxu1 %v10572_v29  ;;  %v10628_v29 = vld [vmem:[%s14669_s1 + $0x28] ss:$16 sps:$4 sm:$0xff]  }
  0xff   :  { %3860 = vmatpush2.bf16.msra.mxu0 %v10567_v26  ;;  %v10625_v26 = vld [vmem:[%s14669_s1 + $0x420] ss:$16 sps:$4 sm:$0xff]  }
 0x100   :  { %3935 = vmatprep.subr.bf16.mxu0 %v10583_v31  ;;  %v10639_v31 = vld [vmem:[%s14669_s1 + $0x5e4] ss:$16 sps:$4 sm:$0xff]  }
 0x101   :  { %3913 = vmatpush2.bf16.msra.mxu1 %v10570_v37  ;;  %v10645_v37 = vld [vmem:[%s14669_s1 + $0x5c4] ss:$16 sps:$4 sm:$0xff]  }
 0x102   :  { %v2465_v50 = vpop.f32.mrf.mxu0  ;;  %3862 = vmatmul.mubr.bf16.vlgmr.msra.gmra.mxu0 %v12212_v39  ;;  %3988 = vmatprep.subr.bf16.mxu1 %v10586_v43  ;;  %v41_v43 = vld [vmem:[%s14668_s0 + $0x30] sm:$0x66] }
 0x103   :  { %3936 = vmatpush1.bf16.msra.mxu0 %v10581_v46  ;;  %3871 = vmatprep.mubr.bf16.mxu0 %v12225_v22  ;;  %v2518_v56 = vpop.f32.mrf.mxu1  ;;  %v10651_v46 = vld [vmem:[%s14669_s1 + $0x5a4] ss:$16 sps:$4 sm:$0xff]  }
 0x104   :  { %v2467_v11 = vpop.f32.mrf.mxu0  ;;  %3937 = vmatprep.subr.bf16.mxu0 %v10589_v1  ;;  %3915 = vmatmul.mubr.bf16.vlgmr.msra.gmra.mxu1 %v12229_v40  ;;  %v12254_v57 = vadd.f32 %v2518_v56, %v2465_v50  ;;  %v42_v1 = vld [vmem:[%s14668_s0 + $0x38] sm:$0x66] }
 0x105   :  { %3989 = vmatpush1.bf16.msra.mxu1 %v10584_v51  ;;  %3924 = vmatprep.mubr.bf16.mxu1 %v12235_v52  ;;  %v2520_v62 = vpop.f32.mrf.mxu1  ;;  %v10646_v50 = vld [vmem:[%s14669_s1 + $0x1c8] ss:$16 sps:$4 sm:$0xff]   ;;  %v8731_v51 = vcombine.low %v41_v43, %v41_v43  ;;  %v8734_v56 = vcombine.high %v42_v1, %v42_v1 }
 0x106   :  { %v2469_v58 = vpop.f32.mrf.mxu0  ;;  %3990 = vmatprep.subr.bf16.mxu1 %v10592_v8  ;;  %v12268_v47 = vadd.f32 %v2520_v62, %v2467_v11  ;;  %v10654_v8 = vld [vmem:[%s14669_s1 + $0x1ac] ss:$16 sps:$4 sm:$0xff]   ;;  %v8732_v11 = vcombine.high %v41_v43, %v41_v43 }
 0x107   :  { %3938 = vmatpush1.bf16.msra.mxu0 %v10587_v54  ;;  %v2522_v2 = vpop.f32.mrf.mxu1  ;;  %v10649_v54 = vld [vmem:[%s14669_s1 + $0x5a0] ss:$16 sps:$4 sm:$0xff]  }
 0x108   :  { %3939 = vmatprep.subr.bf16.mxu0 %v10595_v44  ;;  %v2471_v3 = vpop.f32.mrf.mxu0  ;;  %v12279_v5 = vadd.f32 %v2522_v2, %v2469_v58  ;;  %v8733_v44 = vcombine.low %v42_v1, %v42_v1  ;;  %v10652_v58 = vld [vmem:[%s14669_s1 + $0x1a8] ss:$16 sps:$4 sm:$0xff]   ;;  %v8738_v2 = vcombine.high %v44_v48, %v44_v48 }
 0x109   :  { %3991 = vmatpush1.bf16.msra.mxu1 %v10590_v59  ;;  %v2524_v53 = vpop.f32.mrf.mxu1  ;;  %v10657_v59 = vld [vmem:[%s14669_s1 + $0x584] ss:$16 sps:$4 sm:$0xff]  }
 0x10a   :  { %3872 = vmatmul.mubr.bf16.gmra.mxu0 %v12259_v61  ;;  %3992 = vmatprep.subr.bf16.mxu1 %v10598_v38  ;;  %v12291_v12 = vadd.f32 %v2524_v53, %v2471_v3  ;;  %v8736_v38 = vcombine.high %v43_v45, %v43_v45  ;;  %v10655_v3 = vld [vmem:[%s14669_s1 + $0x580] ss:$16 sps:$4 sm:$0xff]   ;;  %v10663_v53 = vld [vmem:[%s14669_s1 + $0x564] ss:$16 sps:$4 sm:$0xff]  }
 0x10b   :  { %3940 = vmatpush1.bf16.msra.mxu0 %v10593_v14  ;;  %3967 = vmatprep.mubr.bf16.mxu0 %v12275_v0  ;;  %v8735_v14 = vcombine.low %v43_v45, %v43_v45 }
 0x10c   :  { %3941 = vmatprep.subr.bf16.mxu0 %v10609_v63  ;;  %3925 = vmatmul.mubr.bf16.gmra.mxu1 %v12277_v4  ;;  %v8737_v63 = vcombine.low %v44_v48, %v44_v48 }
 0x10d   :  { %3993 = vmatpush1.bf16.msra.mxu1 %v10596_v6  ;;  %4020 = vmatprep.mubr.bf16.mxu1 %v11982_v55  ;;  %v10616_v55 = vld [vmem:[%s14669_s1 + $0x68] ss:$16 sps:$4 sm:$0xff]   ;;  %v2475_v62 = vpop.f32.mrf.mxu0  ;;  %v10660_v6 = vld [vmem:[%s14669_s1 + $0x18c] ss:$16 sps:$4 sm:$0xff]  }
 0x10e   :  { %3994 = vmatprep.subr.bf16.mxu1 %v10612_v9  ;;  %v286_v9 = vrot.slane %v8732_v11, 1  ;;  %v10673_v11 = vld [vmem:[%s14669_s1 + $0x520] ss:$16 sps:$4 sm:$0xff]  }
 0x10f   :  { %3942 = vmatpush1.bf16.msra.mxu0 %v10607_v7  ;;  %v285_v7 = vrot.slane %v8731_v51, 1 }
 0x110   :  { %3943 = vmatprep.subr.bf16.mxu0 %v10615_v13  ;;  %v287_v13 = vrot.slane %v8733_v44, 1  ;;  %v10678_v44 = vld [vmem:[%s14669_s1 + $0x12c] ss:$16 sps:$4 sm:$0xff]  }
 0x111   :  { %3995 = vmatpush1.bf16.msra.mxu1 %v10610_v16  ;;  %v288_v16 = vrot.slane %v8734_v56, 1 }
 0x112   :  { %3996 = vmatprep.subr.bf16.mxu1 %v10618_v19  ;;  %v289_v19 = vrot.slane %v8735_v14, 1  ;;  %v10676_v14 = vld [vmem:[%s14669_s1 + $0x128] ss:$16 sps:$4 sm:$0xff]  }
 0x113   :  { %3944 = vmatpush1.bf16.msra.mxu0 %v10613_v18  ;;  %v2477_v18 = vpop.f32.mrf.mxu0 }
 0x114   :  { %3945 = vmatprep.subr.bf16.mxu0 %v10621_v21  ;;  %v290_v21 = vrot.slane %v8736_v38, 1  ;;  %v10679_v38 = vld [vmem:[%s14669_s1 + $0x500] ss:$16 sps:$4 sm:$0xff]  }
 0x115   :  { %3997 = vmatpush1.bf16.msra.mxu1 %v10616_v55  ;;  %v291_v55 = vrot.slane %v8737_v63, 1  ;;  %v10684_v63 = vld [vmem:[%s14669_s1 + $0x10c] ss:$16 sps:$4 sm:$0xff]  }
 0x116   :  { %3998 = vmatprep.subr.bf16.mxu1 %v10624_v23  ;;  %v10658_v23 = vld [vmem:[%s14669_s1 + $0x188] ss:$16 sps:$4 sm:$0xff]  }
 0x117   :  { %3946 = vmatpush1.bf16.msra.mxu0 %v10619_v33  ;;  %v292_v33 = vrot.slane %v8738_v2, 1  ;;  %v10695_v2 = vld [vmem:[%s14669_s1 + $0x2ec] ss:$16 sps:$4 sm:$0xff]  }
 0x118   :  { %3947 = vmatprep.subr.bf16.mxu0 %v10627_v24  ;;  %v10661_v24 = vld [vmem:[%s14669_s1 + $0x560] ss:$16 sps:$4 sm:$0xff]  }
 0x119   :  { %3999 = vmatpush1.bf16.msra.mxu1 %v10622_v25  ;;  %v10666_v25 = vld [vmem:[%s14669_s1 + $0x16c] ss:$16 sps:$4 sm:$0xff]  }
 0x11a   :  { %4000 = vmatprep.subr.bf16.mxu1 %v10630_v27  ;;  %v10669_v27 = vld [vmem:[%s14669_s1 + $0x544] ss:$16 sps:$4 sm:$0xff]  }
 0x11b   :  { %3948 = vmatpush1.bf16.msra.mxu0 %v10625_v26 }
 0x11c   :  { %3949 = vmatprep.subr.bf16.mxu0 %v10633_v28  ;;  %v2479_v28 = vpop.f32.mrf.mxu0 }
 0x11d   :  { %4001 = vmatpush1.bf16.msra.mxu1 %v10628_v29  ;;  %v410_v29 = vcombine.low %v285_v7, %v286_v9  ;;  %v12474_v7 = vcombine.low %v12248_v10, %v12251_v20  ;;  %v10693_v9 = vld [vmem:[%s14669_s1 + $0x2e8] ss:$16 sps:$4 sm:$0xff]  }
 0x11e   :  { %4002 = vmatprep.subr.bf16.mxu1 %v10636_v30  ;;  %v460_v30 = vcombine.low %v289_v19, %v290_v21  ;;  %v2481_v43 = vpop.f32.mrf.mxu0  ;;  %v10696_v20 = vld [vmem:[%s14669_s1 + $0x4e8] ss:$16 sps:$4 sm:$0xff]  }
 0x11f   :  { %3950 = vmatpush1.bf16.msra.mxu0 %v10631_v15  ;;  %v435_v15 = vcombine.low %v287_v13, %v288_v16  ;;  %v417_v1 = vrot.slane %v410_v29, %v11333_v60  ;;  %v10698_v13 = vld [vmem:[%s14669_s1 + $0x4ec] ss:$16 sps:$4 sm:$0xff]   ;;  %v10699_v21 = vld [vmem:[%s14669_s1 + $0x2c8] ss:$16 sps:$4 sm:$0xff]  }
 0x120   :  { %3951 = vmatprep.subr.bf16.mxu0 %v10639_v31  ;;  %v485_v31 = vcombine.low %v291_v55, %v292_v33  ;;  %v467_v48 = vrot.slane %v460_v30, %v11333_v60  ;;  %v10701_v16 = vld [vmem:[%s14669_s1 + $0x2cc] ss:$16 sps:$4 sm:$0xff]  }
 0x121   :  { %4003 = vmatpush1.bf16.msra.mxu1 %v10634_v32  ;;  %v442_v45 = vrot.slane %v435_v15, %v11333_v60  ;;  %v10704_v55 = vld [vmem:[%s14669_s1 + $0x4cc] ss:$16 sps:$4 sm:$0xff]   ;;  %v10716_v15 = vld [vmem:[%s14669_s1 + $0x4a8] ss:$16 sps:$4 sm:$0xff]  }
 0x122   :  { %4004 = vmatprep.subr.bf16.mxu1 %v10642_v35 }
 0x123   :  { %3952 = vmatpush2.bf16.msra.mxu0 %v10637_v34  ;;  %v10664_v34 = vld [vmem:[%s14669_s1 + $0x168] ss:$16 sps:$4 sm:$0xff]  }
 0x124   :  { %3953 = vmatprep.subr.bf16.mxu0 %v10645_v37  ;;  %v10672_v37 = vld [vmem:[%s14669_s1 + $0x14c] ss:$16 sps:$4 sm:$0xff]  }
 0x125   :  { %4005 = vmatpush2.bf16.msra.mxu1 %v10640_v36  ;;  %v10667_v36 = vld [vmem:[%s14669_s1 + $0x540] ss:$16 sps:$4 sm:$0xff]  }
 0x126   :  { %4006 = vmatprep.subr.bf16.mxu1 %v10648_v42 }
 0x127   :  { %3954 = vmatpush2.bf16.msra.mxu0 %v10643_v41 }
 0x128   :  { %3955 = vmatprep.subr.bf16.mxu0 %v10651_v46  ;;  %v10675_v46 = vld [vmem:[%s14669_s1 + $0x524] ss:$16 sps:$4 sm:$0xff]  }
 0x129   :  { %4007 = vmatpush2.bf16.msra.mxu1 %v10646_v50  ;;  %v2528_v26 = vpop.f32.mrf.mxu1  ;;  %v492_v50 = vrot.slane %v485_v31, %v11333_v60  ;;  %v10719_v31 = vld [vmem:[%s14669_s1 + $0x288] ss:$16 sps:$4 sm:$0xff]  }
 0x12a   :  { %4008 = vmatprep.subr.bf16.mxu1 %v10654_v8  ;;  %v12419_v32 = vadd.f32 %v2528_v26, %v2475_v62 }
 0x12b   :  { %3956 = vmatpush2.bf16.msra.mxu0 %v10649_v54  ;;  %v2530_v35 = vpop.f32.mrf.mxu1  ;;  %v10670_v54 = vld [vmem:[%s14669_s1 + $0x148] ss:$16 sps:$4 sm:$0xff]   ;;  %v2840_v62 = vcombine.low %v467_v48, %v492_v50  ;;  %v10739_v48 = vld [vmem:[%s14669_s1 + $0x22c] ss:$16 sps:$4 sm:$0xff]  }
 0x12c   :  { %3957 = vmatprep.subr.bf16.mxu0 %v10657_v59  ;;  %v12430_v41 = vadd.f32 %v2530_v35, %v2477_v18  ;;  %v2839_v59 = vcombine.low %v417_v1, %v442_v45  ;;  %v10727_v35 = vld [vmem:[%s14669_s1 + $0x26c] ss:$16 sps:$4 sm:$0xff]   ;;  %v10731_v1 = vld [vmem:[%s14669_s1 + $0x248] ss:$16 sps:$4 sm:$0xff]  }
 0x12d   :  { %4009 = vmatpush2.bf16.msra.mxu1 %v10652_v58  ;;  %v2532_v42 = vpop.f32.mrf.mxu1  ;;  %v10681_v58 = vld [vmem:[%s14669_s1 + $0x504] ss:$16 sps:$4 sm:$0xff]   ;;  %v10736_v45 = vld [vmem:[%s14669_s1 + $0x44c] ss:$16 sps:$4 sm:$0xff]   ;;  %v10734_v50 = vld [vmem:[%s14669_s1 + $0x448] ss:$16 sps:$4 sm:$0xff]  }
 0x12e   :  { %4010 = vmatprep.subr.bf16.mxu1 %v10660_v6  ;;  %v12439_v51 = vadd.f32 %v2532_v42, %v2479_v28  ;;  %v2854_v6 = vrot.slane %v2840_v62, %v11333_v60  ;;  %v10725_v42 = vld [vmem:[%s14669_s1 + $0x268] ss:$16 sps:$4 sm:$0xff]  }
 0x12f   :  { %3958 = vmatpush2.bf16.msra.mxu0 %v10655_v3  ;;  %v2534_v8 = vpop.f32.mrf.mxu1  ;;  %v2847_v3 = vrot.slane %v2839_v59, %v11333_v60  ;;  %v10746_v59 = vld [vmem:[%s14669_s1 + $0x408] ss:$16 sps:$4 sm:$0xff]  }
 0x130   :  { %3959 = vmatprep.subr.bf16.mxu0 %v10663_v53  ;;  %v12450_v56 = vadd.f32 %v2534_v8, %v2481_v43  ;;  %v10682_v53 = vld [vmem:[%s14669_s1 + $0x108] ss:$16 sps:$4 sm:$0xff]   ;;  %v10745_v8 = vld [vmem:[%s14669_s1 + $0x20c] ss:$16 sps:$4 sm:$0xff]  }
 0x131   :  { %4011 = vmatpush2.bf16.msra.mxu1 %v10658_v23  ;;  %v12485_v18 = vcombine.high %v2847_v3, %v2854_v6  ;;  %v10715_v23 = vld [vmem:[%s14669_s1 + $0x2ac] ss:$16 sps:$4 sm:$0xff]   ;;  %v12512_v26 = vcombine.low %v2847_v3, %v2854_v6  ;;  %v10749_v62 = vld [vmem:[%s14669_s1 + $0x3e8] ss:$16 sps:$4 sm:$0xff]  }
 0x132   :  { %4012 = vmatprep.subr.bf16.mxu1 %v10666_v25  ;;  %v10702_v25 = vld [vmem:[%s14669_s1 + $0x4c8] ss:$16 sps:$4 sm:$0xff]   ;;  %v10760_v3 = vld [vmem:[%s14669_s1 + $0x5cc] ss:$16 sps:$4 sm:$0xff]  }
 0x133   :  { %3960 = vmatpush2.bf16.msra.mxu0 %v10661_v24  ;;  %v10758_v6 = vld [vmem:[%s14669_s1 + $0x5c8] ss:$16 sps:$4 sm:$0xff]  }
 0x134   :  { %3961 = vmatprep.subr.bf16.mxu0 %v10669_v27 }
 0x135   :  { %4013 = vmatpush2.bf16.msra.mxu1 %v10664_v34 }
 0x136   :  { %4014 = vmatprep.subr.bf16.mxu1 %v10672_v37  ;;  %v10722_v37 = vld [vmem:[%s14669_s1 + $0x488] ss:$16 sps:$4 sm:$0xff]  }
 0x137   :  { %3962 = vmatpush2.bf16.msra.mxu0 %v10667_v36 }
 0x138   :  { %3963 = vmatprep.subr.bf16.mxu0 %v10675_v46 }
 0x139   :  { %4015 = vmatpush2.bf16.msra.mxu1 %v10670_v54  ;;  %v10742_v54 = vld [vmem:[%s14669_s1 + $0x42c] ss:$16 sps:$4 sm:$0xff]  }
 0x13a   :  { %4016 = vmatprep.subr.bf16.mxu1 %v10678_v44  ;;  %v10743_v44 = vld [vmem:[%s14669_s1 + $0x208] ss:$16 sps:$4 sm:$0xff]  }
 0x13b   :  { %3964 = vmatpush2.bf16.msra.mxu0 %v10673_v11  ;;  %v10740_v11 = vld [vmem:[%s14669_s1 + $0x428] ss:$16 sps:$4 sm:$0xff]  }
 0x13c   :  { %3965 = vmatprep.subr.bf16.mxu0 %v10681_v58  ;;  %v10751_v58 = vld [vmem:[%s14669_s1 + $0x3ec] ss:$16 sps:$4 sm:$0xff]  }
 0x13d   :  { %4017 = vmatpush2.bf16.msra.mxu1 %v10676_v14  ;;  %v10754_v14 = vld [vmem:[%s14669_s1 + $0x5ec] ss:$16 sps:$4 sm:$0xff]  }
 0x13e   :  { %4018 = vmatprep.subr.bf16.mxu1 %v10684_v63  ;;  %v10752_v63 = vld [vmem:[%s14669_s1 + $0x5e8] ss:$16 sps:$4 sm:$0xff]  }
 0x13f   :  { %3966 = vmatpush2.bf16.msra.mxu0 %v10679_v38  ;;  %v10757_v38 = vld [vmem:[%s14669_s1 + $0x3cc] ss:$16 sps:$4 sm:$0xff]  }
 0x140   :  { %4041 = vmatprep.subr.bf16.mxu0 %v10695_v2  ;;  %v10755_v2 = vld [vmem:[%s14669_s1 + $0x3c8] ss:$16 sps:$4 sm:$0xff]  }
 0x141   :  { %4019 = vmatpush2.bf16.msra.mxu1 %v10682_v53  ;;  %v10763_v53 = vld [vmem:[%s14669_s1 + $0x3ac] ss:$16 sps:$4 sm:$0xff]  }
 0x142   :  { %v2571_v10 = vpop.f32.mrf.mxu0  ;;  %3968 = vmatmul.mubr.bf16.vlgmr.msra.gmra.mxu0 %v12474_v7  ;;  %4094 = vmatprep.subr.bf16.mxu1 %v10698_v13  ;;  %v10761_v13 = vld [vmem:[%s14669_s1 + $0x3a8] ss:$16 sps:$4 sm:$0xff]  }
 0x143   :  { %v12492_v19 = vadd.f32 %v2571_v10, %v12254_v57  ;;  %4042 = vmatpush1.bf16.msra.mxu0 %v10693_v9  ;;  %3977 = vmatprep.mubr.bf16.mxu0 %v12485_v18  ;;  %v9411_v9 = vld [vmem:[%s14668_s0 + $0x10] sm:$0x77]  ;;  %v9412_v10 = vld [vmem:[%s14668_s0 + $0x18] sm:$0x77] }
 0x144   :  { %v2573_v33 = vpop.f32.mrf.mxu0  ;;  %4043 = vmatprep.subr.bf16.mxu0 %v10701_v16  ;;  %4021 = vmatmul.mubr.bf16.vlgmr.msra.gmra.mxu1 %v12212_v39  ;;  %v10713_v39 = vld [vmem:[%s14669_s1 + $0x2a8] ss:$16 sps:$4 sm:$0xff]   ;;  %v10766_v16 = vld [vmem:[%s14669_s1 + $0x5ac] ss:$16 sps:$4 sm:$0xff]  }
 0x145   :  { %v12506_v57 = vadd.f32 %v2573_v33, %v12268_v47  ;;  %4095 = vmatpush1.bf16.msra.mxu1 %v10696_v20  ;;  %4030 = vmatprep.mubr.bf16.mxu1 %v12225_v22  ;;  %v10718_v47 = vld [vmem:[%s14669_s1 + $0x4ac] ss:$16 sps:$4 sm:$0xff]   ;;  %v9413_v20 = vld [vmem:[%s14668_s0 + $0x20] sm:$0x77] }
 0x146   :  { %v2575_v24 = vpop.f32.mrf.mxu0  ;;  %4096 = vmatprep.subr.bf16.mxu1 %v10704_v55  ;;  %v10721_v22 = vld [vmem:[%s14669_s1 + $0x28c] ss:$16 sps:$4 sm:$0xff]   ;;  %v12650_v55 = vcombine.low %v9411_v9, %v9411_v9 }
 0x147   :  { %v12515_v27 = vadd.f32 %v2575_v24, %v12279_v5  ;;  %4044 = vmatpush1.bf16.msra.mxu0 %v10699_v21  ;;  %v9414_v21 = vld [vmem:[%s14668_s0 + $0x28] sm:$0x77]  ;;  %v9445_v24 = vcombine.low %v9412_v10, %v9412_v10 }
 0x148   :  { %v2577_v28 = vpop.f32.mrf.mxu0  ;;  %4045 = vmatprep.subr.bf16.mxu0 %v10715_v23  ;;  %v10769_v33 = vld [vmem:[%s14669_s1 + $0x38c] ss:$16 sps:$4 sm:$0xff]   ;;  %v9444_v23 = vcombine.high %v9411_v9, %v9411_v9 }
 0x149   :  { %v12527_v29 = vadd.f32 %v2577_v28, %v12291_v12  ;;  %4097 = vmatpush1.bf16.msra.mxu1 %v10702_v25  ;;  %v10724_v12 = vld [vmem:[%s14669_s1 + $0x48c] ss:$16 sps:$4 sm:$0xff]   ;;  %v9446_v25 = vcombine.high %v9412_v10, %v9412_v10  ;;  %v9447_v28 = vcombine.low %v9413_v20, %v9413_v20  ;;  %v10779_v10 = vld [vmem:[%s14669_s1 + $0x348] ss:$16 sps:$4 sm:$0xff]  }
 0x14a   :  { %v2581_v5 = vpop.f32.mrf.mxu0  ;;  %3978 = vmatmul.mubr.bf16.gmra.mxu0 %v12512_v26  ;;  %4098 = vmatprep.subr.bf16.mxu1 %v10718_v47  ;;  %v10764_v47 = vld [vmem:[%s14669_s1 + $0x5a8] ss:$16 sps:$4 sm:$0xff]  }
 0x14b   :  { %v12534_v30 = vadd.f32 %v2581_v5, %v12419_v32  ;;  %4046 = vmatpush1.bf16.msra.mxu0 %v10713_v39  ;;  %4073 = vmatprep.mubr.bf16.mxu0 %v12035_v17  ;;  %v10730_v17 = vld [vmem:[%s14669_s1 + $0x46c] ss:$16 sps:$4 sm:$0xff]   ;;  %v12655_v39 = vpop.f32.mrf.mxu1  ;;  %v9448_v5 = vcombine.high %v9413_v20, %v9413_v20 }
 0x14c   :  { %v2583_v34 = vpop.f32.mrf.mxu0  ;;  %4047 = vmatprep.subr.bf16.mxu0 %v10721_v22  ;;  %4031 = vmatmul.mubr.bf16.gmra.mxu1 %v12259_v61  ;;  %v10767_v22 = vld [vmem:[%s14669_s1 + $0x388] ss:$16 sps:$4 sm:$0xff]   ;;  %v10784_v20 = vld [vmem:[%s14669_s1 + $0x54c] ss:$16 sps:$4 sm:$0xff]  }
 0x14d   :  { %v12548_v32 = vadd.f32 %v2583_v34, %v12430_v41  ;;  %4099 = vmatpush1.bf16.msra.mxu1 %v10716_v15  ;;  %4126 = vmatprep.mubr.bf16.mxu1 %v12275_v0  ;;  %v10733_v41 = vld [vmem:[%s14669_s1 + $0x24c] ss:$16 sps:$4 sm:$0xff]   ;;  %v10728_v0 = vld [vmem:[%s14669_s1 + $0x468] ss:$16 sps:$4 sm:$0xff]   ;;  %v9449_v15 = vcombine.low %v9414_v21, %v9414_v21  ;;  %v4255_v34 = vshll.u32 %v12650_v55, 16 }
 0x14e   :  { %v2585_v36 = vpop.f32.mrf.mxu0  ;;  %4100 = vmatprep.subr.bf16.mxu1 %v10724_v12  ;;  %v10772_v12 = vld [vmem:[%s14669_s1 + $0x58c] ss:$16 sps:$4 sm:$0xff]  }
 0x14f   :  { %v12558_v46 = vadd.f32 %v2585_v36, %v12439_v51  ;;  %4048 = vmatpush1.bf16.msra.mxu0 %v10719_v31  ;;  %v10737_v51 = vld [vmem:[%s14669_s1 + $0x228] ss:$16 sps:$4 sm:$0xff]   ;;  %v9450_v31 = vcombine.high %v9414_v21, %v9414_v21  ;;  %v10775_v36 = vld [vmem:[%s14669_s1 + $0x36c] ss:$16 sps:$4 sm:$0xff]  }
 0x150   :  { %v2587_v61 = vpop.f32.mrf.mxu0  ;;  %4049 = vmatprep.subr.bf16.mxu0 %v10727_v35  ;;  %v10770_v35 = vld [vmem:[%s14669_s1 + $0x588] ss:$16 sps:$4 sm:$0xff]   ;;  %v10787_v21 = vld [vmem:[%s14669_s1 + $0x32c] ss:$16 sps:$4 sm:$0xff]  }
 0x151   :  { %v12567_v43 = vadd.f32 %v2587_v61, %v12450_v56  ;;  %4101 = vmatpush1.bf16.msra.mxu1 %v10722_v37  ;;  %v10748_v56 = vld [vmem:[%s14669_s1 + $0x40c] ss:$16 sps:$4 sm:$0xff]   ;;  %v4262_v37 = vshll.u32 %v9444_v23, 16  ;;  %v12673_v61 = vpop.f32.mrf.mxu1 }
 0x152   :  { %4102 = vmatprep.subr.bf16.mxu1 %v10730_v17  ;;  %v4276_v17 = vshll.u32 %v9446_v25, 16 }
 0x153   :  { %4050 = vmatpush1.bf16.msra.mxu0 %v10725_v42  ;;  %v4269_v42 = vshll.u32 %v9445_v24, 16 }
 0x154   :  { %4051 = vmatprep.subr.bf16.mxu0 %v10733_v41  ;;  %v10773_v41 = vld [vmem:[%s14669_s1 + $0x368] ss:$16 sps:$4 sm:$0xff]  }
 0x155   :  { %4103 = vmatpush1.bf16.msra.mxu1 %v10728_v0  ;;  %v10778_v0 = vld [vmem:[%s14669_s1 + $0x56c] ss:$16 sps:$4 sm:$0xff]  }
 0x156   :  { %4104 = vmatprep.subr.bf16.mxu1 %v10736_v45  ;;  %v10781_v45 = vld [vmem:[%s14669_s1 + $0x34c] ss:$16 sps:$4 sm:$0xff]  }
 0x157   :  { %4052 = vmatpush1.bf16.msra.mxu0 %v10731_v1  ;;  %v4283_v1 = vshll.u32 %v9447_v28, 16 }
 0x158   :  { %4053 = vmatprep.subr.bf16.mxu0 %v10739_v48  ;;  %v4253_v48 = vshrl.u32 %v12650_v55, 16 }
 0x159   :  { %4105 = vmatpush1.bf16.msra.mxu1 %v10734_v50  ;;  %v4290_v50 = vshll.u32 %v9448_v5, 16 }
 0x15a   :  { %4106 = vmatprep.subr.bf16.mxu1 %v10742_v54  ;;  %v4304_v54 = vshll.u32 %v9450_v31, 16 }
 0x15b   :  { %4054 = vmatpush1.bf16.msra.mxu0 %v10737_v51  ;;  %v4297_v51 = vshll.u32 %v9449_v15, 16 }
 0x15c   :  { %4055 = vmatprep.subr.bf16.mxu0 %v10745_v8  ;;  %v4257_v8 = vrot.slane %v4255_v34, 1  ;;  %v10790_v34 = vld [vmem:[%s14669_s1 + $0x52c] ss:$16 sps:$4 sm:$0xff]  }
 0x15d   :  { %4107 = vmatpush1.bf16.msra.mxu1 %v10740_v11  ;;  %v4260_v11 = vshrl.u32 %v9444_v23, 16  ;;  %v4299_v9 = vrot.slane %v4297_v51, 1  ;;  %v10148_v51 = vld.sshfl [vmem:[%s14668_s0 + $0x18] sm:$0xf pattern:$0x76325410] }
 0x15e   :  { %4108 = vmatprep.subr.bf16.mxu1 %v10748_v56  ;;  %v4274_v56 = vshrl.u32 %v9446_v25, 16 }
 0x15f   :  { %4056 = vmatpush1.bf16.msra.mxu0 %v10743_v44  ;;  %v4267_v44 = vshrl.u32 %v9445_v24, 16 }
 0x160   :  { %4057 = vmatprep.subr.bf16.mxu0 %v10751_v58  ;;  %v4264_v58 = vrot.slane %v4262_v37, 1  ;;  %v10791_v37 = vld [vmem:[%s14669_s1 + $0x308] ss:$16 sps:$4 sm:$0xff]  }
 0x161   :  { %4109 = vmatpush1.bf16.msra.mxu1 %v10746_v59  ;;  %v4271_v59 = vrot.slane %v4269_v42, 1  ;;  %v10796_v42 = vld [vmem:[%s14669_s1 + $0x50c] ss:$16 sps:$4 sm:$0xff]  }
 0x162   :  { %4110 = vmatprep.subr.bf16.mxu1 %v10754_v14  ;;  %v4281_v14 = vshrl.u32 %v9447_v28, 16  ;;  %v4265_v23 = vor.u32 %v4264_v58, %v4260_v11  ;;  %v10785_v28 = vld [vmem:[%s14669_s1 + $0x328] ss:$16 sps:$4 sm:$0xff]  }
 0x163   :  { %4058 = vmatpush2.bf16.msra.mxu0 %v10749_v62  ;;  %v4278_v62 = vrot.slane %v4276_v17, 1  ;;  %v4272_v24 = vor.u32 %v4271_v59, %v4267_v44  ;;  %v10799_v17 = vld [vmem:[%s14669_s1 + $0xce4] ss:$16 sps:$4 sm:$0xff]   ;;  %v10794_v11 = vld [vmem:[%s14669_s1 + $0x508] ss:$16 sps:$4 sm:$0xff]  }
 0x164   :  { %4059 = vmatprep.subr.bf16.mxu0 %v10757_v38  ;;  %v12685_v38 = vpop.f32.mrf.mxu1  ;;  %v10797_v44 = vld [vmem:[%s14669_s1 + $0xce0] ss:$16 sps:$4 sm:$0xff]  }
 0x165   :  { %4111 = vmatpush2.bf16.msra.mxu1 %v10752_v63  ;;  %v4285_v63 = vrot.slane %v4283_v1, 1  ;;  %v4279_v25 = vor.u32 %v4278_v62, %v4274_v56 }
 0x166   :  { %4112 = vmatprep.subr.bf16.mxu1 %v10760_v3  ;;  %v4295_v3 = vshrl.u32 %v9449_v15, 16  ;;  %v12699_v55 = vpop.f32.mrf.mxu1 }
 0x167   :  { %4060 = vmatpush2.bf16.msra.mxu0 %v10755_v2  ;;  %v4288_v2 = vshrl.u32 %v9448_v5, 16 }
 0x168   :  { %4061 = vmatprep.subr.bf16.mxu0 %v10763_v53  ;;  %v4292_v53 = vrot.slane %v4290_v50, 1  ;;  %v4300_v15 = vor.u32 %v4299_v9, %v4295_v3  ;;  %v10147_v50 = vld.sshfl [vmem:[%s14668_s0 + $0x10] sm:$0xf pattern:$0x76325410] }
 0x169   :  { %4113 = vmatpush2.bf16.msra.mxu1 %v10758_v6  ;;  %v10776_v6 = vld [vmem:[%s14669_s1 + $0x568] ss:$16 sps:$4 sm:$0xff]   ;;  %v9667_v3 = vcombine.low %v10147_v50, %v10148_v51  ;;  %v10800_v9 = vld [vmem:[%s14669_s1 + $0xee0] ss:$16 sps:$4 sm:$0xff]  }
 0x16a   :  { %4114 = vmatprep.subr.bf16.mxu1 %v10766_v16  ;;  %v4306_v16 = vrot.slane %v4304_v54, 1  ;;  %v4293_v5 = vor.u32 %v4292_v53, %v4288_v2  ;;  %v10149_v54 = vld.sshfl [vmem:[%s14668_s0 + $0x20] sm:$0xf pattern:$0x76325410] }
 0x16b   :  { %4062 = vmatpush2.bf16.msra.mxu0 %v10761_v13  ;;  %v4302_v13 = vshrl.u32 %v9450_v31, 16  ;;  %v10805_v2 = vld [vmem:[%s14669_s1 + $0xcc4] ss:$16 sps:$4 sm:$0xff]  }
 0x16c   :  { %4063 = vmatprep.subr.bf16.mxu0 %v10769_v33  ;;  %v4258_v33 = vor.u32 %v4257_v8, %v4253_v48  ;;  %v10150_v8 = vld.sshfl [vmem:[%s14668_s0 + $0x28] sm:$0xf pattern:$0x76325410] }
 0x16d   :  { %4115 = vmatpush2.bf16.msra.mxu1 %v10764_v47  ;;  %v10782_v47 = vld [vmem:[%s14669_s1 + $0x548] ss:$16 sps:$4 sm:$0xff]   ;;  %v4307_v31 = vor.u32 %v4306_v16, %v4302_v13  ;;  %v10803_v13 = vld [vmem:[%s14669_s1 + $0xcc0] ss:$16 sps:$4 sm:$0xff]  }
 0x16e   :  { %4116 = vmatprep.subr.bf16.mxu1 %v10772_v12  ;;  %v12707_v12 = vpop.f32.mrf.mxu1 }
 0x16f   :  { %4064 = vmatpush2.bf16.msra.mxu0 %v10767_v22  ;;  %v4286_v22 = vor.u32 %v4285_v63, %v4281_v14  ;;  %v10802_v63 = vld [vmem:[%s14669_s1 + $0xee4] ss:$16 sps:$4 sm:$0xff]  }
 0x170   :  { %4065 = vmatprep.subr.bf16.mxu0 %v10775_v36  ;;  %v10788_v36 = vld [vmem:[%s14669_s1 + $0x528] ss:$16 sps:$4 sm:$0xff]   ;;  %v12727_v48 = vpop.f32.mrf.mxu1 }
 0x171   :  { %4117 = vmatpush2.bf16.msra.mxu1 %v10770_v35  ;;  %v10793_v35 = vld [vmem:[%s14669_s1 + $0x30c] ss:$16 sps:$4 sm:$0xff]   ;;  %v4471_v1 = vcombine.low %v4286_v22, %v4293_v5 }
 0x172   :  { %4118 = vmatprep.subr.bf16.mxu1 %v10778_v0  ;;  %v4446_v0 = vcombine.low %v4272_v24, %v4279_v25  ;;  %v12751_v14 = vpop.f32.mrf.mxu1  ;;  %v12777_v24 = vrot.slane %v9667_v3, %v11333_v60  ;;  %v10824_v3 = vld [vmem:[%s14669_s1 + $0xe60] ss:$16 sps:$4 sm:$0xff]  }
 0x173   :  { %4066 = vmatpush2.bf16.msra.mxu0 %v10773_v41  ;;  %v4421_v41 = vcombine.low %v4258_v33, %v4265_v23  ;;  %v4485_v59 = vrot.slane %v4471_v1, %v11333_v60  ;;  %v10811_v23 = vld [vmem:[%s14669_s1 + $0xca4] ss:$16 sps:$4 sm:$0xff]  }
 0x174   :  { %4067 = vmatprep.subr.bf16.mxu0 %v10781_v45  ;;  %v4496_v45 = vcombine.low %v4300_v15, %v4307_v31  ;;  %v4460_v58 = vrot.slane %v4446_v0, %v11333_v60  ;;  %v10812_v0 = vld [vmem:[%s14669_s1 + $0xea0] ss:$16 sps:$4 sm:$0xff]  }
 0x175   :  { %4119 = vmatpush2.bf16.msra.mxu1 %v10776_v6  ;;  %v4435_v56 = vrot.slane %v4421_v41, %v11333_v60  ;;  %v9669_v6 = vcombine.low %v10149_v54, %v10150_v8  ;;  %v10818_v8 = vld [vmem:[%s14669_s1 + $0xe80] ss:$16 sps:$4 sm:$0xff]  }
 0x176   :  { %4120 = vmatprep.subr.bf16.mxu1 %v10784_v20  ;;  %v4510_v62 = vrot.slane %v4496_v45, %v11333_v60  ;;  %v12766_v20 = vpop.f32.mrf.mxu1 }
 0x177   :  { %4068 = vmatpush2.bf16.msra.mxu0 %v10779_v10  ;;  %v9668_v16 = vcombine.low %v4435_v56, %v4460_v58  ;;  %v12780_v25 = vrot.slane %v9669_v6, %v11333_v60 }
 0x178   :  { %4069 = vmatprep.subr.bf16.mxu0 %v10787_v21  ;;  %v9670_v10 = vcombine.low %v4485_v59, %v4510_v62 }
 0x179   :  { %4121 = vmatpush2.bf16.msra.mxu1 %v10782_v47  ;;  %v12791_v5 = vrot.slane %v9668_v16, %v11333_v60  ;;  %v10827_v16 = vld [vmem:[%s14669_s1 + $0xc40] ss:$16 sps:$4 sm:$0xff]  }
 0x17a   :  { %4122 = vmatprep.subr.bf16.mxu1 %v10790_v34  ;;  %v12794_v15 = vrot.slane %v9670_v10, %v11333_v60  ;;  %v10814_v34 = vld [vmem:[%s14669_s1 + $0xea4] ss:$16 sps:$4 sm:$0xff]  }
 0x17b   :  { %4070 = vmatpush2.bf16.msra.mxu0 %v10785_v28  ;;  %v10832_v10 = vld [vmem:[%s14669_s1 + $0xe44] ss:$16 sps:$4 sm:$0xff]  }
 0x17c   :  { %4071 = vmatprep.subr.bf16.mxu0 %v10793_v35  ;;  %v12821_v1 = vcombine.high %v12791_v5, %v12794_v15 }
 0x17d   :  { %4123 = vmatpush2.bf16.msra.mxu1 %v10788_v36  ;;  %v10817_v36 = vld [vmem:[%s14669_s1 + $0xc84] ss:$16 sps:$4 sm:$0xff]  }
 0x17e   :  { %4124 = vmatprep.subr.bf16.mxu1 %v10796_v42 }
 0x17f   :  { %4072 = vmatpush2.bf16.msra.mxu0 %v10791_v37 }
 0x180   :  { %5893 = vmatprep.subr.bf16.mxu0 %v10799_v17 }
 0x181   :  { %4125 = vmatpush2.bf16.msra.mxu1 %v10794_v11 }
 0x182   :  { %v2677_v53 = vpop.f32.mrf.mxu0  ;;  %4074 = vmatmul.mubr.bf16.vlgmr.msra.gmra.mxu0 %v12229_v40  ;;  %5946 = vmatprep.subr.bf16.mxu1 %v10802_v63  ;;  %v10808_v40 = vld [vmem:[%s14669_s1 + $0xec4] ss:$16 sps:$4 sm:$0xff]   ;;  %v10821_v63 = vld [vmem:[%s14669_s1 + $0xc60] ss:$16 sps:$4 sm:$0xff]  }
 0x183   :  { %v2678_v21 = vadd.f32 %v2677_v53, %v12655_v39  ;;  %5894 = vmatpush1.bf16.msra.mxu0 %v10797_v44  ;;  %4083 = vmatprep.mubr.bf16.mxu0 %v12235_v52  ;;  %v10806_v52 = vld [vmem:[%s14669_s1 + $0xec0] ss:$16 sps:$4 sm:$0xff]  }
 0x184   :  { %v2679_v33 = vpop.f32.mrf.mxu0  ;;  %5895 = vmatprep.subr.bf16.mxu0 %v10805_v2  ;;  %v2730_v39 = vpop.f32.mrf.mxu1  ;;  %4127 = vmatmul.mubr.bf16.vlgmr.msra.gmra.mxu1 %v12474_v7 }
 0x185   :  { %v2680_v47 = vadd.f32 %v2679_v33, %v12673_v61  ;;  %v12784_v28 = vadd.f32 %v2730_v39, %v2678_v21  ;;  %5947 = vmatpush1.bf16.msra.mxu1 %v10800_v9  ;;  %4136 = vmatprep.mubr.bf16.mxu1 %v12485_v18  ;;  %v10809_v61 = vld [vmem:[%s14669_s1 + $0xca0] ss:$16 sps:$4 sm:$0xff]   ;;  %v10841_v39 = vld [vmem:[%s14669_s1 + $0xc04] ss:$16 sps:$4 sm:$0xff]  }
 0x186   :  { %v2681_v22 = vpop.f32.mrf.mxu0  ;;  %v2732_v31 = vpop.f32.mrf.mxu1  ;;  %5948 = vmatprep.subr.bf16.mxu1 %v10808_v40  ;;  %v10830_v40 = vld [vmem:[%s14669_s1 + $0xe40] ss:$16 sps:$4 sm:$0xff]  }
 0x187   :  { %v2682_v7 = vadd.f32 %v2681_v22, %v12685_v38  ;;  %5896 = vmatpush1.bf16.msra.mxu0 %v10803_v13  ;;  %v12803_v18 = vadd.f32 %v2732_v31, %v2680_v47  ;;  %v12810_v38 = vcombine.high %v12777_v24, %v12780_v25  ;;  %v10833_v33 = vld [vmem:[%s14669_s1 + $0xc20] ss:$16 sps:$4 sm:$0xff]   ;;  %v10847_v31 = vld [vmem:[%s14669_s1 + $0xde4] ss:$16 sps:$4 sm:$0xff]  }
 0x188   :  { %v2683_v35 = vpop.f32.mrf.mxu0  ;;  %5897 = vmatprep.subr.bf16.mxu0 %v10811_v23  ;;  %v2734_v37 = vpop.f32.mrf.mxu1  ;;  %v10838_v23 = vld [vmem:[%s14669_s1 + $0xe24] ss:$16 sps:$4 sm:$0xff]   ;;  %v10836_v47 = vld [vmem:[%s14669_s1 + $0xe20] ss:$16 sps:$4 sm:$0xff]  }
 0x189   :  { %v2684_v42 = vadd.f32 %v2683_v35, %v12699_v55  ;;  %v12813_v17 = vadd.f32 %v2734_v37, %v2682_v7  ;;  %5949 = vmatpush1.bf16.msra.mxu1 %v10806_v52  ;;  %v10815_v55 = vld [vmem:[%s14669_s1 + $0xc80] ss:$16 sps:$4 sm:$0xff]   ;;  %v10844_v52 = vld [vmem:[%s14669_s1 + $0xe04] ss:$16 sps:$4 sm:$0xff]  }
 0x18a   :  { %v2687_v41 = vpop.f32.mrf.mxu0  ;;  %4084 = vmatmul.mubr.bf16.gmra.mxu0 %v12277_v4  ;;  %v2736_v45 = vpop.f32.mrf.mxu1  ;;  %5950 = vmatprep.subr.bf16.mxu1 %v10814_v34  ;;  %v10820_v4 = vld [vmem:[%s14669_s1 + $0xe84] ss:$16 sps:$4 sm:$0xff]   ;;  %v10839_v22 = vld [vmem:[%s14669_s1 + $0xc00] ss:$16 sps:$4 sm:$0xff]  }
 0x18b   :  { %v2688_v50 = vadd.f32 %v2687_v41, %v12707_v12  ;;  %5898 = vmatpush1.bf16.msra.mxu0 %v10809_v61  ;;  %v12830_v51 = vadd.f32 %v2736_v45, %v2684_v42  ;;  %v10823_v12 = vld [vmem:[%s14669_s1 + $0xc64] ss:$16 sps:$4 sm:$0xff]   ;;  %5925 = vmatprep.mubr.bf16.mxu0 %v12810_v38  ;;  %v9416_v61 = vld [vmem:[%s14668_s0 + $0x48] sm:$0x77]  ;;  %v10842_v34 = vld [vmem:[%s14669_s1 + $0xe00] ss:$16 sps:$4 sm:$0xff]  }
 0x18c   :  { %v2689_v54 = vpop.f32.mrf.mxu0  ;;  %5899 = vmatprep.subr.bf16.mxu0 %v10817_v36  ;;  %v2740_v44 = vpop.f32.mrf.mxu1  ;;  %4137 = vmatmul.mubr.bf16.gmra.mxu1 %v12512_v26  ;;  %v9415_v7 = vld [vmem:[%s14668_s0 + $0x40] sm:$0x77]  ;;  %v9417_v42 = vld [vmem:[%s14668_s0 + $0x50] sm:$0x77]  ;;  %v9418_v41 = vld [vmem:[%s14668_s0 + $0x58] sm:$0x77] }
 0x18d   :  { %v2690_v11 = vadd.f32 %v2689_v54, %v12727_v48  ;;  %5951 = vmatpush1.bf16.msra.mxu1 %v10812_v0  ;;  %v12841_v56 = vadd.f32 %v2740_v44, %v2688_v50  ;;  %5978 = vmatprep.mubr.bf16.mxu1 %v12821_v1  ;;  %v10826_v48 = vld [vmem:[%s14669_s1 + $0xe64] ss:$16 sps:$4 sm:$0xff]   ;;  %v10845_v35 = vld [vmem:[%s14669_s1 + $0xde0] ss:$16 sps:$4 sm:$0xff]   ;;  %v9451_v0 = vcombine.low %v9415_v7, %v9415_v7 }
 0x18e   :  { %v2691_v58 = vpop.f32.mrf.mxu0  ;;  %v2742_v62 = vpop.f32.mrf.mxu1  ;;  %5952 = vmatprep.subr.bf16.mxu1 %v10820_v4  ;;  %v10850_v36 = vld [vmem:[%s14669_s1 + $0xfe4] ss:$16 sps:$4 sm:$0xff]   ;;  %v9452_v45 = vcombine.high %v9415_v7, %v9415_v7  ;;  %v9453_v50 = vcombine.low %v9416_v61, %v9416_v61  ;;  %v9455_v4 = vcombine.low %v9417_v42, %v9417_v42  ;;  %v10848_v54 = vld [vmem:[%s14669_s1 + $0xfe0] ss:$16 sps:$4 sm:$0xff]   ;;  %v9457_v44 = vcombine.low %v9418_v41, %v9418_v41 }
 0x18f   :  { %v2692_v59 = vadd.f32 %v2691_v58, %v12751_v14  ;;  %5900 = vmatpush1.bf16.msra.mxu0 %v10815_v55  ;;  %v12851_v26 = vadd.f32 %v2742_v62, %v2690_v11  ;;  %v10829_v14 = vld [vmem:[%s14669_s1 + $0xc44] ss:$16 sps:$4 sm:$0xff]   ;;  %v9454_v55 = vcombine.high %v9416_v61, %v9416_v61  ;;  %v9456_v11 = vcombine.high %v9417_v42, %v9417_v42 }
 0x190   :  { %v2693_v2 = vpop.f32.mrf.mxu0  ;;  %5901 = vmatprep.subr.bf16.mxu0 %v10823_v12  ;;  %v2744_v53 = vpop.f32.mrf.mxu1  ;;  %v10853_v37 = vld [vmem:[%s14669_s1 + $0xdc4] ss:$16 sps:$4 sm:$0xff]   ;;  %v9458_v58 = vcombine.high %v9418_v41, %v9418_v41  ;;  %v4311_v62 = vshll.u32 %v9451_v0, 16 }
 0x191   :  { %v2694_v6 = vadd.f32 %v2693_v2, %v12766_v20  ;;  %5953 = vmatpush1.bf16.msra.mxu1 %v10818_v8  ;;  %v12860_v9 = vadd.f32 %v2744_v53, %v2692_v59  ;;  %v10835_v20 = vld [vmem:[%s14669_s1 + $0xc24] ss:$16 sps:$4 sm:$0xff]   ;;  %v10851_v8 = vld [vmem:[%s14669_s1 + $0xdc0] ss:$16 sps:$4 sm:$0xff]   ;;  %v4325_v2 = vshll.u32 %v9453_v50, 16  ;;  %v4339_v53 = vshll.u32 %v9455_v4, 16 }
 0x192   :  { %v2746_v13 = vpop.f32.mrf.mxu1  ;;  %5954 = vmatprep.subr.bf16.mxu1 %v10826_v48  ;;  %v10856_v12 = vld [vmem:[%s14669_s1 + $0xfc4] ss:$16 sps:$4 sm:$0xff]   ;;  %v4318_v48 = vshll.u32 %v9452_v45, 16 }
 0x193   :  { %5902 = vmatpush1.bf16.msra.mxu0 %v10821_v63  ;;  %v12868_v21 = vadd.f32 %v2746_v13, %v2694_v6  ;;  %v10859_v59 = vld [vmem:[%s14669_s1 + $0xda4] ss:$16 sps:$4 sm:$0xff]   ;;  %v10854_v63 = vld [vmem:[%s14669_s1 + $0xfc0] ss:$16 sps:$4 sm:$0xff]   ;;  %v4332_v6 = vshll.u32 %v9454_v55, 16 }
 0x194   :  { %5903 = vmatprep.subr.bf16.mxu0 %v10829_v14  ;;  %v10862_v14 = vld [vmem:[%s14669_s1 + $0xfa4] ss:$16 sps:$4 sm:$0xff]  }
 0x195   :  { %14677 = vst [vmem:[#allocation6_spill] sm:$0xff] %v12868_v21  ;;  %5955 = vmatpush1.bf16.msra.mxu1 %v10824_v3  ;;  %v10857_v3 = vld [vmem:[%s14669_s1 + $0xda0] ss:$16 sps:$4 sm:$0xff]   ;;  %v10865_v13 = vld [vmem:[%s14669_s1 + $0xd84] ss:$16 sps:$4 sm:$0xff]  }
 0x196   :  { %5956 = vmatprep.subr.bf16.mxu1 %v10832_v10  ;;  %v4353_v10 = vshll.u32 %v9457_v44, 16 }
 0x197   :  { %5904 = vmatpush1.bf16.msra.mxu0 %v10827_v16  ;;  %v4346_v16 = vshll.u32 %v9456_v11, 16 }
 0x198   :  { %5905 = vmatprep.subr.bf16.mxu0 %v10835_v20  ;;  %v4360_v20 = vshll.u32 %v9458_v58, 16 }
 0x199   :  { %5957 = vmatpush1.bf16.msra.mxu1 %v10830_v40  ;;  %v4309_v40 = vshrl.u32 %v9451_v0, 16 }
 0x19a   :  { %5958 = vmatprep.subr.bf16.mxu1 %v10838_v23  ;;  %v4316_v23 = vshrl.u32 %v9452_v45, 16 }
 0x19b   :  { %5906 = vmatpush1.bf16.msra.mxu0 %v10833_v33  ;;  %v4313_v33 = vrot.slane %v4311_v62, 1 }
 0x19c   :  { %5907 = vmatprep.subr.bf16.mxu0 %v10841_v39  ;;  %v4323_v39 = vshrl.u32 %v9453_v50, 16 }
 0x19d   :  { %5959 = vmatpush1.bf16.msra.mxu1 %v10836_v47  ;;  %v4320_v47 = vrot.slane %v4318_v48, 1 }
 0x19e   :  { %5960 = vmatprep.subr.bf16.mxu1 %v10844_v52  ;;  %v4330_v52 = vshrl.u32 %v9454_v55, 16 }
 0x19f   :  { %5908 = vmatpush1.bf16.msra.mxu0 %v10839_v22  ;;  %v4327_v22 = vrot.slane %v4325_v2, 1 }
 0x1a0   :  { %5909 = vmatprep.subr.bf16.mxu0 %v10847_v31  ;;  %v4337_v31 = vshrl.u32 %v9455_v4, 16 }
 0x1a1   :  { %5961 = vmatpush1.bf16.msra.mxu1 %v10842_v34 }
 0x1a2   :  { %5962 = vmatprep.subr.bf16.mxu1 %v10850_v36 }
 0x1a3   :  { %5910 = vmatpush2.bf16.msra.mxu0 %v10845_v35 }
 0x1a4   :  { %5911 = vmatprep.subr.bf16.mxu0 %v10853_v37 }
 0x1a5   :  { %5963 = vmatpush2.bf16.msra.mxu1 %v10848_v54 }
 0x1a6   :  { %5964 = vmatprep.subr.bf16.mxu1 %v10856_v12 }
 0x1a7   :  { %5912 = vmatpush2.bf16.msra.mxu0 %v10851_v8 }
 0x1a8   :  { %5913 = vmatprep.subr.bf16.mxu0 %v10859_v59 }
 0x1a9   :  { %10 = vsyncpa [#allocation3], 0  ;;  %v4334_v7 = vrot.slane %v4332_v6, 1  ;;  %v4341_v61 = vrot.slane %v4339_v53, 1  ;;  %v4344_v34 = vshrl.u32 %v9456_v11, 16  ;;  %v4351_v35 = vshrl.u32 %v9457_v44, 16  ;;  %5965 = vmatpush2.bf16.msra.mxu1 %v10854_v63 }
 0x1aa   :  { %v10860_v36 = vld [vmem:[%s14669_s1 + $0xfa0] ss:$16 sps:$4 sm:$0xff]   ;;  %v4348_v37 = vrot.slane %v4346_v16, 1  ;;  %v4355_v42 = vrot.slane %v4353_v10, 1  ;;  %v4358_v41 = vshrl.u32 %v9458_v58, 16  ;;  %v4362_v0 = vrot.slane %v4360_v20, 1  ;;  %5966 = vmatprep.subr.bf16.mxu1 %v10862_v14 }
 0x1ab   :  { %5914 = vmatpush2.bf16.msra.mxu0 %v10857_v3  ;;  %v10863_v45 = vld [vmem:[%s14669_s1 + $0xd80] ss:$16 sps:$4 sm:$0xff]   ;;  %v10868_v50 = vld [vmem:[%s14669_s1 + $0xf84] ss:$16 sps:$4 sm:$0xff]   ;;  %v4314_v54 = vor.u32 %v4313_v33, %v4309_v40  ;;  %v9420_v8 = vld [vmem:[%s14668_s0 + $0x18] sm:$0x66]  ;;  %v4321_v12 = vor.u32 %v4320_v47, %v4316_v23  ;;  %v4328_v11 = vor.u32 %v4327_v22, %v4323_v39  ;;  %v4335_v44 = vor.u32 %v4334_v7, %v4330_v52 }
 0x1ac   :  { %v9419_v55 = vld [vmem:[%s14668_s0 + $0x10] sm:$0x66]  ;;  %5915 = vmatprep.subr.bf16.mxu0 %v10865_v13  ;;  %v4342_v58 = vor.u32 %v4341_v61, %v4337_v31  ;;  %v9421_v59 = vld [vmem:[%s14668_s0 + $0x20] sm:$0x66]  ;;  %v9422_v62 = vld [vmem:[%s14668_s0 + $0x28] sm:$0x66]  ;;  %v4349_v48 = vor.u32 %v4348_v37, %v4344_v34  ;;  %v4356_v2 = vor.u32 %v4355_v42, %v4351_v35  ;;  %v4363_v3 = vor.u32 %v4362_v0, %v4358_v41 }
 0x1ad   :  { %v10871_v4 = vld [vmem:[%s14669_s1 + $0xd64] ss:$16 sps:$4 sm:$0xff]   ;;  %5967 = vmatpush2.bf16.msra.mxu1 %v10860_v36  ;;  %v10866_v63 = vld [vmem:[%s14669_s1 + $0xf80] ss:$16 sps:$4 sm:$0xff]   ;;  %v9459_v14 = vcombine.low %v9419_v55, %v9419_v55  ;;  %v9460_v13 = vcombine.high %v9419_v55, %v9419_v55  ;;  %v9461_v16 = vcombine.low %v9420_v8, %v9420_v8  ;;  %v9462_v10 = vcombine.high %v9420_v8, %v9420_v8 }
 0x1ae   :  { %5968 = vmatprep.subr.bf16.mxu1 %v10868_v50  ;;  %v10869_v6 = vld [vmem:[%s14669_s1 + $0xd60] ss:$16 sps:$4 sm:$0xff]   ;;  %v10874_v53 = vld [vmem:[%s14669_s1 + $0xf64] ss:$16 sps:$4 sm:$0xff]   ;;  %v9463_v40 = vcombine.low %v9421_v59, %v9421_v59  ;;  %v9464_v33 = vcombine.high %v9421_v59, %v9421_v59  ;;  %v9465_v23 = vcombine.low %v9422_v62, %v9422_v62  ;;  %v9466_v39 = vcombine.high %v9422_v62, %v9422_v62 }
 0x1af   :  { %5916 = vmatpush2.bf16.msra.mxu0 %v10863_v45  ;;  %v10877_v20 = vld [vmem:[%s14669_s1 + $0xd44] ss:$16 sps:$4 sm:$0xff]   ;;  %v10872_v47 = vld [vmem:[%s14669_s1 + $0xf60] ss:$16 sps:$4 sm:$0xff]   ;;  %v4521_v34 = vcombine.low %v4314_v54, %v4321_v12  ;;  %v4546_v35 = vcombine.low %v4328_v11, %v4335_v44  ;;  %v4571_v36 = vcombine.low %v4342_v58, %v4349_v48  ;;  %v4596_v37 = vcombine.low %v4356_v2, %v4363_v3 }
 0x1b0   :  { %5917 = vmatprep.subr.bf16.mxu0 %v10871_v4  ;;  %v10875_v22 = vld [vmem:[%s14669_s1 + $0xd40] ss:$16 sps:$4 sm:$0xff]   ;;  %v10152_v31 = vld.sshfl [vmem:[%s14668_s0 + $0x48] sm:$0xf pattern:$0x76325410] }
 0x1b1   :  { %5969 = vmatpush2.bf16.msra.mxu1 %v10866_v63  ;;  %v10151_v52 = vld.sshfl [vmem:[%s14668_s0 + $0x40] sm:$0xf pattern:$0x76325410]  ;;  %v4404_v41 = vrot.slane %v9459_v14, 1  ;;  %v4405_v0 = vrot.slane %v9460_v13, 1  ;;  %v4535_v44 = vrot.slane %v4521_v34, %v11333_v60  ;;  %v4560_v58 = vrot.slane %v4546_v35, %v11333_v60 }
 0x1b2   :  { %v10153_v7 = vld.sshfl [vmem:[%s14668_s0 + $0x50] sm:$0xf pattern:$0x76325410]  ;;  %5970 = vmatprep.subr.bf16.mxu1 %v10874_v53  ;;  %v4406_v45 = vrot.slane %v9461_v16, 1  ;;  %v4407_v50 = vrot.slane %v9462_v10, 1  ;;  %v4585_v59 = vrot.slane %v4571_v36, %v11333_v60  ;;  %v4610_v62 = vrot.slane %v4596_v37, %v11333_v60 }
 0x1b3   :  { %v10154_v61 = vld.sshfl [vmem:[%s14668_s0 + $0x58] sm:$0xf pattern:$0x76325410]  ;;  %5918 = vmatpush2.bf16.msra.mxu0 %v10869_v6  ;;  %v10880_v42 = vld [vmem:[%s14669_s1 + $0xf44] ss:$16 sps:$4 sm:$0xff]   ;;  %v9671_v2 = vcombine.low %v10151_v52, %v10152_v31  ;;  %v4437_v6 = vcombine.low %v4404_v41, %v4405_v0  ;;  %v13044_v35 = vcombine.low %v12777_v24, %v12780_v25 }
 0x1b4   :  { %5919 = vmatprep.subr.bf16.mxu0 %v10877_v20  ;;  %v10883_v55 = vld [vmem:[%s14669_s1 + $0xd24] ss:$16 sps:$4 sm:$0xff]   ;;  %v4408_v4 = vrot.slane %v9463_v40, 1  ;;  %v4409_v54 = vrot.slane %v9464_v33, 1  ;;  %v4410_v8 = vrot.slane %v9465_v23, 1  ;;  %v4411_v12 = vrot.slane %v9466_v39, 1 }
 0x1b5   :  { %5971 = vmatpush2.bf16.msra.mxu1 %v10872_v47  ;;  %v10878_v11 = vld [vmem:[%s14669_s1 + $0xf40] ss:$16 sps:$4 sm:$0xff]   ;;  %v10886_v48 = vld [vmem:[%s14669_s1 + $0xf24] ss:$16 sps:$4 sm:$0xff]   ;;  %v9673_v3 = vcombine.low %v10153_v7, %v10154_v61  ;;  %v4462_v53 = vcombine.low %v4406_v45, %v4407_v50  ;;  %v9672_v20 = vcombine.low %v4535_v44, %v4560_v58  ;;  %v9674_v40 = vcombine.low %v4585_v59, %v4610_v62  ;;  %v10906_v41 = vld [vmem:[%s14669_s1 + $0xcec] ss:$16 sps:$4 sm:$0xff]  }
 0x1b6   :  { %5972 = vmatprep.subr.bf16.mxu1 %v10880_v42  ;;  %v10881_v63 = vld [vmem:[%s14669_s1 + $0xd20] ss:$16 sps:$4 sm:$0xff]   ;;  %v10889_v14 = vld [vmem:[%s14669_s1 + $0xd04] ss:$16 sps:$4 sm:$0xff]   ;;  %v4487_v13 = vcombine.low %v4408_v4, %v4409_v54  ;;  %v4512_v16 = vcombine.low %v4410_v8, %v4411_v12  ;;  %v4877_v39 = vrot.slane %v9671_v2, %v11333_v60  ;;  %v4444_v52 = vrot.slane %v4437_v6, %v11333_v60  ;;  %v10904_v4 = vld [vmem:[%s14669_s1 + $0xce8] ss:$16 sps:$4 sm:$0xff]  }
 0x1b7   :  { %5920 = vmatpush2.bf16.msra.mxu0 %v10875_v22  ;;  %v10884_v10 = vld [vmem:[%s14669_s1 + $0xf20] ss:$16 sps:$4 sm:$0xff]   ;;  %v10892_v23 = vld [vmem:[%s14669_s1 + $0xf04] ss:$16 sps:$4 sm:$0xff]   ;;  %v4891_v47 = vrot.slane %v9673_v3, %v11333_v60  ;;  %v4469_v31 = vrot.slane %v4462_v53, %v11333_v60  ;;  %v4884_v36 = vrot.slane %v9672_v20, %v11333_v60  ;;  %v4898_v37 = vrot.slane %v9674_v40, %v11333_v60  ;;  %v10918_v6 = vld [vmem:[%s14669_s1 + $0xcac] ss:$16 sps:$4 sm:$0xff]  }
 0x1b8   :  { %5921 = vmatprep.subr.bf16.mxu0 %v10883_v55  ;;  %v10887_v33 = vld [vmem:[%s14669_s1 + $0xd00] ss:$16 sps:$4 sm:$0xff]   ;;  %v10903_v22 = vld [vmem:[%s14669_s1 + $0x10e4] ss:$16 sps:$4 sm:$0xff]   ;;  %v4494_v7 = vrot.slane %v4487_v13, %v11333_v60  ;;  %v4519_v61 = vrot.slane %v4512_v16, %v11333_v60  ;;  %v13061_v50 = vcombine.low %v12791_v5, %v12794_v15  ;;  %v10912_v5 = vld [vmem:[%s14669_s1 + $0xccc] ss:$16 sps:$4 sm:$0xff]  }
 0x1b9   :  { %5973 = vmatpush2.bf16.msra.mxu1 %v10878_v11  ;;  %v10890_v34 = vld [vmem:[%s14669_s1 + $0xf00] ss:$16 sps:$4 sm:$0xff]   ;;  %v10909_v24 = vld [vmem:[%s14669_s1 + $0x10c4] ss:$16 sps:$4 sm:$0xff]   ;;  %v13057_v25 = vcombine.high %v4877_v39, %v4891_v47  ;;  %v4849_v0 = vcombine.low %v4444_v52, %v4469_v31  ;;  %v13067_v54 = vcombine.high %v4884_v36, %v4898_v37  ;;  %v13094_v2 = vcombine.low %v4877_v39, %v4891_v47  ;;  %v10916_v39 = vld [vmem:[%s14669_s1 + $0xca8] ss:$16 sps:$4 sm:$0xff]  }
 0x1ba   :  { %5974 = vmatprep.subr.bf16.mxu1 %v10886_v48  ;;  %v10901_v42 = vld [vmem:[%s14669_s1 + $0x10e0] ss:$16 sps:$4 sm:$0xff]   ;;  %v4850_v45 = vcombine.low %v4494_v7, %v4519_v61  ;;  %v10915_v11 = vld [vmem:[%s14669_s1 + $0x10a4] ss:$16 sps:$4 sm:$0xff]   ;;  %v10910_v48 = vld [vmem:[%s14669_s1 + $0xcc8] ss:$16 sps:$4 sm:$0xff]   ;;  %v13113_v40 = vcombine.low %v4884_v36, %v4898_v37 }
 0x1bb   :  { %5922 = vmatpush2.bf16.msra.mxu0 %v10881_v63  ;;  %v10907_v12 = vld [vmem:[%s14669_s1 + $0x10c0] ss:$16 sps:$4 sm:$0xff]   ;;  %v10921_v16 = vld [vmem:[%s14669_s1 + $0x1084] ss:$16 sps:$4 sm:$0xff]   ;;  %v10924_v52 = vld [vmem:[%s14669_s1 + $0xc8c] ss:$16 sps:$4 sm:$0xff]  }
 0x1bc   :  { %5923 = vmatprep.subr.bf16.mxu0 %v10889_v14  ;;  %v13084_v44 = vrot.slane %v4850_v45, %v11333_v60  ;;  %v10927_v61 = vld [vmem:[%s14669_s1 + $0x1064] ss:$16 sps:$4 sm:$0xff]   ;;  %vm6585_vm0 = vcmask 1041409   ;;  %vm6587_vm1 = vcmask 1042434   ;;  %vm6589_vm2 = vcmask 1043459  }
 0x1bd   :  { %5975 = vmatpush2.bf16.msra.mxu1 %v10884_v10  ;;  %vm6620_vm3 = vcmask 1043456  }
 0x1be   :  { %5976 = vmatprep.subr.bf16.mxu1 %v10892_v23 }
 0x1bf   :  { %5924 = vmatpush2.bf16.msra.mxu0 %v10887_v33 }
 0x1c0   :  { %5999 = vmatprep.subr.bf16.mxu0 %v10903_v22 }
 0x1c1   :  { %5977 = vmatpush2.bf16.msra.mxu1 %v10890_v34 }
 0x1c2   :  { %v3863_v55 = vpop.f32.mrf.mxu0  ;;  %5926 = vmatmul.mubr.bf16.vlgmr.msra.gmra.mxu0 %v13044_v35  ;;  %6052 = vmatprep.subr.bf16.mxu1 %v10906_v41 }
 0x1c3   :  { %v3864_v8 = vadd.f32 %v3863_v55, %v12492_v19  ;;  %6000 = vmatpush1.bf16.msra.mxu0 %v10901_v42  ;;  %5935 = vmatprep.mubr.bf16.mxu0 %v13057_v25  ;;  %v13081_v19 = vrot.slane %v4849_v0, %v11333_v60  ;;  %v10922_v42 = vld [vmem:[%s14669_s1 + $0xc88] ss:$16 sps:$4 sm:$0xff]   ;;  %v10930_v0 = vld [vmem:[%s14669_s1 + $0xc6c] ss:$16 sps:$4 sm:$0xff]  }
 0x1c4   :  { %v3865_v15 = vpop.f32.mrf.mxu0  ;;  %6001 = vmatprep.subr.bf16.mxu0 %v10909_v24  ;;  %v3916_v58 = vpop.f32.mrf.mxu1  ;;  %5979 = vmatmul.mubr.bf16.vlgmr.msra.gmra.mxu1 %v13061_v50 }
 0x1c5   :  { %v3866_v59 = vadd.f32 %v3865_v15, %v12506_v57  ;;  %v13088_v62 = vadd.f32 %v3916_v58, %v3864_v8  ;;  %6053 = vmatpush1.bf16.msra.mxu1 %v10904_v4  ;;  %5988 = vmatprep.mubr.bf16.mxu1 %v13067_v54  ;;  %v10913_v57 = vld [vmem:[%s14669_s1 + $0x10a0] ss:$16 sps:$4 sm:$0xff]   ;;  %v10939_v58 = vld [vmem:[%s14669_s1 + $0x1024] ss:$16 sps:$4 sm:$0xff]  }
 0x1c6   :  { %v3867_v63 = vpop.f32.mrf.mxu0  ;;  %v3918_v3 = vpop.f32.mrf.mxu1  ;;  %6054 = vmatprep.subr.bf16.mxu1 %v10912_v5  ;;  %v10931_v15 = vld [vmem:[%s14669_s1 + $0x1040] ss:$16 sps:$4 sm:$0xff]  }
 0x1c7   :  { %v3868_v14 = vadd.f32 %v3867_v63, %v12515_v27  ;;  %6002 = vmatpush1.bf16.msra.mxu0 %v10907_v12  ;;  %v13103_v53 = vadd.f32 %v3918_v3, %v3866_v59  ;;  %v13110_v27 = vcombine.high %v13081_v19, %v13084_v44  ;;  %v10928_v12 = vld [vmem:[%s14669_s1 + $0xc68] ss:$16 sps:$4 sm:$0xff]   ;;  %v10937_v63 = vld [vmem:[%s14669_s1 + $0x1020] ss:$16 sps:$4 sm:$0xff]   ;;  %v10945_v3 = vld [vmem:[%s14669_s1 + $0x1004] ss:$16 sps:$4 sm:$0xff]  }
 0x1c8   :  { %v3869_v13 = vpop.f32.mrf.mxu0  ;;  %6003 = vmatprep.subr.bf16.mxu0 %v10915_v11  ;;  %v3920_v10 = vpop.f32.mrf.mxu1  ;;  %v10936_v11 = vld [vmem:[%s14669_s1 + $0xc4c] ss:$16 sps:$4 sm:$0xff]   ;;  %v10934_v59 = vld [vmem:[%s14669_s1 + $0xc48] ss:$16 sps:$4 sm:$0xff]  }
 0x1c9   :  { %v3870_v20 = vadd.f32 %v3869_v13, %v12527_v29  ;;  %v13115_v33 = vadd.f32 %v3920_v10, %v3868_v14  ;;  %6055 = vmatpush1.bf16.msra.mxu1 %v10910_v48  ;;  %v10919_v29 = vld [vmem:[%s14669_s1 + $0x1080] ss:$16 sps:$4 sm:$0xff]   ;;  %v10942_v48 = vld [vmem:[%s14669_s1 + $0xc2c] ss:$16 sps:$4 sm:$0xff]   ;;  %v10940_v14 = vld [vmem:[%s14669_s1 + $0xc28] ss:$16 sps:$4 sm:$0xff]  }
 0x1ca   :  { %v3873_v23 = vpop.f32.mrf.mxu0  ;;  %5936 = vmatmul.mubr.bf16.gmra.mxu0 %v13094_v2  ;;  %v3922_v47 = vpop.f32.mrf.mxu1  ;;  %6056 = vmatprep.subr.bf16.mxu1 %v10918_v6  ;;  %v10948_v6 = vld [vmem:[%s14669_s1 + $0xc0c] ss:$16 sps:$4 sm:$0xff]   ;;  %v10951_v13 = vld [vmem:[%s14669_s1 + $0x11e4] ss:$16 sps:$4 sm:$0xff]   ;;  %v10949_v10 = vld [vmem:[%s14669_s1 + $0x11e0] ss:$16 sps:$4 sm:$0xff]  }
 0x1cb   :  { %v3874_v22 = vadd.f32 %v3873_v23, %v12534_v30  ;;  %6004 = vmatpush1.bf16.msra.mxu0 %v10913_v57  ;;  %v13128_v31 = vadd.f32 %v3922_v47, %v3870_v20  ;;  %6031 = vmatprep.mubr.bf16.mxu0 %v13110_v27  ;;  %v10943_v57 = vld [vmem:[%s14669_s1 + $0x1000] ss:$16 sps:$4 sm:$0xff]   ;;  %v10954_v20 = vld [vmem:[%s14669_s1 + $0xdec] ss:$16 sps:$4 sm:$0xff]   ;;  %v10957_v23 = vld [vmem:[%s14669_s1 + $0x11c4] ss:$16 sps:$4 sm:$0xff]  }
 0x1cc   :  { %v3875_v7 = vpop.f32.mrf.mxu0  ;;  %6005 = vmatprep.subr.bf16.mxu0 %v10921_v16  ;;  %v3926_v34 = vpop.f32.mrf.mxu1  ;;  %5989 = vmatmul.mubr.bf16.gmra.mxu1 %v13113_v40  ;;  %v10946_v16 = vld [vmem:[%s14669_s1 + $0xc08] ss:$16 sps:$4 sm:$0xff]   ;;  %v10955_v47 = vld [vmem:[%s14669_s1 + $0x11c0] ss:$16 sps:$4 sm:$0xff]  }
 0x1cd   :  { %v3876_v30 = vadd.f32 %v3875_v7, %v12548_v32  ;;  %6057 = vmatpush1.bf16.msra.mxu1 %v10916_v39  ;;  %v13136_v36 = vadd.f32 %v3926_v34, %v3874_v22  ;;  %6084 = vmatprep.mubr.bf16.mxu1 %v12810_v38  ;;  %v10925_v32 = vld [vmem:[%s14669_s1 + $0x1060] ss:$16 sps:$4 sm:$0xff]   ;;  %v10933_v38 = vld [vmem:[%s14669_s1 + $0x1044] ss:$16 sps:$4 sm:$0xff]   ;;  %v10952_v39 = vld [vmem:[%s14669_s1 + $0xde8] ss:$16 sps:$4 sm:$0xff]  }
 0x1ce   :  { %v3877_v37 = vpop.f32.mrf.mxu0  ;;  %v3928_v24 = vpop.f32.mrf.mxu1  ;;  %6058 = vmatprep.subr.bf16.mxu1 %v10924_v52  ;;  %v10960_v22 = vld [vmem:[%s14669_s1 + $0xdcc] ss:$16 sps:$4 sm:$0xff]   ;;  %v10963_v52 = vld [vmem:[%s14669_s1 + $0x11a4] ss:$16 sps:$4 sm:$0xff]   ;;  %v10958_v34 = vld [vmem:[%s14669_s1 + $0xdc8] ss:$16 sps:$4 sm:$0xff]  }
 0x1cf   :  { %v3878_v41 = vadd.f32 %v3877_v37, %v12558_v46  ;;  %6006 = vmatpush1.bf16.msra.mxu0 %v10919_v29  ;;  %v13149_v45 = vadd.f32 %v3928_v24, %v3876_v30  ;;  %v9423_v29 = vld [vmem:[%s14668_s0 + $0x40] sm:$0x66]  ;;  %v9424_v7 = vld [vmem:[%s14668_s0 + $0x48] sm:$0x66]  ;;  %v9426_v30 = vld [vmem:[%s14668_s0 + $0x58] sm:$0x66] }
 0x1d0   :  { %v3879_v55 = vpop.f32.mrf.mxu0  ;;  %6007 = vmatprep.subr.bf16.mxu0 %v10927_v61  ;;  %v3930_v4 = vpop.f32.mrf.mxu1  ;;  %v9425_v61 = vld [vmem:[%s14668_s0 + $0x50] sm:$0x66]  ;;  %v9467_v37 = vcombine.low %v9423_v29, %v9423_v29  ;;  %v9468_v24 = vcombine.high %v9423_v29, %v9423_v29 }
 0x1d1   :  { %v3880_v46 = vadd.f32 %v3879_v55, %v12567_v43  ;;  %6059 = vmatpush1.bf16.msra.mxu1 %v10922_v42  ;;  %v13155_v8 = vadd.f32 %v3930_v4, %v3878_v41  ;;  %v10961_v42 = vld [vmem:[%s14669_s1 + $0x11a0] ss:$16 sps:$4 sm:$0xff]   ;;  %v10966_v41 = vld [vmem:[%s14669_s1 + $0xdac] ss:$16 sps:$4 sm:$0xff]   ;;  %v10969_v55 = vld [vmem:[%s14669_s1 + $0x1184] ss:$16 sps:$4 sm:$0xff]   ;;  %v9473_v4 = vcombine.low %v9426_v30, %v9426_v30 }
 0x1d2   :  { %v3932_v5 = vpop.f32.mrf.mxu1  ;;  %6060 = vmatprep.subr.bf16.mxu1 %v10930_v0  ;;  %v9470_v0 = vcombine.high %v9424_v7, %v9424_v7 }
 0x1d3   :  { %6008 = vmatpush1.bf16.msra.mxu0 %v10925_v32  ;;  %v13166_v43 = vadd.f32 %v3932_v5, %v3880_v46  ;;  %v9469_v32 = vcombine.low %v9424_v7, %v9424_v7  ;;  %v9472_v46 = vcombine.high %v9425_v61, %v9425_v61  ;;  %v10964_v5 = vld [vmem:[%s14669_s1 + $0xda8] ss:$16 sps:$4 sm:$0xff]   ;;  %v10987_v7 = vld [vmem:[%s14669_s1 + $0x1140] ss:$16 sps:$4 sm:$0xff]  }
 0x1d4   :  { %6009 = vmatprep.subr.bf16.mxu0 %v10933_v38  ;;  %v9471_v38 = vcombine.low %v9425_v61, %v9425_v61  ;;  %v10992_v61 = vld [vmem:[%s14669_s1 + $0xd4c] ss:$16 sps:$4 sm:$0xff]  }
 0x1d5   :  { %6061 = vmatpush1.bf16.msra.mxu1 %v10928_v12  ;;  %v9474_v12 = vcombine.high %v9426_v30, %v9426_v30  ;;  %v10995_v30 = vld [vmem:[%s14669_s1 + $0x1124] ss:$16 sps:$4 sm:$0xff]  }
 0x1d6   :  { %6062 = vmatprep.subr.bf16.mxu1 %v10936_v11  ;;  %v10972_v11 = vld [vmem:[%s14669_s1 + $0xd8c] ss:$16 sps:$4 sm:$0xff]  }
 0x1d7   :  { %6010 = vmatpush1.bf16.msra.mxu0 %v10931_v15  ;;  %v10967_v15 = vld [vmem:[%s14669_s1 + $0x1180] ss:$16 sps:$4 sm:$0xff]  }
 0x1d8   :  { %6011 = vmatprep.subr.bf16.mxu0 %v10939_v58  ;;  %v4412_v58 = vrot.slane %v9467_v37, 1 }
 0x1d9   :  { %6063 = vmatpush1.bf16.msra.mxu1 %v10934_v59  ;;  %v4413_v59 = vrot.slane %v9468_v24, 1  ;;  %v10990_v24 = vld [vmem:[%s14669_s1 + $0xd48] ss:$16 sps:$4 sm:$0xff]  }
 0x1da   :  { %6064 = vmatprep.subr.bf16.mxu1 %v10942_v48  ;;  %v4415_v48 = vrot.slane %v9470_v0, 1  ;;  %v10998_v0 = vld [vmem:[%s14669_s1 + $0xd2c] ss:$16 sps:$4 sm:$0xff]  }
 0x1db   :  { %6012 = vmatpush1.bf16.msra.mxu0 %v10937_v63  ;;  %v4414_v63 = vrot.slane %v9469_v32, 1  ;;  %v10993_v32 = vld [vmem:[%s14669_s1 + $0x1120] ss:$16 sps:$4 sm:$0xff]  }
 0x1dc   :  { %6013 = vmatprep.subr.bf16.mxu0 %v10945_v3  ;;  %v10975_v3 = vld [vmem:[%s14669_s1 + $0x1164] ss:$16 sps:$4 sm:$0xff]  }
 0x1dd   :  { %6065 = vmatpush1.bf16.msra.mxu1 %v10940_v14  ;;  %v4416_v14 = vrot.slane %v9471_v38, 1 }
 0x1de   :  { %6066 = vmatprep.subr.bf16.mxu1 %v10948_v6  ;;  %v4418_v6 = vrot.slane %v9473_v4, 1  ;;  %v10996_v4 = vld [vmem:[%s14669_s1 + $0xd28] ss:$16 sps:$4 sm:$0xff]  }
 0x1df   :  { %6014 = vmatpush1.bf16.msra.mxu0 %v10943_v57  ;;  %v4417_v57 = vrot.slane %v9472_v46, 1 }
 0x1e0   :  { %6015 = vmatprep.subr.bf16.mxu0 %v10951_v13  ;;  %v4419_v13 = vrot.slane %v9474_v12, 1  ;;  %v10999_v12 = vld [vmem:[%s14669_s1 + $0x1100] ss:$16 sps:$4 sm:$0xff]  }
 0x1e1   :  { %6067 = vmatpush1.bf16.msra.mxu1 %v10946_v16  ;;  %v10970_v16 = vld [vmem:[%s14669_s1 + $0xd88] ss:$16 sps:$4 sm:$0xff]  }
 0x1e2   :  { %6068 = vmatprep.subr.bf16.mxu1 %v10954_v20  ;;  %v10978_v20 = vld [vmem:[%s14669_s1 + $0xd6c] ss:$16 sps:$4 sm:$0xff]   ;;  %v4612_v29 = vcombine.low %v4418_v6, %v4419_v13  ;;  %v11019_v13 = vld [vmem:[%s14669_s1 + $0xec8] ss:$16 sps:$4 sm:$0xff]  }
 0x1e3   :  { %6016 = vmatpush2.bf16.msra.mxu0 %v10949_v10  ;;  %v10973_v10 = vld [vmem:[%s14669_s1 + $0x1160] ss:$16 sps:$4 sm:$0xff]  }
 0x1e4   :  { %6017 = vmatprep.subr.bf16.mxu0 %v10957_v23  ;;  %v10989_v23 = vld [vmem:[%s14669_s1 + $0x1144] ss:$16 sps:$4 sm:$0xff]  }
 0x1e5   :  { %6069 = vmatpush2.bf16.msra.mxu1 %v10952_v39  ;;  %v4537_v39 = vcombine.low %v4412_v58, %v4413_v59  ;;  %v11002_v59 = vld [vmem:[%s14669_s1 + $0xd08] ss:$16 sps:$4 sm:$0xff]  }
 0x1e6   :  { %6070 = vmatprep.subr.bf16.mxu1 %v10960_v22  ;;  %v4587_v22 = vcombine.low %v4416_v14, %v4417_v57  ;;  %v11021_v14 = vld [vmem:[%s14669_s1 + $0xecc] ss:$16 sps:$4 sm:$0xff]  }
 0x1e7   :  { %6018 = vmatpush2.bf16.msra.mxu0 %v10955_v47  ;;  %v4562_v47 = vcombine.low %v4414_v63, %v4415_v48  ;;  %v13314_v63 = vcombine.low %v13081_v19, %v13084_v44  ;;  %v11013_v48 = vld [vmem:[%s14669_s1 + $0xee8] ss:$16 sps:$4 sm:$0xff]  }
 0x1e8   :  { %6019 = vmatprep.subr.bf16.mxu0 %v10963_v52  ;;  %v10976_v52 = vld [vmem:[%s14669_s1 + $0xd68] ss:$16 sps:$4 sm:$0xff]  }
 0x1e9   :  { %6071 = vmatpush2.bf16.msra.mxu1 %v10958_v34  ;;  %v4544_v34 = vrot.slane %v4537_v39, %v11333_v60  ;;  %v4569_v37 = vrot.slane %v4562_v47, %v11333_v60  ;;  %v11016_v44 = vld [vmem:[%s14669_s1 + $0x10e8] ss:$16 sps:$4 sm:$0xff]  }
 0x1ea   :  { %6072 = vmatprep.subr.bf16.mxu1 %v10966_v41  ;;  %v4619_v41 = vrot.slane %v4612_v29, %v11333_v60 }
 0x1eb   :  { %6020 = vmatpush2.bf16.msra.mxu0 %v10961_v42  ;;  %v4594_v42 = vrot.slane %v4587_v22, %v11333_v60  ;;  %v4903_v38 = vcombine.low %v4544_v34, %v4569_v37  ;;  %v11022_v22 = vld [vmem:[%s14669_s1 + $0x10c8] ss:$16 sps:$4 sm:$0xff]  }
 0x1ec   :  { %6021 = vmatprep.subr.bf16.mxu0 %v10969_v55  ;;  %v11001_v55 = vld [vmem:[%s14669_s1 + $0x1104] ss:$16 sps:$4 sm:$0xff]  }
 0x1ed   :  { %6073 = vmatpush2.bf16.msra.mxu1 %v10964_v5  ;;  %v4904_v46 = vcombine.low %v4594_v42, %v4619_v41  ;;  %v11004_v5 = vld [vmem:[%s14669_s1 + $0xd0c] ss:$16 sps:$4 sm:$0xff]  }
 0x1ee   :  { %6074 = vmatprep.subr.bf16.mxu1 %v10972_v11  ;;  %v4911_v11 = vrot.slane %v4903_v38, %v11333_v60 }
 0x1ef   :  { %6022 = vmatpush2.bf16.msra.mxu0 %v10967_v15  ;;  %v11015_v15 = vld [vmem:[%s14669_s1 + $0xeec] ss:$16 sps:$4 sm:$0xff]   ;;  %v4918_v58 = vrot.slane %v4904_v46, %v11333_v60  ;;  %v11042_v46 = vld [vmem:[%s14669_s1 + $0x1088] ss:$16 sps:$4 sm:$0xff]   ;;  %v6761_v60 = vld [vmem:[%s14671_s3 + $0x220] sm:$0xff] }
 0x1f0   :  { %6023 = vmatprep.subr.bf16.mxu0 %v10975_v3  ;;  %v11018_v3 = vld [vmem:[%s14669_s1 + $0x10ec] ss:$16 sps:$4 sm:$0xff]  }
 0x1f1   :  { %6075 = vmatpush2.bf16.msra.mxu1 %v10970_v16  ;;  %v13325_v57 = vcombine.high %v4911_v11, %v4918_v58  ;;  %v11024_v16 = vld [vmem:[%s14669_s1 + $0x10cc] ss:$16 sps:$4 sm:$0xff]   ;;  %v13354_v29 = vcombine.low %v4911_v11, %v4918_v58  ;;  %v11057_v11 = vld [vmem:[%s14669_s1 + $0xe28] ss:$16 sps:$4 sm:$0xff]  }
 0x1f2   :  { %6076 = vmatprep.subr.bf16.mxu1 %v10978_v20  ;;  %v11035_v20 = vld [vmem:[%s14669_s1 + $0xeac] ss:$16 sps:$4 sm:$0xff]  }
 0x1f3   :  { %6024 = vmatpush2.bf16.msra.mxu0 %v10973_v10  ;;  %v11062_v58 = vld [vmem:[%s14669_s1 + $0x102c] ss:$16 sps:$4 sm:$0xff]  }
 0x1f4   :  { %6025 = vmatprep.subr.bf16.mxu0 %v10989_v23 }
 0x1f5   :  { %6077 = vmatpush2.bf16.msra.mxu1 %v10976_v52 }
 0x1f6   :  { %6078 = vmatprep.subr.bf16.mxu1 %v10992_v61 }
 0x1f7   :  { %6026 = vmatpush2.bf16.msra.mxu0 %v10987_v7 }
 0x1f8   :  { %6027 = vmatprep.subr.bf16.mxu0 %v10995_v30 }
 0x1f9   :  { %6079 = vmatpush2.bf16.msra.mxu1 %v10990_v24 }
 0x1fa   :  { %6080 = vmatprep.subr.bf16.mxu1 %v10998_v0 }
 0x1fb   :  { %6028 = vmatpush2.bf16.msra.mxu0 %v10993_v32 }
 0x1fc   :  { %6029 = vmatprep.subr.bf16.mxu0 %v11001_v55 }
 0x1fd   :  { %6081 = vmatpush2.bf16.msra.mxu1 %v10996_v4 }
 0x1fe   :  { %6082 = vmatprep.subr.bf16.mxu1 %v11004_v5  ;;  %v11056_v5 = vld [vmem:[%s14669_s1 + $0x104c] ss:$16 sps:$4 sm:$0xff]  }
 0x1ff   :  { %6030 = vmatpush2.bf16.msra.mxu0 %v10999_v12  ;;  %v11051_v12 = vld [vmem:[%s14669_s1 + $0xe48] ss:$16 sps:$4 sm:$0xff]  }
 0x200   :  { %6105 = vmatprep.subr.bf16.mxu0 %v11015_v15  ;;  %v11054_v15 = vld [vmem:[%s14669_s1 + $0x1048] ss:$16 sps:$4 sm:$0xff]  }
 0x201   :  { %6083 = vmatpush2.bf16.msra.mxu1 %v11002_v59  ;;  %v11065_v59 = vld [vmem:[%s14669_s1 + $0xe0c] ss:$16 sps:$4 sm:$0xff]  }
 0x202   :  { %v3969_v19 = vpop.f32.mrf.mxu0  ;;  %6032 = vmatmul.mubr.bf16.vlgmr.msra.gmra.mxu0 %v13314_v63  ;;  %6158 = vmatprep.subr.bf16.mxu1 %v11018_v3  ;;  %v11063_v3 = vld [vmem:[%s14669_s1 + $0xe08] ss:$16 sps:$4 sm:$0xff]  }
 0x203   :  { %v13332_v6 = vadd.f32 %v3969_v19, %v13088_v62  ;;  %6106 = vmatpush1.bf16.msra.mxu0 %v11013_v48  ;;  %6041 = vmatprep.mubr.bf16.mxu0 %v13325_v57  ;;  %v11060_v48 = vld [vmem:[%s14669_s1 + $0x1028] ss:$16 sps:$4 sm:$0xff]   ;;  %v11071_v19 = vld [vmem:[%s14669_s1 + $0xfec] ss:$16 sps:$4 sm:$0xff]  }
 0x204   :  { %v3971_v10 = vpop.f32.mrf.mxu0  ;;  %6107 = vmatprep.subr.bf16.mxu0 %v11021_v14  ;;  %v4022_v62 = vpop.f32.mrf.mxu1  ;;  %6085 = vmatmul.mubr.bf16.vlgmr.msra.gmra.mxu1 %v13044_v35  ;;  %v11038_v35 = vld [vmem:[%s14669_s1 + $0x10ac] ss:$16 sps:$4 sm:$0xff]  }
 0x205   :  { %v13346_v23 = vadd.f32 %v3971_v10, %v13103_v53  ;;  %v13349_v39 = vadd.f32 %v4022_v62, %v12784_v28  ;;  %6159 = vmatpush1.bf16.msra.mxu1 %v11016_v44  ;;  %6094 = vmatprep.mubr.bf16.mxu1 %v13057_v25  ;;  %v11033_v28 = vld [vmem:[%s14669_s1 + $0xea8] ss:$16 sps:$4 sm:$0xff]   ;;  %v11041_v25 = vld [vmem:[%s14669_s1 + $0xe8c] ss:$16 sps:$4 sm:$0xff]  }
 0x206   :  { %v3973_v47 = vpop.f32.mrf.mxu0  ;;  %v4024_v52 = vpop.f32.mrf.mxu1  ;;  %6160 = vmatprep.subr.bf16.mxu1 %v11024_v16  ;;  %v11068_v14 = vld [vmem:[%s14669_s1 + $0x100c] ss:$16 sps:$4 sm:$0xff]   ;;  %v11066_v44 = vld [vmem:[%s14669_s1 + $0x1008] ss:$16 sps:$4 sm:$0xff]  }
 0x207   :  { %v13358_v7 = vadd.f32 %v3973_v47, %v13115_v33  ;;  %6108 = vmatpush1.bf16.msra.mxu0 %v11019_v13  ;;  %v13367_v53 = vadd.f32 %v4024_v52, %v12803_v18  ;;  %v11036_v18 = vld [vmem:[%s14669_s1 + $0x10a8] ss:$16 sps:$4 sm:$0xff]   ;;  %v11074_v16 = vld [vmem:[%s14669_s1 + $0x11ec] ss:$16 sps:$4 sm:$0xff]  }
 0x208   :  { %v3975_v61 = vpop.f32.mrf.mxu0  ;;  %6109 = vmatprep.subr.bf16.mxu0 %v11035_v20  ;;  %v4026_v33 = vpop.f32.mrf.mxu1  ;;  %v11069_v13 = vld [vmem:[%s14669_s1 + $0xfe8] ss:$16 sps:$4 sm:$0xff]   ;;  %v11077_v10 = vld [vmem:[%s14669_s1 + $0xfcc] ss:$16 sps:$4 sm:$0xff]  }
 0x209   :  { %v13373_v30 = vadd.f32 %v3975_v61, %v13128_v31  ;;  %v13376_v34 = vadd.f32 %v4026_v33, %v12813_v17  ;;  %6161 = vmatpush1.bf16.msra.mxu1 %v11022_v22  ;;  %v11039_v31 = vld [vmem:[%s14669_s1 + $0xe88] ss:$16 sps:$4 sm:$0xff]   ;;  %v11044_v17 = vld [vmem:[%s14669_s1 + $0x108c] ss:$16 sps:$4 sm:$0xff]  }
 0x20a   :  { %v3979_v37 = vpop.f32.mrf.mxu0  ;;  %6042 = vmatmul.mubr.bf16.gmra.mxu0 %v13354_v29  ;;  %v4028_v42 = vpop.f32.mrf.mxu1  ;;  %6162 = vmatprep.subr.bf16.mxu1 %v11038_v35  ;;  %v11072_v20 = vld [vmem:[%s14669_s1 + $0x11e8] ss:$16 sps:$4 sm:$0xff]   ;;  %v11080_v47 = vld [vmem:[%s14669_s1 + $0x11cc] ss:$16 sps:$4 sm:$0xff]  }
 0x20b   :  { %v13383_v41 = vadd.f32 %v3979_v37, %v13136_v36  ;;  %6110 = vmatpush1.bf16.msra.mxu0 %v11033_v28  ;;  %v13392_v24 = vadd.f32 %v4028_v42, %v12830_v51  ;;  %v11047_v36 = vld [vmem:[%s14669_s1 + $0xe6c] ss:$16 sps:$4 sm:$0xff]   ;;  %6137 = vmatprep.mubr.bf16.mxu0 %v12821_v1  ;;  %v11045_v1 = vld [vmem:[%s14669_s1 + $0xe68] ss:$16 sps:$4 sm:$0xff]  }
 0x20c   :  { %v3981_v32 = vpop.f32.mrf.mxu0  ;;  %6111 = vmatprep.subr.bf16.mxu0 %v11041_v25  ;;  %v4032_v0 = vpop.f32.mrf.mxu1  ;;  %6095 = vmatmul.mubr.bf16.gmra.mxu1 %v13094_v2  ;;  %v11075_v62 = vld [vmem:[%s14669_s1 + $0xfc8] ss:$16 sps:$4 sm:$0xff]   ;;  %v11083_v22 = vld [vmem:[%s14669_s1 + $0xfac] ss:$16 sps:$4 sm:$0xff]  }
 0x20d   :  { %v13399_v55 = vadd.f32 %v3981_v32, %v13149_v45  ;;  %v13403_v38 = vadd.f32 %v4032_v0, %v12841_v56  ;;  %6163 = vmatpush1.bf16.msra.mxu1 %v11036_v18  ;;  %6190 = vmatprep.mubr.bf16.mxu1 %v13110_v27  ;;  %v11050_v56 = vld [vmem:[%s14669_s1 + $0x106c] ss:$16 sps:$4 sm:$0xff]   ;;  %v11078_v52 = vld [vmem:[%s14669_s1 + $0x11c8] ss:$16 sps:$4 sm:$0xff]  }
 0x20e   :  { %v3983_v51 = vpop.f32.mrf.mxu0  ;;  %6164 = vmatprep.subr.bf16.mxu1 %v11044_v17  ;;  %v11053_v45 = vld [vmem:[%s14669_s1 + $0xe4c] ss:$16 sps:$4 sm:$0xff]   ;;  %v11081_v28 = vld [vmem:[%s14669_s1 + $0xfa8] ss:$16 sps:$4 sm:$0xff]  }
 0x20f   :  { %v13410_v4 = vadd.f32 %v3983_v51, %v13155_v8  ;;  %6112 = vmatpush1.bf16.msra.mxu0 %v11039_v31  ;;  %v11048_v8 = vld [vmem:[%s14669_s1 + $0x1068] ss:$16 sps:$4 sm:$0xff]   ;;  %v11086_v35 = vld [vmem:[%s14669_s1 + $0x11ac] ss:$16 sps:$4 sm:$0xff]  }
 0x210   :  { %v3985_v2 = vpop.f32.mrf.mxu0  ;;  %6113 = vmatprep.subr.bf16.mxu0 %v11047_v36  ;;  %v11089_v61 = vld [vmem:[%s14669_s1 + $0xf8c] ss:$16 sps:$4 sm:$0xff]   ;;  %v11084_v25 = vld [vmem:[%s14669_s1 + $0x11a8] ss:$16 sps:$4 sm:$0xff]  }
 0x211   :  { %v13422_v27 = vadd.f32 %v3985_v2, %v13166_v43  ;;  %6165 = vmatpush1.bf16.msra.mxu1 %v11042_v46  ;;  %v11059_v43 = vld [vmem:[%s14669_s1 + $0xe2c] ss:$16 sps:$4 sm:$0xff]   ;;  %v11087_v33 = vld [vmem:[%s14669_s1 + $0xf88] ss:$16 sps:$4 sm:$0xff]  }
 0x212   :  { %6166 = vmatprep.subr.bf16.mxu1 %v11050_v56  ;;  %v11092_v37 = vld [vmem:[%s14669_s1 + $0x118c] ss:$16 sps:$4 sm:$0xff]   ;;  %v11090_v42 = vld [vmem:[%s14669_s1 + $0x1188] ss:$16 sps:$4 sm:$0xff]  }
 0x213   :  { %6114 = vmatpush1.bf16.msra.mxu0 %v11045_v1  ;;  %v11095_v18 = vld [vmem:[%s14669_s1 + $0xf6c] ss:$16 sps:$4 sm:$0xff]   ;;  %v11093_v31 = vld [vmem:[%s14669_s1 + $0xf68] ss:$16 sps:$4 sm:$0xff]  }
 0x214   :  { %6115 = vmatprep.subr.bf16.mxu0 %v11053_v45  ;;  %v11098_v17 = vld [vmem:[%s14669_s1 + $0x116c] ss:$16 sps:$4 sm:$0xff]   ;;  %v11096_v36 = vld [vmem:[%s14669_s1 + $0x1168] ss:$16 sps:$4 sm:$0xff]  }
 0x215   :  { %6167 = vmatpush1.bf16.msra.mxu1 %v11048_v8  ;;  %v11101_v32 = vld [vmem:[%s14669_s1 + $0xf4c] ss:$16 sps:$4 sm:$0xff]   ;;  %v11099_v0 = vld [vmem:[%s14669_s1 + $0xf48] ss:$16 sps:$4 sm:$0xff]  }
 0x216   :  { %6168 = vmatprep.subr.bf16.mxu1 %v11056_v5  ;;  %v11104_v51 = vld [vmem:[%s14669_s1 + $0x114c] ss:$16 sps:$4 sm:$0xff]   ;;  %v11102_v1 = vld [vmem:[%s14669_s1 + $0x1148] ss:$16 sps:$4 sm:$0xff]  }
 0x217   :  { %6116 = vmatpush1.bf16.msra.mxu0 %v11051_v12  ;;  %v11107_v46 = vld [vmem:[%s14669_s1 + $0xf2c] ss:$16 sps:$4 sm:$0xff]   ;;  %v11105_v56 = vld [vmem:[%s14669_s1 + $0xf28] ss:$16 sps:$4 sm:$0xff]  }
 0x218   :  { %6117 = vmatprep.subr.bf16.mxu0 %v11059_v43  ;;  %v11110_v2 = vld [vmem:[%s14669_s1 + $0x112c] ss:$16 sps:$4 sm:$0xff]   ;;  %v11108_v8 = vld [vmem:[%s14669_s1 + $0x1128] ss:$16 sps:$4 sm:$0xff]  }
 0x219   :  { %6169 = vmatpush1.bf16.msra.mxu1 %v11054_v15  ;;  %v11113_v45 = vld [vmem:[%s14669_s1 + $0xf0c] ss:$16 sps:$4 sm:$0xff]   ;;  %v11111_v12 = vld [vmem:[%s14669_s1 + $0xf08] ss:$16 sps:$4 sm:$0xff]   ;;  %v6749_v15 = vld [vmem:[%s14671_s3 + $0x1c0] sm:$0xff] }
 0x21a   :  { %6170 = vmatprep.subr.bf16.mxu1 %v11062_v58  ;;  %v11116_v5 = vld [vmem:[%s14669_s1 + $0x110c] ss:$16 sps:$4 sm:$0xff]   ;;  %v11114_v43 = vld [vmem:[%s14669_s1 + $0x1108] ss:$16 sps:$4 sm:$0xff]   ;;  %v6741_v58 = vld [vmem:[%s14671_s3 + $0x180] sm:$0xff] }
 0x21b   :  { %6118 = vmatpush1.bf16.msra.mxu0 %v11057_v11  ;;  %v6753_v11 = vld [vmem:[%s14671_s3 + $0x1e0] sm:$0xff] }
 0x21c   :  { %6119 = vmatprep.subr.bf16.mxu0 %v11065_v59  ;;  %v6745_v59 = vld [vmem:[%s14671_s3 + $0x1a0] sm:$0xff] }
 0x21d   :  { %6171 = vmatpush1.bf16.msra.mxu1 %v11060_v48  ;;  %v6869_v48 = vld [vmem:[%s14671_s3 + $0x580] sm:$0xff] }
 0x21e   :  { %6172 = vmatprep.subr.bf16.mxu1 %v11068_v14  ;;  %v9924_v14 = vcombine.high %v6741_v58, %v6745_v59 }
 0x21f   :  { %6120 = vmatpush1.bf16.msra.mxu0 %v11063_v3 }
 0x220   :  { %6121 = vmatprep.subr.bf16.mxu0 %v11071_v19  ;;  %v6873_v19 = vld [vmem:[%s14671_s3 + $0x5a0] sm:$0xff] }
 0x221   :  { %6173 = vmatpush1.bf16.msra.mxu1 %v11066_v44  ;;  %v9923_v44 = vcombine.low %v6741_v58, %v6745_v59  ;;  %v6841_v59 = vld [vmem:[%s14671_s3 + $0x4a0] sm:$0xff] }
 0x222   :  { %6174 = vmatprep.subr.bf16.mxu1 %v11074_v16  ;;  %v10052_v16 = vcombine.high %v6869_v48, %v6873_v19 }
 0x223   :  { %6122 = vmatpush2.bf16.msra.mxu0 %v11069_v13  ;;  %v10051_v13 = vcombine.low %v6869_v48, %v6873_v19 }
 0x224   :  { %6123 = vmatprep.subr.bf16.mxu0 %v11077_v10 }
 0x225   :  { %6175 = vmatpush2.bf16.msra.mxu1 %v11072_v20  ;;  %v6733_v20 = vld [vmem:[%s14671_s3 + $0x140] sm:$0xff] }
 0x226   :  { %6176 = vmatprep.subr.bf16.mxu1 %v11080_v47  ;;  %v6861_v47 = vld [vmem:[%s14671_s3 + $0x540] sm:$0xff] }
 0x227   :  { %6124 = vmatpush2.bf16.msra.mxu0 %v11075_v62  ;;  %v6737_v62 = vld [vmem:[%s14671_s3 + $0x160] sm:$0xff] }
 0x228   :  { %6125 = vmatprep.subr.bf16.mxu0 %v11083_v22  ;;  %v13599_v22 = vpop.f32.mrf.mxu1 }
 0x229   :  { %6177 = vmatpush2.bf16.msra.mxu1 %v11078_v52  ;;  %v9916_v52 = vcombine.high %v6733_v20, %v6737_v62 }
 0x22a   :  { %6178 = vmatprep.subr.bf16.mxu1 %v11086_v35  ;;  %v9915_v35 = vcombine.low %v6733_v20, %v6737_v62  ;;  %v6705_v20 = vld [vmem:[%s14671_s3 + $0x60] sm:$0xff] }
 0x22b   :  { %6126 = vmatpush2.bf16.msra.mxu0 %v11081_v28  ;;  %v6865_v28 = vld [vmem:[%s14671_s3 + $0x560] sm:$0xff] }
 0x22c   :  { %6127 = vmatprep.subr.bf16.mxu0 %v11089_v61  ;;  %v10043_v61 = vcombine.low %v6861_v47, %v6865_v28  ;;  %v6829_v62 = vld [vmem:[%s14671_s3 + $0x440] sm:$0xff] }
 0x22d   :  { %6179 = vmatpush2.bf16.msra.mxu1 %v11084_v25  ;;  %v10044_v25 = vcombine.high %v6861_v47, %v6865_v28 }
 0x22e   :  { %6180 = vmatprep.subr.bf16.mxu1 %v11092_v37  ;;  %v13606_v37 = vpop.f32.mrf.mxu1 }
 0x22f   :  { %6128 = vmatpush2.bf16.msra.mxu0 %v11087_v33 }
 0x230   :  { %6129 = vmatprep.subr.bf16.mxu0 %v11095_v18  ;;  %v6725_v18 = vld [vmem:[%s14671_s3 + $0x100] sm:$0xff] }
 0x231   :  { %6181 = vmatpush2.bf16.msra.mxu1 %v11090_v42  ;;  %v6729_v42 = vld [vmem:[%s14671_s3 + $0x120] sm:$0xff] }
 0x232   :  { %6182 = vmatprep.subr.bf16.mxu1 %v11098_v17  ;;  %v9908_v17 = vcombine.high %v6725_v18, %v6729_v42 }
 0x233   :  { %6130 = vmatpush2.bf16.msra.mxu0 %v11093_v31  ;;  %v6853_v31 = vld [vmem:[%s14671_s3 + $0x500] sm:$0xff] }
 0x234   :  { %6131 = vmatprep.subr.bf16.mxu0 %v11101_v32  ;;  %v6857_v32 = vld [vmem:[%s14671_s3 + $0x520] sm:$0xff] }
 0x235   :  { %6183 = vmatpush2.bf16.msra.mxu1 %v11096_v36 }
 0x236   :  { %6184 = vmatprep.subr.bf16.mxu1 %v11104_v51  ;;  %v10035_v51 = vcombine.low %v6853_v31, %v6857_v32 }
 0x237   :  { %6132 = vmatpush2.bf16.msra.mxu0 %v11099_v0  ;;  %v9907_v0 = vcombine.low %v6725_v18, %v6729_v42  ;;  %v6693_v42 = vld [vmem:[%s14671_s3] sm:$0xff] }
 0x238   :  { %6133 = vmatprep.subr.bf16.mxu0 %v11107_v46  ;;  %v10036_v46 = vcombine.high %v6853_v31, %v6857_v32  ;;  %v6697_v31 = vld [vmem:[%s14671_s3 + $0x20] sm:$0xff] }
 0x239   :  { %6185 = vmatpush2.bf16.msra.mxu1 %v11102_v1  ;;  %v13622_v1 = vpop.f32.mrf.mxu1 }
 0x23a   :  { %6186 = vmatprep.subr.bf16.mxu1 %v11110_v2  ;;  %14678 = vst [vmem:[#allocation7_spill] sm:$0xff] %v13622_v1 }
 0x23b   :  { %6134 = vmatpush2.bf16.msra.mxu0 %v11105_v56 }
 0x23c   :  { %6135 = vmatprep.subr.bf16.mxu0 %v11113_v45  ;;  %v6717_v45 = vld [vmem:[%s14671_s3 + $0xc0] sm:$0xff] }
 0x23d   :  { %6187 = vmatpush2.bf16.msra.mxu1 %v11108_v8  ;;  %v6721_v8 = vld [vmem:[%s14671_s3 + $0xe0] sm:$0xff] }
 0x23e   :  { %6188 = vmatprep.subr.bf16.mxu1 %v11116_v5  ;;  %v9900_v5 = vcombine.high %v6717_v45, %v6721_v8 }
 0x23f   :  { %6136 = vmatpush2.bf16.msra.mxu0 %v11111_v12  ;;  %v6845_v12 = vld [vmem:[%s14671_s3 + $0x4c0] sm:$0xff] }
 0x241   :  { %6189 = vmatpush2.bf16.msra.mxu1 %v11114_v43  ;;  %v6849_v43 = vld [vmem:[%s14671_s3 + $0x4e0] sm:$0xff] }
 0x242   :  { %6138 = vmatmul.mubr.bf16.vlgmr.msra.gmra.mxu0 %v13061_v50  ;;  %v6877_v50 = vld [vmem:[%s14671_s3 + $0x5c0] sm:$0xff]  ;;  %v13583_v3 = vpop.f32.mrf.mxu0 }
 0x243   :  { %6147 = vmatprep.mubr.bf16.mxu0 %v13067_v54  ;;  %v9932_v54 = vcombine.high %v6749_v15, %v6753_v11 }
 0x244   :  { %6191 = vmatmul.mubr.bf16.vlgmr.msra.gmra.mxu1 %v13314_v63  ;;  %v6881_v63 = vld [vmem:[%s14671_s3 + $0x5e0] sm:$0xff]  ;;  %v13588_v10 = vpop.f32.mrf.mxu0  ;;  %v13624_v56 = vpop.f32.mrf.mxu1 }
 0x245   :  { %6200 = vmatprep.mubr.bf16.mxu1 %v13325_v57  ;;  %v10059_v57 = vcombine.low %v6877_v50, %v6881_v63  ;;  %8303 = vmatprep.subr.bf16.mxu0 %v9932_v54 }
 0x246   :  { %v13604_v33 = vpop.f32.mrf.mxu0  ;;  %v13640_v54 = vpop.f32.mrf.mxu1 }
 0x248   :  { %v13620_v36 = vpop.f32.mrf.mxu0 }
 0x24a   :  { %6148 = vmatmul.mubr.bf16.gmra.mxu0 %v13113_v40  ;;  %v9931_v40 = vcombine.low %v6749_v15, %v6753_v11  ;;  %v13626_v2 = vpop.f32.mrf.mxu0  ;;  %v9899_v15 = vcombine.low %v6717_v45, %v6721_v8  ;;  %v10027_v11 = vcombine.low %v6845_v12, %v6849_v43  ;;  %v9875_v45 = vcombine.low %v6693_v42, %v6697_v31 }
 0x24c   :  { %6201 = vmatmul.mubr.bf16.gmra.mxu1 %v13354_v29  ;;  %v10060_v29 = vcombine.high %v6877_v50, %v6881_v63  ;;  %8304 = vmatpush1.bf16.msra.mxu0 %v9931_v40  ;;  %v10028_v50 = vcombine.high %v6845_v12, %v6849_v43  ;;  %v13642_v63 = vpop.f32.mrf.mxu0  ;;  %v6709_v40 = vld [vmem:[%s14671_s3 + $0x80] sm:$0xff] }
 0x24d   :  { %8305 = vmatprep.subr.bf16.mxu0 %v9924_v14  ;;  %14679 = vst [vmem:[#allocation8_spill] sm:$0xff] %v13642_v63  ;;  %v6817_v43 = vld [vmem:[%s14671_s3 + $0x3e0] sm:$0xff] }
 0x24e   :  { %8344 = vmatprep.subr.bf16.mxu1 %v10060_v29  ;;  %v6837_v29 = vld [vmem:[%s14671_s3 + $0x480] sm:$0xff] }
 0x24f   :  { %8345 = vmatpush1.bf16.msra.mxu1 %v10059_v57  ;;  %v6713_v57 = vld [vmem:[%s14671_s3 + $0xa0] sm:$0xff]  ;;  %v10019_v14 = vcombine.low %v6837_v29, %v6841_v59  ;;  %v10020_v19 = vcombine.high %v6837_v29, %v6841_v59 }
 0x250   :  { %8346 = vmatprep.subr.bf16.mxu1 %v10052_v16  ;;  %8306 = vmatpush1.bf16.msra.mxu0 %v9923_v44  ;;  %v9892_v58 = vcombine.high %v6709_v40, %v6713_v57  ;;  %v9891_v48 = vcombine.low %v6709_v40, %v6713_v57  ;;  %v13656_v44 = vpop.f32.mrf.mxu1  ;;  %v6701_v16 = vld [vmem:[%s14671_s3 + $0x40] sm:$0xff] }
 0x251   :  { %8307 = vmatprep.subr.bf16.mxu0 %v9916_v52  ;;  %v9884_v47 = vcombine.high %v6701_v16, %v6705_v20  ;;  %v6833_v52 = vld [vmem:[%s14671_s3 + $0x460] sm:$0xff]  ;;  %v9883_v28 = vcombine.low %v6701_v16, %v6705_v20 }
 0x252   :  { %v6945_v40 = vld [vmem:[%s14671_s3 + $0x7e0] sm:$0xff] }
 0x253   :  { %8347 = vmatpush1.bf16.msra.mxu1 %v10051_v13  ;;  %v13658_v13 = vpop.f32.mrf.mxu0 }
 0x254   :  { %8348 = vmatprep.subr.bf16.mxu1 %v10044_v25  ;;  %8308 = vmatpush1.bf16.msra.mxu0 %v9915_v35  ;;  %14680 = vst [vmem:[#allocation9_spill] sm:$0xff] %v13658_v13  ;;  %v10011_v35 = vcombine.low %v6829_v62, %v6833_v52  ;;  %v13672_v25 = vpop.f32.mrf.mxu1 }
 0x255   :  { %8309 = vmatprep.subr.bf16.mxu0 %v9908_v17  ;;  %v13674_v18 = vpop.f32.mrf.mxu0  ;;  %v6821_v17 = vld [vmem:[%s14671_s3 + $0x400] sm:$0xff] }
 0x256   :  { %14681 = vst [vmem:[#allocation10_spill] sm:$0xff] %v13674_v18  ;;  %v13685_v32 = vpop.f32.mrf.mxu1 }
 0x257   :  { %8349 = vmatpush1.bf16.msra.mxu1 %v10043_v61  ;;  %v10012_v61 = vcombine.high %v6829_v62, %v6833_v52  ;;  %14682 = vst [vmem:[#allocation11_spill] sm:$0xff] %v13685_v32  ;;  %v6937_v62 = vld [vmem:[%s14671_s3 + $0x7a0] sm:$0xff] }
 0x258   :  { %8350 = vmatprep.subr.bf16.mxu1 %v10036_v46  ;;  %8310 = vmatpush1.bf16.msra.mxu0 %v9907_v0  ;;  %v9876_v0 = vcombine.high %v6693_v42, %v6697_v31  ;;  %v6801_v42 = vld [vmem:[%s14671_s3 + $0x360] sm:$0xff] }
 0x259   :  { %8311 = vmatprep.subr.bf16.mxu0 %v9900_v5  ;;  %v6813_v5 = vld [vmem:[%s14671_s3 + $0x3c0] sm:$0xff] }
 0x25a   :  { %v9995_v29 = vcombine.low %v6813_v5, %v6817_v43  ;;  %v6925_v31 = vld [vmem:[%s14671_s3 + $0x740] sm:$0xff] }
 0x25b   :  { %8351 = vmatpush1.bf16.msra.mxu1 %v10035_v51  ;;  %v6825_v51 = vld [vmem:[%s14671_s3 + $0x420] sm:$0xff] }
 0x25c   :  { %8352 = vmatprep.subr.bf16.mxu1 %v10028_v50  ;;  %8312 = vmatpush1.bf16.msra.mxu0 %v9899_v15  ;;  %v10003_v8 = vcombine.low %v6821_v17, %v6825_v51  ;;  %v10004_v12 = vcombine.high %v6821_v17, %v6825_v51  ;;  %v6941_v15 = vld [vmem:[%s14671_s3 + $0x7c0] sm:$0xff]  ;;  %v9996_v50 = vcombine.high %v6813_v5, %v6817_v43 }
 0x25d   :  { %8313 = vmatprep.subr.bf16.mxu0 %v9892_v58  ;;  %v10123_v58 = vcombine.low %v6941_v15, %v6945_v40  ;;  %v10124_v59 = vcombine.high %v6941_v15, %v6945_v40  ;;  %v6929_v51 = vld [vmem:[%s14671_s3 + $0x760] sm:$0xff] }
 0x25e   :  { %v10107_v5 = vcombine.low %v6925_v31, %v6929_v51  ;;  %v10108_v43 = vcombine.high %v6925_v31, %v6929_v51  ;;  %v6921_v40 = vld [vmem:[%s14671_s3 + $0x720] sm:$0xff] }
 0x25f   :  { %8353 = vmatpush1.bf16.msra.mxu1 %v10027_v11  ;;  %v13701_v11 = vpop.f32.mrf.mxu1  ;;  %v6777_v31 = vld [vmem:[%s14671_s3 + $0x2a0] sm:$0xff] }
 0x260   :  { %8354 = vmatprep.subr.bf16.mxu1 %v10020_v19  ;;  %8314 = vmatpush1.bf16.msra.mxu0 %v9891_v48  ;;  %14683 = vst [vmem:[#allocation12_spill] sm:$0xff] %v13701_v11  ;;  %v6805_v48 = vld [vmem:[%s14671_s3 + $0x380] sm:$0xff] }
 0x261   :  { %8315 = vmatprep.subr.bf16.mxu0 %v9884_v47  ;;  %v6933_v19 = vld [vmem:[%s14671_s3 + $0x780] sm:$0xff]  ;;  %v13717_v16 = vpop.f32.mrf.mxu1 }
 0x262   :  { %14684 = vst [vmem:[#allocation13_spill] sm:$0xff] %v13717_v16  ;;  %v6905_v51 = vld [vmem:[%s14671_s3 + $0x6a0] sm:$0xff]  ;;  %v13801_v16 = vsub.s32 0, %v11306_v49 }
 0x263   :  { %8355 = vmatpush1.bf16.msra.mxu1 %v10019_v14  ;;  %v6809_v14 = vld [vmem:[%s14671_s3 + $0x3a0] sm:$0xff] }
 0x264   :  { %8356 = vmatprep.subr.bf16.mxu1 %v10012_v61  ;;  %8316 = vmatpush1.bf16.msra.mxu0 %v9883_v28  ;;  %v9988_v20 = vcombine.high %v6805_v48, %v6809_v14  ;;  %v9987_v52 = vcombine.low %v6805_v48, %v6809_v14  ;;  %v10115_v28 = vcombine.low %v6933_v19, %v6937_v62  ;;  %v6797_v61 = vld [vmem:[%s14671_s3 + $0x340] sm:$0xff] }
 0x265   :  { %8317 = vmatprep.subr.bf16.mxu0 %v9876_v0  ;;  %v9979_v17 = vcombine.low %v6797_v61, %v6801_v42  ;;  %v9980_v0 = vcombine.high %v6797_v61, %v6801_v42  ;;  %v6785_v48 = vld [vmem:[%s14671_s3 + $0x2e0] sm:$0xff] }
 0x266   :  { %v6773_v42 = vld [vmem:[%s14671_s3 + $0x280] sm:$0xff] }
 0x267   :  { %8357 = vmatpush1.bf16.msra.mxu1 %v10011_v35  ;;  %v10116_v35 = vcombine.high %v6933_v19, %v6937_v62  ;;  %v6909_v19 = vld [vmem:[%s14671_s3 + $0x6c0] sm:$0xff] }
 0x268   :  { %8358 = vmatprep.subr.bf16.mxu1 %v10004_v12  ;;  %8318 = vmatpush1.bf16.msra.mxu0 %v9875_v45  ;;  %v6789_v45 = vld [vmem:[%s14671_s3 + $0x300] sm:$0xff]  ;;  %v13742_v12 = vpop.f32.mrf.mxu1 }
 0x269   :  { %8319 = vmatprep.subr.bf16.mxu0 %v9996_v50  ;;  %14685 = vst [vmem:[#allocation14_spill] sm:$0xff] %v13742_v12  ;;  %v6917_v50 = vld [vmem:[%s14671_s3 + $0x700] sm:$0xff] }
 0x26b   :  { %8359 = vmatpush1.bf16.msra.mxu1 %v10003_v8  ;;  %v6793_v8 = vld [vmem:[%s14671_s3 + $0x320] sm:$0xff] }
 0x26c   :  { %8360 = vmatprep.subr.bf16.mxu1 %v10124_v59  ;;  %8320 = vmatpush2.bf16.msra.mxu0 %v9995_v29  ;;  %v9972_v15 = vcombine.high %v6789_v45, %v6793_v8  ;;  %v6781_v59 = vld [vmem:[%s14671_s3 + $0x2c0] sm:$0xff] }
 0x26d   :  { %8321 = vmatprep.subr.bf16.mxu0 %v9988_v20  ;;  %v6913_v20 = vld [vmem:[%s14671_s3 + $0x6e0] sm:$0xff] }
 0x26e   :  { %v10092_v61 = vcombine.high %v6909_v19, %v6913_v20 }
 0x26f   :  { %8361 = vmatpush2.bf16.msra.mxu1 %v10123_v58  ;;  %v10100_v58 = vcombine.high %v6917_v50, %v6921_v40 }
 0x270   :  { %8362 = vmatprep.subr.bf16.mxu1 %v10116_v35  ;;  %8322 = vmatpush2.bf16.msra.mxu0 %v9987_v52  ;;  %v9971_v52 = vcombine.low %v6789_v45, %v6793_v8  ;;  %v9964_v35 = vcombine.high %v6781_v59, %v6785_v48  ;;  %v9963_v8 = vcombine.low %v6781_v59, %v6785_v48  ;;  %v6897_v59 = vld [vmem:[%s14671_s3 + $0x660] sm:$0xff] }
 0x271   :  { %8323 = vmatprep.subr.bf16.mxu0 %v9980_v0 }
 0x273   :  { %8363 = vmatpush2.bf16.msra.mxu1 %v10115_v28  ;;  %v10099_v28 = vcombine.low %v6917_v50, %v6921_v40  ;;  %v6765_v50 = vld [vmem:[%s14671_s3 + $0x240] sm:$0xff] }
 0x274   :  { %8364 = vmatprep.subr.bf16.mxu1 %v10108_v43  ;;  %8324 = vmatpush2.bf16.msra.mxu0 %v9979_v17  ;;  %v6901_v17 = vld [vmem:[%s14671_s3 + $0x680] sm:$0xff]  ;;  %v9956_v43 = vcombine.high %v6773_v42, %v6777_v31 }
 0x275   :  { %8325 = vmatprep.subr.bf16.mxu0 %v9972_v15  ;;  %v10084_v15 = vcombine.high %v6901_v17, %v6905_v51  ;;  %v6769_v40 = vld [vmem:[%s14671_s3 + $0x260] sm:$0xff] }
 0x277   :  { %8365 = vmatpush2.bf16.msra.mxu1 %v10107_v5  ;;  %v10091_v5 = vcombine.low %v6909_v19, %v6913_v20  ;;  %v9955_v19 = vcombine.low %v6773_v42, %v6777_v31  ;;  %v10083_v20 = vcombine.low %v6901_v17, %v6905_v51  ;;  %v6885_v42 = vld [vmem:[%s14671_s3 + $0x600] sm:$0xff] }
 0x278   :  { %8366 = vmatprep.subr.bf16.mxu1 %v10100_v58  ;;  %8326 = vmatpush2.bf16.msra.mxu0 %v9971_v52  ;;  %v6893_v52 = vld [vmem:[%s14671_s3 + $0x640] sm:$0xff] }
 0x279   :  { %8327 = vmatprep.subr.bf16.mxu0 %v9964_v35  ;;  %v10076_v35 = vcombine.high %v6893_v52, %v6897_v59  ;;  %v6889_v31 = vld [vmem:[%s14671_s3 + $0x620] sm:$0xff]  ;;  %v10075_v11 = vcombine.low %v6893_v52, %v6897_v59 }
 0x27a   :  { %v13814_v51 = vld [vmem:[%s14670_s2] sm:$0xf]  ;;  %v10068_v13 = vcombine.high %v6885_v42, %v6889_v31 }
 0x27b   :  { %8367 = vmatpush2.bf16.msra.mxu1 %v10099_v28  ;;  %v9948_v28 = vcombine.high %v6765_v50, %v6769_v40  ;;  %v13821_v63 = vrot.slane %v13814_v51, %v13801_v16 }
 0x27c   :  { %8368 = vmatprep.subr.bf16.mxu1 %v10092_v61  ;;  %8328 = vmatpush2.bf16.msra.mxu0 %v9963_v8  ;;  %v6757_v61 = vld [vmem:[%s14671_s3 + $0x200] sm:$0xff]  ;;  %v6235_v8 = vsub.s32 1, %v11306_v49 }
 0x27d   :  { %8329 = vmatprep.subr.bf16.mxu0 %v9956_v43  ;;  %v9940_v18 = vcombine.high %v6757_v61, %v6761_v60 }
 0x27f   :  { %8369 = vmatpush2.bf16.msra.mxu1 %v10091_v5  ;;  %v9947_v5 = vcombine.low %v6765_v50, %v6769_v40 }
 0x280   :  { %8370 = vmatprep.subr.bf16.mxu1 %v10084_v15  ;;  %8330 = vmatpush2.bf16.msra.mxu0 %v9955_v19 }
 0x281   :  { %8331 = vmatprep.subr.bf16.mxu0 %v9948_v28 }
 0x282   :  { %v13690_v46 = vpop.f32.mrf.mxu0 }
 0x283   :  { %8371 = vmatpush2.bf16.msra.mxu1 %v10083_v20 }
 0x284   :  { %v13706_v57 = vpop.f32.mrf.mxu0  ;;  %v5980_v14 = vpop.f32.mrf.mxu1  ;;  %8372 = vmatprep.subr.bf16.mxu1 %v10076_v35  ;;  %8332 = vmatpush2.bf16.msra.mxu0 %v9947_v5 }
 0x285   :  { %v5981_v43 = vadd.f32 %v5980_v14, %v13690_v46  ;;  %v13827_v46 = vrot.slane %v13814_v51, %v6235_v8  ;;  %v9939_v14 = vcombine.low %v6757_v61, %v6761_v60  ;;  %8333 = vmatprep.subr.bf16.mxu0 %v9940_v18 }
 0x286   :  { %v13722_v47 = vpop.f32.mrf.mxu0  ;;  %v5982_v0 = vpop.f32.mrf.mxu1 }
 0x287   :  { %v5983_v1 = vadd.f32 %v5982_v0, %v13706_v57  ;;  %8373 = vmatpush2.bf16.msra.mxu1 %v10075_v11 }
 0x288   :  { %v13750_v29 = vpop.f32.mrf.mxu0  ;;  %v5984_v58 = vpop.f32.mrf.mxu1  ;;  %8374 = vmatprep.subr.bf16.mxu1 %v10068_v13  ;;  %8334 = vmatpush2.bf16.msra.mxu0 %v9939_v14 }
 0x289   :  { %v5985_v19 = vadd.f32 %v5984_v58, %v13722_v47 }
 0x28a   :  { %v13764_v62 = vpop.f32.mrf.mxu0  ;;  %v5986_v12 = vpop.f32.mrf.mxu1 }
 0x28b   :  { %v5987_v0 = vadd.f32 %v5986_v12, %v13750_v29  ;;  %v13845_v12 = vld [vmem:[%s14671_s3 + $0x1e8] sm:$0xff] }
 0x28c   :  { %v13778_v45 = vpop.f32.mrf.mxu0  ;;  %v5990_v15 = vpop.f32.mrf.mxu1 }
 0x28d   :  { %v5991_v60 = vadd.f32 %v5990_v15, %v13764_v62 }
 0x28e   :  { %v13792_v48 = vpop.f32.mrf.mxu0  ;;  %v5992_v40 = vpop.f32.mrf.mxu1 }
 0x28f   :  { %v5993_v13 = vadd.f32 %v5992_v40, %v13778_v45 }
 0x290   :  { %v13809_v17 = vpop.f32.mrf.mxu0  ;;  %v5994_v35 = vpop.f32.mrf.mxu1 }
 0x2c2   :  { %v6033_v32 = vpop.f32.mrf.mxu0 }
 0x2c3   :  { %v6034_v21 = vadd.f32 %v6033_v32, %v5981_v43  ;;  %v10067_v32 = vcombine.low %v6885_v42, %v6889_v31  ;;  %v13857_v42 = vld [vmem:[%s14671_s3 + $0x5e8] sm:$0xff] }
 0x2c4   :  { %v6035_v50 = vpop.f32.mrf.mxu0 }
 0x2c5   :  { %v6211_v52 = vadd.f32 %v6034_v21, %v13332_v6  ;;  %v6036_v59 = vadd.f32 %v6035_v50, %v5983_v1  ;;  %8375 = vmatpush2.bf16.msra.mxu1 %v10067_v32  ;;  %v5996_v50 = vpop.f32.mrf.mxu1 }
 0x2c6   :  { %v6037_v57 = vpop.f32.mrf.mxu0 }
 0x2c7   :  { %v6249_v47 = vadd.f32 %v13821_v63, %v6211_v52  ;;  %v6212_v58 = vadd.f32 %v6036_v59, %v13346_v23  ;;  %v6038_v20 = vadd.f32 %v6037_v57, %v5985_v19  ;;  %v13840_v23 = vld [vmem:[%s14671_s3 + $0x1c8] sm:$0xff] }
 0x2c8   :  { %v6039_v28 = vpop.f32.mrf.mxu0  ;;  %v9933_v5 = vcombine.low %v13840_v23, %v13845_v12  ;;  %v9934_v43 = vcombine.high %v13840_v23, %v13845_v12  ;;  %v6862_v23 = vld [vmem:[%s14671_s3 + $0x548] sm:$0xff] }
 0x2c9   :  { %v6250_v21 = vadd.f32 %v13827_v46, %v6212_v58  ;;  %v6215_v6 = vadd.f32 %v6038_v20, %v13358_v7  ;;  %v6040_v1 = vadd.f32 %v6039_v28, %v5987_v0  ;;  %v6265_v18 = vmax.f32 %v6249_v47, 0.0  ;;  %v13850_v7 = vld [vmem:[%s14671_s3 + $0x5c8] sm:$0xff] }
 0x2ca   :  { %v6043_v11 = vpop.f32.mrf.mxu0  ;;  %v10061_v15 = vcombine.low %v13850_v7, %v13857_v42  ;;  %v10062_v19 = vcombine.high %v13850_v7, %v13857_v42  ;;  %8385 = vmatprep.subr.bf16.mxu0 %v9934_v43  ;;  %v6866_v12 = vld [vmem:[%s14671_s3 + $0x568] sm:$0xff] }
 0x2cb   :  { %v6266_v29 = vmax.f32 %v6250_v21, 0.0  ;;  %v6253_v62 = vadd.f32 %v13821_v63, %v6215_v6  ;;  %v6216_v45 = vadd.f32 %v6040_v1, %v13373_v30  ;;  %v6044_v61 = vadd.f32 %v6043_v11, %v5991_v60  ;;  %v6854_v7 = vld [vmem:[%s14671_s3 + $0x508] sm:$0xff] }
 0x2cc   :  { %v6045_v31 = vpop.f32.mrf.mxu0  ;;  %v5995_v30 = vadd.f32 %v5994_v35, %v13792_v48  ;;  %8426 = vmatprep.subr.bf16.mxu1 %v10062_v19  ;;  %v5997_v48 = vadd.f32 %v5996_v50, %v13809_v17  ;;  %v6086_v50 = vpop.f32.mrf.mxu1  ;;  %v6858_v42 = vld [vmem:[%s14671_s3 + $0x528] sm:$0xff] }
 0x2cd   :  { %v13868_v14 = vcombine.low %v6265_v18, %v6266_v29  ;;  %v13870_v40 = vcombine.high %v6265_v18, %v6266_v29  ;;  %v6254_v52 = vadd.f32 %v13827_v46, %v6216_v45  ;;  %v6219_v59 = vadd.f32 %v6044_v61, %v13383_v41 }
 0x2ce   :  { %v6046_v32 = vadd.f32 %v6045_v31, %v5993_v13  ;;  %v6047_v57 = vpop.f32.mrf.mxu0  ;;  %v6269_v47 = vmax.f32 %v6253_v62, 0.0 }
 0x2cf   :  { %v6329_v0 = vmax.f32 %v13868_v14, %v13870_v40  ;;  %v6270_v58 = vmax.f32 %v6254_v52, 0.0  ;;  %v6048_v20 = vadd.f32 %v6047_v57, %v5995_v30  ;;  %v6257_v28 = vadd.f32 %v13821_v63, %v6219_v59 }
 0x2d0   :  { %v6220_v60 = vadd.f32 %v6046_v32, %v13399_v55  ;;  %v6049_v35 = vpop.f32.mrf.mxu0 }
 0x2d1   :  { %v13879_v21 = vcombine.low %v6269_v47, %v6270_v58  ;;  %v13881_v41 = vcombine.high %v6269_v47, %v6270_v58  ;;  %v6223_v6 = vadd.f32 %v6048_v20, %v13410_v4  ;;  %v6050_v13 = vadd.f32 %v6049_v35, %v5997_v48 }
 0x2d2   :  { %v6258_v1 = vadd.f32 %v13827_v46, %v6220_v60  ;;  %v6273_v11 = vmax.f32 %v6257_v28, 0.0  ;;  %v13905_v20 = vsub.s32 2, %v11306_v49  ;;  %v4078_v60 = vadd.f32 %v13588_v10, %v13367_v53 }
 0x2d3   :  { %v6331_v18 = vmax.f32 %v13879_v21, %v13881_v41  ;;  %v6261_v17 = vadd.f32 %v13821_v63, %v6223_v6  ;;  %v6224_v62 = vadd.f32 %v6050_v13, %v13422_v27  ;;  %v6088_v27 = vpop.f32.mrf.mxu1  ;;  %v6243_v6 = vsub.s32 3, %v11306_v49 }
 0x2d4   :  { %v6274_v29 = vmax.f32 %v6258_v1, 0.0 }
 0x2d5   :  { %v6262_v61 = vadd.f32 %v13827_v46, %v6224_v62  ;;  %v6277_v31 = vmax.f32 %v6261_v17, 0.0  ;;  %v6090_v52 = vpop.f32.mrf.mxu1  ;;  %v4076_v46 = vadd.f32 %v13583_v3, %v13349_v39  ;;  %v13915_v3 = vrot.slane %v13814_v51, %v13905_v20 }
 0x2d6   :  { %v13889_v55 = vcombine.low %v6273_v11, %v6274_v29  ;;  %v13891_v45 = vcombine.high %v6273_v11, %v6274_v29  ;;  %v4080_v29 = vadd.f32 %v13604_v33, %v13376_v34  ;;  %v4082_v62 = vadd.f32 %v13620_v36, %v13392_v24 }
 0x2d7   :  { %v6278_v43 = vmax.f32 %v6262_v61, 0.0  ;;  %v6092_v59 = vpop.f32.mrf.mxu1  ;;  %v4129_v11 = vadd.f32 %v13624_v56, %v4076_v46  ;;  %v4131_v61 = vadd.f32 %v13640_v54, %v4078_v60  ;;  %v13923_v56 = vrot.slane %v13814_v51, %v6243_v6 }
 0x2d8   :  { %v6333_v4 = vmax.f32 %v13889_v55, %v13891_v45  ;;  %v4035_v33 = vadd.f32 %v13599_v22, %v12851_v26  ;;  %v4133_v46 = vadd.f32 %v13656_v44, %v4080_v29  ;;  %v4086_v51 = vadd.f32 %v13626_v2, %v13403_v38  ;;  %v14686_v26 = vld [vmem:[#allocation8_spill] sm:$0xff]  ;;  %v14688_v29 = vld [vmem:[#allocation7_spill] sm:$0xff] }
 0x2d9   :  { %v13896_v19 = vcombine.low %v6277_v31, %v6278_v43  ;;  %v13898_v30 = vcombine.high %v6277_v31, %v6278_v43  ;;  %v6096_v32 = vpop.f32.mrf.mxu1 }
 0x2da   :  { %v4088_v22 = vadd.f32 %v14686_v26, %v4035_v33 }
 0x2db   :  { %v6335_v63 = vmax.f32 %v13896_v19, %v13898_v30  ;;  %v6098_v57 = vpop.f32.mrf.mxu1 }
 0x2dd   :  { %v6100_v47 = vpop.f32.mrf.mxu1 }
 0x2df   :  { %v6102_v48 = vpop.f32.mrf.mxu1 }
 0x302   :  { %v6139_v58 = vpop.f32.mrf.mxu0 }
 0x303   :  { %v6140_v28 = vadd.f32 %v6139_v58, %v6086_v50  ;;  %v4037_v58 = vadd.f32 %v13606_v37, %v12860_v9 }
 0x304   :  { %v6141_v35 = vpop.f32.mrf.mxu0  ;;  %v6192_v1 = vpop.f32.mrf.mxu1 }
 0x305   :  { %v6142_v13 = vadd.f32 %v6141_v35, %v6088_v27  ;;  %v6193_v39 = vadd.f32 %v6192_v1, %v6140_v28  ;;  %v4135_v28 = vadd.f32 %v13672_v25, %v4082_v62 }
 0x306   :  { %v6143_v17 = vpop.f32.mrf.mxu0  ;;  %v6194_v53 = vpop.f32.mrf.mxu1 }
 0x307   :  { %v6144_v10 = vadd.f32 %v6143_v17, %v6090_v52  ;;  %v6213_v31 = vadd.f32 %v6193_v39, %v4129_v11  ;;  %v6195_v43 = vadd.f32 %v6194_v53, %v6142_v13  ;;  %v14687_v11 = vld [vmem:[#allocation6_spill] sm:$0xff]  ;;  %v14689_v17 = vld [vmem:[#allocation9_spill] sm:$0xff] }
 0x308   :  { %v6145_v34 = vpop.f32.mrf.mxu0  ;;  %v6196_v50 = vpop.f32.mrf.mxu1  ;;  %v4039_v39 = vadd.f32 %v14688_v29, %v14687_v11  ;;  %v4090_v53 = vadd.f32 %v14689_v17, %v4037_v58 }
 0x309   :  { %v6146_v27 = vadd.f32 %v6145_v34, %v6092_v59  ;;  %v6251_v24 = vadd.f32 %v13915_v3, %v6213_v31  ;;  %v6214_v36 = vadd.f32 %v6195_v43, %v4131_v61  ;;  %v6197_v52 = vadd.f32 %v6196_v50, %v6144_v10  ;;  %v14690_v61 = vld [vmem:[#allocation11_spill] sm:$0xff]  ;;  %v14691_v43 = vld [vmem:[#allocation10_spill] sm:$0xff] }
 0x30a   :  { %v6149_v54 = vpop.f32.mrf.mxu0  ;;  %v6198_v60 = vpop.f32.mrf.mxu1  ;;  %v4139_v31 = vadd.f32 %v14690_v61, %v4086_v51  ;;  %v4092_v34 = vadd.f32 %v14691_v43, %v4039_v39 }
 0x30b   :  { %v6150_v35 = vadd.f32 %v6149_v54, %v6096_v32  ;;  %v6252_v59 = vadd.f32 %v13923_v56, %v6214_v36  ;;  %v6217_v44 = vadd.f32 %v6197_v52, %v4133_v46  ;;  %v6199_v1 = vadd.f32 %v6198_v60, %v6146_v27  ;;  %v14692_v27 = vld [vmem:[#allocation12_spill] sm:$0xff] }
 0x30c   :  { %v6151_v13 = vpop.f32.mrf.mxu0  ;;  %v6267_v9 = vmax.f32 %v6251_v24, 0.0  ;;  %v6202_v37 = vpop.f32.mrf.mxu1  ;;  %v4141_v46 = vadd.f32 %v14692_v27, %v4088_v22 }
 0x30d   :  { %v6152_v25 = vadd.f32 %v6151_v13, %v6098_v57  ;;  %v6268_v62 = vmax.f32 %v6252_v59, 0.0  ;;  %v6255_v38 = vadd.f32 %v13915_v3, %v6217_v44  ;;  %v6218_v2 = vadd.f32 %v6199_v1, %v4135_v28  ;;  %v14693_v57 = vld [vmem:[#allocation13_spill] sm:$0xff]  ;;  %v14694_v13 = vld [vmem:[#allocation14_spill] sm:$0xff] }
 0x30e   :  { %v6203_v32 = vadd.f32 %v6202_v37, %v6150_v35  ;;  %v6153_v10 = vpop.f32.mrf.mxu0  ;;  %v6204_v33 = vpop.f32.mrf.mxu1  ;;  %v4143_v58 = vadd.f32 %v14693_v57, %v4090_v53  ;;  %v4145_v11 = vadd.f32 %v14694_v13, %v4092_v34 }
 0x30f   :  { %v6154_v50 = vadd.f32 %v6153_v10, %v6100_v47  ;;  %v6299_v36 = vcombine.low %v6267_v9, %v6268_v62  ;;  %v6300_v52 = vcombine.high %v6267_v9, %v6268_v62  ;;  %v6256_v24 = vadd.f32 %v13923_v56, %v6218_v2  ;;  %v14695_v47 = vld [vmem:[#allocation5_spill] sm:$0xff] }
 0x310   :  { %v6155_v54 = vpop.f32.mrf.mxu0  ;;  %v6221_v60 = vadd.f32 %v6203_v32, %v4139_v31  ;;  %v6205_v26 = vadd.f32 %v6204_v33, %v6152_v25  ;;  %v6206_v28 = vpop.f32.mrf.mxu1  ;;  %v6271_v44 = vmax.f32 %v6255_v38, 0.0  ;;  %v6351_v22 = vrot.slane %v6329_v0, %v14695_v47 }
 0x311   :  { %v6156_v35 = vadd.f32 %v6155_v54, %v6102_v48  ;;  %v6330_v59 = vmax.f32 %v6299_v36, %v6300_v52  ;;  %v6272_v51 = vmax.f32 %v6256_v24, 0.0  ;;  %v6207_v1 = vadd.f32 %v6206_v28, %v6154_v50 }
 0x312   :  { %v6259_v29 = vadd.f32 %v13915_v3, %v6221_v60  ;;  %v6222_v39 = vadd.f32 %v6205_v26, %v4141_v46  ;;  %v6208_v48 = vpop.f32.mrf.mxu1  ;;  %v13953_v25 = vsub.s32 4, %v11306_v49  ;;  %v13956_v62 = vsub.s32 6, %v11306_v49 }
 0x313   :  { %v6358_v17 = vrot.slane %v6330_v59, %v14695_v47  ;;  %v6303_v53 = vcombine.low %v6271_v44, %v6272_v51  ;;  %v6304_v9 = vcombine.high %v6271_v44, %v6272_v51  ;;  %v6225_v37 = vadd.f32 %v6207_v1, %v4143_v58 }
 0x314   :  { %v6260_v38 = vadd.f32 %v13923_v56, %v6222_v39  ;;  %v6209_v2 = vadd.f32 %v6208_v48, %v6156_v35  ;;  %v6275_v32 = vmax.f32 %v6259_v29, 0.0  ;;  %v6367_v43 = vrot.slane %v6331_v18, %v14695_v47 }
 0x315   :  { %v6359_v14 = vcombine.low %v6351_v22, %v6358_v17  ;;  %v6360_v40 = vcombine.high %v6351_v22, %v6358_v17  ;;  %v6332_v0 = vmax.f32 %v6303_v53, %v6304_v9  ;;  %v6263_v61 = vadd.f32 %v13915_v3, %v6225_v37 }
 0x316   :  { %v6276_v10 = vmax.f32 %v6260_v38, 0.0  ;;  %v6226_v31 = vadd.f32 %v6209_v2, %v4145_v11  ;;  %v6383_v21 = vrot.slane %v6333_v4, %v14695_v47  ;;  %v6399_v9 = vrot.slane %v6335_v63, %v14695_v47 }
 0x317   :  { %v9867_v34 = vrot.slane %v6359_v14, 9  ;;  %v9868_v33 = vrot.slane %v6360_v40, 9  ;;  %v6374_v50 = vrot.slane %v6332_v0, %v14695_v47  ;;  %v6279_v18 = vmax.f32 %v6263_v61, 0.0 }
 0x318   :  { %v6307_v27 = vcombine.low %v6275_v32, %v6276_v10  ;;  %v6308_v46 = vcombine.high %v6275_v32, %v6276_v10  ;;  %v6264_v36 = vadd.f32 %v13923_v56, %v6226_v31 }
 0x319   :  { %v6441_v52 = vmax.f32 %v6359_v14, %v9867_v34  ;;  %v6442_v24 = vmax.f32 %v6360_v40, %v9868_v33  ;;  %v6375_v54 = vcombine.low %v6367_v43, %v6374_v50  ;;  %v6376_v57 = vcombine.high %v6367_v43, %v6374_v50 }
 0x31a   :  { %v6334_v41 = vmax.f32 %v6307_v27, %v6308_v46  ;;  %v6280_v3 = vmax.f32 %v6264_v36, 0.0 }
 0x31b   :  { %v6460_v58 = vrot.slane %v6441_v52, %v13801_v16  ;;  %v6464_v60 = vrot.slane %v6441_v52, %v13905_v20  ;;  %v6468_v56 = vrot.slane %v6441_v52, %v13953_v25  ;;  %v6472_v26 = vrot.slane %v6441_v52, %v13956_v62 }
 0x31c   :  { %v6476_v28 = vrot.slane %v6442_v24, %v13801_v16  ;;  %v6480_v35 = vrot.slane %v6442_v24, %v13905_v20  ;;  %v6484_v59 = vrot.slane %v6442_v24, %v13953_v25  ;;  %v6488_v55 = vrot.slane %v6442_v24, %v13956_v62 }
 0x31d   :  { %v9869_v45 = vrot.slane %v6375_v54, 9  ;;  %v9870_v4 = vrot.slane %v6376_v57, 9  ;;  %v6390_v44 = vrot.slane %v6334_v41, %v14695_v47  ;;  %v6311_v51 = vcombine.low %v6279_v18, %v6280_v3 }
 0x31e   :  { %v6586_v1 = vsel %vm6585_vm0, %v6476_v28, %v6460_v58  ;;  %v6594_v13 = vsel %vm6585_vm0, %v6484_v59, %v6468_v56  ;;  %v6312_v11 = vcombine.high %v6279_v18, %v6280_v3  ;;  %v6591_v22 = vsel %vm6585_vm0, %v6480_v35, %v6464_v60 }
 0x31f   :  { %v6443_v29 = vmax.f32 %v6375_v54, %v9869_v45  ;;  %v6444_v39 = vmax.f32 %v6376_v57, %v9870_v4  ;;  %v6391_v17 = vcombine.low %v6383_v21, %v6390_v44  ;;  %v6392_v53 = vcombine.high %v6383_v21, %v6390_v44 }
 0x320   :  { %v6336_v37 = vmax.f32 %v6311_v51, %v6312_v11  ;;  %v6597_v48 = vsel %vm6585_vm0, %v6488_v55, %v6472_v26 }
 0x321   :  { %v6492_v38 = vrot.slane %v6443_v29, %v13801_v16  ;;  %v6496_v2 = vrot.slane %v6443_v29, %v13905_v20  ;;  %v6500_v14 = vrot.slane %v6443_v29, %v13953_v25  ;;  %v6504_v40 = vrot.slane %v6443_v29, %v13956_v62 }
 0x322   :  { %v6508_v0 = vrot.slane %v6444_v39, %v13801_v16  ;;  %v6512_v32 = vrot.slane %v6444_v39, %v13905_v20  ;;  %v6516_v10 = vrot.slane %v6444_v39, %v13953_v25  ;;  %v6520_v19 = vrot.slane %v6444_v39, %v13956_v62 }
 0x323   :  { %v9871_v30 = vrot.slane %v6391_v17, 9  ;;  %v9872_v63 = vrot.slane %v6392_v53, 9  ;;  %v6406_v61 = vrot.slane %v6336_v37, %v14695_v47  ;;  %v6592_v31 = vsel %vm6587_vm1, %v6496_v2, %v6591_v22 }
 0x324   :  { %v6593_v43 = vsel %vm6589_vm2, %v6512_v32, %v6592_v31  ;;  %v6598_v34 = vsel %vm6587_vm1, %v6504_v40, %v6597_v48  ;;  %v6588_v33 = vsel %vm6587_vm1, %v6492_v38, %v6586_v1  ;;  %v6595_v50 = vsel %vm6587_vm1, %v6500_v14, %v6594_v13 }
 0x325   :  { %v6445_v27 = vmax.f32 %v6391_v17, %v9871_v30  ;;  %v6446_v46 = vmax.f32 %v6392_v53, %v9872_v63  ;;  %v6407_v36 = vcombine.low %v6399_v9, %v6406_v61  ;;  %v6408_v52 = vcombine.high %v6399_v9, %v6406_v61 }
 0x326   :  { %v6628_v24 = vsel %vm6620_vm3, %v6593_v43, 0.0  ;;  %v6599_v54 = vsel %vm6589_vm2, %v6520_v19, %v6598_v34  ;;  %v6590_v57 = vsel %vm6589_vm2, %v6508_v0, %v6588_v33  ;;  %v6596_v21 = vsel %vm6589_vm2, %v6516_v10, %v6595_v50 }
 0x327   :  { %v6524_v41 = vrot.slane %v6445_v27, %v13801_v16  ;;  %v6528_v18 = vrot.slane %v6445_v27, %v13905_v20  ;;  %v6532_v3 = vrot.slane %v6445_v27, %v13953_v25  ;;  %v6536_v58 = vrot.slane %v6445_v27, %v13956_v62 }
 0x328   :  { %v6540_v60 = vrot.slane %v6446_v46, %v13801_v16  ;;  %v6544_v56 = vrot.slane %v6446_v46, %v13905_v20  ;;  %v6548_v26 = vrot.slane %v6446_v46, %v13953_v25  ;;  %v6552_v28 = vrot.slane %v6446_v46, %v13956_v62 }
 0x329   :  { %v9873_v35 = vrot.slane %v6407_v36, 9  ;;  %v9874_v59 = vrot.slane %v6408_v52, 9  ;;  %v6629_v55 = vrot.slane %v6628_v24, 4  ;;  %v6642_v45 = vsel %vm6620_vm3, %v6599_v54, 0.0 }
 0x32a   :  { %v6600_v4 = vsel %vm6585_vm0, %v6540_v60, %v6524_v41  ;;  %v6606_v44 = vsel %vm6585_vm0, %v6548_v26, %v6532_v3  ;;  %v6603_v51 = vsel %vm6585_vm0, %v6544_v56, %v6528_v18  ;;  %v6609_v1 = vsel %vm6585_vm0, %v6552_v28, %v6536_v58 }
 0x32b   :  { %v6447_v13 = vmax.f32 %v6407_v36, %v9873_v35  ;;  %v6448_v11 = vmax.f32 %v6408_v52, %v9874_v59  ;;  %v6630_v22 = vadd.f32 %v6629_v55, %v6628_v24  ;;  %v6643_v29 = vrot.slane %v6642_v45, 4 }
 0x32c   :  { %v6621_v39 = vsel %vm6620_vm3, %v6590_v57, 0.0  ;;  %v6635_v17 = vsel %vm6620_vm3, %v6596_v21, 0.0 }
 0x32d   :  { %v6556_v53 = vrot.slane %v6447_v13, %v13801_v16  ;;  %v6560_v9 = vrot.slane %v6447_v13, %v13905_v20  ;;  %v6564_v37 = vrot.slane %v6447_v13, %v13953_v25  ;;  %v6568_v48 = vrot.slane %v6447_v13, %v13956_v62 }
 0x32e   :  { %v6572_v38 = vrot.slane %v6448_v11, %v13801_v16  ;;  %v6576_v2 = vrot.slane %v6448_v11, %v13905_v20  ;;  %v6580_v14 = vrot.slane %v6448_v11, %v13953_v25  ;;  %v6584_v40 = vrot.slane %v6448_v11, %v13956_v62 }
 0x32f   :  { %v6604_v0 = vsel %vm6587_vm1, %v6560_v9, %v6603_v51  ;;  %v6631_v32 = vrot.slane %v6630_v22, 2  ;;  %v6610_v10 = vsel %vm6587_vm1, %v6568_v48, %v6609_v1  ;;  %v6644_v19 = vadd.f32 %v6643_v29, %v6642_v45 }
 0x330   :  { %v6605_v30 = vsel %vm6589_vm2, %v6576_v2, %v6604_v0  ;;  %v6611_v63 = vsel %vm6589_vm2, %v6584_v40, %v6610_v10  ;;  %v6601_v61 = vsel %vm6587_vm1, %v6556_v53, %v6600_v4  ;;  %v6622_v31 = vrot.slane %v6621_v39, 4 }
 0x331   :  { %v6632_v43 = vadd.f32 %v6631_v32, %v6630_v22  ;;  %v6656_v34 = vsel %vm6620_vm3, %v6605_v30, 0.0  ;;  %v6645_v33 = vrot.slane %v6644_v19, 2  ;;  %v6670_v50 = vsel %vm6620_vm3, %v6611_v63, 0.0 }
 0x332   :  { %v6657_v27 = vrot.slane %v6656_v34, 4  ;;  %v6671_v46 = vrot.slane %v6670_v50, 4  ;;  %v6602_v36 = vsel %vm6589_vm2, %v6572_v38, %v6601_v61  ;;  %v6623_v52 = vadd.f32 %v6622_v31, %v6621_v39 }
 0x333   :  { %v6633_v24 = vrot.slane %v6632_v43, 1  ;;  %v6646_v54 = vadd.f32 %v6645_v33, %v6644_v19  ;;  %v6649_v57 = vsel %vm6620_vm3, %v6602_v36, 0.0  ;;  %v6607_v21 = vsel %vm6587_vm1, %v6564_v37, %v6606_v44 }
 0x334   :  { %v6658_v41 = vadd.f32 %v6657_v27, %v6656_v34  ;;  %v6672_v18 = vadd.f32 %v6671_v46, %v6670_v50  ;;  %v6624_v3 = vrot.slane %v6623_v52, 2  ;;  %v6650_v58 = vrot.slane %v6649_v57, 4 }
 0x335   :  { %v6647_v60 = vrot.slane %v6646_v54, 1  ;;  %v6608_v56 = vsel %vm6589_vm2, %v6580_v14, %v6607_v21  ;;  %v6636_v26 = vrot.slane %v6635_v17, 4  ;;  %v6634_v45 = vadd.f32 %v6633_v24, %v6632_v43 }
 0x336   :  { %v6659_v28 = vrot.slane %v6658_v41, 2  ;;  %v6673_v35 = vrot.slane %v6672_v18, 2  ;;  %v6625_v59 = vadd.f32 %v6624_v3, %v6623_v52  ;;  %v6651_v55 = vadd.f32 %v6650_v58, %v6649_v57 }
 0x337   :  { %v6648_v4 = vadd.f32 %v6647_v60, %v6646_v54  ;;  %v6637_v51 = vadd.f32 %v6636_v26, %v6635_v17  ;;  %v6663_v1 = vsel %vm6620_vm3, %v6608_v56, 0.0  ;;  %v6678_v38 = vmul.f32 0.25, %v6634_v45 }
 0x338   :  { %v6660_v13 = vadd.f32 %v6659_v28, %v6658_v41  ;;  %v6674_v11 = vadd.f32 %v6673_v35, %v6672_v18  ;;  %v6626_v44 = vrot.slane %v6625_v59, 1  ;;  %v6652_v22 = vrot.slane %v6651_v55, 2 }
 0x339   :  { %v6638_v29 = vrot.slane %v6637_v51, 2  ;;  %v6664_v39 = vrot.slane %v6663_v1, 4  ;;  %v6680_v32 = vmul.f32 0.25, %v6648_v4  ;;  %v6686_v43 = vpack.c.bf16 %v6678_v38, %v6678_v38  ;;  %v6742_v4 = vld [vmem:[%s14671_s3 + $0x188] sm:$0xff] }
 0x33a   :  { %v6661_v53 = vrot.slane %v6660_v13, 1  ;;  %v6675_v9 = vrot.slane %v6674_v11, 1  ;;  %v6627_v37 = vadd.f32 %v6626_v44, %v6625_v59  ;;  %v6653_v48 = vadd.f32 %v6652_v22, %v6651_v55  ;;  %v6874_v38 = vld [vmem:[%s14671_s3 + $0x5a8] sm:$0xff] }
 0x33b   :  { %v6639_v2 = vadd.f32 %v6638_v29, %v6637_v51  ;;  %v6665_v14 = vadd.f32 %v6664_v39, %v6663_v1  ;;  %v6688_v27 = vpack.c.bf16 %v6680_v32, %v6680_v32  ;;  %v7000_v41 = vunpack.c.l.b16 %v6686_v43  ;;  %v6746_v51 = vld [vmem:[%s14671_s3 + $0x1a8] sm:$0xff] }
 0x33c   :  { %v6662_v40 = vadd.f32 %v6661_v53, %v6660_v13  ;;  %v6676_v0 = vadd.f32 %v6675_v9, %v6674_v11  ;;  %v6654_v10 = vrot.slane %v6653_v48, 1  ;;  %v6677_v31 = vmul.f32 0.25, %v6627_v37  ;;  %v6870_v9 = vld [vmem:[%s14671_s3 + $0x588] sm:$0xff] }
 0x33d   :  { %v6640_v17 = vrot.slane %v6639_v2, 1  ;;  %v6666_v19 = vrot.slane %v6665_v14, 2  ;;  %v7002_v60 = vunpack.c.l.b16 %v6688_v27  ;;  %v9926_v53 = vcombine.high %v6742_v4, %v6746_v51  ;;  %v6718_v43 = vld [vmem:[%s14671_s3 + $0xc8] sm:$0xff] }
 0x33e   :  { %v6682_v30 = vmul.f32 0.25, %v6662_v40  ;;  %v6684_v63 = vmul.f32 0.25, %v6676_v0  ;;  %v6655_v61 = vadd.f32 %v6654_v10, %v6653_v48  ;;  %v6685_v57 = vpack.c.bf16 %v6677_v31, %v6677_v31 }
 0x33f   :  { %v6641_v34 = vadd.f32 %v6640_v17, %v6639_v2  ;;  %v6667_v33 = vadd.f32 %v6666_v19, %v6665_v14  ;;  %v6734_v2 = vld [vmem:[%s14671_s3 + $0x148] sm:$0xff]  ;;  %v9925_v40 = vcombine.low %v6742_v4, %v6746_v51  ;;  %v10054_v10 = vcombine.high %v6870_v9, %v6874_v38 }
 0x340   :  { %v6690_v50 = vpack.c.bf16 %v6682_v30, %v6682_v30  ;;  %v6692_v46 = vpack.c.bf16 %v6684_v63, %v6684_v63  ;;  %v6681_v36 = vmul.f32 0.25, %v6655_v61  ;;  %v6999_v55 = vunpack.c.l.b16 %v6685_v57  ;;  %v6738_v14 = vld [vmem:[%s14671_s3 + $0x168] sm:$0xff] }
 0x341   :  { %v6668_v52 = vrot.slane %v6667_v33, 1  ;;  %v6679_v3 = vmul.f32 0.25, %v6641_v34  ;;  %v9918_v17 = vcombine.high %v6734_v2, %v6738_v14  ;;  %v6726_v19 = vld [vmem:[%s14671_s3 + $0x108] sm:$0xff]  ;;  %v10053_v63 = vcombine.low %v6870_v9, %v6874_v38 }
 0x342   :  { %v7004_v24 = vunpack.c.l.b16 %v6690_v50  ;;  %v7006_v54 = vunpack.c.l.b16 %v6692_v46  ;;  %v6689_v21 = vpack.c.bf16 %v6681_v36, %v6681_v36  ;;  %v6730_v30 = vld [vmem:[%s14671_s3 + $0x128] sm:$0xff]  ;;  %v10046_v31 = vcombine.high %v6862_v23, %v6866_v12 }
 0x343   :  { %v6669_v18 = vadd.f32 %v6668_v52, %v6667_v33  ;;  %v6687_v11 = vpack.c.bf16 %v6679_v3, %v6679_v3  ;;  %v9910_v61 = vcombine.high %v6726_v19, %v6730_v30  ;;  %v6722_v34 = vld [vmem:[%s14671_s3 + $0xe8] sm:$0xff]  ;;  %v10045_v33 = vcombine.low %v6862_v23, %v6866_v12 }
 0x344   :  { %v7009_v58 = vrot.slane %v7004_v24, 7  ;;  %v7013_v56 = vrot.slane %v7006_v54, 7  ;;  %v7003_v26 = vunpack.c.l.b16 %v6689_v21  ;;  %v9902_v50 = vcombine.high %v6718_v43, %v6722_v34  ;;  %v6710_v46 = vld [vmem:[%s14671_s3 + $0x88] sm:$0xff] }
 0x345   :  { %v6683_v28 = vmul.f32 0.25, %v6669_v18  ;;  %v7001_v37 = vunpack.c.l.b16 %v6687_v11  ;;  %v10038_v27 = vcombine.high %v6854_v7, %v6858_v42  ;;  %v6714_v36 = vld [vmem:[%s14671_s3 + $0xa8] sm:$0xff]  ;;  %v9901_v54 = vcombine.low %v6718_v43, %v6722_v34 }
 0x346   :  { %v7010_v35 = vsel %vm6585_vm0, %v7009_v58, %v7000_v41  ;;  %v7014_v59 = vsel %vm6585_vm0, %v7013_v56, %v7002_v60  ;;  %v7007_v45 = vrot.slane %v7003_v26, 7  ;;  %v6846_v52 = vld [vmem:[%s14671_s3 + $0x4c8] sm:$0xff]  ;;  %v10037_v57 = vcombine.low %v6854_v7, %v6858_v42 }
 0x347   :  { %v14048_v1 = vpack.c.b16 %v7010_v35, %v7010_v35  ;;  %v14050_v13 = vpack.c.b16 %v7014_v59, %v7014_v59  ;;  %v6691_v44 = vpack.c.bf16 %v6683_v28, %v6683_v28  ;;  %v6850_v24 = vld [vmem:[%s14671_s3 + $0x4e8] sm:$0xff]  ;;  %v9894_v21 = vcombine.high %v6710_v46, %v6714_v36 }
 0x348   :  { %v7008_v22 = vsel %vm6585_vm0, %v7007_v45, %v6999_v55  ;;  %v10030_v41 = vcombine.high %v6846_v52, %v6850_v24  ;;  %v6702_v18 = vld [vmem:[%s14671_s3 + $0x48] sm:$0xff]  ;;  %v9893_v56 = vcombine.low %v6710_v46, %v6714_v36  ;;  %v10029_v26 = vcombine.low %v6846_v52, %v6850_v24 }
 0x349   :  { %8335 = vmatprep.mubr.bf16.mxu0 %v14048_v1  ;;  %8376 = vmatprep.mubr.bf16.mxu1 %v14050_v13  ;;  %v14055_v29 = vpack.c.b16 %v7008_v22, %v7008_v22  ;;  %v7005_v39 = vunpack.c.l.b16 %v6691_v44  ;;  %v6706_v3 = vld [vmem:[%s14671_s3 + $0x68] sm:$0xff] }
 0x34a   :  { %v6838_v58 = vld [vmem:[%s14671_s3 + $0x488] sm:$0xff]  ;;  %v9886_v28 = vcombine.high %v6702_v18, %v6706_v3  ;;  %v9885_v51 = vcombine.low %v6702_v18, %v6706_v3 }
 0x34b   :  { %8336 = vmatmul.mubr.bf16.vlgmr.msra.gmra.mxu0 %v14055_v29  ;;  %v7011_v48 = vrot.slane %v7005_v39, 7  ;;  %v6842_v60 = vld [vmem:[%s14671_s3 + $0x4a8] sm:$0xff] }
 0x34c   :  { %8386 = vmatpush1.bf16.msra.mxu0 %v9933_v5  ;;  %8417 = vmatprep.mubr.bf16.mxu0 %v14048_v1  ;;  %v9917_v5 = vcombine.low %v6734_v2, %v6738_v14  ;;  %v10022_v35 = vcombine.high %v6838_v58, %v6842_v60  ;;  %v6694_v59 = vld [vmem:[%s14671_s3 + $0x8] sm:$0xff]  ;;  %v10021_v11 = vcombine.low %v6838_v58, %v6842_v60 }
 0x34d   :  { %v7012_v0 = vsel %vm6585_vm0, %v7011_v48, %v7001_v37  ;;  %8387 = vmatprep.subr.bf16.mxu0 %v9926_v53  ;;  %v6698_v55 = vld [vmem:[%s14671_s3 + $0x28] sm:$0xff] }
 0x34e   :  { %v14075_v32 = vpack.c.b16 %v7012_v0, %v7012_v0  ;;  %v6830_v45 = vld [vmem:[%s14671_s3 + $0x448] sm:$0xff]  ;;  %v9878_v44 = vcombine.high %v6694_v59, %v6698_v55  ;;  %v9877_v48 = vcombine.low %v6694_v59, %v6698_v55 }
 0x34f   :  { %v6834_v4 = vld [vmem:[%s14671_s3 + $0x468] sm:$0xff] }
 0x350   :  { %8377 = vmatmul.mubr.bf16.vlgmr.msra.gmra.mxu1 %v14075_v32  ;;  %8388 = vmatpush1.bf16.msra.mxu0 %v9925_v40  ;;  %v10014_v22 = vcombine.high %v6830_v45, %v6834_v4  ;;  %v6814_v39 = vld [vmem:[%s14671_s3 + $0x3c8] sm:$0xff]  ;;  %v10013_v38 = vcombine.low %v6830_v45, %v6834_v4 }
 0x351   :  { %8427 = vmatpush1.bf16.msra.mxu1 %v10061_v15  ;;  %8458 = vmatprep.mubr.bf16.mxu1 %v14050_v13  ;;  %v9909_v15 = vcombine.low %v6726_v19, %v6730_v30  ;;  %v6818_v53 = vld [vmem:[%s14671_s3 + $0x3e8] sm:$0xff] }
 0x352   :  { %8428 = vmatprep.subr.bf16.mxu1 %v10054_v10  ;;  %8389 = vmatprep.subr.bf16.mxu0 %v9918_v17  ;;  %v6822_v9 = vld [vmem:[%s14671_s3 + $0x408] sm:$0xff]  ;;  %v9998_v2 = vcombine.high %v6814_v39, %v6818_v53  ;;  %v9997_v19 = vcombine.low %v6814_v39, %v6818_v53 }
 0x353   :  { %v6826_v37 = vld [vmem:[%s14671_s3 + $0x428] sm:$0xff] }
 0x354   :  { %8390 = vmatpush1.bf16.msra.mxu0 %v9917_v5  ;;  %v10006_v14 = vcombine.high %v6822_v9, %v6826_v37  ;;  %v6806_v40 = vld [vmem:[%s14671_s3 + $0x388] sm:$0xff]  ;;  %v10005_v30 = vcombine.low %v6822_v9, %v6826_v37 }
 0x355   :  { %8429 = vmatpush1.bf16.msra.mxu1 %v10053_v63  ;;  %8391 = vmatprep.subr.bf16.mxu0 %v9910_v61  ;;  %v6810_v0 = vld [vmem:[%s14671_s3 + $0x3a8] sm:$0xff] }
 0x356   :  { %8430 = vmatprep.subr.bf16.mxu1 %v10046_v31  ;;  %v6942_v10 = vld [vmem:[%s14671_s3 + $0x7c8] sm:$0xff]  ;;  %v9990_v23 = vcombine.high %v6806_v40, %v6810_v0  ;;  %v9989_v43 = vcombine.low %v6806_v40, %v6810_v0 }
 0x357   :  { %v6946_v17 = vld [vmem:[%s14671_s3 + $0x7e8] sm:$0xff] }
 0x358   :  { %8392 = vmatpush1.bf16.msra.mxu0 %v9909_v15  ;;  %v10126_v12 = vcombine.high %v6942_v10, %v6946_v17  ;;  %v6798_v5 = vld [vmem:[%s14671_s3 + $0x348] sm:$0xff]  ;;  %v10125_v34 = vcombine.low %v6942_v10, %v6946_v17 }
 0x359   :  { %8431 = vmatpush1.bf16.msra.mxu1 %v10045_v33  ;;  %8393 = vmatprep.subr.bf16.mxu0 %v9902_v50  ;;  %v6802_v63 = vld [vmem:[%s14671_s3 + $0x368] sm:$0xff] }
 0x35a   :  { %8432 = vmatprep.subr.bf16.mxu1 %v10038_v27  ;;  %v6934_v61 = vld [vmem:[%s14671_s3 + $0x788] sm:$0xff]  ;;  %v9982_v7 = vcombine.high %v6798_v5, %v6802_v63  ;;  %v9981_v46 = vcombine.low %v6798_v5, %v6802_v63 }
 0x35b   :  { %v6938_v31 = vld [vmem:[%s14671_s3 + $0x7a8] sm:$0xff] }
 0x35c   :  { %8394 = vmatpush1.bf16.msra.mxu0 %v9901_v54  ;;  %v10118_v42 = vcombine.high %v6934_v61, %v6938_v31  ;;  %v6790_v15 = vld [vmem:[%s14671_s3 + $0x308] sm:$0xff]  ;;  %v10117_v36 = vcombine.low %v6934_v61, %v6938_v31 }
 0x35d   :  { %8433 = vmatpush1.bf16.msra.mxu1 %v10037_v57  ;;  %8395 = vmatprep.subr.bf16.mxu0 %v9894_v21  ;;  %v6794_v33 = vld [vmem:[%s14671_s3 + $0x328] sm:$0xff] }
 0x35e   :  { %8434 = vmatprep.subr.bf16.mxu1 %v10030_v41  ;;  %v6926_v50 = vld [vmem:[%s14671_s3 + $0x748] sm:$0xff]  ;;  %v9974_v52 = vcombine.high %v6790_v15, %v6794_v33  ;;  %v9973_v18 = vcombine.low %v6790_v15, %v6794_v33 }
 0x35f   :  { %v6930_v27 = vld [vmem:[%s14671_s3 + $0x768] sm:$0xff] }
 0x360   :  { %8396 = vmatpush1.bf16.msra.mxu0 %v9893_v56  ;;  %v10110_v24 = vcombine.high %v6926_v50, %v6930_v27  ;;  %v6782_v54 = vld [vmem:[%s14671_s3 + $0x2c8] sm:$0xff]  ;;  %v10109_v3 = vcombine.low %v6926_v50, %v6930_v27 }
 0x361   :  { %8435 = vmatpush1.bf16.msra.mxu1 %v10029_v26  ;;  %8397 = vmatprep.subr.bf16.mxu0 %v9886_v28  ;;  %v6786_v57 = vld [vmem:[%s14671_s3 + $0x2e8] sm:$0xff] }
 0x362   :  { %8436 = vmatprep.subr.bf16.mxu1 %v10022_v35  ;;  %v6918_v21 = vld [vmem:[%s14671_s3 + $0x708] sm:$0xff]  ;;  %v9966_v58 = vcombine.high %v6782_v54, %v6786_v57  ;;  %v9965_v59 = vcombine.low %v6782_v54, %v6786_v57 }
 0x363   :  { %v6922_v41 = vld [vmem:[%s14671_s3 + $0x728] sm:$0xff] }
 0x364   :  { %8398 = vmatpush1.bf16.msra.mxu0 %v9885_v51  ;;  %v10102_v60 = vcombine.high %v6918_v21, %v6922_v41  ;;  %v6774_v56 = vld [vmem:[%s14671_s3 + $0x288] sm:$0xff]  ;;  %v10101_v55 = vcombine.low %v6918_v21, %v6922_v41 }
 0x365   :  { %8437 = vmatpush1.bf16.msra.mxu1 %v10021_v11  ;;  %8399 = vmatprep.subr.bf16.mxu0 %v9878_v44  ;;  %v6778_v26 = vld [vmem:[%s14671_s3 + $0x2a8] sm:$0xff] }
 0x366   :  { %8438 = vmatprep.subr.bf16.mxu1 %v10014_v22  ;;  %v6910_v28 = vld [vmem:[%s14671_s3 + $0x6c8] sm:$0xff]  ;;  %v9958_v45 = vcombine.high %v6774_v56, %v6778_v26  ;;  %v9957_v39 = vcombine.low %v6774_v56, %v6778_v26 }
 0x367   :  { %v6914_v35 = vld [vmem:[%s14671_s3 + $0x6e8] sm:$0xff] }
 0x368   :  { %8400 = vmatpush1.bf16.msra.mxu0 %v9877_v48  ;;  %v10094_v4 = vcombine.high %v6910_v28, %v6914_v35  ;;  %v6766_v51 = vld [vmem:[%s14671_s3 + $0x248] sm:$0xff]  ;;  %v10093_v53 = vcombine.low %v6910_v28, %v6914_v35 }
 0x369   :  { %8439 = vmatpush1.bf16.msra.mxu1 %v10013_v38  ;;  %8401 = vmatprep.subr.bf16.mxu0 %v9998_v2  ;;  %v6770_v11 = vld [vmem:[%s14671_s3 + $0x268] sm:$0xff] }
 0x36a   :  { %8440 = vmatprep.subr.bf16.mxu1 %v10006_v14  ;;  %v6902_v44 = vld [vmem:[%s14671_s3 + $0x688] sm:$0xff]  ;;  %v9950_v9 = vcombine.high %v6766_v51, %v6770_v11  ;;  %v9949_v40 = vcombine.low %v6766_v51, %v6770_v11 }
 0x36b   :  { %v6906_v22 = vld [vmem:[%s14671_s3 + $0x6a8] sm:$0xff] }
 0x36c   :  { %8402 = vmatpush2.bf16.msra.mxu0 %v9997_v19  ;;  %v10086_v37 = vcombine.high %v6902_v44, %v6906_v22  ;;  %v6758_v48 = vld [vmem:[%s14671_s3 + $0x208] sm:$0xff]  ;;  %v10085_v0 = vcombine.low %v6902_v44, %v6906_v22  ;;  %v6751_v19 = vld [vmem:[%s14671_s3 + $0x1d0] sm:$0xff] }
 0x36d   :  { %8441 = vmatpush1.bf16.msra.mxu1 %v10005_v30  ;;  %8403 = vmatprep.subr.bf16.mxu0 %v9990_v23  ;;  %v6762_v38 = vld [vmem:[%s14671_s3 + $0x228] sm:$0xff]  ;;  %v6755_v30 = vld [vmem:[%s14671_s3 + $0x1f0] sm:$0xff] }
 0x36e   :  { %8442 = vmatprep.subr.bf16.mxu1 %v10126_v12  ;;  %v6894_v2 = vld [vmem:[%s14671_s3 + $0x648] sm:$0xff]  ;;  %v9942_v10 = vcombine.high %v6758_v48, %v6762_v38  ;;  %v9941_v5 = vcombine.low %v6758_v48, %v6762_v38  ;;  %v9936_v61 = vcombine.high %v6751_v19, %v6755_v30  ;;  %v9935_v15 = vcombine.low %v6751_v19, %v6755_v30 }
 0x36f   :  { %v6898_v14 = vld [vmem:[%s14671_s3 + $0x668] sm:$0xff] }
 0x370   :  { %8404 = vmatpush2.bf16.msra.mxu0 %v9989_v43  ;;  %v10078_v17 = vcombine.high %v6894_v2, %v6898_v14  ;;  %v6886_v23 = vld [vmem:[%s14671_s3 + $0x608] sm:$0xff]  ;;  %v10077_v63 = vcombine.low %v6894_v2, %v6898_v14  ;;  %v6743_v43 = vld [vmem:[%s14671_s3 + $0x190] sm:$0xff] }
 0x371   :  { %8443 = vmatpush2.bf16.msra.mxu1 %v10125_v34  ;;  %8405 = vmatprep.subr.bf16.mxu0 %v9982_v7  ;;  %v6890_v12 = vld [vmem:[%s14671_s3 + $0x628] sm:$0xff]  ;;  %v6747_v34 = vld [vmem:[%s14671_s3 + $0x1b0] sm:$0xff] }
 0x372   :  { %8444 = vmatprep.subr.bf16.mxu1 %v10118_v42  ;;  %v10070_v31 = vcombine.high %v6886_v23, %v6890_v12  ;;  %v6879_v7 = vld [vmem:[%s14671_s3 + $0x5d0] sm:$0xff]  ;;  %v10069_v33 = vcombine.low %v6886_v23, %v6890_v12  ;;  %v9928_v50 = vcombine.high %v6743_v43, %v6747_v34  ;;  %v9927_v54 = vcombine.low %v6743_v43, %v6747_v34 }
 0x373   :  { %v6883_v42 = vld [vmem:[%s14671_s3 + $0x5f0] sm:$0xff] }
 0x374   :  { %8406 = vmatpush2.bf16.msra.mxu0 %v9981_v46  ;;  %v10064_v27 = vcombine.high %v6879_v7, %v6883_v42  ;;  %v6871_v46 = vld [vmem:[%s14671_s3 + $0x590] sm:$0xff]  ;;  %v10063_v57 = vcombine.low %v6879_v7, %v6883_v42 }
 0x375   :  { %8445 = vmatpush2.bf16.msra.mxu1 %v10117_v36  ;;  %8407 = vmatprep.subr.bf16.mxu0 %v9974_v52  ;;  %v6875_v36 = vld [vmem:[%s14671_s3 + $0x5b0] sm:$0xff] }
 0x376   :  { %8446 = vmatprep.subr.bf16.mxu1 %v10110_v24  ;;  %v6735_v52 = vld [vmem:[%s14671_s3 + $0x150] sm:$0xff]  ;;  %v10056_v21 = vcombine.high %v6871_v46, %v6875_v36  ;;  %v10055_v26 = vcombine.low %v6871_v46, %v6875_v36 }
 0x377   :  { %v6739_v24 = vld [vmem:[%s14671_s3 + $0x170] sm:$0xff] }
 0x378   :  { %8408 = vmatpush2.bf16.msra.mxu0 %v9973_v18  ;;  %v9920_v41 = vcombine.high %v6735_v52, %v6739_v24  ;;  %v6727_v18 = vld [vmem:[%s14671_s3 + $0x110] sm:$0xff]  ;;  %v9919_v56 = vcombine.low %v6735_v52, %v6739_v24 }
 0x379   :  { %8447 = vmatpush2.bf16.msra.mxu1 %v10109_v3  ;;  %8409 = vmatprep.subr.bf16.mxu0 %v9966_v58  ;;  %v6731_v3 = vld [vmem:[%s14671_s3 + $0x130] sm:$0xff] }
 0x37a   :  { %8448 = vmatprep.subr.bf16.mxu1 %v10102_v60  ;;  %v6863_v58 = vld [vmem:[%s14671_s3 + $0x550] sm:$0xff]  ;;  %v9912_v28 = vcombine.high %v6727_v18, %v6731_v3  ;;  %v9911_v51 = vcombine.low %v6727_v18, %v6731_v3 }
 0x37b   :  { %v6867_v60 = vld [vmem:[%s14671_s3 + $0x570] sm:$0xff] }
 0x37c   :  { %8410 = vmatpush2.bf16.msra.mxu0 %v9965_v59  ;;  %v10048_v35 = vcombine.high %v6863_v58, %v6867_v60  ;;  %v6719_v59 = vld [vmem:[%s14671_s3 + $0xd0] sm:$0xff]  ;;  %v10047_v11 = vcombine.low %v6863_v58, %v6867_v60 }
 0x37d   :  { %8449 = vmatpush2.bf16.msra.mxu1 %v10101_v55  ;;  %8411 = vmatprep.subr.bf16.mxu0 %v9958_v45  ;;  %v6723_v55 = vld [vmem:[%s14671_s3 + $0xf0] sm:$0xff] }
 0x37e   :  { %8450 = vmatprep.subr.bf16.mxu1 %v10094_v4  ;;  %v6855_v45 = vld [vmem:[%s14671_s3 + $0x510] sm:$0xff]  ;;  %v9904_v44 = vcombine.high %v6719_v59, %v6723_v55  ;;  %v9903_v48 = vcombine.low %v6719_v59, %v6723_v55 }
 0x37f   :  { %v6859_v4 = vld [vmem:[%s14671_s3 + $0x530] sm:$0xff] }
 0x380   :  { %8412 = vmatpush2.bf16.msra.mxu0 %v9957_v39  ;;  %v10040_v22 = vcombine.high %v6855_v45, %v6859_v4  ;;  %v6711_v39 = vld [vmem:[%s14671_s3 + $0x90] sm:$0xff]  ;;  %v10039_v38 = vcombine.low %v6855_v45, %v6859_v4 }
 0x381   :  { %8451 = vmatpush2.bf16.msra.mxu1 %v10093_v53  ;;  %8413 = vmatprep.subr.bf16.mxu0 %v9950_v9  ;;  %v6715_v53 = vld [vmem:[%s14671_s3 + $0xb0] sm:$0xff] }
 0x382   :  { %8452 = vmatprep.subr.bf16.mxu1 %v10086_v37  ;;  %v6847_v9 = vld [vmem:[%s14671_s3 + $0x4d0] sm:$0xff]  ;;  %v9896_v2 = vcombine.high %v6711_v39, %v6715_v53  ;;  %v9895_v19 = vcombine.low %v6711_v39, %v6715_v53 }
 0x383   :  { %v6851_v37 = vld [vmem:[%s14671_s3 + $0x4f0] sm:$0xff] }
 0x384   :  { %8414 = vmatpush2.bf16.msra.mxu0 %v9949_v40  ;;  %v10032_v14 = vcombine.high %v6847_v9, %v6851_v37  ;;  %v6703_v40 = vld [vmem:[%s14671_s3 + $0x50] sm:$0xff]  ;;  %v10031_v30 = vcombine.low %v6847_v9, %v6851_v37 }
 0x385   :  { %8453 = vmatpush2.bf16.msra.mxu1 %v10085_v0  ;;  %8415 = vmatprep.subr.bf16.mxu0 %v9942_v10  ;;  %v6707_v0 = vld [vmem:[%s14671_s3 + $0x70] sm:$0xff] }
 0x386   :  { %8454 = vmatprep.subr.bf16.mxu1 %v10078_v17  ;;  %v6839_v10 = vld [vmem:[%s14671_s3 + $0x490] sm:$0xff]  ;;  %v9888_v23 = vcombine.high %v6703_v40, %v6707_v0  ;;  %v9887_v43 = vcombine.low %v6703_v40, %v6707_v0 }
 0x387   :  { %v6843_v17 = vld [vmem:[%s14671_s3 + $0x4b0] sm:$0xff] }
 0x388   :  { %8416 = vmatpush2.bf16.msra.mxu0 %v9941_v5  ;;  %v10024_v12 = vcombine.high %v6839_v10, %v6843_v17  ;;  %v6695_v5 = vld [vmem:[%s14671_s3 + $0x10] sm:$0xff]  ;;  %v10023_v34 = vcombine.low %v6839_v10, %v6843_v17 }
 0x389   :  { %8455 = vmatpush2.bf16.msra.mxu1 %v10077_v63  ;;  %8467 = vmatprep.subr.bf16.mxu0 %v9936_v61  ;;  %v6699_v63 = vld [vmem:[%s14671_s3 + $0x30] sm:$0xff] }
 0x38a   :  { %8456 = vmatprep.subr.bf16.mxu1 %v10070_v31  ;;  %v6831_v61 = vld [vmem:[%s14671_s3 + $0x450] sm:$0xff]  ;;  %v9880_v7 = vcombine.high %v6695_v5, %v6699_v63  ;;  %v9879_v46 = vcombine.low %v6695_v5, %v6699_v63 }
 0x38b   :  { %8418 = vmatmul.mubr.bf16.vlgmr.msra.gmra.mxu0 %v14055_v29  ;;  %v6835_v31 = vld [vmem:[%s14671_s3 + $0x470] sm:$0xff] }
 0x38c   :  { %8468 = vmatpush1.bf16.msra.mxu0 %v9935_v15  ;;  %8499 = vmatprep.mubr.bf16.mxu0 %v14048_v1  ;;  %v10016_v42 = vcombine.high %v6831_v61, %v6835_v31  ;;  %v6815_v15 = vld [vmem:[%s14671_s3 + $0x3d0] sm:$0xff]  ;;  %v10015_v36 = vcombine.low %v6831_v61, %v6835_v31 }
 0x38d   :  { %8457 = vmatpush2.bf16.msra.mxu1 %v10069_v33  ;;  %8469 = vmatprep.subr.bf16.mxu0 %v9928_v50  ;;  %v6819_v33 = vld [vmem:[%s14671_s3 + $0x3f0] sm:$0xff] }
 0x38e   :  { %8508 = vmatprep.subr.bf16.mxu1 %v10064_v27  ;;  %v6823_v50 = vld [vmem:[%s14671_s3 + $0x410] sm:$0xff]  ;;  %v10000_v52 = vcombine.high %v6815_v15, %v6819_v33  ;;  %v9999_v18 = vcombine.low %v6815_v15, %v6819_v33 }
 0x38f   :  { %v6827_v27 = vld [vmem:[%s14671_s3 + $0x430] sm:$0xff] }
 0x390   :  { %8459 = vmatmul.mubr.bf16.vlgmr.msra.gmra.mxu1 %v14075_v32  ;;  %8470 = vmatpush1.bf16.msra.mxu0 %v9927_v54  ;;  %v10008_v24 = vcombine.high %v6823_v50, %v6827_v27  ;;  %v6807_v54 = vld [vmem:[%s14671_s3 + $0x390] sm:$0xff]  ;;  %v10007_v3 = vcombine.low %v6823_v50, %v6827_v27 }
 0x391   :  { %8509 = vmatpush1.bf16.msra.mxu1 %v10063_v57  ;;  %8540 = vmatprep.mubr.bf16.mxu1 %v14050_v13  ;;  %v6811_v57 = vld [vmem:[%s14671_s3 + $0x3b0] sm:$0xff] }
 0x392   :  { %8510 = vmatprep.subr.bf16.mxu1 %v10056_v21  ;;  %8471 = vmatprep.subr.bf16.mxu0 %v9920_v41  ;;  %v6943_v21 = vld [vmem:[%s14671_s3 + $0x7d0] sm:$0xff]  ;;  %v9992_v58 = vcombine.high %v6807_v54, %v6811_v57  ;;  %v9991_v59 = vcombine.low %v6807_v54, %v6811_v57 }
 0x393   :  { %v6947_v41 = vld [vmem:[%s14671_s3 + $0x7f0] sm:$0xff] }
 0x394   :  { %8472 = vmatpush1.bf16.msra.mxu0 %v9919_v56  ;;  %v10128_v60 = vcombine.high %v6943_v21, %v6947_v41  ;;  %v6799_v56 = vld [vmem:[%s14671_s3 + $0x350] sm:$0xff]  ;;  %v10127_v55 = vcombine.low %v6943_v21, %v6947_v41 }
 0x395   :  { %8511 = vmatpush1.bf16.msra.mxu1 %v10055_v26  ;;  %8473 = vmatprep.subr.bf16.mxu0 %v9912_v28  ;;  %v6803_v26 = vld [vmem:[%s14671_s3 + $0x370] sm:$0xff] }
 0x396   :  { %8512 = vmatprep.subr.bf16.mxu1 %v10048_v35  ;;  %v6935_v28 = vld [vmem:[%s14671_s3 + $0x790] sm:$0xff]  ;;  %v9984_v45 = vcombine.high %v6799_v56, %v6803_v26  ;;  %v9983_v39 = vcombine.low %v6799_v56, %v6803_v26 }
 0x397   :  { %v6939_v35 = vld [vmem:[%s14671_s3 + $0x7b0] sm:$0xff] }
 0x398   :  { %8474 = vmatpush1.bf16.msra.mxu0 %v9911_v51  ;;  %v10120_v4 = vcombine.high %v6935_v28, %v6939_v35  ;;  %v6791_v51 = vld [vmem:[%s14671_s3 + $0x310] sm:$0xff]  ;;  %v10119_v53 = vcombine.low %v6935_v28, %v6939_v35 }
 0x399   :  { %8513 = vmatpush1.bf16.msra.mxu1 %v10047_v11  ;;  %8475 = vmatprep.subr.bf16.mxu0 %v9904_v44  ;;  %v6795_v11 = vld [vmem:[%s14671_s3 + $0x330] sm:$0xff] }
 0x39a   :  { %8514 = vmatprep.subr.bf16.mxu1 %v10040_v22  ;;  %v6927_v44 = vld [vmem:[%s14671_s3 + $0x750] sm:$0xff]  ;;  %v9976_v9 = vcombine.high %v6791_v51, %v6795_v11  ;;  %v9975_v40 = vcombine.low %v6791_v51, %v6795_v11 }
 0x39b   :  { %v6931_v22 = vld [vmem:[%s14671_s3 + $0x770] sm:$0xff] }
 0x39c   :  { %8476 = vmatpush1.bf16.msra.mxu0 %v9903_v48  ;;  %v10112_v37 = vcombine.high %v6927_v44, %v6931_v22  ;;  %v6783_v48 = vld [vmem:[%s14671_s3 + $0x2d0] sm:$0xff]  ;;  %v10111_v0 = vcombine.low %v6927_v44, %v6931_v22 }
 0x39d   :  { %8515 = vmatpush1.bf16.msra.mxu1 %v10039_v38  ;;  %8477 = vmatprep.subr.bf16.mxu0 %v9896_v2  ;;  %v6787_v38 = vld [vmem:[%s14671_s3 + $0x2f0] sm:$0xff] }
 0x39e   :  { %8516 = vmatprep.subr.bf16.mxu1 %v10032_v14  ;;  %v6919_v2 = vld [vmem:[%s14671_s3 + $0x710] sm:$0xff]  ;;  %v9968_v10 = vcombine.high %v6783_v48, %v6787_v38  ;;  %v9967_v5 = vcombine.low %v6783_v48, %v6787_v38 }
 0x39f   :  { %v6923_v14 = vld [vmem:[%s14671_s3 + $0x730] sm:$0xff] }
 0x3a0   :  { %8478 = vmatpush1.bf16.msra.mxu0 %v9895_v19  ;;  %v10104_v17 = vcombine.high %v6919_v2, %v6923_v14  ;;  %v6775_v19 = vld [vmem:[%s14671_s3 + $0x290] sm:$0xff]  ;;  %v10103_v63 = vcombine.low %v6919_v2, %v6923_v14 }
 0x3a1   :  { %8517 = vmatpush1.bf16.msra.mxu1 %v10031_v30  ;;  %8479 = vmatprep.subr.bf16.mxu0 %v9888_v23  ;;  %v6779_v30 = vld [vmem:[%s14671_s3 + $0x2b0] sm:$0xff] }
 0x3a2   :  { %8518 = vmatprep.subr.bf16.mxu1 %v10024_v12  ;;  %v6911_v23 = vld [vmem:[%s14671_s3 + $0x6d0] sm:$0xff]  ;;  %v9960_v61 = vcombine.high %v6775_v19, %v6779_v30  ;;  %v9959_v15 = vcombine.low %v6775_v19, %v6779_v30 }
 0x3a3   :  { %v6915_v12 = vld [vmem:[%s14671_s3 + $0x6f0] sm:$0xff] }
 0x3a4   :  { %8480 = vmatpush1.bf16.msra.mxu0 %v9887_v43  ;;  %v10096_v31 = vcombine.high %v6911_v23, %v6915_v12  ;;  %v6767_v43 = vld [vmem:[%s14671_s3 + $0x250] sm:$0xff]  ;;  %v10095_v33 = vcombine.low %v6911_v23, %v6915_v12  ;;  %v6720_v12 = vld [vmem:[%s14671_s3 + $0xd8] sm:$0xff] }
 0x3a5   :  { %8519 = vmatpush1.bf16.msra.mxu1 %v10023_v34  ;;  %8481 = vmatprep.subr.bf16.mxu0 %v9880_v7  ;;  %v6771_v34 = vld [vmem:[%s14671_s3 + $0x270] sm:$0xff] }
 0x3a6   :  { %8520 = vmatprep.subr.bf16.mxu1 %v10016_v42  ;;  %v6903_v7 = vld [vmem:[%s14671_s3 + $0x690] sm:$0xff]  ;;  %v9952_v50 = vcombine.high %v6767_v43, %v6771_v34  ;;  %v9951_v54 = vcombine.low %v6767_v43, %v6771_v34 }
 0x3a7   :  { %v6907_v42 = vld [vmem:[%s14671_s3 + $0x6b0] sm:$0xff] }
 0x3a8   :  { %8482 = vmatpush1.bf16.msra.mxu0 %v9879_v46  ;;  %v10088_v27 = vcombine.high %v6903_v7, %v6907_v42  ;;  %v6759_v46 = vld [vmem:[%s14671_s3 + $0x210] sm:$0xff]  ;;  %v10087_v57 = vcombine.low %v6903_v7, %v6907_v42  ;;  %v6712_v7 = vld [vmem:[%s14671_s3 + $0x98] sm:$0xff] }
 0x3a9   :  { %8521 = vmatpush1.bf16.msra.mxu1 %v10015_v36  ;;  %8483 = vmatprep.subr.bf16.mxu0 %v10000_v52  ;;  %v6763_v36 = vld [vmem:[%s14671_s3 + $0x230] sm:$0xff]  ;;  %v6716_v42 = vld [vmem:[%s14671_s3 + $0xb8] sm:$0xff] }
 0x3aa   :  { %8522 = vmatprep.subr.bf16.mxu1 %v10008_v24  ;;  %v6895_v52 = vld [vmem:[%s14671_s3 + $0x650] sm:$0xff]  ;;  %v9944_v21 = vcombine.high %v6759_v46, %v6763_v36  ;;  %v9943_v56 = vcombine.low %v6759_v46, %v6763_v36  ;;  %v9898_v46 = vcombine.high %v6712_v7, %v6716_v42 }
 0x3ab   :  { %v6899_v24 = vld [vmem:[%s14671_s3 + $0x670] sm:$0xff] }
 0x3ac   :  { %8484 = vmatpush2.bf16.msra.mxu0 %v9999_v18  ;;  %v10080_v41 = vcombine.high %v6895_v52, %v6899_v24  ;;  %v6752_v18 = vld [vmem:[%s14671_s3 + $0x1d8] sm:$0xff]  ;;  %v10079_v26 = vcombine.low %v6895_v52, %v6899_v24 }
 0x3ad   :  { %8523 = vmatpush1.bf16.msra.mxu1 %v10007_v3  ;;  %8485 = vmatprep.subr.bf16.mxu0 %v9992_v58  ;;  %v6756_v3 = vld [vmem:[%s14671_s3 + $0x1f8] sm:$0xff]  ;;  %v6887_v58 = vld [vmem:[%s14671_s3 + $0x610] sm:$0xff] }
 0x3ae   :  { %8524 = vmatprep.subr.bf16.mxu1 %v10128_v60  ;;  %v6891_v60 = vld [vmem:[%s14671_s3 + $0x630] sm:$0xff]  ;;  %v9938_v28 = vcombine.high %v6752_v18, %v6756_v3  ;;  %v9937_v51 = vcombine.low %v6752_v18, %v6756_v3  ;;  %v6704_v52 = vld [vmem:[%s14671_s3 + $0x58] sm:$0xff] }
 0x3af   :  { %v10072_v35 = vcombine.high %v6887_v58, %v6891_v60  ;;  %v10071_v11 = vcombine.low %v6887_v58, %v6891_v60  ;;  %v6708_v24 = vld [vmem:[%s14671_s3 + $0x78] sm:$0xff] }
 0x3b0   :  { %8486 = vmatpush2.bf16.msra.mxu0 %v9991_v59  ;;  %v6744_v59 = vld [vmem:[%s14671_s3 + $0x198] sm:$0xff]  ;;  %v9890_v18 = vcombine.high %v6704_v52, %v6708_v24 }
 0x3b1   :  { %8525 = vmatpush2.bf16.msra.mxu1 %v10127_v55  ;;  %8487 = vmatprep.subr.bf16.mxu0 %v9984_v45  ;;  %v6748_v55 = vld [vmem:[%s14671_s3 + $0x1b8] sm:$0xff] }
 0x3b2   :  { %8526 = vmatprep.subr.bf16.mxu1 %v10120_v4  ;;  %v6880_v45 = vld [vmem:[%s14671_s3 + $0x5d8] sm:$0xff]  ;;  %v9930_v44 = vcombine.high %v6744_v59, %v6748_v55  ;;  %v9929_v48 = vcombine.low %v6744_v59, %v6748_v55 }
 0x3b3   :  { %v6884_v4 = vld [vmem:[%s14671_s3 + $0x5f8] sm:$0xff] }
 0x3b4   :  { %8488 = vmatpush2.bf16.msra.mxu0 %v9983_v39  ;;  %v10066_v22 = vcombine.high %v6880_v45, %v6884_v4  ;;  %v6872_v39 = vld [vmem:[%s14671_s3 + $0x598] sm:$0xff]  ;;  %v10065_v38 = vcombine.low %v6880_v45, %v6884_v4 }
 0x3b5   :  { %8527 = vmatpush2.bf16.msra.mxu1 %v10119_v53  ;;  %8489 = vmatprep.subr.bf16.mxu0 %v9976_v9  ;;  %v6876_v53 = vld [vmem:[%s14671_s3 + $0x5b8] sm:$0xff] }
 0x3b6   :  { %8528 = vmatprep.subr.bf16.mxu1 %v10112_v37  ;;  %v6736_v9 = vld [vmem:[%s14671_s3 + $0x158] sm:$0xff]  ;;  %v10058_v2 = vcombine.high %v6872_v39, %v6876_v53  ;;  %v10057_v19 = vcombine.low %v6872_v39, %v6876_v53 }
 0x3b7   :  { %v6740_v37 = vld [vmem:[%s14671_s3 + $0x178] sm:$0xff] }
 0x3b8   :  { %8490 = vmatpush2.bf16.msra.mxu0 %v9975_v40  ;;  %v9922_v14 = vcombine.high %v6736_v9, %v6740_v37  ;;  %v6728_v40 = vld [vmem:[%s14671_s3 + $0x118] sm:$0xff] }
 0x3b9   :  { %8529 = vmatpush2.bf16.msra.mxu1 %v10111_v0  ;;  %8491 = vmatprep.subr.bf16.mxu0 %v9968_v10  ;;  %v6732_v0 = vld [vmem:[%s14671_s3 + $0x138] sm:$0xff] }
 0x3ba   :  { %8530 = vmatprep.subr.bf16.mxu1 %v10104_v17  ;;  %v6864_v10 = vld [vmem:[%s14671_s3 + $0x558] sm:$0xff]  ;;  %v9921_v17 = vcombine.low %v6736_v9, %v6740_v37  ;;  %v9914_v30 = vcombine.high %v6728_v40, %v6732_v0 }
 0x3bb   :  { %v6696_v58 = vld [vmem:[%s14671_s3 + $0x18] sm:$0xff] }
 0x3bc   :  { %8492 = vmatpush2.bf16.msra.mxu0 %v9967_v5  ;;  %v6724_v5 = vld [vmem:[%s14671_s3 + $0xf8] sm:$0xff] }
 0x3bd   :  { %8531 = vmatpush2.bf16.msra.mxu1 %v10103_v63  ;;  %8493 = vmatprep.subr.bf16.mxu0 %v9960_v61  ;;  %v6856_v63 = vld [vmem:[%s14671_s3 + $0x518] sm:$0xff]  ;;  %v9913_v61 = vcombine.low %v6728_v40, %v6732_v0  ;;  %v9906_v43 = vcombine.high %v6720_v12, %v6724_v5 }
 0x3be   :  { %8532 = vmatprep.subr.bf16.mxu1 %v10096_v31  ;;  %v6700_v60 = vld [vmem:[%s14671_s3 + $0x38] sm:$0xff] }
 0x3bf   :  { %v9882_v59 = vcombine.high %v6696_v58, %v6700_v60  ;;  %v6816_v45 = vld [vmem:[%s14671_s3 + $0x3d8] sm:$0xff] }
 0x3c0   :  { %8494 = vmatpush2.bf16.msra.mxu0 %v9959_v15  ;;  %v6848_v15 = vld [vmem:[%s14671_s3 + $0x4d8] sm:$0xff] }
 0x3c1   :  { %8533 = vmatpush2.bf16.msra.mxu1 %v10095_v33  ;;  %8495 = vmatprep.subr.bf16.mxu0 %v9952_v50  ;;  %v6852_v33 = vld [vmem:[%s14671_s3 + $0x4f8] sm:$0xff]  ;;  %v9905_v50 = vcombine.low %v6720_v12, %v6724_v5 }
 0x3c2   :  { %8534 = vmatprep.subr.bf16.mxu1 %v10088_v27  ;;  %v10034_v36 = vcombine.high %v6848_v15, %v6852_v33  ;;  %v6820_v4 = vld [vmem:[%s14671_s3 + $0x3f8] sm:$0xff] }
 0x3c3   :  { %v10002_v39 = vcombine.high %v6816_v45, %v6820_v4  ;;  %v6808_v9 = vld [vmem:[%s14671_s3 + $0x398] sm:$0xff] }
 0x3c4   :  { %8496 = vmatpush2.bf16.msra.mxu0 %v9951_v54  ;;  %v6840_v54 = vld [vmem:[%s14671_s3 + $0x498] sm:$0xff] }
 0x3c5   :  { %8535 = vmatpush2.bf16.msra.mxu1 %v10087_v57  ;;  %8497 = vmatprep.subr.bf16.mxu0 %v9944_v21  ;;  %v6844_v57 = vld [vmem:[%s14671_s3 + $0x4b8] sm:$0xff]  ;;  %v9897_v21 = vcombine.low %v6712_v7, %v6716_v42 }
 0x3c6   :  { %8536 = vmatprep.subr.bf16.mxu1 %v10080_v41  ;;  %v10033_v41 = vcombine.low %v6848_v15, %v6852_v33  ;;  %v10026_v3 = vcombine.high %v6840_v54, %v6844_v57  ;;  %v6812_v37 = vld [vmem:[%s14671_s3 + $0x3b8] sm:$0xff] }
 0x3c7   :  { %v9994_v40 = vcombine.high %v6808_v9, %v6812_v37  ;;  %v6784_v15 = vld [vmem:[%s14671_s3 + $0x2d8] sm:$0xff] }
 0x3c8   :  { %8498 = vmatpush2.bf16.msra.mxu0 %v9943_v56  ;;  %v6832_v56 = vld [vmem:[%s14671_s3 + $0x458] sm:$0xff] }
 0x3c9   :  { %8537 = vmatpush2.bf16.msra.mxu1 %v10079_v26  ;;  %8549 = vmatprep.subr.bf16.mxu0 %v9938_v28  ;;  %v6836_v26 = vld [vmem:[%s14671_s3 + $0x478] sm:$0xff]  ;;  %v9889_v28 = vcombine.low %v6704_v52, %v6708_v24 }
 0x3ca   :  { %8538 = vmatprep.subr.bf16.mxu1 %v10072_v35  ;;  %v10025_v35 = vcombine.low %v6840_v54, %v6844_v57  ;;  %v10018_v55 = vcombine.high %v6832_v56, %v6836_v26  ;;  %v6788_v33 = vld [vmem:[%s14671_s3 + $0x2f8] sm:$0xff] }
 0x3cb   :  { %8500 = vmatmul.mubr.bf16.vlgmr.msra.gmra.mxu0 %v14055_v29  ;;  %v9970_v52 = vcombine.high %v6784_v15, %v6788_v33  ;;  %v6776_v54 = vld [vmem:[%s14671_s3 + $0x298] sm:$0xff] }
 0x3cc   :  { %8550 = vmatpush1.bf16.msra.mxu0 %v9937_v51  ;;  %8581 = vmatprep.mubr.bf16.mxu0 %v14048_v1  ;;  %v6868_v1 = vld [vmem:[%s14671_s3 + $0x578] sm:$0xff] }
 0x3cd   :  { %8539 = vmatpush2.bf16.msra.mxu1 %v10071_v11  ;;  %8551 = vmatprep.subr.bf16.mxu0 %v9930_v44  ;;  %v10050_v23 = vcombine.high %v6864_v10, %v6868_v1  ;;  %v10049_v31 = vcombine.low %v6864_v10, %v6868_v1  ;;  %v6824_v51 = vld [vmem:[%s14671_s3 + $0x418] sm:$0xff]  ;;  %v9881_v44 = vcombine.low %v6696_v58, %v6700_v60 }
 0x3ce   :  { %8590 = vmatprep.subr.bf16.mxu1 %v10066_v22  ;;  %v6828_v11 = vld [vmem:[%s14671_s3 + $0x438] sm:$0xff]  ;;  %v10017_v22 = vcombine.low %v6832_v56, %v6836_v26 }
 0x3cf   :  { %v10010_v53 = vcombine.high %v6824_v51, %v6828_v11  ;;  %v6800_v10 = vld [vmem:[%s14671_s3 + $0x358] sm:$0xff] }
 0x3d0   :  { %8541 = vmatmul.mubr.bf16.vlgmr.msra.gmra.mxu1 %v14075_v32  ;;  %8552 = vmatpush1.bf16.msra.mxu0 %v9929_v48  ;;  %v6944_v48 = vld [vmem:[%s14671_s3 + $0x7d8] sm:$0xff] }
 0x3d1   :  { %8591 = vmatpush1.bf16.msra.mxu1 %v10065_v38  ;;  %8622 = vmatprep.mubr.bf16.mxu1 %v14050_v13  ;;  %v6860_v13 = vld [vmem:[%s14671_s3 + $0x538] sm:$0xff] }
 0x3d2   :  { %8592 = vmatprep.subr.bf16.mxu1 %v10058_v2  ;;  %8553 = vmatprep.subr.bf16.mxu0 %v9922_v14  ;;  %v10042_v34 = vcombine.high %v6856_v63, %v6860_v13  ;;  %v10041_v27 = vcombine.low %v6856_v63, %v6860_v13  ;;  %v6948_v38 = vld [vmem:[%s14671_s3 + $0x7f8] sm:$0xff]  ;;  %v10001_v2 = vcombine.low %v6816_v45, %v6820_v4 }
 0x3d3   :  { %v10009_v14 = vcombine.low %v6824_v51, %v6828_v11  ;;  %v10130_v0 = vcombine.high %v6944_v48, %v6948_v38  ;;  %v6804_v1 = vld [vmem:[%s14671_s3 + $0x378] sm:$0xff] }
 0x3d4   :  { %8554 = vmatpush1.bf16.msra.mxu0 %v9921_v17  ;;  %v6936_v17 = vld [vmem:[%s14671_s3 + $0x798] sm:$0xff]  ;;  %v9986_v12 = vcombine.high %v6800_v10, %v6804_v1 }
 0x3d5   :  { %8593 = vmatpush1.bf16.msra.mxu1 %v10057_v19  ;;  %8555 = vmatprep.subr.bf16.mxu0 %v9914_v30  ;;  %v6940_v19 = vld [vmem:[%s14671_s3 + $0x7b8] sm:$0xff]  ;;  %v9993_v30 = vcombine.low %v6808_v9, %v6812_v37 }
 0x3d6   :  { %8594 = vmatprep.subr.bf16.mxu1 %v10050_v23  ;;  %v10129_v23 = vcombine.low %v6944_v48, %v6948_v38  ;;  %v10122_v5 = vcombine.high %v6936_v17, %v6940_v19  ;;  %v6792_v63 = vld [vmem:[%s14671_s3 + $0x318] sm:$0xff] }
 0x3d7   :  { %v6796_v13 = vld [vmem:[%s14671_s3 + $0x338] sm:$0xff] }
 0x3d8   :  { %8556 = vmatpush1.bf16.msra.mxu0 %v9913_v61  ;;  %v6928_v61 = vld [vmem:[%s14671_s3 + $0x758] sm:$0xff]  ;;  %v9978_v7 = vcombine.high %v6792_v63, %v6796_v13 }
 0x3d9   :  { %8595 = vmatpush1.bf16.msra.mxu1 %v10049_v31  ;;  %8557 = vmatprep.subr.bf16.mxu0 %v9906_v43  ;;  %v6932_v31 = vld [vmem:[%s14671_s3 + $0x778] sm:$0xff]  ;;  %v9985_v43 = vcombine.low %v6800_v10, %v6804_v1 }
 0x3da   :  { %8596 = vmatprep.subr.bf16.mxu1 %v10042_v34  ;;  %v10121_v34 = vcombine.low %v6936_v17, %v6940_v19  ;;  %v10114_v42 = vcombine.high %v6928_v61, %v6932_v31  ;;  %v6780_v57 = vld [vmem:[%s14671_s3 + $0x2b8] sm:$0xff] }
 0x3db   :  { %v9962_v58 = vcombine.high %v6776_v54, %v6780_v57  ;;  %v6768_v56 = vld [vmem:[%s14671_s3 + $0x258] sm:$0xff] }
 0x3dc   :  { %8558 = vmatpush1.bf16.msra.mxu0 %v9905_v50  ;;  %v6920_v50 = vld [vmem:[%s14671_s3 + $0x718] sm:$0xff] }
 0x3dd   :  { %8597 = vmatpush1.bf16.msra.mxu1 %v10041_v27  ;;  %8559 = vmatprep.subr.bf16.mxu0 %v9898_v46  ;;  %v6924_v27 = vld [vmem:[%s14671_s3 + $0x738] sm:$0xff]  ;;  %v9977_v46 = vcombine.low %v6792_v63, %v6796_v13 }
 0x3de   :  { %8598 = vmatprep.subr.bf16.mxu1 %v10034_v36  ;;  %v10113_v36 = vcombine.low %v6928_v61, %v6932_v31  ;;  %v10106_v24 = vcombine.high %v6920_v50, %v6924_v27  ;;  %v6772_v26 = vld [vmem:[%s14671_s3 + $0x278] sm:$0xff] }
 0x3df   :  { %v9954_v45 = vcombine.high %v6768_v56, %v6772_v26  ;;  %v6760_v51 = vld [vmem:[%s14671_s3 + $0x218] sm:$0xff] }
 0x3e0   :  { %8560 = vmatpush1.bf16.msra.mxu0 %v9897_v21  ;;  %v6912_v21 = vld [vmem:[%s14671_s3 + $0x6d8] sm:$0xff] }
 0x3e1   :  { %8599 = vmatpush1.bf16.msra.mxu1 %v10033_v41  ;;  %8561 = vmatprep.subr.bf16.mxu0 %v9890_v18  ;;  %v6916_v41 = vld [vmem:[%s14671_s3 + $0x6f8] sm:$0xff]  ;;  %v9969_v18 = vcombine.low %v6784_v15, %v6788_v33 }
 0x3e2   :  { %8600 = vmatprep.subr.bf16.mxu1 %v10026_v3  ;;  %v10105_v3 = vcombine.low %v6920_v50, %v6924_v27  ;;  %v10098_v60 = vcombine.high %v6912_v21, %v6916_v41  ;;  %v6764_v11 = vld [vmem:[%s14671_s3 + $0x238] sm:$0xff] }
 0x3e3   :  { %v9946_v9 = vcombine.high %v6760_v51, %v6764_v11  ;;  %v6888_v48 = vld [vmem:[%s14671_s3 + $0x618] sm:$0xff] }
 0x3e4   :  { %8562 = vmatpush1.bf16.msra.mxu0 %v9889_v28  ;;  %v6904_v28 = vld [vmem:[%s14671_s3 + $0x698] sm:$0xff] }
 0x3e5   :  { %8601 = vmatpush1.bf16.msra.mxu1 %v10025_v35  ;;  %8563 = vmatprep.subr.bf16.mxu0 %v9882_v59  ;;  %v6908_v35 = vld [vmem:[%s14671_s3 + $0x6b8] sm:$0xff]  ;;  %v9961_v59 = vcombine.low %v6776_v54, %v6780_v57 }
 0x3e6   :  { %8602 = vmatprep.subr.bf16.mxu1 %v10018_v55  ;;  %v10097_v55 = vcombine.low %v6912_v21, %v6916_v41  ;;  %v10090_v4 = vcombine.high %v6904_v28, %v6908_v35  ;;  %v6892_v38 = vld [vmem:[%s14671_s3 + $0x638] sm:$0xff] }
 0x3e7   :  { %v10073_v10 = vcombine.low %v6888_v48, %v6892_v38 }
 0x3e8   :  { %8564 = vmatpush1.bf16.msra.mxu0 %v9881_v44  ;;  %v6896_v44 = vld [vmem:[%s14671_s3 + $0x658] sm:$0xff] }
 0x3e9   :  { %8603 = vmatpush1.bf16.msra.mxu1 %v10017_v22  ;;  %8565 = vmatprep.subr.bf16.mxu0 %v10002_v39  ;;  %v6900_v22 = vld [vmem:[%s14671_s3 + $0x678] sm:$0xff]  ;;  %v9953_v39 = vcombine.low %v6768_v56, %v6772_v26  ;;  %s11140_s3 = smov [#allocation2]  }
 0x3ea   :  { %8604 = vmatprep.subr.bf16.mxu1 %v10010_v53  ;;  %v10089_v53 = vcombine.low %v6904_v28, %v6908_v35  ;;  %v10082_v37 = vcombine.high %v6896_v44, %v6900_v22 }
 0x3ec   :  { %8566 = vmatpush2.bf16.msra.mxu0 %v10001_v2  ;;  %v9945_v2 = vcombine.low %v6760_v51, %v6764_v11 }
 0x3ed   :  { %8605 = vmatpush1.bf16.msra.mxu1 %v10009_v14  ;;  %8567 = vmatprep.subr.bf16.mxu0 %v9994_v40  ;;  %v10081_v14 = vcombine.low %v6896_v44, %v6900_v22  ;;  %v10074_v40 = vcombine.high %v6888_v48, %v6892_v38 }
 0x3ee   :  { %8606 = vmatprep.subr.bf16.mxu1 %v10130_v0  ;;  %v14639_v0 = vld [vmem:[%s14672_s4] sm:$0xff]  ;;  %s8683_s4 = sshll.u32 %s11140_s3, 4  ;;  %s8684_s4 = int_to_ptr.vmem [resolvable:$true] %s8683_s4 }
 0x3ef   :  { %v6954_v1 = vrot.slane %v14639_v0, %v13801_v16  ;;  %v6958_v19 = vrot.slane %v14639_v0, %v6235_v8  ;;  %v6966_v8 = vrot.slane %v14639_v0, %v6243_v6  ;;  %v6973_v6 = vsub.s32 5, %v11306_v49  ;;  %s11117_s21 = scalar_lea.vmem %s8684_s4, 256  ;;  %p11122_p1 = scmp.lt.s32.totalorder %s8684_s4, %s8684_s4 }
 0x3f0   :  { %8568 = vmatpush2.bf16.msra.mxu0 %v9993_v30  ;;  %p11118_p0 = scmp.ne.s32.totalorder %s8684_s4, %s11117_s21  ;;  %p11123_p2 = scmp.lt.s32.totalorder %s11117_s21, %s11117_s21 }
 0x3f1   :  { %8607 = vmatpush2.bf16.msra.mxu1 %v10129_v23  ;;  %8569 = vmatprep.subr.bf16.mxu0 %v9986_v12 }
 0x3f2   :  { %8608 = vmatprep.subr.bf16.mxu1 %v10122_v5  ;;  %p11124_p3 = por %p11123_p2, %p11122_p1 }
 0x3f4   :  { %8570 = vmatpush2.bf16.msra.mxu0 %v9985_v43  ;;  %p11125_p4 = pnand %p11124_p3, %p11118_p0 }
 0x3f5   :  { %8609 = vmatpush2.bf16.msra.mxu1 %v10121_v34  ;;  %8571 = vmatprep.subr.bf16.mxu0 %v9978_v7  ;;  %v6962_v7 = vrot.slane %v14639_v0, %v13905_v20 }
 0x3f6   :  { %8610 = vmatprep.subr.bf16.mxu1 %v10114_v42 }
 0x3f8   :  { %8572 = vmatpush2.bf16.msra.mxu0 %v9977_v46 }
 0x3f9   :  { %8611 = vmatpush2.bf16.msra.mxu1 %v10113_v36  ;;  %8573 = vmatprep.subr.bf16.mxu0 %v9970_v52 }
 0x3fa   :  { %8612 = vmatprep.subr.bf16.mxu1 %v10106_v24 }
 0x3fc   :  { %8574 = vmatpush2.bf16.msra.mxu0 %v9969_v18 }
 0x3fd   :  { %8613 = vmatpush2.bf16.msra.mxu1 %v10105_v3  ;;  %8575 = vmatprep.subr.bf16.mxu0 %v9962_v58  ;;  %v6970_v3 = vrot.slane %v14639_v0, %v13953_v25  ;;  %v6978_v25 = vrot.slane %v14639_v0, %v13956_v62 }
 0x3fe   :  { %8614 = vmatprep.subr.bf16.mxu1 %v10098_v60  ;;  %v6974_v60 = vrot.slane %v14639_v0, %v6973_v6 }
 0x400   :  { %8576 = vmatpush2.bf16.msra.mxu0 %v9961_v59 }
 0x401   :  { %8615 = vmatpush2.bf16.msra.mxu1 %v10097_v55  ;;  %8577 = vmatprep.subr.bf16.mxu0 %v9954_v45 }
 0x402   :  { %8616 = vmatprep.subr.bf16.mxu1 %v10090_v4 }
 0x404   :  { %8578 = vmatpush2.bf16.msra.mxu0 %v9953_v39  ;;  %v6981_v39 = vsub.s32 7, %v11306_v49 }
 0x405   :  { %8617 = vmatpush2.bf16.msra.mxu1 %v10089_v53  ;;  %8579 = vmatprep.subr.bf16.mxu0 %v9946_v9 }
 0x406   :  { %8618 = vmatprep.subr.bf16.mxu1 %v10082_v37  ;;  %v6982_v9 = vrot.slane %v14639_v0, %v6981_v39 }
 0x408   :  { %8580 = vmatpush2.bf16.msra.mxu0 %v9945_v2 }
 0x409   :  { %8619 = vmatpush2.bf16.msra.mxu1 %v10081_v14 }
 0x40a   :  { %8620 = vmatprep.subr.bf16.mxu1 %v10074_v40 }
 0x40b   :  { %8582 = vmatmul.mubr.bf16.vlgmr.msra.gmra.mxu0 %v14055_v29  ;;  %v8337_v17 = vpop.f32.mrf.mxu0 }
 0x40c   :  { %v8338_v30 = vadd.f32 %v8337_v17, %v6954_v1 }
 0x40d   :  { %8621 = vmatpush2.bf16.msra.mxu1 %v10073_v10  ;;  %v8339_v23 = vpop.f32.mrf.mxu0 }
 0x40e   :  { %v8340_v12 = vadd.f32 %v8339_v23, %v6958_v19 }
 0x40f   :  { %v8341_v5 = vpop.f32.mrf.mxu0 }
 0x410   :  { %8623 = vmatmul.mubr.bf16.vlgmr.msra.gmra.mxu1 %v14075_v32  ;;  %v8378_v63 = vpop.f32.mrf.mxu1 }
 0x411   :  { %v8379_v13 = vadd.f32 %v8378_v63, %v8338_v30  ;;  %v8342_v61 = vpop.f32.mrf.mxu0 }
 0x412   :  { %v8380_v31 = vpop.f32.mrf.mxu1 }
 0x413   :  { %v8381_v16 = vadd.f32 %v8380_v31, %v8340_v12 }
 0x414   :  { %v8382_v43 = vpop.f32.mrf.mxu1 }
 0x415   :  { %v8639_v34 = vcombine.low %v8379_v13, %v8381_v16 }
 0x416   :  { %v8383_v29 = vpop.f32.mrf.mxu1 }
 0x417   :  { %v8647_v41 = vrot.slane %v8639_v34, %v14695_v47 }
 0x44b   :  { %v8419_v42 = vpop.f32.mrf.mxu0 }
 0x44c   :  { %v8420_v33 = vadd.f32 %v8419_v42, %v6962_v7 }
 0x44d   :  { %v8421_v15 = vpop.f32.mrf.mxu0 }
 0x44e   :  { %v8422_v50 = vadd.f32 %v8421_v15, %v6966_v8 }
 0x44f   :  { %v8423_v32 = vpop.f32.mrf.mxu0 }
 0x450   :  { %v8460_v27 = vpop.f32.mrf.mxu1 }
 0x451   :  { %v8424_v46 = vpop.f32.mrf.mxu0  ;;  %v8461_v52 = vadd.f32 %v8460_v27, %v8420_v33 }
 0x452   :  { %v8462_v36 = vpop.f32.mrf.mxu1 }
 0x453   :  { %v8463_v24 = vadd.f32 %v8462_v36, %v8422_v50 }
 0x454   :  { %v8464_v54 = vpop.f32.mrf.mxu1 }
 0x455   :  { %v8640_v57 = vcombine.low %v8461_v52, %v8463_v24 }
 0x456   :  { %v8465_v21 = vpop.f32.mrf.mxu1 }
 0x457   :  { %v8654_v20 = vrot.slane %v8640_v57, %v14695_v47 }
 0x459   :  { %v8655_v18 = vcombine.low %v8647_v41, %v8654_v20 }
 0x45b   :  { %8675 = vst [vmem:[#allocation2] sm:$0xff] %v8655_v18 }
 0x48b   :  { %v8501_v58 = vpop.f32.mrf.mxu0 }
 0x48c   :  { %v8502_v56 = vadd.f32 %v8501_v58, %v6970_v3 }
 0x48d   :  { %v8503_v26 = vpop.f32.mrf.mxu0 }
 0x48e   :  { %v8504_v28 = vadd.f32 %v8503_v26, %v6974_v60 }
 0x48f   :  { %v8505_v35 = vpop.f32.mrf.mxu0 }
 0x490   :  { %v8542_v59 = vpop.f32.mrf.mxu1 }
 0x491   :  { %v8543_v55 = vadd.f32 %v8542_v59, %v8502_v56  ;;  %v8506_v45 = vpop.f32.mrf.mxu0 }
 0x492   :  { %v8544_v4 = vpop.f32.mrf.mxu1 }
 0x493   :  { %v8545_v51 = vadd.f32 %v8544_v4, %v8504_v28 }
 0x494   :  { %v8546_v11 = vpop.f32.mrf.mxu1 }
 0x495   :  { %v8656_v44 = vcombine.low %v8543_v55, %v8545_v51 }
 0x496   :  { %v8547_v22 = vpop.f32.mrf.mxu1 }
 0x497   :  { %v8664_v49 = vrot.slane %v8656_v44, %v14695_v47 }
 0x4cb   :  { %v8583_v53 = vpop.f32.mrf.mxu0 }
 0x4cc   :  { %v8584_v48 = vadd.f32 %v8583_v53, %v6978_v25 }
 0x4cd   :  { %v8585_v37 = vpop.f32.mrf.mxu0 }
 0x4ce   :  { %v8586_v38 = vadd.f32 %v8585_v37, %v6982_v9 }
 0x4cf   :  { %v8587_v2 = vpop.f32.mrf.mxu0 }
 0x4d0   :  { %v8624_v14 = vpop.f32.mrf.mxu1 }
 0x4d1   :  { %v8588_v40 = vpop.f32.mrf.mxu0  ;;  %v8625_v1 = vadd.f32 %v8624_v14, %v8584_v48 }
 0x4d2   :  { %v8626_v10 = vpop.f32.mrf.mxu1 }
 0x4d3   :  { %v8627_v17 = vadd.f32 %v8626_v10, %v8586_v38 }
 0x4d4   :  { %v8628_v19 = vpop.f32.mrf.mxu1 }
 0x4d5   :  { %v8657_v30 = vcombine.low %v8625_v1, %v8627_v17 }
 0x4d6   :  { %v8629_v23 = vpop.f32.mrf.mxu1 }
 0x4d7   :  { %v8671_v62 = vrot.slane %v8657_v30, %v14695_v47 }
 0x4d9   :  { %v8672_v12 = vcombine.low %v8664_v49, %v8671_v62 }
 0x4db   :  { %8676 = vst [vmem:[#allocation2 + $0x8] sm:$0xff] %v8672_v12 }
 0x4dc   :  { %11128 = shalt.err (!%p11125_p4)
}
 0x4dd   :  { %8686 = dma.vmem_to_hbm [thread:$0]  %s8684_s4, 256, %s14673_s5, [#allocation3]  }
 0x4de   :  { %11137 = dma.done.wait [#allocation3], 256  }
 0x4df   :  { %11138 = vsyncadd [#allocation3], 4294967040 }
 0x4e0   :  { %8690 = vsyncpa [#allocation3], 1 }

</bundles_post_ra>
